<compile_context>
chip_gen: v5e
topology: v5e:2x2
jax: 0.10.0
libtpu: 0.0.40
codegen_flags: <defaults>
</compile_context>

<pallas_src>
import functools

import jax
import jax.numpy as jnp
from jax.experimental import pallas as pl
from jax.experimental.pallas import tpu as pltpu


def inception_kernel(x_ref,
                     w1x1_ref, b1x1_ref,
                     w2_ref, b2_ref,
                     w3_ref, b3_ref,
                     w4_ref, b4_ref,
                     o_ref,
                     *, C1, R3, C3, R5, C5, C4):
    # x_ref block: (1, H, W, Cin)
    H, W, Cin = x_ref.shape[1], x_ref.shape[2], x_ref.shape[3]
    x = x_ref[0].astype(jnp.float32)                       # (H, W, Cin)
    xf_bf = x.reshape(H * W, Cin).astype(jnp.bfloat16)

    # ---- fused 1x1 convs (branch1 + branch2-reduce + branch3-reduce) ----
    y = jnp.dot(xf_bf, w1x1_ref[...],
                preferred_element_type=jnp.float32) + b1x1_ref[...]
    y = jnp.maximum(y, 0.0)                                # (H*W, C1+R3+R5)
    br1 = y[:, :C1]
    r2 = y[:, C1:C1 + R3]
    r3 = y[:, C1 + R3:C1 + R3 + R5]

    # branch 1: store directly into its channel slice of the output.
    o_ref[0, :, :, 0:C1] = br1.reshape(H, W, C1).astype(o_ref.dtype)

    # ---- branch 2: 3x3 conv (pad=1) via one im2col matmul, K = 9*R3 ----
    r2p = jnp.pad(r2.reshape(H, W, R3), ((1, 1), (1, 1), (0, 0))).astype(jnp.bfloat16)
    p2 = jnp.concatenate(
        [r2p[dy:dy + H, dx:dx + W, :] for dy in range(3) for dx in range(3)],
        axis=-1).reshape(H * W, 9 * R3)
    br2 = jnp.maximum(
        jnp.dot(p2, w2_ref[...], preferred_element_type=jnp.float32) + b2_ref[...],
        0.0)                                               # (H*W, C3)
    o_ref[0, :, :, C1:C1 + C3] = br2.reshape(H, W, C3).astype(o_ref.dtype)

    # ---- branch 3: 5x5 conv (pad=2) via one im2col matmul, K = 25*R5 ----
    r3p = jnp.pad(r3.reshape(H, W, R5), ((2, 2), (2, 2), (0, 0))).astype(jnp.bfloat16)
    p3 = jnp.concatenate(
        [r3p[dy:dy + H, dx:dx + W, :] for dy in range(5) for dx in range(5)],
        axis=-1).reshape(H * W, 25 * R5)
    br3 = jnp.maximum(
        jnp.dot(p3, w3_ref[...], preferred_element_type=jnp.float32) + b3_ref[...],
        0.0)                                               # (H*W, C5)
    o_ref[0, :, :, C1 + C3:C1 + C3 + C5] = br3.reshape(H, W, C5).astype(o_ref.dtype)

    # ---- branch 4: 3x3 max-pool (stride 1, pad 1) -> 1x1 conv + ReLU ----
    xp = jnp.pad(x, ((1, 1), (1, 1), (0, 0)), constant_values=-jnp.inf)
    pooled = x                                             # center tap
    for dy in range(3):
        for dx in range(3):
            if dy == 1 and dx == 1:
                continue
            pooled = jnp.maximum(pooled, xp[dy:dy + H, dx:dx + W, :])
    br4 = jnp.maximum(
        jnp.dot(pooled.reshape(H * W, Cin).astype(jnp.bfloat16), w4_ref[...],
                preferred_element_type=jnp.float32) + b4_ref[...],
        0.0)                                               # (H*W, C4)
    o_ref[0, :, :, C1 + C3 + C5:C1 + C3 + C5 + C4] = (
        br4.reshape(H, W, C4).astype(o_ref.dtype))


def inception_forward(x_nchw, params):
    """x_nchw: (N, Cin, H, W).  Returns (N, Ctot, H, W) like the PyTorch module."""
    (w1, b1, w2r, b2r, w2, b2, w3r, b3r, w3, b3, w4, b4) = params
    N, Cin, H, W = x_nchw.shape
    x = jnp.transpose(x_nchw, (0, 2, 3, 1))                # NHWC

    C1, R3, C3 = w1.shape[-1], w2r.shape[-1], w2.shape[-1]
    R5, C5, C4 = w3r.shape[-1], w3.shape[-1], w4.shape[-1]
    Ctot = C1 + C3 + C5 + C4

    # Wrapper-side weight prep: fuse the three 1x1 weights; flatten KxK conv
    # weights into im2col layout; cast matmul operands to bf16 (f32 biases).
    w1x1 = jnp.concatenate([w1, w2r, w3r], axis=-1).astype(jnp.bfloat16)  # (Cin, C1+R3+R5)
    b1x1 = jnp.concatenate([b1, b2r, b3r], axis=-1).astype(jnp.float32)   # (1, C1+R3+R5)
    w2f = w2.reshape(9 * R3, C3).astype(jnp.bfloat16)
    w3f = w3.reshape(25 * R5, C5).astype(jnp.bfloat16)
    w4b = w4.astype(jnp.bfloat16)
    b2f = b2.astype(jnp.float32)
    b3f = b3.astype(jnp.float32)
    b4f = b4.astype(jnp.float32)
    weights = (w1x1, b1x1, w2f, b2f, w3f, b3f, w4b, b4f)

    def full_spec(shape):
        n = len(shape)
        return pl.BlockSpec(shape, lambda b, n=n: (0,) * n)

    in_specs = [pl.BlockSpec((1, H, W, Cin), lambda b: (b, 0, 0, 0))]
    in_specs += [full_spec(p.shape) for p in weights]

    kernel = functools.partial(inception_kernel,
                               C1=C1, R3=R3, C3=C3, R5=R5, C5=C5, C4=C4)

    out = pl.pallas_call(
        kernel,
        out_shape=jax.ShapeDtypeStruct((N, H, W, Ctot), x.dtype),
        grid=(N,),
        in_specs=in_specs,
        out_specs=pl.BlockSpec((1, H, W, Ctot), lambda b: (b, 0, 0, 0)),
        compiler_params=pltpu.CompilerParams(
            dimension_semantics=("parallel",),
            vmem_limit_bytes=64 << 20),
    )(x, *weights)

    return jnp.transpose(out, (0, 3, 1, 2))                # back to NCHW


# ---------------- pure-JAX reference (XLA convs) for verification ----------------
def _conv_ref(x_nhwc, w_hwio, b, pad):
    y = jax.lax.conv_general_dilated(
        x_nhwc, w_hwio, window_strides=(1, 1),
        padding=[(pad, pad), (pad, pad)],
        dimension_numbers=('NHWC', 'HWIO', 'NHWC'))
    return y + b


def inception_reference(x_nchw, params):
    (w1, b1, w2r, b2r, w2, b2, w3r, b3r, w3, b3, w4, b4) = params
    x = jnp.transpose(x_nchw, (0, 2, 3, 1))
    to_hwio_1x1 = lambda w: w.reshape(1, 1, *w.shape)
    relu = lambda v: jnp.maximum(v, 0.0)

    br1 = relu(_conv_ref(x, to_hwio_1x1(w1), b1, 0))
    br2 = relu(_conv_ref(relu(_conv_ref(x, to_hwio_1x1(w2r), b2r, 0)), w2, b2, 1))
    br3 = relu(_conv_ref(relu(_conv_ref(x, to_hwio_1x1(w3r), b3r, 0)), w3, b3, 2))
    pooled = jax.lax.reduce_window(
        x, -jnp.inf, jax.lax.max, (1, 3, 3, 1), (1, 1, 1, 1),
        [(0, 0), (1, 1), (1, 1), (0, 0)])
    br4 = relu(_conv_ref(pooled, to_hwio_1x1(w4), b4, 0))
    out = jnp.concatenate([br1, br2, br3, br4], axis=-1)
    return jnp.transpose(out, (0, 3, 1, 2))


if __name__ == "__main__":
    # Module config (small, consistent with the PyTorch __init__):
    in_channels = 4
    out_1x1, red_3x3, out_3x3 = 8, 4, 8
    red_5x5, out_5x5, pool_proj = 4, 8, 8
    N, H, W = 2, 16, 16

    key = jax.random.PRNGKey(0)
    keys = jax.random.split(key, 13)

    def w_init(k, shape):
        return jax.random.normal(k, shape, dtype=jnp.float32) * 0.1

    # 1x1 conv weights stored as (Cin, Cout); KxK conv weights as (K, K, Cin, Cout).
    # Biases stored as (1, Cout) rows for in-kernel broadcasting.
    w1  = w_init(keys[0], (in_channels, out_1x1));    b1  = w_init(keys[1], (1, out_1x1))
    w2r = w_init(keys[2], (in_channels, red_3x3));    b2r = w_init(keys[3], (1, red_3x3))
    w2  = w_init(keys[4], (3, 3, red_3x3, out_3x3));  b2  = w_init(keys[5], (1, out_3x3))
    w3r = w_init(keys[6], (in_channels, red_5x5));    b3r = w_init(keys[7], (1, red_5x5))
    w3  = w_init(keys[8], (5, 5, red_5x5, out_5x5));  b3  = w_init(keys[9], (1, out_5x5))
    w4  = w_init(keys[10], (in_channels, pool_proj)); b4  = w_init(keys[11], (1, pool_proj))
    params = (w1, b1, w2r, b2r, w2, b2, w3r, b3r, w3, b3, w4, b4)

    x = jax.random.normal(keys[12], (N, in_channels, H, W), dtype=jnp.float32)

    out = jax.block_until_ready(inception_forward(x, params))
    ref = jax.block_until_ready(inception_reference(x, params))

    assert out.shape == (N, out_1x1 + out_3x3 + out_5x5 + pool_proj, H, W), out.shape
    # bf16 MXU operands (f32 accumulation) -> loosened tolerance vs f32 reference.
    assert jnp.allclose(out, ref, rtol=2e-2, atol=2e-2), \
        f"max abs diff {jnp.max(jnp.abs(out - ref))}"

    print("KERNEL_OK")
</pallas_src>

<mosaic_0001>
module attributes {stable_mosaic.version = 11 : i64} {
  func.func @inception_kernel(%arg0: i32, %arg1: memref<1x16x16x4xf32, #tpu.memory_space<vmem>>, %arg2: memref<4x16xbf16, #tpu.memory_space<vmem>>, %arg3: memref<1x16xf32, #tpu.memory_space<vmem>>, %arg4: memref<36x8xbf16, #tpu.memory_space<vmem>>, %arg5: memref<1x8xf32, #tpu.memory_space<vmem>>, %arg6: memref<100x8xbf16, #tpu.memory_space<vmem>>, %arg7: memref<1x8xf32, #tpu.memory_space<vmem>>, %arg8: memref<4x8xbf16, #tpu.memory_space<vmem>>, %arg9: memref<1x8xf32, #tpu.memory_space<vmem>>, %arg10: memref<1x16x16x32xf32, #tpu.memory_space<vmem>>) attributes {dimension_semantics = [#tpu.dimension_semantics<parallel>], iteration_bounds = array<i64: 2>, scalar_prefetch = 0 : i64, scratch_operands = 0 : i64, tpu.core_type = #tpu.core_type<tc>, window_params = [{transform_indices = @transform_0, window_bounds = array<i64: 1, 16, 16, 4>}, {pipeline_mode = #tpu.pipeline_mode<synchronous>, transform_indices = @transform_1, window_bounds = array<i64: 4, 16>}, {pipeline_mode = #tpu.pipeline_mode<synchronous>, transform_indices = @transform_2, window_bounds = array<i64: 1, 16>}, {pipeline_mode = #tpu.pipeline_mode<synchronous>, transform_indices = @transform_3, window_bounds = array<i64: 36, 8>}, {pipeline_mode = #tpu.pipeline_mode<synchronous>, transform_indices = @transform_4, window_bounds = array<i64: 1, 8>}, {pipeline_mode = #tpu.pipeline_mode<synchronous>, transform_indices = @transform_5, window_bounds = array<i64: 100, 8>}, {pipeline_mode = #tpu.pipeline_mode<synchronous>, transform_indices = @transform_6, window_bounds = array<i64: 1, 8>}, {pipeline_mode = #tpu.pipeline_mode<synchronous>, transform_indices = @transform_7, window_bounds = array<i64: 4, 8>}, {pipeline_mode = #tpu.pipeline_mode<synchronous>, transform_indices = @transform_8, window_bounds = array<i64: 1, 8>}, {transform_indices = @transform_9, window_bounds = array<i64: 1, 16, 16, 32>}]} {
    %c0 = arith.constant 0 : index
    %c0_0 = arith.constant 0 : index
    %c0_1 = arith.constant 0 : index
    %c0_2 = arith.constant 0 : index
    %0 = vector.load %arg1[%c0, %c0_0, %c0_1, %c0_2] : memref<1x16x16x4xf32, #tpu.memory_space<vmem>>, vector<1x16x16x4xf32>
    %1 = vector.shape_cast %0 : vector<1x16x16x4xf32> to vector<16x16x4xf32>
    %2 = vector.shape_cast %1 : vector<16x16x4xf32> to vector<256x4xf32>
    %3 = arith.truncf %2 : vector<256x4xf32> to vector<256x4xbf16>
    %c0_3 = arith.constant 0 : index
    %c0_4 = arith.constant 0 : index
    %4 = vector.load %arg2[%c0_3, %c0_4] : memref<4x16xbf16, #tpu.memory_space<vmem>>, vector<4x16xbf16>
    %cst = arith.constant dense<0.000000e+00> : vector<256x16xf32>
    %5 = tpu.matmul %3, %4, %cst {dimension_numbers = #tpu.dot_dimension_numbers<[1], [0], [0], [1], [0, 0, 1, 1], [], []>} : vector<256x4xbf16>, vector<4x16xbf16>, vector<256x16xf32> -> vector<256x16xf32>
    %c0_5 = arith.constant 0 : index
    %c0_6 = arith.constant 0 : index
    %6 = vector.load %arg3[%c0_5, %c0_6] : memref<1x16xf32, #tpu.memory_space<vmem>>, vector<1x16xf32>
    %7 = vector.broadcast %6 : vector<1x16xf32> to vector<256x16xf32>
    %8 = arith.addf %5, %7 : vector<256x16xf32>
    %cst_7 = arith.constant 0.000000e+00 : f32
    %9 = vector.broadcast %cst_7 : f32 to vector<256x16xf32>
    %10 = arith.maximumf %8, %9 : vector<256x16xf32>
    %11 = vector.extract_strided_slice %10 {offsets = [0, 0], sizes = [256, 8], strides = [1, 1]} : vector<256x16xf32> to vector<256x8xf32>
    %12 = vector.extract_strided_slice %10 {offsets = [0, 8], sizes = [256, 4], strides = [1, 1]} : vector<256x16xf32> to vector<256x4xf32>
    %13 = vector.extract_strided_slice %10 {offsets = [0, 12], sizes = [256, 4], strides = [1, 1]} : vector<256x16xf32> to vector<256x4xf32>
    %14 = vector.shape_cast %11 : vector<256x8xf32> to vector<16x16x8xf32>
    %c0_8 = arith.constant 0 : index
    %c0_9 = arith.constant 0 : index
    %c0_10 = arith.constant 0 : index
    %c0_11 = arith.constant 0 : index
    %15 = vector.load %arg10[%c0_8, %c0_9, %c0_10, %c0_11] : memref<1x16x16x32xf32, #tpu.memory_space<vmem>>, vector<1x16x16x8xf32>
    %16 = vector.shape_cast %15 : vector<1x16x16x8xf32> to vector<16x16x8xf32>
    %17 = vector.shape_cast %14 : vector<16x16x8xf32> to vector<1x16x16x8xf32>
    tpu.vector_store %arg10[%c0_8, %c0_9, %c0_10, %c0_11], %17 {strides = array<i32>} : memref<1x16x16x32xf32, #tpu.memory_space<vmem>>, vector<1x16x16x8xf32>,
    %18 = vector.shape_cast %12 : vector<256x4xf32> to vector<16x16x4xf32>
    %c0_i32 = arith.constant 0 : i32
    %19 = arith.sitofp %c0_i32 : i32 to f32
    %20 = vector.broadcast %19 : f32 to vector<1x16x4xf32>
    %21 = tpu.concatenate %20, %18 in 0 : vector<1x16x4xf32>, vector<16x16x4xf32> -> vector<17x16x4xf32>
    %22 = vector.broadcast %19 : f32 to vector<1x16x4xf32>
    %23 = tpu.concatenate %21, %22 in 0 : vector<17x16x4xf32>, vector<1x16x4xf32> -> vector<18x16x4xf32>
    %24 = vector.broadcast %19 : f32 to vector<18x1x4xf32>
    %25 = tpu.concatenate %24, %23 in 1 : vector<18x1x4xf32>, vector<18x16x4xf32> -> vector<18x17x4xf32>
    %26 = vector.broadcast %19 : f32 to vector<18x1x4xf32>
    %27 = tpu.concatenate %25, %26 in 1 : vector<18x17x4xf32>, vector<18x1x4xf32> -> vector<18x18x4xf32>
    %28 = arith.truncf %27 : vector<18x18x4xf32> to vector<18x18x4xbf16>
    %29 = vector.extract_strided_slice %28 {offsets = [0, 0, 0], sizes = [16, 16, 4], strides = [1, 1, 1]} : vector<18x18x4xbf16> to vector<16x16x4xbf16>
    %30 = vector.extract_strided_slice %28 {offsets = [0, 1, 0], sizes = [16, 16, 4], strides = [1, 1, 1]} : vector<18x18x4xbf16> to vector<16x16x4xbf16>
    %31 = vector.extract_strided_slice %28 {offsets = [0, 2, 0], sizes = [16, 16, 4], strides = [1, 1, 1]} : vector<18x18x4xbf16> to vector<16x16x4xbf16>
    %32 = vector.extract_strided_slice %28 {offsets = [1, 0, 0], sizes = [16, 16, 4], strides = [1, 1, 1]} : vector<18x18x4xbf16> to vector<16x16x4xbf16>
    %33 = vector.extract_strided_slice %28 {offsets = [1, 1, 0], sizes = [16, 16, 4], strides = [1, 1, 1]} : vector<18x18x4xbf16> to vector<16x16x4xbf16>
    %34 = vector.extract_strided_slice %28 {offsets = [1, 2, 0], sizes = [16, 16, 4], strides = [1, 1, 1]} : vector<18x18x4xbf16> to vector<16x16x4xbf16>
    %35 = vector.extract_strided_slice %28 {offsets = [2, 0, 0], sizes = [16, 16, 4], strides = [1, 1, 1]} : vector<18x18x4xbf16> to vector<16x16x4xbf16>
    %36 = vector.extract_strided_slice %28 {offsets = [2, 1, 0], sizes = [16, 16, 4], strides = [1, 1, 1]} : vector<18x18x4xbf16> to vector<16x16x4xbf16>
    %37 = vector.extract_strided_slice %28 {offsets = [2, 2, 0], sizes = [16, 16, 4], strides = [1, 1, 1]} : vector<18x18x4xbf16> to vector<16x16x4xbf16>
    %38 = tpu.concatenate %29, %30, %31, %32, %33, %34, %35, %36, %37 in 2 : vector<16x16x4xbf16>, vector<16x16x4xbf16>, vector<16x16x4xbf16>, vector<16x16x4xbf16>, vector<16x16x4xbf16>, vector<16x16x4xbf16>, vector<16x16x4xbf16>, vector<16x16x4xbf16>, vector<16x16x4xbf16> -> vector<16x16x36xbf16>
    %39 = vector.shape_cast %38 : vector<16x16x36xbf16> to vector<256x36xbf16>
    %c0_12 = arith.constant 0 : index
    %c0_13 = arith.constant 0 : index
    %40 = vector.load %arg4[%c0_12, %c0_13] : memref<36x8xbf16, #tpu.memory_space<vmem>>, vector<36x8xbf16>
    %cst_14 = arith.constant dense<0.000000e+00> : vector<256x8xf32>
    %41 = tpu.matmul %39, %40, %cst_14 {dimension_numbers = #tpu.dot_dimension_numbers<[1], [0], [0], [1], [0, 0, 1, 1], [], []>} : vector<256x36xbf16>, vector<36x8xbf16>, vector<256x8xf32> -> vector<256x8xf32>
    %c0_15 = arith.constant 0 : index
    %c0_16 = arith.constant 0 : index
    %42 = vector.load %arg5[%c0_15, %c0_16] : memref<1x8xf32, #tpu.memory_space<vmem>>, vector<1x8xf32>
    %43 = vector.broadcast %42 : vector<1x8xf32> to vector<256x8xf32>
    %44 = arith.addf %41, %43 : vector<256x8xf32>
    %cst_17 = arith.constant 0.000000e+00 : f32
    %45 = vector.broadcast %cst_17 : f32 to vector<256x8xf32>
    %46 = arith.maximumf %44, %45 : vector<256x8xf32>
    %47 = vector.shape_cast %46 : vector<256x8xf32> to vector<16x16x8xf32>
    %c0_18 = arith.constant 0 : index
    %c0_19 = arith.constant 0 : index
    %c0_20 = arith.constant 0 : index
    %c8 = arith.constant 8 : index
    %48 = vector.load %arg10[%c0_18, %c0_19, %c0_20, %c8] : memref<1x16x16x32xf32, #tpu.memory_space<vmem>>, vector<1x16x16x8xf32>
    %49 = vector.shape_cast %48 : vector<1x16x16x8xf32> to vector<16x16x8xf32>
    %50 = vector.shape_cast %47 : vector<16x16x8xf32> to vector<1x16x16x8xf32>
    tpu.vector_store %arg10[%c0_18, %c0_19, %c0_20, %c8], %50 {strides = array<i32>} : memref<1x16x16x32xf32, #tpu.memory_space<vmem>>, vector<1x16x16x8xf32>,
    %51 = vector.shape_cast %13 : vector<256x4xf32> to vector<16x16x4xf32>
    %c0_i32_21 = arith.constant 0 : i32
    %52 = arith.sitofp %c0_i32_21 : i32 to f32
    %53 = vector.broadcast %52 : f32 to vector<2x16x4xf32>
    %54 = tpu.concatenate %53, %51 in 0 : vector<2x16x4xf32>, vector<16x16x4xf32> -> vector<18x16x4xf32>
    %55 = vector.broadcast %52 : f32 to vector<2x16x4xf32>
    %56 = tpu.concatenate %54, %55 in 0 : vector<18x16x4xf32>, vector<2x16x4xf32> -> vector<20x16x4xf32>
    %57 = vector.broadcast %52 : f32 to vector<20x2x4xf32>
    %58 = tpu.concatenate %57, %56 in 1 : vector<20x2x4xf32>, vector<20x16x4xf32> -> vector<20x18x4xf32>
    %59 = vector.broadcast %52 : f32 to vector<20x2x4xf32>
    %60 = tpu.concatenate %58, %59 in 1 : vector<20x18x4xf32>, vector<20x2x4xf32> -> vector<20x20x4xf32>
    %61 = arith.truncf %60 : vector<20x20x4xf32> to vector<20x20x4xbf16>
    %62 = vector.extract_strided_slice %61 {offsets = [0, 0, 0], sizes = [16, 16, 4], strides = [1, 1, 1]} : vector<20x20x4xbf16> to vector<16x16x4xbf16>
    %63 = vector.extract_strided_slice %61 {offsets = [0, 1, 0], sizes = [16, 16, 4], strides = [1, 1, 1]} : vector<20x20x4xbf16> to vector<16x16x4xbf16>
    %64 = vector.extract_strided_slice %61 {offsets = [0, 2, 0], sizes = [16, 16, 4], strides = [1, 1, 1]} : vector<20x20x4xbf16> to vector<16x16x4xbf16>
    %65 = vector.extract_strided_slice %61 {offsets = [0, 3, 0], sizes = [16, 16, 4], strides = [1, 1, 1]} : vector<20x20x4xbf16> to vector<16x16x4xbf16>
    %66 = vector.extract_strided_slice %61 {offsets = [0, 4, 0], sizes = [16, 16, 4], strides = [1, 1, 1]} : vector<20x20x4xbf16> to vector<16x16x4xbf16>
    %67 = vector.extract_strided_slice %61 {offsets = [1, 0, 0], sizes = [16, 16, 4], strides = [1, 1, 1]} : vector<20x20x4xbf16> to vector<16x16x4xbf16>
    %68 = vector.extract_strided_slice %61 {offsets = [1, 1, 0], sizes = [16, 16, 4], strides = [1, 1, 1]} : vector<20x20x4xbf16> to vector<16x16x4xbf16>
    %69 = vector.extract_strided_slice %61 {offsets = [1, 2, 0], sizes = [16, 16, 4], strides = [1, 1, 1]} : vector<20x20x4xbf16> to vector<16x16x4xbf16>
    %70 = vector.extract_strided_slice %61 {offsets = [1, 3, 0], sizes = [16, 16, 4], strides = [1, 1, 1]} : vector<20x20x4xbf16> to vector<16x16x4xbf16>
    %71 = vector.extract_strided_slice %61 {offsets = [1, 4, 0], sizes = [16, 16, 4], strides = [1, 1, 1]} : vector<20x20x4xbf16> to vector<16x16x4xbf16>
    %72 = vector.extract_strided_slice %61 {offsets = [2, 0, 0], sizes = [16, 16, 4], strides = [1, 1, 1]} : vector<20x20x4xbf16> to vector<16x16x4xbf16>
    %73 = vector.extract_strided_slice %61 {offsets = [2, 1, 0], sizes = [16, 16, 4], strides = [1, 1, 1]} : vector<20x20x4xbf16> to vector<16x16x4xbf16>
    %74 = vector.extract_strided_slice %61 {offsets = [2, 2, 0], sizes = [16, 16, 4], strides = [1, 1, 1]} : vector<20x20x4xbf16> to vector<16x16x4xbf16>
    %75 = vector.extract_strided_slice %61 {offsets = [2, 3, 0], sizes = [16, 16, 4], strides = [1, 1, 1]} : vector<20x20x4xbf16> to vector<16x16x4xbf16>
    %76 = vector.extract_strided_slice %61 {offsets = [2, 4, 0], sizes = [16, 16, 4], strides = [1, 1, 1]} : vector<20x20x4xbf16> to vector<16x16x4xbf16>
    %77 = vector.extract_strided_slice %61 {offsets = [3, 0, 0], sizes = [16, 16, 4], strides = [1, 1, 1]} : vector<20x20x4xbf16> to vector<16x16x4xbf16>
    %78 = vector.extract_strided_slice %61 {offsets = [3, 1, 0], sizes = [16, 16, 4], strides = [1, 1, 1]} : vector<20x20x4xbf16> to vector<16x16x4xbf16>
    %79 = vector.extract_strided_slice %61 {offsets = [3, 2, 0], sizes = [16, 16, 4], strides = [1, 1, 1]} : vector<20x20x4xbf16> to vector<16x16x4xbf16>
    %80 = vector.extract_strided_slice %61 {offsets = [3, 3, 0], sizes = [16, 16, 4], strides = [1, 1, 1]} : vector<20x20x4xbf16> to vector<16x16x4xbf16>
    %81 = vector.extract_strided_slice %61 {offsets = [3, 4, 0], sizes = [16, 16, 4], strides = [1, 1, 1]} : vector<20x20x4xbf16> to vector<16x16x4xbf16>
    %82 = vector.extract_strided_slice %61 {offsets = [4, 0, 0], sizes = [16, 16, 4], strides = [1, 1, 1]} : vector<20x20x4xbf16> to vector<16x16x4xbf16>
    %83 = vector.extract_strided_slice %61 {offsets = [4, 1, 0], sizes = [16, 16, 4], strides = [1, 1, 1]} : vector<20x20x4xbf16> to vector<16x16x4xbf16>
    %84 = vector.extract_strided_slice %61 {offsets = [4, 2, 0], sizes = [16, 16, 4], strides = [1, 1, 1]} : vector<20x20x4xbf16> to vector<16x16x4xbf16>
    %85 = vector.extract_strided_slice %61 {offsets = [4, 3, 0], sizes = [16, 16, 4], strides = [1, 1, 1]} : vector<20x20x4xbf16> to vector<16x16x4xbf16>
    %86 = vector.extract_strided_slice %61 {offsets = [4, 4, 0], sizes = [16, 16, 4], strides = [1, 1, 1]} : vector<20x20x4xbf16> to vector<16x16x4xbf16>
    %87 = tpu.concatenate %62, %63, %64, %65, %66, %67, %68, %69, %70, %71, %72, %73, %74, %75, %76, %77 in 2 : vector<16x16x4xbf16>, vector<16x16x4xbf16>, vector<16x16x4xbf16>, vector<16x16x4xbf16>, vector<16x16x4xbf16>, vector<16x16x4xbf16>, vector<16x16x4xbf16>, vector<16x16x4xbf16>, vector<16x16x4xbf16>, vector<16x16x4xbf16>, vector<16x16x4xbf16>, vector<16x16x4xbf16>, vector<16x16x4xbf16>, vector<16x16x4xbf16>, vector<16x16x4xbf16>, vector<16x16x4xbf16> -> vector<16x16x64xbf16>
    %88 = tpu.concatenate %78, %79, %80, %81, %82, %83, %84, %85, %86 in 2 : vector<16x16x4xbf16>, vector<16x16x4xbf16>, vector<16x16x4xbf16>, vector<16x16x4xbf16>, vector<16x16x4xbf16>, vector<16x16x4xbf16>, vector<16x16x4xbf16>, vector<16x16x4xbf16>, vector<16x16x4xbf16> -> vector<16x16x36xbf16>
    %89 = tpu.concatenate %87, %88 in 2 : vector<16x16x64xbf16>, vector<16x16x36xbf16> -> vector<16x16x100xbf16>
    %90 = vector.shape_cast %89 : vector<16x16x100xbf16> to vector<256x100xbf16>
    %c0_22 = arith.constant 0 : index
    %c0_23 = arith.constant 0 : index
    %91 = vector.load %arg6[%c0_22, %c0_23] : memref<100x8xbf16, #tpu.memory_space<vmem>>, vector<100x8xbf16>
    %cst_24 = arith.constant dense<0.000000e+00> : vector<256x8xf32>
    %92 = tpu.matmul %90, %91, %cst_24 {dimension_numbers = #tpu.dot_dimension_numbers<[1], [0], [0], [1], [0, 0, 1, 1], [], []>} : vector<256x100xbf16>, vector<100x8xbf16>, vector<256x8xf32> -> vector<256x8xf32>
    %c0_25 = arith.constant 0 : index
    %c0_26 = arith.constant 0 : index
    %93 = vector.load %arg7[%c0_25, %c0_26] : memref<1x8xf32, #tpu.memory_space<vmem>>, vector<1x8xf32>
    %94 = vector.broadcast %93 : vector<1x8xf32> to vector<256x8xf32>
    %95 = arith.addf %92, %94 : vector<256x8xf32>
    %cst_27 = arith.constant 0.000000e+00 : f32
    %96 = vector.broadcast %cst_27 : f32 to vector<256x8xf32>
    %97 = arith.maximumf %95, %96 : vector<256x8xf32>
    %98 = vector.shape_cast %97 : vector<256x8xf32> to vector<16x16x8xf32>
    %c0_28 = arith.constant 0 : index
    %c0_29 = arith.constant 0 : index
    %c0_30 = arith.constant 0 : index
    %c16 = arith.constant 16 : index
    %99 = vector.load %arg10[%c0_28, %c0_29, %c0_30, %c16] : memref<1x16x16x32xf32, #tpu.memory_space<vmem>>, vector<1x16x16x8xf32>
    %100 = vector.shape_cast %99 : vector<1x16x16x8xf32> to vector<16x16x8xf32>
    %101 = vector.shape_cast %98 : vector<16x16x8xf32> to vector<1x16x16x8xf32>
    tpu.vector_store %arg10[%c0_28, %c0_29, %c0_30, %c16], %101 {strides = array<i32>} : memref<1x16x16x32xf32, #tpu.memory_space<vmem>>, vector<1x16x16x8xf32>,
    %cst_31 = arith.constant 0xFF800000 : f32
    %102 = vector.broadcast %cst_31 : f32 to vector<1x16x4xf32>
    %103 = tpu.concatenate %102, %1 in 0 : vector<1x16x4xf32>, vector<16x16x4xf32> -> vector<17x16x4xf32>
    %104 = vector.broadcast %cst_31 : f32 to vector<1x16x4xf32>
    %105 = tpu.concatenate %103, %104 in 0 : vector<17x16x4xf32>, vector<1x16x4xf32> -> vector<18x16x4xf32>
    %106 = vector.broadcast %cst_31 : f32 to vector<18x1x4xf32>
    %107 = tpu.concatenate %106, %105 in 1 : vector<18x1x4xf32>, vector<18x16x4xf32> -> vector<18x17x4xf32>
    %108 = vector.broadcast %cst_31 : f32 to vector<18x1x4xf32>
    %109 = tpu.concatenate %107, %108 in 1 : vector<18x17x4xf32>, vector<18x1x4xf32> -> vector<18x18x4xf32>
    %110 = vector.extract_strided_slice %109 {offsets = [0, 0, 0], sizes = [16, 16, 4], strides = [1, 1, 1]} : vector<18x18x4xf32> to vector<16x16x4xf32>
    %111 = arith.maximumf %1, %110 : vector<16x16x4xf32>
    %112 = vector.extract_strided_slice %109 {offsets = [0, 1, 0], sizes = [16, 16, 4], strides = [1, 1, 1]} : vector<18x18x4xf32> to vector<16x16x4xf32>
    %113 = arith.maximumf %111, %112 : vector<16x16x4xf32>
    %114 = vector.extract_strided_slice %109 {offsets = [0, 2, 0], sizes = [16, 16, 4], strides = [1, 1, 1]} : vector<18x18x4xf32> to vector<16x16x4xf32>
    %115 = arith.maximumf %113, %114 : vector<16x16x4xf32>
    %116 = vector.extract_strided_slice %109 {offsets = [1, 0, 0], sizes = [16, 16, 4], strides = [1, 1, 1]} : vector<18x18x4xf32> to vector<16x16x4xf32>
    %117 = arith.maximumf %115, %116 : vector<16x16x4xf32>
    %118 = vector.extract_strided_slice %109 {offsets = [1, 2, 0], sizes = [16, 16, 4], strides = [1, 1, 1]} : vector<18x18x4xf32> to vector<16x16x4xf32>
    %119 = arith.maximumf %117, %118 : vector<16x16x4xf32>
    %120 = vector.extract_strided_slice %109 {offsets = [2, 0, 0], sizes = [16, 16, 4], strides = [1, 1, 1]} : vector<18x18x4xf32> to vector<16x16x4xf32>
    %121 = arith.maximumf %119, %120 : vector<16x16x4xf32>
    %122 = vector.extract_strided_slice %109 {offsets = [2, 1, 0], sizes = [16, 16, 4], strides = [1, 1, 1]} : vector<18x18x4xf32> to vector<16x16x4xf32>
    %123 = arith.maximumf %121, %122 : vector<16x16x4xf32>
    %124 = vector.extract_strided_slice %109 {offsets = [2, 2, 0], sizes = [16, 16, 4], strides = [1, 1, 1]} : vector<18x18x4xf32> to vector<16x16x4xf32>
    %125 = arith.maximumf %123, %124 : vector<16x16x4xf32>
    %126 = vector.shape_cast %125 : vector<16x16x4xf32> to vector<256x4xf32>
    %127 = arith.truncf %126 : vector<256x4xf32> to vector<256x4xbf16>
    %c0_32 = arith.constant 0 : index
    %c0_33 = arith.constant 0 : index
    %128 = vector.load %arg8[%c0_32, %c0_33] : memref<4x8xbf16, #tpu.memory_space<vmem>>, vector<4x8xbf16>
    %cst_34 = arith.constant dense<0.000000e+00> : vector<256x8xf32>
    %129 = tpu.matmul %127, %128, %cst_34 {dimension_numbers = #tpu.dot_dimension_numbers<[1], [0], [0], [1], [0, 0, 1, 1], [], []>} : vector<256x4xbf16>, vector<4x8xbf16>, vector<256x8xf32> -> vector<256x8xf32>
    %c0_35 = arith.constant 0 : index
    %c0_36 = arith.constant 0 : index
    %130 = vector.load %arg9[%c0_35, %c0_36] : memref<1x8xf32, #tpu.memory_space<vmem>>, vector<1x8xf32>
    %131 = vector.broadcast %130 : vector<1x8xf32> to vector<256x8xf32>
    %132 = arith.addf %129, %131 : vector<256x8xf32>
    %cst_37 = arith.constant 0.000000e+00 : f32
    %133 = vector.broadcast %cst_37 : f32 to vector<256x8xf32>
    %134 = arith.maximumf %132, %133 : vector<256x8xf32>
    %135 = vector.shape_cast %134 : vector<256x8xf32> to vector<16x16x8xf32>
    %c0_38 = arith.constant 0 : index
    %c0_39 = arith.constant 0 : index
    %c0_40 = arith.constant 0 : index
    %c24 = arith.constant 24 : index
    %136 = vector.load %arg10[%c0_38, %c0_39, %c0_40, %c24] : memref<1x16x16x32xf32, #tpu.memory_space<vmem>>, vector<1x16x16x8xf32>
    %137 = vector.shape_cast %136 : vector<1x16x16x8xf32> to vector<16x16x8xf32>
    %138 = vector.shape_cast %135 : vector<16x16x8xf32> to vector<1x16x16x8xf32>
    tpu.vector_store %arg10[%c0_38, %c0_39, %c0_40, %c24], %138 {strides = array<i32>} : memref<1x16x16x32xf32, #tpu.memory_space<vmem>>, vector<1x16x16x8xf32>,
    return
  }
  func.func @transform_0(%arg0: i32) -> (i32, i32, i32, i32) {
    %c0_i32 = arith.constant 0 : i32
    %c0_i32_0 = arith.constant 0 : i32
    %c0_i32_1 = arith.constant 0 : i32
    %c0_i32_2 = arith.constant 0 : i32
    return %arg0, %c0_i32, %c0_i32_0, %c0_i32_1 : i32, i32, i32, i32
  }
  func.func @transform_1(%arg0: i32) -> (i32, i32) {
    %c0_i32 = arith.constant 0 : i32
    %c0_i32_0 = arith.constant 0 : i32
    %c0_i32_1 = arith.constant 0 : i32
    return %c0_i32, %c0_i32_0 : i32, i32
  }
  func.func @transform_2(%arg0: i32) -> (i32, i32) {
    %c0_i32 = arith.constant 0 : i32
    %c0_i32_0 = arith.constant 0 : i32
    %c0_i32_1 = arith.constant 0 : i32
    return %c0_i32, %c0_i32_0 : i32, i32
  }
  func.func @transform_3(%arg0: i32) -> (i32, i32) {
    %c0_i32 = arith.constant 0 : i32
    %c0_i32_0 = arith.constant 0 : i32
    %c0_i32_1 = arith.constant 0 : i32
    return %c0_i32, %c0_i32_0 : i32, i32
  }
  func.func @transform_4(%arg0: i32) -> (i32, i32) {
    %c0_i32 = arith.constant 0 : i32
    %c0_i32_0 = arith.constant 0 : i32
    %c0_i32_1 = arith.constant 0 : i32
    return %c0_i32, %c0_i32_0 : i32, i32
  }
  func.func @transform_5(%arg0: i32) -> (i32, i32) {
    %c0_i32 = arith.constant 0 : i32
    %c0_i32_0 = arith.constant 0 : i32
    %c0_i32_1 = arith.constant 0 : i32
    return %c0_i32, %c0_i32_0 : i32, i32
  }
  func.func @transform_6(%arg0: i32) -> (i32, i32) {
    %c0_i32 = arith.constant 0 : i32
    %c0_i32_0 = arith.constant 0 : i32
    %c0_i32_1 = arith.constant 0 : i32
    return %c0_i32, %c0_i32_0 : i32, i32
  }
  func.func @transform_7(%arg0: i32) -> (i32, i32) {
    %c0_i32 = arith.constant 0 : i32
    %c0_i32_0 = arith.constant 0 : i32
    %c0_i32_1 = arith.constant 0 : i32
    return %c0_i32, %c0_i32_0 : i32, i32
  }
  func.func @transform_8(%arg0: i32) -> (i32, i32) {
    %c0_i32 = arith.constant 0 : i32
    %c0_i32_0 = arith.constant 0 : i32
    %c0_i32_1 = arith.constant 0 : i32
    return %c0_i32, %c0_i32_0 : i32, i32
  }
  func.func @transform_9(%arg0: i32) -> (i32, i32, i32, i32) {
    %c0_i32 = arith.constant 0 : i32
    %c0_i32_0 = arith.constant 0 : i32
    %c0_i32_1 = arith.constant 0 : i32
    %c0_i32_2 = arith.constant 0 : i32
    return %arg0, %c0_i32, %c0_i32_0, %c0_i32_1 : i32, i32, i32, i32
  }
}

</mosaic_0001>

<bundles_post_ra>
// kernel: tpu_custom_call.1
= control target key start
LH: loop header
LB: loop body
LE: loop exit
PB: predicated region body
PF: predicated region fallthrough
CT: control target
= control target key end

     0   :  { %s12343_s0 = inlined_call_operand.vmem [shape: f32[2,16,16,4], index: 0, kind: input, shape index: {}]   ;;  %s12344_s1 = inlined_call_operand.vmem [shape: bf16[4,16], index: 1, kind: input, shape index: {}]   ;;  %s12345_s2 = inlined_call_operand.vmem [shape: f32[1,16], index: 2, kind: input, shape index: {}]   ;;  %s12346_s3 = inlined_call_operand.vmem [shape: bf16[36,8], index: 3, kind: input, shape index: {}]   ;;  %s12347_s4 = inlined_call_operand.vmem [shape: f32[1,8], index: 4, kind: input, shape index: {}]   ;;  %s12348_s5 = inlined_call_operand.vmem [shape: bf16[100,8], index: 5, kind: input, shape index: {}]   ;;  %s12349_s6 = inlined_call_operand.vmem [shape: f32[1,8], index: 6, kind: input, shape index: {}]   ;;  %s12350_s7 = inlined_call_operand.vmem [shape: bf16[4,8], index: 7, kind: input, shape index: {}]   ;;  %s12351_s8 = inlined_call_operand.vmem [shape: f32[1,8], index: 8, kind: input, shape index: {}]   ;;  %s12352_s9 = inlined_call_operand.hbm [shape: f32[2,16,16,32], index: 9, kind: output, shape index: {}]  }
   0x1   :  { %12881 = sst [smem:[#allocation313_spill]] %s12343_s0 }
   0x2   :  { %14 = vsyncpa [#allocation3], 0 }
   0x3   :  { %16 = vsyncpa [#allocation3 + $0x1], 0  ;;  %s6834_s30 = smov 0   ;;  %s6836_s10 = smov 0  }
   0x4   :  { %s6838_s11 = smov 0   ;;  %s6840_s12 = smov 0  }
   0x5 LB: > { %s6855_s13 = sadd.s32 4294967295, %s6761_s12   ;;  %s6340_s14 = sadd.s32 4294967294, %s6761_s12   ;;  %s6761_s12 = sphi %s6840_s12, %s14060_s12   ;;  %s6757_s11 = sphi %s6838_s11, %s14059_s11   ;;  %s6753_s10 = sphi %s6836_s10, %s14058_s10   ;;  %s6749_s30 = sphi %s6834_s30, %s14057_s30  }
   0x6   : > { %s6859_s15 = sadd.s32 1, %s6761_s12   ;;  %s223_s16 = sadd.s32 1, %s6757_s11 }
   0x7   : > { %s220_s17 = ssub.s32 %s6761_s12, %s6859_s15  ;;  %p233_p0 = scmp.ne.s32.totalorder %s6757_s11, %s6753_s10 }
   0x8   : > { %p221_p1 = scmp.eq.s32.totalorder %s220_s17, 0  ;;  %p234_p2 = scmp.eq.s32.totalorder %s6855_s13, 1 }
   0x9   : > { %p239_p3 = scmp.ne.s32.totalorder %s6753_s10, %s6749_s30  ;;  %p240_p4 = scmp.eq.s32.totalorder %s6340_s14, 1 }
   0xa   : > { %s6870_s18 = scalar_select %p221_p1, %s6757_s11, %s223_s16  }
   0xb   : > { %p6872_p5 = por %p234_p2, %p233_p0  ;;  %p6876_p6 = por %p240_p4, %p239_p3 }
   0xc   : > { %p6343_p7 = scmp.ge.s32.totalorder %s6761_s12, 1  ;;  %p290_p8 = scmp.lt.s32.totalorder %s6761_s12, 3 }
   0xe   : > { %p291_p9 = pnand %p6343_p7, %p290_p8 }
  0x10   : > { %294 = sbr.rel (%p291_p9) target bundleno = 2754 (0xac2), region = 56 }
  0x15   : > { %v380_v0 = vld [vmem:[%s12344_s1] sm:$0x3]  ;;  %vm12876_vm0 = vcmask 1041408   ;;  %p326_p10 = scmp.lt.s32.totalorder %s6855_s13, 1  ;;  %s12884_s0 = sld [smem:[#allocation313_spill]]  ;;  %vm385_vm1 = vcmask 31744  }
  0x16   : > { %v436_v1 = vsel %vm12876_vm0, %v380_v0, 0  ;;  %vm12855_vm2 = vcmask 1040384   ;;  %vm12853_vm3 = vcmask 1046528   ;;  %vm12854_vm4 = vcmask 1045504   ;;  %s12870_s28 = smov 24   ;;  %s6765_s29 = smov 4  }
  0x17   : > { %445 = vmatpush.bf16.msra.mxu0 %v436_v1  ;;  %s327_s23 = scalar_select %p326_p10, %s6855_s13, 1  ;;  %vm12877_vm5 = vsmask.f32 7424  ;;  %vm2782_vm6 = vsmask.f32 6400  ;;  %vm559_vm7 = vcmask 64512  }
  0x18   : > { %s12494_s14 = smov 8   ;;  %s12874_s16 = smov 28   ;;  %vm1588_vm8 = vcmask 97280   ;;  %vm1621_vm9 = vcmask 130048   ;;  %vm12880_vm10 = vcmask 162816   ;;  %vm1687_vm11 = vcmask 195584  }
  0x19   : > { %s6448_s24 = sshll.u32 %s327_s23, 8  ;;  %s6768_s17 = smov 12   ;;  %vm1720_vm12 = vcmask 228352   ;;  %vm1753_vm13 = vcmask 261120   ;;  %vm12879_vm14 = vcmask 293888   ;;  %vm2095_vm15 = vcmask 130112  }
  0x1a   : > { %s12496_s21 = smov 32   ;;  %s12411_s22 = sand.u32 1, %s6753_s10  }
  0x1b   : > { %s6891_s27 = scalar_lea.vmem %s12884_s0, %s6448_s24  ;;  %s6344_s25 = sshll.u32 %s12411_s22, 8 }
  0x1c   : > { %v332_v2 = vld [vmem:[%s6891_s27] sm:$0xff]  ;;  %v333_v3 = vld [vmem:[%s6891_s27 + $0x8] sm:$0xff]  ;;  %v334_v12 = vld [vmem:[%s6891_s27 + $0x10] sm:$0xff]  ;;  %s7176_s26 = scalar_lea.vmem [#allocation2], %s6344_s25  ;;  %s6770_s23 = smov 116  }
  0x1d   : > { %v364_v4 = vpack.c.bf16 %v333_v3, %v332_v2  ;;  %v5246_v5 = vrot.slane %v332_v2, 7  ;;  %v5247_v6 = vrot.slane %v333_v3, 7  ;;  %v6904_v13 = vld [vmem:[%s6891_s27 + $0x18] sm:$0xff]  ;;  %v5249_v16 = vrot.slane %v334_v12, 7  ;;  %v6921_v23 = vld [vmem:[%s6891_s27 + $0x20] sm:$0xff]  ;;  %v6940_v32 = vld [vmem:[%s6891_s27 + $0x28] sm:$0xff] }
  0x1e   : > { %12886 = vst [vmem:[#allocation6_spill] sm:$0xff] %v6904_v13  ;;  %v12361_v17 = vrot.slane %v6904_v13, 7  ;;  %v5252_v27 = vrot.slane %v6921_v23, 7  ;;  %v12359_v33 = vrot.slane %v6940_v32, 7  ;;  %v365_v39 = vpack.c.bf16 %v6904_v13, %v334_v12  ;;  %v6961_v41 = vld [vmem:[%s6891_s27 + $0x30] sm:$0xff]  ;;  %v6964_v42 = vld [vmem:[%s6891_s27 + $0x38] sm:$0xff] }
  0x1f   : > { %6347 = vmatmul.msk.bf16.vlgmr.msra.gmra.mxu0 %vm385_vm1, %v364_v4  ;;  %v6897_v7 = vsel %vm12855_vm2, -inf, %v5246_v5  ;;  %v5362_v8 = vsel %vm12855_vm2, %v5247_v6, -inf  ;;  %v6907_v14 = vsel %vm12855_vm2, %v5246_v5, %v5247_v6  ;;  %12889 = vst [vmem:[#allocation9_spill] sm:$0xff] %v6921_v23  ;;  %v6930_v28 = vsel %vm12855_vm2, -inf, %v5249_v16  ;;  %v6984_v50 = vld [vmem:[%s6891_s27 + $0x40] sm:$0xff]  ;;  %v6987_v51 = vld [vmem:[%s6891_s27 + $0x48] sm:$0xff] }
  0x20   : > { %12885 = vst [vmem:[#allocation5_spill] sm:$0xff] %v6897_v7  ;;  %v5448_v9 = vrot.slane %v6897_v7, 1  ;;  %v5451_v10 = vrot.slane %v5362_v8, 1  ;;  %v5593_v11 = vrot.slane %v6897_v7, 2  ;;  %v5596_v15 = vrot.slane %v5362_v8, 2  ;;  %v7007_v59 = vld [vmem:[%s6891_s27 + $0x50] sm:$0xff] }
  0x21   : > { %12887 = vst [vmem:[#allocation7_spill] sm:$0xff] %v6907_v14  ;;  %v5380_v18 = vmax.f32 %v334_v12, %v6897_v7  ;;  %v5381_v19 = vmax.f32 %v6904_v13, %v6907_v14  ;;  %v5449_v20 = vrot.slane %v6907_v14, 1  ;;  %v5594_v21 = vrot.slane %v6907_v14, 2  ;;  %v7010_v60 = vld [vmem:[%s6891_s27 + $0x58] sm:$0xff]  ;;  %s6771_s24 = smov 120   ;;  %v7209_v34 = vld [vmem:[%s6891_s27 + $0xa8] sm:$0xff] }
  0x22   : > { %v6918_v22 = vsel %vm12855_vm2, %v5249_v16, %v12361_v17  ;;  %12891 = vst [vmem:[#allocation11_spill] sm:$0xff] %v6930_v28  ;;  %v6954_v38 = vsel %vm12855_vm2, %v5252_v27, %v12359_v33  ;;  %v6958_v40 = vsel %vm12855_vm2, -inf, %v5252_v27  ;;  %v5255_v43 = vrot.slane %v6961_v41, 7  ;;  %v7036_v27 = vld [vmem:[%s6891_s27 + $0x68] sm:$0xff]  ;;  %s12542_s25 = smov 20   ;;  %s12872_s22 = smov 16  }
  0x23   : > { %12888 = vst [vmem:[#allocation8_spill] sm:$0xff] %v6918_v22  ;;  %v5450_v24 = vsel %vm12853_vm3, %v5448_v9, %v5449_v20  ;;  %v5452_v25 = vsel %vm12853_vm3, %v5449_v20, %v5451_v10  ;;  %v6926_v26 = vsel %vm12854_vm4, %v5593_v11, %v5594_v21  ;;  %v6937_v31 = vsel %vm12854_vm4, %v5594_v21, %v5596_v15  ;;  %v7527_v22 = vld [vmem:[%s6891_s27 + $0xf0] sm:$0xff]  ;;  %v7530_v28 = vld [vmem:[%s6891_s27 + $0xf8] sm:$0xff]  ;;  %s13643_s0 = smov 16  }
  0x24   : > { %12890 = vst [vmem:[#allocation10_spill] sm:$0xff] %v6926_v26  ;;  %v6932_v29 = vmax.f32 %v5380_v18, %v5450_v24  ;;  %v6934_v30 = vmax.f32 %v5381_v19, %v5452_v25  ;;  %v12358_v44 = vrot.slane %v6964_v42, 7  ;;  %v366_v48 = vpack.c.bf16 %v6940_v32, %v6921_v23  ;;  %v7033_v25 = vld [vmem:[%s6891_s27 + $0x60] sm:$0xff] }
  0x25   : > { %12894 = vst [vmem:[#allocation14_spill] sm:$0xff] %v6937_v31  ;;  %v6981_v49 = vsel %vm12855_vm2, -inf, %v5255_v43  ;;  %v5258_v52 = vrot.slane %v6984_v50, 7  ;;  %v12356_v53 = vrot.slane %v6987_v51, 7  ;;  %v367_v57 = vpack.c.bf16 %v6964_v42, %v6961_v41 }
  0x26   : > { %12892 = vst [vmem:[#allocation12_spill] sm:$0xff] %v6932_v29  ;;  %v6976_v47 = vsel %vm12855_vm2, %v5255_v43, %v12358_v44  ;;  %v5261_v61 = vrot.slane %v7007_v59, 7  ;;  %v12354_v62 = vrot.slane %v7010_v60, 7  ;;  %v6763_v2 = vmov 0.0   ;;  %v7174_v44 = vld [vmem:[%s6891_s27 + $0x98] sm:$0xff] }
  0x27   : > { %12893 = vst [vmem:[#allocation13_spill] sm:$0xff] %v6934_v30  ;;  %v6999_v56 = vsel %vm12855_vm2, %v5258_v52, %v12356_v53  ;;  %v7004_v58 = vsel %vm12855_vm2, -inf, %v5258_v52  ;;  %v690_v3 = vrot.slane %v6763_v2, 7  ;;  %v2192_v4 = vrot.slane %v6763_v2, 6 }
  0x28   : > { %12895 = vst [vmem:[#allocation15_spill] sm:$0xff] %v6940_v32  ;;  %v7022_v1 = vsel %vm12855_vm2, %v5261_v61, %v12354_v62  ;;  %v368_v10 = vpack.c.bf16 %v6987_v51, %v6984_v50  ;;  %v7030_v24 = vsel %vm12855_vm2, -inf, %v5261_v61  ;;  %v5264_v43 = vrot.slane %v7033_v25, 7 }
  0x29   : > { %12896 = vst [vmem:[#allocation16_spill] sm:$0xff] %v6954_v38  ;;  %v790_v5 = vsel %vm12855_vm2, 0.0, %v690_v3  ;;  %v825_v8 = vpack.c.bf16 %v690_v3, %v690_v3  ;;  %v2292_v9 = vsel %vm12876_vm0, 0.0, %v2192_v4  ;;  %v2327_v11 = vpack.c.bf16 %v2192_v4, %v2192_v4 }
  0x2a   : > { %12897 = vst [vmem:[#allocation17_spill] sm:$0xff] %v6958_v40  ;;  %v824_v6 = vpack.c.bf16 %v790_v5, %v790_v5  ;;  %v2326_v12 = vpack.c.bf16 %v2292_v9, %v2292_v9  ;;  %v2309_v18 = vsel %vm12876_vm0, %v2192_v4, 0.0 }
  0x2b   : > { %12898 = vst [vmem:[#allocation18_spill] sm:$0xff] %v6961_v41  ;;  %v908_v16 = vunpack.c.l.b16 %v825_v8  ;;  %v2408_v19 = vunpack.c.l.b16 %v2327_v11  ;;  %v2328_v20 = vpack.c.bf16 %v2309_v18, %v2309_v18  ;;  %v807_v11 = vsel %vm12855_vm2, %v690_v3, 0.0 }
  0x2c   : > { %12899 = vst [vmem:[#allocation19_spill] sm:$0xff] %v6964_v42  ;;  %v907_v15 = vunpack.c.l.b16 %v824_v6  ;;  %v2407_v21 = vunpack.c.l.b16 %v2326_v12  ;;  %v369_v3 = vpack.c.bf16 %v7010_v60, %v7007_v59 }
  0x2d   : > { %12900 = vst [vmem:[#allocation20_spill] sm:$0xff] %v6976_v47  ;;  %v2467_v2 = vunpack.c.l.b16 %v2328_v20 }
  0x2e   : > { %12901 = vst [vmem:[#allocation21_spill] sm:$0xff] %v6981_v49  ;;  %v7049_v61 = vpack.c.b16 %v2408_v19, %v2407_v21 }
  0x2f   : > { %6348 = vmatmul.msk.bf16.gmra.mxu0 %vm385_vm1, %v365_v39  ;;  %12902 = vst [vmem:[#allocation22_spill] sm:$0xff] %v6984_v50  ;;  %v7038_v39 = vpack.c.b16 %v908_v16, %v907_v15  ;;  %v7056_v5 = vpack.c.b16 %v2467_v2, %v2467_v2  ;;  %v826_v15 = vpack.c.bf16 %v807_v11, %v807_v11 }
  0x30   : > { %12903 = vst [vmem:[#allocation23_spill] sm:$0xff] %v6987_v51  ;;  %v7059_v6 = vshrl.u32 %v7049_v61, 16  ;;  %v7062_v8 = vshll.u32 %v7049_v61, 16 }
  0x31   : > { %12904 = vst [vmem:[#allocation24_spill] sm:$0xff] %v6999_v56  ;;  %1458 = vrot.lane.b32.xlu0 %v7038_v39, %s12870_s28  ;;  %v2505_v9 = vshll.u32 %v7056_v5, 16  ;;  %v971_v18 = vunpack.c.l.b16 %v826_v15  ;;  %v1007_v21 = vshll.u32 %v7038_v39, 16  ;;  %v1005_v2 = vshrl.u32 %v7038_v39, 16 }
  0x32   : > { %12905 = vst [vmem:[#allocation25_spill] sm:$0xff] %v7004_v58  ;;  %v7079_v15 = vrot.slane %v7056_v5, 1 }
  0x33   : > { %12906 = vst [vmem:[#allocation26_spill] sm:$0xff] %v7007_v59  ;;  %v2507_v12 = vrot.slane %v2505_v9, 1  ;;  %v987_v20 = vpack.c.b16 %v971_v18, %v971_v18  ;;  %v1009_v11 = vrot.slane %v1007_v21, 1  ;;  %v7088_v18 = vld [vmem:[%s6891_s27 + $0x78] sm:$0xff] }
  0x34   : > { %12907 = vst [vmem:[#allocation27_spill] sm:$0xff] %v7010_v60  ;;  %v12355_v21 = vrot.slane %v7088_v18, 7 }
  0x35   : > { %12908 = vst [vmem:[#allocation28_spill] sm:$0xff] %v7022_v1 }
  0x36   : > { %12909 = vst [vmem:[#allocation29_spill] sm:$0xff] %v7030_v24 }
  0x37   : > { %12910 = vst [vmem:[#allocation30_spill] sm:$0xff] %v7033_v25 }
  0x38   : > { %12911 = vst [vmem:[#allocation31_spill] sm:$0xff] %v7036_v27 }
  0x39   : > { %12912 = vst [vmem:[#allocation32_spill] sm:$0xff] %v7049_v61 }
  0x3a   : > { %12914 = vst [vmem:[#allocation34_spill] sm:$0xff] %v7056_v5 }
  0x3b   : > { %12915 = vst [vmem:[#allocation35_spill] sm:$0xff] %v7059_v6 }
  0x3c   : > { %12916 = vst [vmem:[#allocation36_spill] sm:$0xff] %v7062_v8 }
  0x3d   : > { %12918 = vst [vmem:[#allocation38_spill] sm:$0xff] %v7079_v15 }
  0x3e   : > { %12921 = vst [vmem:[#allocation41_spill] sm:$0xff] %v7088_v18 }
  0x3f   : > { %6349 = vmatmul.msk.bf16.gmra.mxu0 %vm385_vm1, %v366_v48  ;;  %v12353_v48 = vrot.slane %v7036_v27, 7  ;;  %12933 = vst [vmem:[#allocation53_spill] sm:$0xff] %v7174_v44 }
  0x40   : > { %12936 = vst [vmem:[#allocation56_spill] sm:$0xff] %v7209_v34 }
  0x41   : > { %v7054_v4 = vsel %vm12855_vm2, %v5264_v43, %v12353_v48  ;;  %v1012_v48 = vshll.u32 %v987_v20, 16  ;;  %12967 = vst [vmem:[#allocation85_spill] sm:$0xff] %v7527_v22 }
  0x42   : > { %12913 = vst [vmem:[#allocation33_spill] sm:$0xff] %v7054_v4 }
  0x43   : > { %v1014_v52 = vrot.slane %v1012_v48, 1  ;;  %v2783_v48 = vrot.slane %v7059_v6, 1  ;;  %12968 = vst [vmem:[#allocation86_spill] sm:$0xff] %v7530_v28 }
  0x4f   : > { %6350 = vmatmul.msk.bf16.gmra.mxu0 %vm385_vm1, %v367_v57  ;;  %v1010_v57 = vor.u32 %v1009_v11, %v1005_v2  ;;  %v2784_v2 = vrot.slane %v7062_v8, 2  ;;  %v7113_v11 = vshrl.u32 %v7056_v5, 16 }
  0x51   : > { %v1015_v55 = vsel %vm12877_vm5, %v1010_v57, %v1014_v52  ;;  %12924 = vst [vmem:[#allocation44_spill] sm:$0xff] %v7113_v11  ;;  %v1229_v52 = vrot.slane %v7038_v39, 1  ;;  %v1230_v57 = vrot.slane %v987_v20, 1  ;;  %v2785_v63 = vor.u32 %v2784_v2, %v2783_v48  ;;  %v7171_v2 = vld [vmem:[%s6891_s27 + $0x90] sm:$0xff] }
  0x52   : > { %1196 = vrot.lane.b32.xlu1 %v1015_v55, %s6765_s29  ;;  %12932 = vst [vmem:[#allocation52_spill] sm:$0xff] %v7171_v2  ;;  %v5273_v46 = vrot.slane %v7171_v2, 7 }
  0x53   : > { %v1231_v0 = vsel %vm12853_vm3, %v1229_v52, %v1230_v57  ;;  %v7159_v52 = vld [vmem:[%s12345_s2] ss:$0 sm:$0xff] }
  0x54   : > { %1277 = vrot.lane.b32.xlu2 %v1231_v0, %s12494_s14 }
  0x5a   : > { %1490 = vrot.lane.b32.xlu1 %v1015_v55, %s12874_s16  ;;  %v7139_v55 = vld [vmem:[%s6891_s27 + $0x88] sm:$0xff] }
  0x5b   : > { %12929 = vst [vmem:[#allocation49_spill] sm:$0xff] %v7139_v55  ;;  %v12357_v48 = vrot.slane %v7139_v55, 7 }
  0x5c   : > { %1522 = vrot.lane.b32.xlu2 %v1231_v0, %s12496_s21 }
  0x5f   : > { %6351 = vmatmul.msk.bf16.gmra.mxu0 %vm385_vm1, %v368_v10  ;;  %v2502_v10 = vrot.slane %v7062_v8, 1 }
  0x61   : > { %v2503_v16 = vor.u32 %v2502_v10, %v7059_v6  ;;  %v2707_v10 = vrot.slane %v7049_v61, 1 }
  0x63   : > { %v7069_v19 = vsel %vm12877_vm5, %v2503_v16, %v2507_v12  ;;  %v7082_v12 = vsel %vm12855_vm2, -inf, %v5264_v43  ;;  %v7085_v16 = vld [vmem:[%s6891_s27 + $0x70] sm:$0xff]  ;;  %v7099_v43 = vsel %vm12853_vm3, %v2707_v10, %v7079_v15  ;;  %v2789_v10 = vrot.slane %v2505_v9, 2 }
  0x64   : > { %12917 = vst [vmem:[#allocation37_spill] sm:$0xff] %v7069_v19  ;;  %2677 = vrot.lane.b32.xlu0 %v7069_v19, %s6765_s29  ;;  %v5267_v62 = vrot.slane %v7085_v16, 7  ;;  %v370_v9 = vpack.c.bf16 %v7036_v27, %v7033_v25  ;;  %v358_v27 = vld [vmem:[%s6891_s27 + $0xd0] sm:$0xff] }
  0x65   : > { %12919 = vst [vmem:[#allocation39_spill] sm:$0xff] %v7082_v12 }
  0x66   : > { %12920 = vst [vmem:[#allocation40_spill] sm:$0xff] %v7085_v16 }
  0x67   : > { %12922 = vst [vmem:[#allocation42_spill] sm:$0xff] %v7099_v43 }
  0x6c   : > { %2752 = vrot.lane.b32.xlu0 %v7099_v43, %s12494_s14 }
  0x6f   : > { %6352 = vmatmul.msk.bf16.gmra.mxu0 %vm385_vm1, %v369_v3  ;;  %v7106_v3 = vsel %vm12855_vm2, %v5267_v62, %v12355_v21  ;;  %v7117_v21 = vrot.slane %v7113_v11, 1 }
  0x70   : > { %12923 = vst [vmem:[#allocation43_spill] sm:$0xff] %v7106_v3 }
  0x71   : > { %12925 = vst [vmem:[#allocation45_spill] sm:$0xff] %v7117_v21  ;;  %v2790_v54 = vor.u32 %v2789_v10, %v7117_v21  ;;  %v371_v10 = vpack.c.bf16 %v7088_v18, %v7085_v16 }
  0x73   : > { %v7123_v53 = vsel %vm2782_vm6, %v2785_v63, %v2790_v54  ;;  %v7133_v54 = vsel %vm12855_vm2, -inf, %v5267_v62  ;;  %v7136_v63 = vld [vmem:[%s6891_s27 + $0x80] sm:$0xff] }
  0x74   : > { %12926 = vst [vmem:[#allocation46_spill] sm:$0xff] %v7123_v53  ;;  %2918 = vrot.lane.b32.xlu0 %v7123_v53, %s6768_s17  ;;  %v5270_v20 = vrot.slane %v7136_v63, 7  ;;  %v372_v57 = vpack.c.bf16 %v7139_v55, %v7136_v63 }
  0x75   : > { %12927 = vst [vmem:[#allocation47_spill] sm:$0xff] %v7133_v54 }
  0x76   : > { %12928 = vst [vmem:[#allocation48_spill] sm:$0xff] %v7136_v63  ;;  %v7150_v62 = vsel %vm12855_vm2, %v5270_v20, %v12357_v48 }
  0x77   : > { %12930 = vst [vmem:[#allocation50_spill] sm:$0xff] %v7150_v62 }
  0x7f   : > { %6353 = vmatmul.msk.bf16.gmra.mxu0 %vm385_vm1, %v370_v9 }
  0x8f   : > { %6354 = vmatmul.msk.bf16.gmra.mxu0 %vm385_vm1, %v371_v10  ;;  %v7168_v10 = vsel %vm12855_vm2, -inf, %v5270_v20 }
  0x90   : > { %12931 = vst [vmem:[#allocation51_spill] sm:$0xff] %v7168_v10 }
  0x9c   : > { %v447_v9 = vpop.f32.mrf.mxu0 }
  0x9d   : > { %v448_v48 = vadd.f32 %v7159_v52, %v447_v9  ;;  %v12360_v9 = vrot.slane %v7174_v44, 7 }
  0x9f   : > { %v527_v0 = vmax.f32 %v448_v48, 0.0  ;;  %6355 = vmatmul.msk.bf16.gmra.mxu0 %vm385_vm1, %v372_v57  ;;  %v7189_v57 = vsel %vm12855_vm2, %v5273_v46, %v12360_v9  ;;  %v373_v9 = vpack.c.bf16 %v7174_v44, %v7171_v2 }
  0xa0   : > { %12934 = vst [vmem:[#allocation54_spill] sm:$0xff] %v7189_v57 }
  0xa1   : > { %560 = vst.msk [vmem:[%s7176_s26] sm:$0xff] %vm559_vm7, %v527_v0 }
  0xa4   : > { %v449_v45 = vpop.f32.mrf.mxu0 }
  0xa5   : > { %v450_v33 = vadd.f32 %v7159_v52, %v449_v45 }
  0xa7   : > { %v528_v37 = vmax.f32 %v450_v33, 0.0 }
  0xa9   : > { %561 = vst.msk [vmem:[%s7176_s26 + $0x8] sm:$0xff] %vm559_vm7, %v528_v37  ;;  %v6530_v36 = vpack.i.bf16 %v528_v37, %v527_v0 }
  0xab   : > { %6531 = vrot.lane.b32.xlu2 %v6530_v36, %s6770_s23  ;;  %6526 = vrot.lane.b32.xlu0 %v6530_v36, %s6771_s24  ;;  %v7206_v36 = vld [vmem:[%s6891_s27 + $0xa0] sm:$0xff] }
  0xac   : > { %v452_v20 = vpop.f32.mrf.mxu0  ;;  %12935 = vst [vmem:[#allocation55_spill] sm:$0xff] %v7206_v36 }
  0xad   : > { %v453_v48 = vadd.f32 %v7159_v52, %v452_v20 }
  0xaf   : > { %v529_v45 = vmax.f32 %v453_v48, 0.0  ;;  %6356 = vmatmul.msk.bf16.gmra.mxu0 %vm385_vm1, %v373_v9  ;;  %v374_v48 = vpack.c.bf16 %v7209_v34, %v7206_v36 }
  0xb1   : > { %562 = vst.msk [vmem:[%s7176_s26 + $0x10] sm:$0xff] %vm559_vm7, %v529_v45 }
  0xb4   : > { %v454_v33 = vpop.f32.mrf.mxu0 }
  0xb5   : > { %v455_v37 = vadd.f32 %v7159_v52, %v454_v33  ;;  %v7217_v33 = vsel %vm12855_vm2, -inf, %v5273_v46 }
  0xb6   : > { %12937 = vst [vmem:[#allocation57_spill] sm:$0xff] %v7217_v33 }
  0xb7   : > { %v530_v0 = vmax.f32 %v455_v37, 0.0  ;;  %v12365_v37 = vrot.slane %v7209_v34, 7 }
  0xb9   : > { %563 = vst.msk [vmem:[%s7176_s26 + $0x18] sm:$0xff] %vm559_vm7, %v530_v0  ;;  %v6535_v35 = vpack.i.bf16 %v530_v0, %v529_v45  ;;  %v5276_v45 = vrot.slane %v7206_v36, 7 }
  0xbb   : > { %6536 = vrot.lane.b32.xlu0 %v6535_v35, %s6771_s24  ;;  %v7231_v46 = vsel %vm12855_vm2, %v5276_v45, %v12365_v37 }
  0xbc   : > { %v457_v9 = vpop.f32.mrf.mxu0  ;;  %12938 = vst [vmem:[#allocation58_spill] sm:$0xff] %v7231_v46 }
  0xbd   : > { %v458_v20 = vadd.f32 %v7159_v52, %v457_v9 }
  0xbf   : > { %v531_v17 = vmax.f32 %v458_v20, 0.0  ;;  %6357 = vmatmul.msk.bf16.gmra.mxu0 %vm385_vm1, %v374_v48 }
  0xc1   : > { %564 = vst.msk [vmem:[%s7176_s26 + $0x20] sm:$0xff] %vm559_vm7, %v531_v17 }
  0xc3   : > { %6541 = vrot.lane.b32.xlu0 %v6535_v35, %s6770_s23 }
  0xc4   : > { %v459_v48 = vpop.f32.mrf.mxu0 }
  0xc5   : > { %v460_v9 = vadd.f32 %v7159_v52, %v459_v48 }
  0xc7   : > { %v532_v20 = vmax.f32 %v460_v9, 0.0 }
  0xc9   : > { %565 = vst.msk [vmem:[%s7176_s26 + $0x28] sm:$0xff] %vm559_vm7, %v532_v20  ;;  %v6545_v2 = vpack.i.bf16 %v532_v20, %v531_v17  ;;  %v7247_v20 = vld [vmem:[%s6891_s27 + $0xb0] sm:$0xff] }
  0xca   : > { %12939 = vst [vmem:[#allocation59_spill] sm:$0xff] %v7247_v20 }
  0xcb   : > { %6546 = vrot.lane.b32.xlu1 %v6545_v2, %s6771_s24 }
  0xcc   : > { %v462_v44 = vpop.f32.mrf.mxu0 }
  0xcd   : > { %v463_v35 = vadd.f32 %v7159_v52, %v462_v44  ;;  %v7250_v44 = vld [vmem:[%s6891_s27 + $0xb8] sm:$0xff] }
  0xce   : > { %12940 = vst [vmem:[#allocation60_spill] sm:$0xff] %v7250_v44 }
  0xcf   : > { %v533_v0 = vmax.f32 %v463_v35, 0.0  ;;  %v375_v35 = vpack.c.bf16 %v7250_v44, %v7247_v20 }
  0xd1   : > { %566 = vst.msk [vmem:[%s7176_s26 + $0x30] sm:$0xff] %vm559_vm7, %v533_v0  ;;  %6358 = vmatmul.msk.bf16.gmra.mxu0 %vm385_vm1, %v375_v35 }
  0xd3   : > { %6551 = vrot.lane.b32.xlu1 %v6545_v2, %s6770_s23 }
  0xd4   : > { %v464_v37 = vpop.f32.mrf.mxu0 }
  0xd5   : > { %v465_v48 = vadd.f32 %v7159_v52, %v464_v37 }
  0xd7   : > { %v534_v9 = vmax.f32 %v465_v48, 0.0  ;;  %v12374_v48 = vrot.slane %v7250_v44, 7 }
  0xd9   : > { %567 = vst.msk [vmem:[%s7176_s26 + $0x38] sm:$0xff] %vm559_vm7, %v534_v9  ;;  %v6555_v34 = vpack.i.bf16 %v534_v9, %v533_v0  ;;  %v7257_v0 = vsel %vm12855_vm2, -inf, %v5276_v45 }
  0xda   : > { %12941 = vst [vmem:[#allocation61_spill] sm:$0xff] %v7257_v0 }
  0xdb   : > { %6556 = vrot.lane.b32.xlu1 %v6555_v34, %s6771_s24  ;;  %6561 = vrot.lane.b32.xlu2 %v6555_v34, %s6770_s23  ;;  %v12373_v34 = vrot.slane %v7247_v20, 7 }
  0xdc   : > { %v467_v17 = vpop.f32.mrf.mxu0 }
  0xdd   : > { %v468_v2 = vadd.f32 %v7159_v52, %v467_v17  ;;  %v7272_v45 = vsel %vm12855_vm2, %v12373_v34, %v12374_v48  ;;  %v7282_v34 = vpop.permute.xlu2 %1277  ;;  %v7285_v48 = vpop.permute.xlu0 %1458 }
  0xde   : > { %12942 = vst [vmem:[#allocation62_spill] sm:$0xff] %v7272_v45 }
  0xdf   : > { %v535_v37 = vmax.f32 %v468_v2, 0.0  ;;  %12943 = vst [vmem:[#allocation63_spill] sm:$0xff] %v7285_v48 }
  0xe1   : > { %568 = vst.msk [vmem:[%s7176_s26 + $0x40] sm:$0xff] %vm559_vm7, %v535_v37 }
  0xe4   : > { %v469_v2 = vpop.f32.mrf.mxu0 }
  0xe5   : > { %v470_v35 = vadd.f32 %v7159_v52, %v469_v2  ;;  %v7294_v0 = vpop.permute.xlu0 %2677 }
  0xe6   : > { %12945 = vst [vmem:[#allocation65_spill] sm:$0xff] %v7294_v0 }
  0xe7   : > { %v536_v36 = vmax.f32 %v470_v35, 0.0 }
  0xe9   : > { %569 = vst.msk [vmem:[%s7176_s26 + $0x48] sm:$0xff] %vm559_vm7, %v536_v36  ;;  %v6565_v57 = vpack.i.bf16 %v536_v36, %v535_v37  ;;  %v7291_v37 = vpop.permute.xlu2 %1522 }
  0xea   : > { %12944 = vst [vmem:[#allocation64_spill] sm:$0xff] %v7291_v37 }
  0xeb   : > { %6566 = vrot.lane.b32.xlu2 %v6565_v57, %s6771_s24  ;;  %6571 = vrot.lane.b32.xlu0 %v6565_v57, %s6770_s23 }
  0xec   : > { %v472_v17 = vpop.f32.mrf.mxu0 }
  0xed   : > { %v473_v9 = vadd.f32 %v7159_v52, %v472_v17 }
  0xef   : > { %v537_v46 = vmax.f32 %v473_v9, 0.0 }
  0xf1   : > { %570 = vst.msk [vmem:[%s7176_s26 + $0x50] sm:$0xff] %vm559_vm7, %v537_v46 }
  0xf4   : > { %v474_v2 = vpop.f32.mrf.mxu0 }
  0xf5   : > { %v475_v35 = vadd.f32 %v7159_v52, %v474_v2  ;;  %v356_v2 = vld [vmem:[%s6891_s27 + $0xc0] sm:$0xff] }
  0xf7   : > { %v538_v36 = vmax.f32 %v475_v35, 0.0  ;;  %v357_v35 = vld [vmem:[%s6891_s27 + $0xc8] sm:$0xff] }
  0xf8   : > { %v376_v20 = vpack.c.bf16 %v357_v35, %v356_v2 }
  0xf9   : > { %571 = vst.msk [vmem:[%s7176_s26 + $0x58] sm:$0xff] %vm559_vm7, %v538_v36  ;;  %v6580_v57 = vpack.i.bf16 %v538_v36, %v537_v46 }
  0xfa   : > { %6359 = vmatmul.msk.bf16.gmra.mxu0 %vm385_vm1, %v376_v20 }
  0xfb   : > { %6581 = vrot.lane.b32.xlu1 %v6580_v57, %s6770_s23  ;;  %6576 = vrot.lane.b32.xlu2 %v6580_v57, %s6771_s24 }
  0xfc   : > { %v477_v9 = vpop.f32.mrf.mxu0 }
  0xfd   : > { %v478_v17 = vadd.f32 %v7159_v52, %v477_v9 }
  0xff   : > { %v539_v45 = vmax.f32 %v478_v17, 0.0  ;;  %v7304_v17 = vpop.permute.xlu0 %2752 }
 0x100   : > { %12946 = vst [vmem:[#allocation66_spill] sm:$0xff] %v7304_v17 }
 0x101   : > { %572 = vst.msk [vmem:[%s7176_s26 + $0x60] sm:$0xff] %vm559_vm7, %v539_v45 }
 0x104   : > { %v479_v44 = vpop.f32.mrf.mxu0 }
 0x105   : > { %v480_v46 = vadd.f32 %v7159_v52, %v479_v44  ;;  %v6532_v36 = vpop.permute.xlu2 %6531 }
 0x106   : > { %v6534_v33 = vunpack.i.h.bf16 %v6532_v36  ;;  %v6533_v62 = vunpack.i.l.bf16 %v6532_v36 }
 0x107   : > { %v540_v57 = vmax.f32 %v480_v46, 0.0  ;;  %v7314_v63 = vpop.permute.xlu0 %2918 }
 0x108   : > { %v2195_v10 = vrot.slane %v6534_v33, 6  ;;  %v2194_v55 = vrot.slane %v6533_v62, 6  ;;  %12947 = vst [vmem:[#allocation67_spill] sm:$0xff] %v7314_v63 }
 0x109   : > { %573 = vst.msk [vmem:[%s7176_s26 + $0x68] sm:$0xff] %vm559_vm7, %v540_v57  ;;  %v6590_v9 = vpack.i.bf16 %v540_v57, %v539_v45 }
 0x10a   : > { %v2310_v20 = vsel %vm12876_vm0, %v2195_v10, 0.0  ;;  %v2196_v35 = vsel %vm12876_vm0, %v2194_v55, %v2195_v10  ;;  %v2293_v46 = vsel %vm12876_vm0, 0.0, %v2194_v55 }
 0x10b   : > { %6591 = vrot.lane.b32.xlu2 %v6590_v9, %s6770_s23  ;;  %6586 = vrot.lane.b32.xlu0 %v6590_v9, %s6771_s24  ;;  %v2331_v45 = vpack.c.bf16 %v2310_v20, %v2310_v20  ;;  %v2329_v33 = vpack.c.bf16 %v2293_v46, %v2293_v46  ;;  %v2330_v62 = vpack.c.bf16 %v2196_v35, %v2196_v35 }
 0x10c   : > { %v482_v2 = vpop.f32.mrf.mxu0 }
 0x10d   : > { %v483_v44 = vadd.f32 %v7159_v52, %v482_v2  ;;  %v2468_v3 = vunpack.c.l.b16 %v2331_v45  ;;  %v2409_v2 = vunpack.c.l.b16 %v2329_v33  ;;  %v2410_v54 = vunpack.c.l.b16 %v2330_v62 }
 0x10f   : > { %v541_v36 = vmax.f32 %v483_v44, 0.0  ;;  %v7319_v55 = vpack.c.b16 %v2468_v3, %v2468_v3  ;;  %v7321_v44 = vpack.c.b16 %v2410_v54, %v2409_v2 }
 0x111   : > { %574 = vst.msk [vmem:[%s7176_s26 + $0x70] sm:$0xff] %vm559_vm7, %v541_v36  ;;  %v2710_v62 = vrot.slane %v7321_v44, 1 }
 0x112   : > { %12948 = vst [vmem:[#allocation68_spill] sm:$0xff] %v7319_v55 }
 0x113   : > { %12949 = vst [vmem:[#allocation69_spill] sm:$0xff] %v7321_v44 }
 0x114   : > { %v484_v57 = vpop.f32.mrf.mxu0 }
 0x115   : > { %v485_v9 = vadd.f32 %v7159_v52, %v484_v57  ;;  %v2711_v57 = vrot.slane %v7319_v55, 1 }
 0x117   : > { %v542_v18 = vmax.f32 %v485_v9, 0.0 }
 0x119   : > { %575 = vst.msk [vmem:[%s7176_s26 + $0x78] sm:$0xff] %vm559_vm7, %v542_v18  ;;  %v6595_v10 = vpack.i.bf16 %v542_v18, %v541_v36 }
 0x11b   : > { %6596 = vrot.lane.b32.xlu1 %v6595_v10, %s6771_s24  ;;  %6601 = vrot.lane.b32.xlu0 %v6595_v10, %s6770_s23  ;;  %v7334_v10 = vsel %vm12853_vm3, %v2710_v62, %v2711_v57 }
 0x11c   : > { %v487_v20 = vpop.f32.mrf.mxu0  ;;  %12950 = vst [vmem:[#allocation70_spill] sm:$0xff] %v7334_v10 }
 0x11d   : > { %v488_v35 = vadd.f32 %v7159_v52, %v487_v20  ;;  %v6527_v46 = vpop.permute.xlu0 %6526 }
 0x11e   : > { %v6529_v45 = vunpack.i.h.bf16 %v6527_v46  ;;  %v6528_v33 = vunpack.i.l.bf16 %v6527_v46 }
 0x11f   : > { %v543_v9 = vmax.f32 %v488_v35, 0.0 }
 0x120   : > { %v693_v18 = vrot.slane %v6529_v45, 7  ;;  %v692_v3 = vrot.slane %v6528_v33, 7 }
 0x121   : > { %576 = vst.msk [vmem:[%s7176_s26 + $0x80] sm:$0xff] %vm559_vm7, %v543_v9 }
 0x122   : > { %v808_v54 = vsel %vm12855_vm2, %v693_v18, 0.0  ;;  %v694_v36 = vsel %vm12855_vm2, %v692_v3, %v693_v18  ;;  %v791_v2 = vsel %vm12855_vm2, 0.0, %v692_v3  ;;  %v359_v18 = vld [vmem:[%s6891_s27 + $0xd8] sm:$0xff] }
 0x123   : > { %v829_v20 = vpack.c.bf16 %v808_v54, %v808_v54  ;;  %v827_v46 = vpack.c.bf16 %v791_v2, %v791_v2  ;;  %v828_v16 = vpack.c.bf16 %v694_v36, %v694_v36  ;;  %2754 = vrot.lane.b32.xlu1 %v7334_v10, %s12494_s14  ;;  %v377_v25 = vpack.c.bf16 %v359_v18, %v358_v27  ;;  %v7350_v2 = vpop.permute.xlu1 %1196 }
 0x124   : > { %v489_v35 = vpop.f32.mrf.mxu0 }
 0x125   : > { %v972_v45 = vunpack.c.l.b16 %v829_v20  ;;  %v909_v33 = vunpack.c.l.b16 %v827_v46  ;;  %v910_v4 = vunpack.c.l.b16 %v828_v16  ;;  %v490_v12 = vadd.f32 %v7159_v52, %v489_v35  ;;  %6360 = vmatmul.msk.bf16.gmra.mxu0 %vm385_vm1, %v377_v25 }
 0x126   : > { %v2512_v35 = vshll.u32 %v7321_v44, 16 }
 0x127   : > { %v988_v3 = vpack.c.b16 %v972_v45, %v972_v45  ;;  %v7341_v1 = vpack.c.b16 %v910_v4, %v909_v33  ;;  %v544_v62 = vmax.f32 %v490_v12, 0.0 }
 0x129   : > { %577 = vst.msk [vmem:[%s7176_s26 + $0x88] sm:$0xff] %vm559_vm7, %v544_v62  ;;  %1314 = vrot.lane.b32.xlu0 %v7341_v1, %s6768_s17  ;;  %v6610_v57 = vpack.i.bf16 %v544_v62, %v543_v9  ;;  %v1232_v54 = vrot.slane %v7341_v1, 1  ;;  %v1233_v16 = vrot.slane %v988_v3, 1  ;;  %v1019_v36 = vshll.u32 %v7341_v1, 16 }
 0x12a   : > { %v1017_v25 = vshrl.u32 %v7341_v1, 16  ;;  %v1024_v12 = vshll.u32 %v988_v3, 16  ;;  %v2514_v3 = vrot.slane %v2512_v35, 1 }
 0x12b   : > { %6611 = vrot.lane.b32.xlu1 %v6610_v57, %s6770_s23  ;;  %v1234_v27 = vsel %vm12853_vm3, %v1232_v54, %v1233_v16  ;;  %v1021_v4 = vrot.slane %v1019_v36, 1 }
 0x12c   : > { %1396 = vrot.lane.b32.xlu2 %v1234_v27, %s12542_s25  ;;  %v492_v9 = vpop.f32.mrf.mxu0  ;;  %v1026_v24 = vrot.slane %v1024_v12, 1  ;;  %v2510_v12 = vshrl.u32 %v7321_v44, 16 }
 0x12d   : > { %v6537_v20 = vpop.permute.xlu0 %6536  ;;  %v7357_v46 = vadd.f32 %v7159_v52, %v492_v9  ;;  %v1022_v18 = vor.u32 %v1021_v4, %v1017_v25 }
 0x12e   : > { %v6539_v45 = vunpack.i.h.bf16 %v6537_v20  ;;  %v6538_v33 = vunpack.i.l.bf16 %v6537_v20  ;;  %v2515_v56 = vor.u32 %v2514_v3, %v2510_v12 }
 0x12f   : > { %v12412_v62 = vmax.f32 %v7357_v46, 0.0  ;;  %v1027_v25 = vsel %vm12877_vm5, %v1022_v18, %v1026_v24 }
 0x130   : > { %v696_v54 = vrot.slane %v6539_v45, 7  ;;  %v695_v16 = vrot.slane %v6538_v33, 7  ;;  %v2517_v33 = vshll.u32 %v7319_v55, 16 }
 0x131   : > { %1279 = vrot.lane.b32.xlu0 %v1234_v27, %s12494_s14  ;;  %578 = vst.msk [vmem:[%s7176_s26 + $0x90] sm:$0xff] %vm559_vm7, %v12412_v62  ;;  %v7371_v27 = vpop.permute.xlu1 %1490 }
 0x132   : > { %v809_v36 = vsel %vm12855_vm2, %v696_v54, 0.0  ;;  %v697_v9 = vsel %vm12855_vm2, %v695_v16, %v696_v54  ;;  %v792_v60 = vsel %vm12855_vm2, 0.0, %v695_v16  ;;  %12951 = vst [vmem:[#allocation71_spill] sm:$0xff] %v7371_v27  ;;  %v2795_v54 = vshrl.u32 %v7319_v55, 16 }
 0x133   : > { %v832_v4 = vpack.c.bf16 %v809_v36, %v809_v36  ;;  %v830_v20 = vpack.c.bf16 %v792_v60, %v792_v60  ;;  %v831_v45 = vpack.c.bf16 %v697_v9, %v697_v9  ;;  %1361 = vrot.lane.b32.xlu1 %v1027_v25, %s12872_s22  ;;  %v2519_v51 = vrot.slane %v2517_v33, 1 }
 0x134   : > { %6606 = vrot.lane.b32.xlu2 %v6610_v57, %s6771_s24  ;;  %v494_v62 = vpop.f32.mrf.mxu0 }
 0x135   : > { %v973_v16 = vunpack.c.l.b16 %v832_v4  ;;  %v911_v24 = vunpack.c.l.b16 %v830_v20  ;;  %v912_v18 = vunpack.c.l.b16 %v831_v45  ;;  %v6542_v60 = vpop.permute.xlu0 %6541  ;;  %v495_v36 = vadd.f32 %v7159_v52, %v494_v62 }
 0x136   : > { %v6544_v9 = vunpack.i.h.bf16 %v6542_v60  ;;  %v6543_v59 = vunpack.i.l.bf16 %v6542_v60  ;;  %v2792_v4 = vrot.slane %v2510_v12, 1  ;;  %v2793_v20 = vrot.slane %v2512_v35, 2 }
 0x137   : > { %v7378_v58 = vpack.c.b16 %v973_v16, %v973_v16  ;;  %v7380_v57 = vpack.c.b16 %v912_v18, %v911_v24  ;;  %v546_v50 = vmax.f32 %v495_v36, 0.0  ;;  %v2797_v45 = vrot.slane %v2795_v54, 1 }
 0x138   : > { %v2198_v47 = vrot.slane %v6544_v9, 6  ;;  %v2197_v49 = vrot.slane %v6543_v59, 6  ;;  %v2798_v62 = vrot.slane %v2517_v33, 2  ;;  %v7388_v3 = vsel %vm12877_vm5, %v2515_v56, %v2519_v51 }
 0x139   : > { %1428 = vrot.lane.b32.xlu0 %v7380_v57, %s12870_s28  ;;  %579 = vst.msk [vmem:[%s7176_s26 + $0x98] sm:$0xff] %vm559_vm7, %v546_v50  ;;  %v1235_v59 = vrot.slane %v7380_v57, 1  ;;  %v1236_v24 = vrot.slane %v7378_v58, 1  ;;  %v2794_v54 = vor.u32 %v2793_v20, %v2792_v4 }
 0x13a   : > { %v2311_v60 = vsel %vm12876_vm0, %v2198_v47, 0.0  ;;  %12952 = vst [vmem:[#allocation72_spill] sm:$0xff] %v7388_v3  ;;  %v2199_v18 = vsel %vm12876_vm0, %v2197_v49, %v2198_v47  ;;  %v2294_v12 = vsel %vm12876_vm0, 0.0, %v2197_v49  ;;  %v2799_v36 = vor.u32 %v2798_v62, %v2797_v45 }
 0x13b   : > { %v2334_v16 = vpack.c.bf16 %v2311_v60, %v2311_v60  ;;  %2679 = vrot.lane.b32.xlu1 %v7388_v3, %s6765_s29  ;;  %v2332_v51 = vpack.c.bf16 %v2294_v12, %v2294_v12  ;;  %v2333_v56 = vpack.c.bf16 %v2199_v18, %v2199_v18  ;;  %v1237_v42 = vsel %vm12853_vm3, %v1235_v59, %v1236_v24 }
 0x13c   : > { %1198 = vrot.lane.b32.xlu2 %v1027_v25, %s6765_s29  ;;  %v497_v41 = vpop.f32.mrf.mxu0  ;;  %v7402_v49 = vsel %vm2782_vm6, %v2794_v54, %v2799_v36  ;;  %v1031_v62 = vshll.u32 %v7380_v57, 16 }
 0x13d   : > { %v2469_v35 = vunpack.c.l.b16 %v2334_v16  ;;  %v6547_v33 = vpop.permute.xlu1 %6546  ;;  %v2411_v38 = vunpack.c.l.b16 %v2332_v51  ;;  %v2412_v40 = vunpack.c.l.b16 %v2333_v56  ;;  %12954 = vst [vmem:[#allocation74_spill] sm:$0xff] %v7402_v49  ;;  %v7414_v16 = vadd.f32 %v7159_v52, %v497_v41 }
 0x13e   : > { %v6549_v9 = vunpack.i.h.bf16 %v6547_v33  ;;  %v6548_v60 = vunpack.i.l.bf16 %v6547_v33  ;;  %v1033_v41 = vrot.slane %v1031_v62, 1 }
 0x13f   : > { %v7399_v47 = vpack.c.b16 %v2469_v35, %v2469_v35  ;;  %v7404_v25 = vpack.c.b16 %v2412_v40, %v2411_v38  ;;  %v12956_v38 = vmax.f32 %v7357_v46, 0.0  ;;  %v12437_v54 = vmax.f32 %v7414_v16, 0.0 }
 0x140   : > { %v699_v31 = vrot.slane %v6549_v9, 7  ;;  %v698_v30 = vrot.slane %v6548_v60, 7  ;;  %v1029_v46 = vshrl.u32 %v7380_v57, 16  ;;  %v1036_v9 = vshll.u32 %v7378_v58, 16 }
 0x141   : > { %1398 = vrot.lane.b32.xlu0 %v1237_v42, %s12542_s25  ;;  %12953 = vst [vmem:[#allocation73_spill] sm:$0xff] %v7399_v47  ;;  %v6615_v40 = vpack.i.bf16 %v546_v50, %v12956_v38  ;;  %v12435_v35 = vrot.slane %v7399_v47, 1 }
 0x142   : > { %12955 = vst [vmem:[#allocation75_spill] sm:$0xff] %v7404_v25  ;;  %v810_v4 = vsel %vm12855_vm2, %v699_v31, 0.0  ;;  %v700_v20 = vsel %vm12855_vm2, %v698_v30, %v699_v31  ;;  %v793_v45 = vsel %vm12855_vm2, 0.0, %v698_v30  ;;  %v2713_v30 = vrot.slane %v7404_v25, 1 }
 0x143   : > { %2920 = vrot.lane.b32.xlu1 %v7402_v49, %s6768_s17  ;;  %v835_v24 = vpack.c.bf16 %v810_v4, %v810_v4  ;;  %v833_v31 = vpack.c.bf16 %v793_v45, %v793_v45  ;;  %v834_v33 = vpack.c.bf16 %v700_v20, %v700_v20  ;;  %580 = vst.msk [vmem:[%s7176_s26 + $0xa0] sm:$0xff] %vm559_vm7, %v12437_v54 }
 0x144   : > { %1492 = vrot.lane.b32.xlu2 %v1237_v42, %s12496_s21  ;;  %v499_v36 = vpop.f32.mrf.mxu0  ;;  %v7436_v45 = vsel %vm12853_vm3, %v2713_v30, %v12435_v35  ;;  %v7451_v30 = vld [vmem:[%s6891_s27 + $0xe0] sm:$0xff] }
 0x145   : > { %v6552_v59 = vpop.permute.xlu1 %6551  ;;  %v7427_v50 = vadd.f32 %v7159_v52, %v499_v36  ;;  %v974_v60 = vunpack.c.l.b16 %v835_v24  ;;  %v913_v4 = vunpack.c.l.b16 %v833_v31  ;;  %v914_v20 = vunpack.c.l.b16 %v834_v33  ;;  %12957 = vst [vmem:[#allocation76_spill] sm:$0xff] %v7436_v45  ;;  %v7454_v36 = vld [vmem:[%s6891_s27 + $0xe8] sm:$0xff] }
 0x146   : > { %v6554_v18 = vunpack.i.h.bf16 %v6552_v59  ;;  %v6553_v12 = vunpack.i.l.bf16 %v6552_v59  ;;  %v1034_v59 = vor.u32 %v1033_v41, %v1029_v46  ;;  %12958 = vst [vmem:[#allocation77_spill] sm:$0xff] %v7454_v36 }
 0x147   : > { %v548_v58 = vmax.f32 %v7427_v50, 0.0  ;;  %v7448_v31 = vpack.c.b16 %v914_v20, %v913_v4  ;;  %v5288_v20 = vrot.slane %v7451_v30, 7 }
 0x148   : > { %v2201_v51 = vrot.slane %v6554_v18, 6  ;;  %v2200_v56 = vrot.slane %v6553_v12, 6  ;;  %v1038_v18 = vrot.slane %v1036_v9, 1  ;;  %v7446_v12 = vpack.c.b16 %v974_v60, %v974_v60 }
 0x149   : > { %6616 = vrot.lane.b32.xlu0 %v6615_v40, %s6771_s24  ;;  %581 = vst.msk [vmem:[%s7176_s26 + $0xa8] sm:$0xff] %vm559_vm7, %v548_v58  ;;  %v1238_v46 = vrot.slane %v7448_v31, 1  ;;  %v1043_v32 = vshll.u32 %v7448_v31, 16 }
 0x14a   : > { %v2312_v62 = vsel %vm12876_vm0, %v2201_v51, 0.0  ;;  %v2202_v38 = vsel %vm12876_vm0, %v2200_v56, %v2201_v51  ;;  %v2295_v24 = vsel %vm12876_vm0, 0.0, %v2200_v56  ;;  %v1039_v50 = vsel %vm12877_vm5, %v1034_v59, %v1038_v18  ;;  %v7467_v59 = vpop.permute.xlu2 %6561 }
 0x14b   : > { %1316 = vrot.lane.b32.xlu1 %v7380_v57, %s6768_s17  ;;  %v2337_v33 = vpack.c.bf16 %v2312_v62, %v2312_v62  ;;  %v2335_v35 = vpack.c.bf16 %v2295_v24, %v2295_v24  ;;  %v2336_v41 = vpack.c.bf16 %v2202_v38, %v2202_v38  ;;  %v378_v51 = vpack.c.bf16 %v7454_v36, %v7451_v30 }
 0x14c   : > { %2756 = vrot.lane.b32.xlu2 %v7436_v45, %s12494_s14  ;;  %v1239_v9 = vrot.slane %v7446_v12, 1  ;;  %v12436_v62 = vrot.slane %v7454_v36, 7  ;;  %v2524_v38 = vshll.u32 %v7404_v25, 16  ;;  %v1045_v14 = vrot.slane %v1043_v32, 1 }
 0x14d   : > { %v2470_v56 = vunpack.c.l.b16 %v2337_v33  ;;  %v2413_v60 = vunpack.c.l.b16 %v2335_v35  ;;  %v2414_v4 = vunpack.c.l.b16 %v2336_v41  ;;  %6361 = vmatmul.msk.bf16.gmra.mxu0 %vm385_vm1, %v378_v51  ;;  %v2522_v41 = vshrl.u32 %v7404_v25, 16  ;;  %v6557_v26 = vpop.permute.xlu1 %6556 }
 0x14e   : > { %v2526_v18 = vrot.slane %v2524_v38, 1  ;;  %v2529_v51 = vshll.u32 %v7399_v47, 16  ;;  %v12468_v32 = vrot.slane %v7527_v22, 7 }
 0x14f   : > { %v7475_v24 = vpack.c.b16 %v2470_v56, %v2470_v56  ;;  %v7477_v35 = vpack.c.b16 %v2414_v4, %v2413_v60  ;;  %v502_v56 = vpop.f32.mrf.mxu0  ;;  %v12445_v60 = vshrl.u32 %v7399_v47, 16  ;;  %v2801_v36 = vrot.slane %v2522_v41, 1 }
 0x150   : > { %v2807_v29 = vrot.slane %v2529_v51, 2 }
 0x151   : > { %1200 = vrot.lane.b32.xlu0 %v1039_v50, %s6765_s29  ;;  %12960 = vst [vmem:[#allocation79_spill] sm:$0xff] %v7475_v24  ;;  %v2716_v33 = vrot.slane %v7477_v35, 1  ;;  %v7488_v30 = vrot.slane %v7475_v24, 1 }
 0x152   : > { %12961 = vst [vmem:[#allocation80_spill] sm:$0xff] %v7477_v35 }
 0x153   : > { %1281 = vrot.lane.b32.xlu1 %v1237_v42, %s12494_s14  ;;  %v7473_v42 = vsel %vm12855_vm2, %v5288_v20, %v12436_v62  ;;  %12962 = vst [vmem:[#allocation81_spill] sm:$0xff] %v7488_v30  ;;  %v7497_v4 = vsel %vm12853_vm3, %v2716_v33, %v7488_v30  ;;  %v7502_v62 = vadd.f32 %v7159_v52, %v502_v56  ;;  %v7511_v33 = vrot.slane %v12445_v60, 1 }
 0x154   : > { %6621 = vrot.lane.b32.xlu2 %v6615_v40, %s6770_s23  ;;  %12959 = vst [vmem:[#allocation78_spill] sm:$0xff] %v7473_v42  ;;  %v7480_v40 = vsel %vm12853_vm3, %v1238_v46, %v1239_v9  ;;  %v7492_v46 = vpop.permute.xlu2 %6566  ;;  %v2527_v9 = vor.u32 %v2526_v18, %v2522_v41  ;;  %v2802_v18 = vrot.slane %v2524_v38, 2  ;;  %v12966_v41 = vmax.f32 %v7414_v16, 0.0 }
 0x155   : > { %12963 = vst [vmem:[#allocation82_spill] sm:$0xff] %v7497_v4  ;;  %v12452_v56 = vmax.f32 %v7502_v62, 0.0  ;;  %v6558_v38 = vunpack.i.l.bf16 %v6557_v26  ;;  %v1041_v16 = vshrl.u32 %v7448_v31, 16 }
 0x156   : > { %12965 = vst [vmem:[#allocation84_spill] sm:$0xff] %v7511_v33  ;;  %v2803_v60 = vor.u32 %v2802_v18, %v2801_v36 }
 0x157   : > { %582 = vst.msk [vmem:[%s7176_s26 + $0xb0] sm:$0xff] %vm559_vm7, %v12452_v56  ;;  %v504_v7 = vpop.f32.mrf.mxu0  ;;  %v701_v18 = vrot.slane %v6558_v38, 7  ;;  %v7543_v56 = vsel %vm12855_vm2, -inf, %v5288_v20  ;;  %v1046_v13 = vor.u32 %v1045_v14, %v1041_v16  ;;  %v12469_v20 = vrot.slane %v7530_v28, 7 }
 0x158   : > { %12969 = vst [vmem:[#allocation87_spill] sm:$0xff] %v7543_v56  ;;  %v6563_v38 = vunpack.i.l.bf16 %v7467_v59 }
 0x159   : > { %1494 = vrot.lane.b32.xlu0 %v7480_v40, %s12496_s21 }
 0x15b   : > { %1460 = vrot.lane.b32.xlu1 %v1039_v50, %s12874_s16 }
 0x15c   : > { %1363 = vrot.lane.b32.xlu2 %v1039_v50, %s12872_s22  ;;  %v2531_v50 = vrot.slane %v2529_v51, 1  ;;  %v7519_v23 = vpop.permute.xlu2 %6576  ;;  %v2808_v51 = vor.u32 %v2807_v29, %v7511_v33  ;;  %v1048_v29 = vshll.u32 %v7446_v12, 16 }
 0x15e   : > { %v7505_v54 = vsel %vm12877_vm5, %v2527_v9, %v2531_v50  ;;  %v6630_v9 = vpack.i.bf16 %v548_v58, %v12966_v41  ;;  %v6559_v50 = vunpack.i.h.bf16 %v6557_v26  ;;  %v7535_v58 = vadd.f32 %v7159_v52, %v504_v7 }
 0x15f   : > { %12964 = vst [vmem:[#allocation83_spill] sm:$0xff] %v7505_v54  ;;  %v379_v41 = vpack.c.bf16 %v7530_v28, %v7527_v22  ;;  %v6564_v26 = vunpack.i.h.bf16 %v7467_v59  ;;  %v7548_v7 = vsel %vm2782_vm6, %v2803_v60, %v2808_v51  ;;  %v1050_v16 = vrot.slane %v1048_v29, 1 }
 0x160   : > { %v702_v36 = vrot.slane %v6559_v50, 7  ;;  %12970 = vst [vmem:[#allocation88_spill] sm:$0xff] %v7548_v7  ;;  %v7553_v50 = vshll.u32 %v7477_v35, 16  ;;  %v12461_v12 = vmax.f32 %v7535_v58, 0.0  ;;  %v794_v60 = vsel %vm12855_vm2, 0.0, %v701_v18 }
 0x161   : > { %2758 = vrot.lane.b32.xlu0 %v7497_v4, %s12494_s14  ;;  %6362 = vmatmul.msk.bf16.gmra.mxu0 %vm385_vm1, %v379_v41  ;;  %v7572_v41 = vsel %vm12855_vm2, %v12468_v32, %v12469_v20  ;;  %v2204_v42 = vrot.slane %v6564_v26, 6  ;;  %v1051_v29 = vsel %vm12877_vm5, %v1046_v13, %v1050_v16  ;;  %v836_v28 = vpack.c.bf16 %v794_v60, %v794_v60 }
 0x162   : > { %12971 = vst [vmem:[#allocation89_spill] sm:$0xff] %v7553_v50  ;;  %v811_v14 = vsel %vm12855_vm2, %v702_v36, 0.0  ;;  %v703_v56 = vsel %vm12855_vm2, %v701_v18, %v702_v36  ;;  %v2538_v8 = vrot.slane %v7553_v50, 1  ;;  %v7581_v32 = vshrl.u32 %v7477_v35, 16 }
 0x163   : > { %1430 = vrot.lane.b32.xlu1 %v7448_v31, %s12870_s28  ;;  %583 = vst.msk [vmem:[%s7176_s26 + $0xb8] sm:$0xff] %vm559_vm7, %v12461_v12  ;;  %v838_v6 = vpack.c.bf16 %v811_v14, %v811_v14  ;;  %v837_v22 = vpack.c.bf16 %v703_v56, %v703_v56  ;;  %v2541_v59 = vshll.u32 %v7475_v24, 16  ;;  %v2203_v36 = vrot.slane %v6563_v38, 6 }
 0x164   : > { %2681 = vrot.lane.b32.xlu2 %v7505_v54, %s6765_s29  ;;  %12972 = vst [vmem:[#allocation90_spill] sm:$0xff] %v7572_v41  ;;  %v2539_v13 = vor.u32 %v2538_v8, %v7581_v32  ;;  %v7589_v26 = vshrl.u32 %v7475_v24, 16  ;;  %v2313_v18 = vsel %vm12876_vm0, %v2204_v42, 0.0  ;;  %v2810_v41 = vrot.slane %v7581_v32, 1 }
 0x165   : > { %v6592_v51 = vpop.permute.xlu2 %6591  ;;  %12973 = vst [vmem:[#allocation91_spill] sm:$0xff] %v7581_v32  ;;  %v975_v14 = vunpack.c.l.b16 %v838_v6  ;;  %v916_v16 = vunpack.c.l.b16 %v837_v22  ;;  %v2543_v20 = vrot.slane %v2541_v59, 1  ;;  %v2205_v38 = vsel %vm12876_vm0, %v2203_v36, %v2204_v42 }
 0x166   : > { %v6594_v12 = vunpack.i.h.bf16 %v6592_v51  ;;  %v6593_v21 = vunpack.i.l.bf16 %v6592_v51  ;;  %12974 = vst [vmem:[#allocation92_spill] sm:$0xff] %v7589_v26  ;;  %v915_v51 = vunpack.c.l.b16 %v836_v28  ;;  %v2811_v8 = vrot.slane %v7553_v50, 2 }
 0x167   : > { %v7596_v33 = vsel %vm12877_vm5, %v2539_v13, %v2543_v20  ;;  %v7600_v15 = vrot.slane %v7589_v26, 1  ;;  %v2339_v42 = vpack.c.bf16 %v2205_v38, %v2205_v38 }
 0x168   : > { %v2213_v60 = vrot.slane %v6594_v12, 6  ;;  %v2212_v56 = vrot.slane %v6593_v21, 6  ;;  %12975 = vst [vmem:[#allocation93_spill] sm:$0xff] %v7596_v33  ;;  %v2816_v12 = vrot.slane %v2541_v59, 2  ;;  %v2340_v21 = vpack.c.bf16 %v2313_v18, %v2313_v18 }
 0x169   : > { %6631 = vrot.lane.b32.xlu0 %v6630_v9, %s6770_s23  ;;  %12976 = vst [vmem:[#allocation94_spill] sm:$0xff] %v7600_v15  ;;  %v7608_v20 = vpack.c.b16 %v916_v16, %v915_v51  ;;  %v2812_v59 = vor.u32 %v2811_v8, %v2810_v41  ;;  %v2416_v11 = vunpack.c.l.b16 %v2339_v42 }
 0x16a   : > { %v2214_v28 = vsel %vm12876_vm0, %v2212_v56, %v2213_v60  ;;  %v2299_v22 = vsel %vm12876_vm0, 0.0, %v2212_v56  ;;  %v2817_v18 = vor.u32 %v2816_v12, %v7600_v15  ;;  %v2471_v56 = vunpack.c.l.b16 %v2340_v21  ;;  %v7626_v12 = vpop.permute.xlu0 %6571 }
 0x16b   : > { %1400 = vrot.lane.b32.xlu1 %v7480_v40, %s12542_s25  ;;  %v2347_v13 = vpack.c.bf16 %v2299_v22, %v2299_v22  ;;  %v2348_v50 = vpack.c.bf16 %v2214_v28, %v2214_v28  ;;  %v2316_v21 = vsel %vm12876_vm0, %v2213_v60, 0.0  ;;  %v6569_v60 = vunpack.i.h.bf16 %v7492_v46 }
 0x16c   : > { %2922 = vrot.lane.b32.xlu2 %v7548_v7, %s6768_s17  ;;  %v7617_v30 = vsel %vm2782_vm6, %v2812_v59, %v2817_v18 }
 0x16d   : > { %v2421_v38 = vunpack.c.l.b16 %v2347_v13  ;;  %v2422_v51 = vunpack.c.l.b16 %v2348_v50  ;;  %v6582_v16 = vpop.permute.xlu1 %6581  ;;  %12977 = vst [vmem:[#allocation95_spill] sm:$0xff] %v7617_v30 }
 0x16e   : > { %v6584_v28 = vunpack.i.h.bf16 %v6582_v16  ;;  %v6583_v22 = vunpack.i.l.bf16 %v6582_v16 }
 0x16f   : > { %v7630_v50 = vpack.c.b16 %v2422_v51, %v2421_v38 }
 0x170   : > { %v2210_v13 = vrot.slane %v6584_v28, 6  ;;  %v2209_v59 = vrot.slane %v6583_v22, 6 }
 0x171   : > { %1365 = vrot.lane.b32.xlu0 %v1051_v29, %s12872_s22  ;;  %12980 = vst [vmem:[#allocation98_spill] sm:$0xff] %v7630_v50 }
 0x172   : > { %v2211_v16 = vsel %vm12876_vm0, %v2209_v59, %v2210_v13 }
 0x173   : > { %6626 = vrot.lane.b32.xlu1 %v6630_v9, %s6771_s24  ;;  %v2296_v9 = vsel %vm12876_vm0, 0.0, %v2203_v36  ;;  %v7606_v36 = vpack.c.b16 %v975_v14, %v975_v14 }
 0x174   : > { %1318 = vrot.lane.b32.xlu2 %v7448_v31, %s6768_s17  ;;  %v2338_v6 = vpack.c.bf16 %v2296_v9, %v2296_v9  ;;  %v1241_v9 = vrot.slane %v7608_v20, 1 }
 0x175   : > { %v1242_v14 = vrot.slane %v7606_v36, 1 }
 0x176   : > { %v2415_v32 = vunpack.c.l.b16 %v2338_v6  ;;  %v2349_v6 = vpack.c.bf16 %v2316_v21, %v2316_v21  ;;  %v2298_v21 = vsel %vm12876_vm0, 0.0, %v2209_v59  ;;  %v2315_v59 = vsel %vm12876_vm0, %v2210_v13, 0.0 }
 0x177   : > { %v1243_v8 = vsel %vm12853_vm3, %v1241_v9, %v1242_v14  ;;  %v507_v18 = vpop.f32.mrf.mxu0  ;;  %v7650_v14 = vshll.u32 %v7630_v50, 16  ;;  %v2344_v63 = vpack.c.bf16 %v2298_v21, %v2298_v21  ;;  %v2346_v7 = vpack.c.bf16 %v2315_v59, %v2315_v59 }
 0x178   : > { %v7623_v41 = vpack.c.b16 %v2416_v11, %v2415_v32  ;;  %v7642_v9 = vadd.f32 %v7159_v52, %v507_v18  ;;  %v2474_v38 = vunpack.c.l.b16 %v2349_v6  ;;  %v705_v6 = vrot.slane %v6569_v60, 7 }
 0x179   : > { %2683 = vrot.lane.b32.xlu0 %v7596_v33, %s6765_s29  ;;  %v2847_v22 = vrot.slane %v7650_v14, 2  ;;  %v2345_v60 = vpack.c.bf16 %v2211_v16, %v2211_v16  ;;  %v12985_v13 = vmax.f32 %v7502_v62, 0.0  ;;  %v1053_v21 = vshrl.u32 %v7608_v20, 16 }
 0x17a   : > { %12979 = vst [vmem:[#allocation97_spill] sm:$0xff] %v7623_v41  ;;  %v2719_v11 = vrot.slane %v7623_v41, 1  ;;  %v7677_v26 = vpack.c.b16 %v2474_v38, %v2474_v38  ;;  %v812_v17 = vsel %vm12855_vm2, %v705_v6, 0.0  ;;  %v1060_v16 = vshll.u32 %v7606_v36, 16 }
 0x17b   : > { %1202 = vrot.lane.b32.xlu1 %v1051_v29, %s6765_s29  ;;  %v841_v62 = vpack.c.bf16 %v812_v17, %v812_v17  ;;  %v2473_v59 = vunpack.c.l.b16 %v2346_v7 }
 0x17c   : > { %1283 = vrot.lane.b32.xlu2 %v7480_v40, %s12494_s14  ;;  %v7621_v40 = vpack.c.b16 %v2471_v56, %v2471_v56  ;;  %v6568_v56 = vunpack.i.l.bf16 %v7492_v46  ;;  %v12490_v46 = vmax.f32 %v7642_v9, 0.0  ;;  %12984 = vst [vmem:[#allocation102_spill] sm:$0xff] %v7677_v26 }
 0x17d   : > { %v7660_v28 = vpop.permute.xlu0 %6586  ;;  %v7723_v4 = vpack.c.b16 %v2473_v59, %v2473_v59 }
 0x17e   : > { %12978 = vst [vmem:[#allocation96_spill] sm:$0xff] %v7621_v40  ;;  %v7637_v32 = vrot.slane %v7621_v40, 1  ;;  %v704_v18 = vrot.slane %v6568_v56, 7 }
 0x17f   : > { %584 = vst.msk [vmem:[%s7176_s26 + $0xc0] sm:$0xff] %vm559_vm7, %v12490_v46  ;;  %v509_v53 = vpop.f32.mrf.mxu0  ;;  %v12999_v48 = vshll.u32 %v7723_v4, 16 }
 0x180   : > { %12981 = vst [vmem:[#allocation99_spill] sm:$0xff] %v7637_v32  ;;  %v7654_v51 = vsel %vm12853_vm3, %v2719_v11, %v7637_v32  ;;  %v1055_v11 = vshll.u32 %v7608_v20, 16  ;;  %v706_v0 = vsel %vm12855_vm2, %v704_v18, %v705_v6  ;;  %v795_v46 = vsel %vm12855_vm2, 0.0, %v704_v18 }
 0x181   : > { %2924 = vrot.lane.b32.xlu0 %v7617_v30, %s6768_s17  ;;  %12983 = vst [vmem:[#allocation101_spill] sm:$0xff] %v7654_v51  ;;  %v2420_v30 = vunpack.c.l.b16 %v2345_v60  ;;  %v7707_v60 = vld [vmem:[%s12345_s2] ss:$0 sm:$0xff] }
 0x182   : > { %v1057_v49 = vrot.slane %v1055_v11, 1  ;;  %v7693_v11 = vshrl.u32 %v7677_v26, 16  ;;  %v7710_v6 = vadd.f32 %v7707_v60, %v509_v53  ;;  %12992 = vst [vmem:[#allocation107_spill] sm:$0xff] %v7723_v4 }
 0x183   : > { %1496 = vrot.lane.b32.xlu1 %v1243_v8, %s12496_s21  ;;  %s13049_s21 = smov 20  }
 0x184   : > { %1462 = vrot.lane.b32.xlu2 %v1051_v29, %s12874_s16  ;;  %v7645_v29 = vshrl.u32 %v7630_v50, 16  ;;  %12987 = vst [vmem:[#allocation103_spill] sm:$0xff] %v7693_v11 }
 0x186   : > { %v7633_v42 = vpop.permute.xlu2 %1396  ;;  %12982 = vst [vmem:[#allocation100_spill] sm:$0xff] %v7645_v29  ;;  %v2846_v52 = vrot.slane %v7645_v29, 1 }
 0x188   : > { %v7675_v32 = vor.u32 %v2847_v22, %v2846_v52  ;;  %v12986_v52 = vmax.f32 %v7535_v58, 0.0  ;;  %v2419_v22 = vunpack.c.l.b16 %v2344_v63  ;;  %v1058_v58 = vor.u32 %v1057_v49, %v1053_v21 }
 0x189   : > { %1320 = vrot.lane.b32.xlu0 %v7608_v20, %s6768_s17  ;;  %v7702_v63 = vshll.u32 %v7623_v41, 16  ;;  %v1062_v49 = vrot.slane %v1060_v16, 1  ;;  %v6574_v21 = vunpack.i.h.bf16 %v7626_v12  ;;  %v12507_v16 = vmax.f32 %v7710_v6, 0.0 }
 0x18a   : > { %v6640_v38 = vpack.i.bf16 %v12986_v52, %v12985_v13  ;;  %v839_v13 = vpack.c.bf16 %v795_v46, %v795_v46  ;;  %v840_v52 = vpack.c.bf16 %v706_v0, %v706_v0  ;;  %v7712_v17 = vpack.c.b16 %v2420_v30, %v2419_v22 }
 0x18b   : > { %2760 = vrot.lane.b32.xlu1 %v7654_v51, %s12494_s14  ;;  %v7717_v0 = vrot.slane %v7693_v11, 1  ;;  %v1063_v53 = vsel %vm12877_vm5, %v1058_v58, %v1062_v49  ;;  %v976_v30 = vunpack.c.l.b16 %v841_v62  ;;  %v2550_v11 = vrot.slane %v7702_v63, 1  ;;  %585 = vst.msk [vmem:[%s7176_s26 + $0xc8] sm:$0xff] %vm559_vm7, %v12507_v16 }
 0x18c   : > { %1432 = vrot.lane.b32.xlu2 %v7608_v20, %s12870_s28  ;;  %12989 = vst [vmem:[#allocation105_spill] sm:$0xff] %v7712_v17  ;;  %v917_v22 = vunpack.c.l.b16 %v839_v13  ;;  %v918_v51 = vunpack.c.l.b16 %v840_v52  ;;  %v7737_v62 = vshrl.u32 %v7623_v41, 16  ;;  %v7744_v58 = vshll.u32 %v7712_v17, 16 }
 0x18d   : > { %v7673_v15 = vpop.permute.xlu1 %6596  ;;  %v7695_v18 = vpop.permute.xlu0 %6601  ;;  %12990 = vst [vmem:[#allocation106_spill] sm:$0xff] %v7717_v0  ;;  %v2553_v13 = vshll.u32 %v7621_v40, 16  ;;  %v7751_v49 = vshrl.u32 %v7723_v4, 16  ;;  %v7758_v16 = vshrl.u32 %v7621_v40, 16  ;;  %v6579_v40 = vunpack.i.h.bf16 %v7519_v23 }
 0x18e   : > { %v7679_v56 = vpop.permute.xlu2 %6606  ;;  %12994 = vst [vmem:[#allocation109_spill] sm:$0xff] %v7737_v62  ;;  %v7761_v10 = vpack.c.b16 %v918_v51, %v917_v22  ;;  %v2551_v52 = vor.u32 %v2550_v11, %v7737_v62  ;;  %v6604_v54 = vunpack.i.h.bf16 %v7695_v18  ;;  %v2843_v11 = vrot.slane %v12999_v48, 2 }
 0x18f   : > { %12995 = vst [vmem:[#allocation110_spill] sm:$0xff] %v7751_v49  ;;  %v2555_v22 = vrot.slane %v2553_v13, 1  ;;  %v7776_v27 = vrot.slane %v7751_v49, 1 }
 0x190   : > { %12996 = vst [vmem:[#allocation111_spill] sm:$0xff] %v7758_v16  ;;  %v2216_v25 = vrot.slane %v6604_v54, 6 }
 0x191   : > { %1285 = vrot.lane.b32.xlu0 %v1243_v8, %s12494_s14  ;;  %12998 = vst [vmem:[#allocation113_spill] sm:$0xff] %v7776_v27  ;;  %s13016_s14 = smov 8  }
 0x193   : > { %6641 = vrot.lane.b32.xlu1 %v6640_v38, %s6770_s23 }
 0x194   : > { %1402 = vrot.lane.b32.xlu2 %v1243_v8, %s12542_s25  ;;  %v12991_v8 = vshll.u32 %v7677_v26, 16 }
 0x195   : > { %v7699_v36 = vpop.permute.xlu1 %2754 }
 0x196   : > { %12988 = vst [vmem:[#allocation104_spill] sm:$0xff] %v7699_v36  ;;  %v7714_v7 = vpop.permute.xlu2 %1198  ;;  %v2852_v46 = vrot.slane %v12991_v8, 2  ;;  %v6573_v36 = vunpack.i.l.bf16 %v7626_v12  ;;  %v7730_v8 = vshrl.u32 %v7712_v17, 16  ;;  %v2207_v12 = vrot.slane %v6574_v21, 6 }
 0x198   : > { %12993 = vst [vmem:[#allocation108_spill] sm:$0xff] %v7730_v8  ;;  %v2853_v43 = vor.u32 %v2852_v46, %v7717_v0  ;;  %v2206_v45 = vrot.slane %v6573_v36, 6  ;;  %v2837_v36 = vrot.slane %v7730_v8, 1  ;;  %v7753_v46 = vpack.c.b16 %v976_v30, %v976_v30 }
 0x199   : > { %1464 = vrot.lane.b32.xlu0 %v1063_v53, %s12874_s16  ;;  %v2838_v0 = vrot.slane %v7744_v58, 2  ;;  %v2314_v30 = vsel %vm12876_vm0, %v2207_v12, 0.0 }
 0x19a   : > { %v7769_v33 = vsel %vm2782_vm6, %v7675_v32, %v2853_v43  ;;  %v2208_v19 = vsel %vm12876_vm0, %v2206_v45, %v2207_v12  ;;  %v2297_v51 = vsel %vm12876_vm0, 0.0, %v2206_v45  ;;  %v2819_v43 = vrot.slane %v7737_v62, 1 }
 0x19b   : > { %v7733_v59 = vpop.permute.xlu0 %1314  ;;  %1367 = vrot.lane.b32.xlu1 %v1063_v53, %s12872_s22  ;;  %12997 = vst [vmem:[#allocation112_spill] sm:$0xff] %v7769_v33  ;;  %v2839_v37 = vor.u32 %v2838_v0, %v2837_v36  ;;  %v2820_v32 = vrot.slane %v7702_v63, 2  ;;  %v7785_v12 = vrot.slane %v7758_v16, 1  ;;  %v2343_v0 = vpack.c.bf16 %v2314_v30, %v2314_v30 }
 0x19c   : > { %6636 = vrot.lane.b32.xlu2 %v6640_v38, %s6771_s24  ;;  %v6603_v38 = vunpack.i.l.bf16 %v7695_v18  ;;  %v2825_v18 = vrot.slane %v2553_v13, 2  ;;  %v7788_v36 = vsel %vm12877_vm5, %v2551_v52, %v2555_v22  ;;  %v2341_v49 = vpack.c.bf16 %v2297_v51, %v2297_v51  ;;  %v1790_v22 = vld [vmem:[%s12346_s3 + $0x10] sm:$0x3] }
 0x19d   : > { %v7755_v21 = vpop.permute.xlu1 %6611  ;;  %13000 = vst [vmem:[#allocation114_spill] sm:$0xff] %v7785_v12  ;;  %v2342_v47 = vpack.c.bf16 %v2208_v19, %v2208_v19  ;;  %v1244_v16 = vrot.slane %v7761_v10, 1  ;;  %v1245_v13 = vrot.slane %v7753_v46, 1  ;;  %v6578_v52 = vunpack.i.l.bf16 %v7519_v23 }
 0x19e   : > { %v7764_v3 = vpop.permute.xlu2 %1492  ;;  %v2215_v45 = vrot.slane %v6603_v38, 6  ;;  %13001 = vst [vmem:[#allocation115_spill] sm:$0xff] %v7788_v36  ;;  %v2844_v38 = vor.u32 %v2843_v11, %v7776_v27  ;;  %v2821_v19 = vor.u32 %v2820_v32, %v2819_v43  ;;  %v2826_v54 = vor.u32 %v2825_v18, %v7785_v12 }
 0x19f   : > { %v1804_v23 = vunpack.c.l.b16 %v1790_v22  ;;  %v2417_v27 = vunpack.c.l.b16 %v2341_v49  ;;  %v2418_v43 = vunpack.c.l.b16 %v2342_v47  ;;  %v708_v12 = vrot.slane %v6579_v40, 7 }
 0x1a0   : > { %v2300_v41 = vsel %vm12876_vm0, 0.0, %v2215_v45  ;;  %v2217_v32 = vsel %vm12876_vm0, %v2215_v45, %v2216_v25  ;;  %v7815_v18 = vsel %vm2782_vm6, %v2839_v37, %v2844_v38  ;;  %v7824_v49 = vsel %vm2782_vm6, %v2821_v19, %v2826_v54 }
 0x1a1   : > { %1434 = vrot.lane.b32.xlu0 %v7761_v10, %s12870_s28  ;;  %13003 = vst [vmem:[#allocation117_spill] sm:$0xff] %v7815_v18  ;;  %v1807_v44 = vpack.c.b16 %v1804_v23, %v1804_v23  ;;  %v2350_v24 = vpack.c.bf16 %v2300_v41, %v2300_v41  ;;  %v13005_v47 = vrot.slane %v7737_v62, 7  ;;  %v2351_v40 = vpack.c.bf16 %v2217_v32, %v2217_v32 }
 0x1a2   : > { %v512_v51 = vpop.f32.mrf.mxu0  ;;  %13004 = vst [vmem:[#allocation118_spill] sm:$0xff] %v7824_v49  ;;  %v6613_v45 = vunpack.i.l.bf16 %v7755_v21  ;;  %v7840_v38 = vpack.c.b16 %v2418_v43, %v2417_v27  ;;  %v2317_v19 = vsel %vm12876_vm0, %v2216_v25, 0.0  ;;  %v13011_v22 = vmax.f32 %v7642_v9, 0.0  ;;  %v6449_v9 = vld [vmem:[%s12346_s3] sm:$0xff] }
 0x1a3   : > { %v7790_v48 = vpop.permute.xlu0 %1279  ;;  %2685 = vrot.lane.b32.xlu1 %v7788_v36, %s6765_s29  ;;  %v2472_v36 = vunpack.c.l.b16 %v2343_v0  ;;  %v7811_v11 = vadd.f32 %v7707_v60, %v512_v51  ;;  %v7829_v37 = vor.u32 %v13005_v47, %v7702_v63  ;;  %v1844_v41 = vsel %vm12876_vm0, %v1807_v44, 0  ;;  %v6450_v63 = vld [vmem:[%s12346_s3 + $0x8] sm:$0xff] }
 0x1a4   : > { %1204 = vrot.lane.b32.xlu2 %v1063_v53, %s6765_s29  ;;  %v7818_v53 = vsel %vm12853_vm3, %v1244_v16, %v1245_v13  ;;  %v6614_v16 = vunpack.i.h.bf16 %v7755_v21  ;;  %13008 = vst [vmem:[#allocation121_spill] sm:$0xff] %v7840_v38  ;;  %1851 = vmatpush.bf16.msra.mxu1 %v1844_v41  ;;  %v813_v21 = vsel %vm12855_vm2, %v708_v12, 0.0  ;;  %v1067_v44 = vshll.u32 %v7761_v10, 16 }
 0x1a5   : > { %v7800_v30 = vpop.permute.xlu1 %1361  ;;  %v12544_v0 = vmax.f32 %v7811_v11, 0.0  ;;  %13006 = vst [vmem:[#allocation119_spill] sm:$0xff] %v7829_v37  ;;  %v7838_v13 = vpack.c.b16 %v2472_v36, %v2472_v36  ;;  %v2423_v54 = vunpack.c.l.b16 %v2350_v24  ;;  %v13012_v23 = vmax.f32 %v7710_v6, 0.0 }
 0x1a6   : > { %v7808_v55 = vpop.permute.xlu2 %2756  ;;  %v2424_v47 = vunpack.c.l.b16 %v2351_v40  ;;  %v2219_v25 = vrot.slane %v6614_v16, 6  ;;  %v2218_v41 = vrot.slane %v6613_v45, 6  ;;  %v844_v37 = vpack.c.bf16 %v813_v21, %v813_v21 }
 0x1a7   : > { %13002 = vst [vmem:[#allocation116_spill] sm:$0xff] %v7808_v55  ;;  %v707_v55 = vrot.slane %v6578_v52, 7  ;;  %v6645_v43 = vpack.i.bf16 %v13012_v23, %v13011_v22  ;;  %v7867_v24 = vrot.slane %v7838_v13, 1  ;;  %v1069_v16 = vrot.slane %v1067_v44, 1 }
 0x1a8   : > { %586 = vst.msk [vmem:[%s7176_s26 + $0xd0] sm:$0xff] %vm559_vm7, %v12544_v0  ;;  %1852 = vmatpush.bf16.msra.mxu1 %v6450_v63  ;;  %v1065_v21 = vshrl.u32 %v7761_v10, 16  ;;  %v2220_v22 = vsel %vm12876_vm0, %v2218_v41, %v2219_v25  ;;  %v2301_v23 = vsel %vm12876_vm0, 0.0, %v2218_v41  ;;  %v1072_v63 = vshll.u32 %v7753_v46, 16 }
 0x1a9   : > { %1404 = vrot.lane.b32.xlu0 %v7818_v53, %s12542_s25  ;;  %13007 = vst [vmem:[#allocation120_spill] sm:$0xff] %v7838_v13  ;;  %s13009_s25 = smov 32   ;;  %v709_v27 = vsel %vm12855_vm2, %v707_v55, %v708_v12  ;;  %v796_v36 = vsel %vm12855_vm2, 0.0, %v707_v55  ;;  %v2352_v12 = vpack.c.bf16 %v2317_v19, %v2317_v19  ;;  %v2722_v55 = vrot.slane %v7840_v38, 1 }
 0x1aa   : > { %v514_v32 = vpop.f32.mrf.mxu0  ;;  %13013 = vst [vmem:[#allocation123_spill] sm:$0xff] %v7867_v24  ;;  %v842_v6 = vpack.c.bf16 %v796_v36, %v796_v36  ;;  %v843_v40 = vpack.c.bf16 %v709_v27, %v709_v27  ;;  %v7875_v19 = vpack.c.b16 %v2424_v47, %v2423_v54  ;;  %v977_v27 = vunpack.c.l.b16 %v844_v37 }
 0x1ab   : > { %v7842_v52 = vpop.permute.xlu0 %1428  ;;  %2926 = vrot.lane.b32.xlu1 %v7824_v49, %s6768_s17  ;;  %v7863_v62 = vadd.f32 %v7707_v60, %v514_v32  ;;  %v2475_v44 = vunpack.c.l.b16 %v2352_v12  ;;  %v7890_v54 = vsel %vm12853_vm3, %v2722_v55, %v7867_v24  ;;  %v2318_v46 = vsel %vm12876_vm0, %v2219_v25, 0.0 }
 0x1ac   : > { %1498 = vrot.lane.b32.xlu2 %v7818_v53, %s13009_s25  ;;  %13014 = vst [vmem:[#allocation124_spill] sm:$0xff] %v7875_v19  ;;  %1853 = vmatpush.bf16.msra.mxu1 %v6449_v9  ;;  %v919_v32 = vunpack.c.l.b16 %v842_v6  ;;  %v920_v47 = vunpack.c.l.b16 %v843_v40  ;;  %v1070_v41 = vor.u32 %v1069_v16, %v1065_v21  ;;  %v2353_v37 = vpack.c.bf16 %v2301_v23, %v2301_v23 }
 0x1ad   : > { %v7856_v51 = vpop.permute.xlu1 %2679  ;;  %v12546_v45 = vmax.f32 %v7863_v62, 0.0  ;;  %13015 = vst [vmem:[#allocation125_spill] sm:$0xff] %v7890_v54  ;;  %v2354_v12 = vpack.c.bf16 %v2220_v22, %v2220_v22  ;;  %v1074_v49 = vrot.slane %v1072_v63, 1  ;;  %v7900_v35 = vshrl.u32 %v7875_v19, 16 }
 0x1ae   : > { %13010 = vst [vmem:[#allocation122_spill] sm:$0xff] %v7856_v51  ;;  %v6622_v0 = vpop.permute.xlu2 %6621  ;;  %v7902_v55 = vpack.c.b16 %v2475_v44, %v2475_v44  ;;  %v2355_v9 = vpack.c.bf16 %v2318_v46, %v2318_v46  ;;  %v7905_v6 = vshll.u32 %v7875_v19, 16  ;;  %v7907_v25 = vpack.c.b16 %v977_v27, %v977_v27 }
 0x1af   : > { %587 = vst.msk [vmem:[%s7176_s26 + $0xd8] sm:$0xff] %vm559_vm7, %v12546_v45  ;;  %v7909_v40 = vpack.c.b16 %v920_v47, %v919_v32  ;;  %v1075_v16 = vsel %vm12877_vm5, %v1070_v41, %v1074_v49  ;;  %v2425_v21 = vunpack.c.l.b16 %v2353_v37  ;;  %v2426_v22 = vunpack.c.l.b16 %v2354_v12 }
 0x1b0   : > { %13018 = vst [vmem:[#allocation127_spill] sm:$0xff] %v7900_v35  ;;  %v6624_v23 = vunpack.i.h.bf16 %v6622_v0  ;;  %v6623_v63 = vunpack.i.l.bf16 %v6622_v0  ;;  %v2856_v44 = vrot.slane %v7905_v6, 2  ;;  %v2476_v46 = vunpack.c.l.b16 %v2355_v9 }
 0x1b1   : > { %6646 = vrot.lane.b32.xlu0 %v6645_v43, %s6771_s24  ;;  %13019 = vst [vmem:[#allocation128_spill] sm:$0xff] %v7902_v55  ;;  %v7921_v49 = vshrl.u32 %v7902_v55, 16  ;;  %v1247_v32 = vrot.slane %v7909_v40, 1  ;;  %v1248_v0 = vrot.slane %v7907_v25, 1  ;;  %v7929_v37 = vshll.u32 %v7840_v38, 16 }
 0x1b2   : > { %v7931_v12 = vpack.c.b16 %v2426_v22, %v2425_v21  ;;  %v2221_v9 = vrot.slane %v6623_v63, 6  ;;  %v13026_v5 = vshll.u32 %v7902_v55, 16 }
 0x1b3   : > { %v7884_v36 = vpop.permute.xlu0 %1398  ;;  %1322 = vrot.lane.b32.xlu1 %v7761_v10, %s6768_s17  ;;  %13020 = vst [vmem:[#allocation129_spill] sm:$0xff] %v7921_v49  ;;  %v2562_v21 = vrot.slane %v7929_v37, 1 }
 0x1b4   : > { %2762 = vrot.lane.b32.xlu2 %v7890_v54, %s13016_s14  ;;  %13021 = vst [vmem:[#allocation130_spill] sm:$0xff] %v7929_v37  ;;  %v7935_v54 = vpack.c.b16 %v2476_v46, %v2476_v46  ;;  %v2861_v61 = vrot.slane %v13026_v5, 2  ;;  %v2302_v63 = vsel %vm12876_vm0, 0.0, %v2221_v9  ;;  %v7955_v5 = vshrl.u32 %v7931_v12, 16 }
 0x1b5   : > { %v7895_v45 = vpop.permute.xlu1 %2920  ;;  %13022 = vst [vmem:[#allocation131_spill] sm:$0xff] %v7931_v12 }
 0x1b6   : > { %13017 = vst [vmem:[#allocation126_spill] sm:$0xff] %v7895_v45  ;;  %v7897_v51 = vpop.permute.xlu2 %1363  ;;  %v2855_v45 = vrot.slane %v7900_v35, 1 }
 0x1b7   : > { %13024 = vst [vmem:[#allocation133_spill] sm:$0xff] %v7935_v54 }
 0x1b8   : > { %v2857_v47 = vor.u32 %v2856_v44, %v2855_v45  ;;  %v1525_v45 = vsel %vm385_vm1, %v7038_v39, %v7350_v2  ;;  %v7946_v44 = vsel %vm12853_vm3, %v1247_v32, %v1248_v0  ;;  %13027 = vst [vmem:[#allocation135_spill] sm:$0xff] %v7955_v5  ;;  %v7958_v39 = vshll.u32 %v7931_v12, 16 }
 0x1b9   : > { %1206 = vrot.lane.b32.xlu0 %v1075_v16, %s6765_s29  ;;  %v1557_v2 = vsel %vm559_vm7, %v1525_v45, %v7282_v34  ;;  %v2864_v34 = vrot.slane %v7955_v5, 1  ;;  %v13031_v0 = vshll.u32 %v7838_v13, 16 }
 0x1ba   : > { %13028 = vst [vmem:[#allocation136_spill] sm:$0xff] %v7958_v39  ;;  %v2865_v33 = vrot.slane %v7958_v39, 2  ;;  %v1590_v18 = vsel %vm1588_vm8, %v1557_v2, %v7733_v59  ;;  %v12576_v2 = vrot.slane %v7730_v8, 7 }
 0x1bb   : > { %v7915_v24 = vpop.permute.xlu0 %6616  ;;  %1287 = vrot.lane.b32.xlu1 %v7818_v53, %s13016_s14  ;;  %v2222_v53 = vrot.slane %v6624_v23, 6 }
 0x1bc   : > { %6651 = vrot.lane.b32.xlu2 %v6645_v43, %s6770_s23  ;;  %v7938_v43 = vrot.slane %v7921_v49, 1  ;;  %v7974_v49 = vshrl.u32 %v7840_v38, 16  ;;  %v7986_v38 = vshrl.u32 %v7935_v54, 16 }
 0x1bd   : > { %v7926_v41 = vpop.permute.xlu1 %1316  ;;  %v2223_v23 = vsel %vm12876_vm0, %v2221_v9, %v2222_v53  ;;  %v2319_v46 = vsel %vm12876_vm0, %v2222_v53, 0.0  ;;  %v2725_v9 = vrot.slane %v7712_v17, 1  ;;  %v2356_v53 = vpack.c.bf16 %v2302_v63, %v2302_v63 }
 0x1be   : > { %v7933_v27 = vpop.permute.xlu2 %2681  ;;  %13025 = vst [vmem:[#allocation134_spill] sm:$0xff] %v7938_v43  ;;  %v2862_v22 = vor.u32 %v2861_v61, %v7938_v43  ;;  %v2357_v45 = vpack.c.bf16 %v2223_v23, %v2223_v23  ;;  %v2567_v61 = vrot.slane %v13031_v0, 1  ;;  %v2358_v43 = vpack.c.bf16 %v2319_v46, %v2319_v46 }
 0x1bf   : > { %13023 = vst [vmem:[#allocation132_spill] sm:$0xff] %v7933_v27  ;;  %v7971_v27 = vrot.slane %v7723_v4, 1  ;;  %v2563_v17 = vor.u32 %v2562_v21, %v7974_v49  ;;  %v13034_v23 = vshll.u32 %v7935_v54, 16  ;;  %v1623_v46 = vsel %vm1621_vm9, %v1590_v18, %v7800_v30 }
 0x1c0   : > { %13030 = vst [vmem:[#allocation138_spill] sm:$0xff] %v7974_v49  ;;  %v7993_v13 = vsel %vm2782_vm6, %v2857_v47, %v2862_v22  ;;  %v2866_v0 = vor.u32 %v2865_v33, %v2864_v34  ;;  %v2427_v49 = vunpack.c.l.b16 %v2356_v53  ;;  %v2428_v59 = vunpack.c.l.b16 %v2357_v45 }
 0x1c1   : > { %1500 = vrot.lane.b32.xlu0 %v7946_v44, %s13009_s25  ;;  %13029 = vst [vmem:[#allocation137_spill] sm:$0xff] %v7971_v27  ;;  %v2870_v63 = vrot.slane %v13034_v23, 2  ;;  %v7999_v21 = vsel %vm12853_vm3, %v2725_v9, %v7971_v27  ;;  %v12575_v47 = vrot.slane %v7645_v29, 7  ;;  %v2477_v22 = vunpack.c.l.b16 %v2358_v43 }
 0x1c2   : > { %13033 = vst [vmem:[#allocation140_spill] sm:$0xff] %v7986_v38  ;;  %v8014_v33 = vsel %vm12877_vm5, %v2563_v17, %v2567_v61  ;;  %v8024_v43 = vor.u32 %v12576_v2, %v7744_v58  ;;  %v1656_v34 = vsel %vm12880_vm10, %v1623_v46, %v7633_v42  ;;  %v1079_v17 = vshll.u32 %v7909_v40, 16 }
 0x1c3   : > { %v7963_v32 = vpop.permute.xlu0 %1200  ;;  %1466 = vrot.lane.b32.xlu1 %v1075_v16, %s12874_s16  ;;  %13035 = vst [vmem:[#allocation141_spill] sm:$0xff] %v7993_v13  ;;  %v8019_v9 = vor.u32 %v12575_v47, %v7650_v14  ;;  %v1689_v45 = vsel %vm1687_vm11, %v1656_v34, %v7842_v52  ;;  %v8036_v61 = vpack.c.b16 %v2428_v59, %v2427_v49  ;;  %v13043_v42 = vmax.f32 %v7863_v62, 0.0 }
 0x1c4   : > { %1369 = vrot.lane.b32.xlu2 %v1075_v16, %s12872_s22  ;;  %13036 = vst [vmem:[#allocation142_spill] sm:$0xff] %v7999_v21  ;;  %v6589_v47 = vunpack.i.h.bf16 %v7660_v28  ;;  %v8043_v2 = vpack.c.b16 %v2477_v22, %v2477_v22  ;;  %v1081_v49 = vrot.slane %v1079_v17, 1  ;;  %v1077_v62 = vshrl.u32 %v7909_v40, 16 }
 0x1c5   : > { %v7977_v37 = vpop.permute.xlu1 %1281  ;;  %13038 = vst [vmem:[#allocation144_spill] sm:$0xff] %v8014_v33  ;;  %v8056_v22 = vshrl.u32 %v8036_v61, 16  ;;  %v8059_v34 = vshll.u32 %v8036_v61, 16 }
 0x1c6   : > { %v7981_v16 = vpop.permute.xlu2 %2922  ;;  %13039 = vst [vmem:[#allocation145_spill] sm:$0xff] %v8019_v9 }
 0x1c7   : > { %13032 = vst [vmem:[#allocation139_spill] sm:$0xff] %v7981_v16  ;;  %v8002_v16 = vrot.slane %v7986_v38, 1 }
 0x1c8   : > { %13040 = vst [vmem:[#allocation146_spill] sm:$0xff] %v8024_v43 }
 0x1c9   : > { %13037 = vst [vmem:[#allocation143_spill] sm:$0xff] %v8002_v16  ;;  %2764 = vrot.lane.b32.xlu0 %v7999_v21, %s13016_s14  ;;  %v2871_v30 = vor.u32 %v2870_v63, %v8002_v16  ;;  %v13042_v63 = vmax.f32 %v7811_v11, 0.0  ;;  %v1084_v11 = vshll.u32 %v7907_v25, 16  ;;  %v2873_v25 = vrot.slane %v8056_v22, 1 }
 0x1ca   : > { %13044 = vst [vmem:[#allocation148_spill] sm:$0xff] %v8043_v2  ;;  %v517_v59 = vpop.f32.mrf.mxu0 }
 0x1cb   : > { %v8009_v18 = vpop.permute.xlu0 %1494  ;;  %1436 = vrot.lane.b32.xlu1 %v7909_v40, %s12870_s28  ;;  %v8032_v53 = vsel %vm2782_vm6, %v2866_v0, %v2871_v30  ;;  %v6660_v46 = vpack.i.bf16 %v13043_v42, %v13042_v63  ;;  %v6588_v30 = vunpack.i.l.bf16 %v7660_v28  ;;  %13045 = vst [vmem:[#allocation149_spill] sm:$0xff] %v8056_v22  ;;  %v711_v28 = vrot.slane %v6589_v47, 7 }
 0x1cc   : > { %2687 = vrot.lane.b32.xlu2 %v8014_v33, %s6765_s29  ;;  %13041 = vst [vmem:[#allocation147_spill] sm:$0xff] %v8032_v53  ;;  %v2874_v63 = vrot.slane %v8059_v34, 2  ;;  %v1082_v47 = vor.u32 %v1081_v49, %v1077_v62  ;;  %v1086_v62 = vrot.slane %v1084_v11, 1 }
 0x1cd   : > { %v1461_v23 = vpop.permute.xlu1 %1460  ;;  %13046 = vst [vmem:[#allocation150_spill] sm:$0xff] %v8059_v34  ;;  %v710_v17 = vrot.slane %v6588_v30, 7  ;;  %v814_v27 = vsel %vm12855_vm2, %v711_v28, 0.0 }
 0x1ce   : > { %v1722_v43 = vsel %vm1720_vm12, %v1689_v45, %v1461_v23  ;;  %v8046_v0 = vpop.permute.xlu2 %1318  ;;  %v8062_v45 = vadd.f32 %v7707_v60, %v517_v59  ;;  %v1527_v59 = vsel %vm385_vm1, %v7341_v1, %v7714_v7  ;;  %v2875_v16 = vor.u32 %v2874_v63, %v2873_v25 }
 0x1cf   : > { %v1755_v52 = vsel %vm1753_vm13, %v1722_v43, %v7764_v3  ;;  %v12583_v3 = vshll.u32 %v8043_v2, 16  ;;  %v8066_v43 = vshrl.u32 %v8043_v2, 16  ;;  %v1559_v38 = vsel %vm559_vm7, %v1527_v59, %v7790_v48 }
 0x1d0   : > { %6371 = vmatmul.msk.bf16.vlgmr.msra.gmra.mxu1 %vm12879_vm14, %v1755_v52  ;;  %v12586_v42 = vmax.f32 %v8062_v45, 0.0  ;;  %v797_v1 = vsel %vm12855_vm2, 0.0, %v710_v17  ;;  %v1592_v7 = vsel %vm1588_vm8, %v1559_v38, %v7926_v41  ;;  %v1087_v25 = vsel %vm12877_vm5, %v1082_v47, %v1086_v62 }
 0x1d1   : > { %6661 = vrot.lane.b32.xlu0 %v6660_v46, %s6770_s23  ;;  %13047 = vst [vmem:[#allocation151_spill] sm:$0xff] %v8066_v43  ;;  %v8078_v52 = vrot.slane %v8066_v43, 1  ;;  %v2879_v30 = vrot.slane %v12583_v3, 2  ;;  %v712_v43 = vsel %vm12855_vm2, %v710_v17, %v711_v28  ;;  %v2574_v48 = vrot.slane %v7744_v58, 1 }
 0x1d2   : > { %588 = vst.msk [vmem:[%s7176_s26 + $0xe0] sm:$0xff] %vm559_vm7, %v12586_v42  ;;  %v847_v11 = vpack.c.bf16 %v814_v27, %v814_v27  ;;  %v519_v59 = vpop.f32.mrf.mxu0  ;;  %v845_v42 = vpack.c.bf16 %v797_v1, %v797_v1  ;;  %v1625_v28 = vsel %vm1621_vm9, %v1592_v7, %v7897_v51 }
 0x1d3   : > { %v8068_v23 = vpop.permute.xlu0 %2758  ;;  %1406 = vrot.lane.b32.xlu1 %v7946_v44, %s13049_s21  ;;  %13050 = vst [vmem:[#allocation153_spill] sm:$0xff] %v8078_v52  ;;  %v2880_v3 = vor.u32 %v2879_v30, %v8078_v52  ;;  %v846_v30 = vpack.c.bf16 %v712_v43, %v712_v43  ;;  %v8108_v17 = vadd.f32 %v7707_v60, %v519_v59 }
 0x1d4   : > { %13048 = vst [vmem:[#allocation152_spill] sm:$0xff] %v8068_v23  ;;  %1324 = vrot.lane.b32.xlu2 %v7909_v40, %s6768_s17  ;;  %v2575_v58 = vor.u32 %v2574_v48, %v7730_v8  ;;  %v978_v41 = vunpack.c.l.b16 %v847_v11  ;;  %v921_v51 = vunpack.c.l.b16 %v845_v42 }
 0x1d5   : > { %v1431_v9 = vpop.permute.xlu1 %1430  ;;  %v8102_v63 = vsel %vm2782_vm6, %v2875_v16, %v2880_v3  ;;  %v12588_v27 = vmax.f32 %v8108_v17, 0.0  ;;  %v1658_v16 = vsel %vm12880_vm10, %v1625_v28, %v7884_v36  ;;  %v922_v43 = vunpack.c.l.b16 %v846_v30 }
 0x1d6   : > { %v8088_v49 = vpop.permute.xlu2 %1283  ;;  %13051 = vst [vmem:[#allocation154_spill] sm:$0xff] %v8102_v63  ;;  %v1691_v47 = vsel %vm1687_vm11, %v1658_v16, %v1431_v9  ;;  %v12587_v9 = vrot.slane %v7900_v35, 7  ;;  %v994_v42 = vpack.c.b16 %v978_v41, %v978_v41 }
 0x1d7   : > { %589 = vst.msk [vmem:[%s7176_s26 + $0xe8] sm:$0xff] %vm559_vm7, %v12588_v27  ;;  %v8136_v48 = vpack.c.b16 %v922_v43, %v921_v51 }
 0x1d8   : > { %v8144_v59 = vor.u32 %v12587_v9, %v7905_v6  ;;  %v1096_v21 = vshll.u32 %v994_v42, 16 }
 0x1d9   : > { %1371 = vrot.lane.b32.xlu0 %v1087_v25, %s12872_s22  ;;  %v1250_v28 = vrot.slane %v8136_v48, 1 }
 0x1da   : > { %13054 = vst [vmem:[#allocation156_spill] sm:$0xff] %v8144_v59 }
 0x1db   : > { %v6632_v38 = vpop.permute.xlu0 %6631  ;;  %6656 = vrot.lane.b32.xlu1 %v6660_v46, %s6771_s24  ;;  %v13052_v46 = vshll.u32 %v7723_v4, 16 }
 0x1dc   : > { %1289 = vrot.lane.b32.xlu2 %v7946_v44, %s13016_s14  ;;  %v6634_v41 = vunpack.i.h.bf16 %v6632_v38  ;;  %v6633_v16 = vunpack.i.l.bf16 %v6632_v38  ;;  %v1091_v38 = vshll.u32 %v8136_v48, 16 }
 0x1dd   : > { %v8117_v3 = vpop.permute.xlu1 %1400  ;;  %v2579_v1 = vrot.slane %v13052_v46, 1 }
 0x1de   : > { %v1463_v62 = vpop.permute.xlu2 %1462  ;;  %v522_v51 = vpop.f32.mrf.mxu0  ;;  %v1093_v59 = vrot.slane %v1091_v38, 1 }
 0x1df   : > { %v1724_v44 = vsel %vm1720_vm12, %v1691_v47, %v1463_v62  ;;  %v8128_v7 = vsel %vm12877_vm5, %v2575_v58, %v2579_v1  ;;  %v1251_v58 = vrot.slane %v994_v42, 1  ;;  %v8156_v47 = vadd.f32 %v7707_v60, %v522_v51 }
 0x1e0   : > { %13053 = vst [vmem:[#allocation155_spill] sm:$0xff] %v8128_v7  ;;  %v1757_v36 = vsel %vm1753_vm13, %v1724_v44, %v8009_v18  ;;  %v6598_v62 = vunpack.i.l.bf16 %v7673_v15  ;;  %v2225_v44 = vrot.slane %v6634_v41, 6  ;;  %v8171_v51 = vrot.slane %v7677_v26, 1 }
 0x1e1   : > { %2689 = vrot.lane.b32.xlu0 %v8128_v7, %s6765_s29  ;;  %6372 = vmatmul.msk.bf16.gmra.mxu1 %vm12879_vm14, %v1757_v36  ;;  %v1252_v43 = vsel %vm12853_vm3, %v1250_v28, %v1251_v58  ;;  %v12594_v1 = vmax.f32 %v8156_v47, 0.0  ;;  %v2224_v36 = vrot.slane %v6633_v16, 6  ;;  %v2728_v58 = vrot.slane %v7630_v50, 1 }
 0x1e2   : > { %13056 = vst [vmem:[#allocation158_spill] sm:$0xff] %v8171_v51  ;;  %v713_v27 = vrot.slane %v6598_v62, 7  ;;  %v2320_v23 = vsel %vm12876_vm0, %v2225_v44, 0.0 }
 0x1e3   : > { %v8138_v11 = vpop.permute.xlu0 %1365  ;;  %1208 = vrot.lane.b32.xlu1 %v1087_v25, %s6765_s29  ;;  %590 = vst.msk [vmem:[%s7176_s26 + $0xf0] sm:$0xff] %vm559_vm7, %v12594_v1  ;;  %v2226_v8 = vsel %vm12876_vm0, %v2224_v36, %v2225_v44  ;;  %v2303_v41 = vsel %vm12876_vm0, 0.0, %v2224_v36  ;;  %v8184_v16 = vsel %vm12853_vm3, %v2728_v58, %v8171_v51 }
 0x1e4   : > { %1468 = vrot.lane.b32.xlu2 %v1087_v25, %s12874_s16  ;;  %v6599_v25 = vunpack.i.h.bf16 %v7673_v15  ;;  %13057 = vst [vmem:[#allocation159_spill] sm:$0xff] %v8184_v16  ;;  %v798_v38 = vsel %vm12855_vm2, 0.0, %v713_v27  ;;  %v2359_v58 = vpack.c.bf16 %v2303_v41, %v2303_v41  ;;  %v2360_v1 = vpack.c.bf16 %v2226_v8, %v2226_v8 }
 0x1e5   : > { %v8147_v18 = vpop.permute.xlu1 %6626 }
 0x1e6   : > { %v8149_v30 = vpop.permute.xlu2 %1432  ;;  %v714_v9 = vrot.slane %v6599_v25, 7  ;;  %v524_v52 = vpop.f32.mrf.mxu0 }
 0x1e7   : > { %v8189_v25 = vadd.f32 %v7707_v60, %v524_v52  ;;  %v2361_v60 = vpack.c.bf16 %v2320_v23, %v2320_v23  ;;  %v13059_v23 = vmax.f32 %v8062_v45, 0.0 }
 0x1e8   : > { %v715_v62 = vsel %vm12855_vm2, %v713_v27, %v714_v9  ;;  %v815_v51 = vsel %vm12855_vm2, %v714_v9, 0.0  ;;  %v1098_v27 = vrot.slane %v1096_v21, 1  ;;  %v13060_v9 = vmax.f32 %v8108_v17, 0.0 }
 0x1e9   : > { %1326 = vrot.lane.b32.xlu0 %v8136_v48, %s6768_s17  ;;  %v12607_v42 = vmax.f32 %v8189_v25, 0.0  ;;  %v849_v41 = vpack.c.bf16 %v715_v62, %v715_v62  ;;  %v850_v8 = vpack.c.bf16 %v815_v51, %v815_v51 }
 0x1ea   : > { %v6670_v33 = vpack.i.bf16 %v13060_v9, %v13059_v23 }
 0x1eb   : > { %v8160_v46 = vpop.permute.xlu0 %2683  ;;  %1502 = vrot.lane.b32.xlu1 %v1252_v43, %s13009_s25  ;;  %591 = vst.msk [vmem:[%s7176_s26 + $0xf8] sm:$0xff] %vm559_vm7, %v12607_v42  ;;  %v924_v50 = vunpack.c.l.b16 %v849_v41  ;;  %v979_v62 = vunpack.c.l.b16 %v850_v8 }
 0x1ec   : > { %13055 = vst [vmem:[#allocation157_spill] sm:$0xff] %v8160_v46  ;;  %1438 = vrot.lane.b32.xlu2 %v8136_v48, %s12870_s28  ;;  %v1089_v46 = vshrl.u32 %v8136_v48, 16 }
 0x1ed   : > { %v8167_v28 = vpop.permute.xlu1 %1202  ;;  %v8228_v17 = vpack.c.b16 %v979_v62, %v979_v62 }
 0x1ee   : > { %v8173_v15 = vpop.permute.xlu2 %1402  ;;  %v1094_v44 = vor.u32 %v1093_v59, %v1089_v46  ;;  %v2478_v46 = vunpack.c.l.b16 %v2361_v60  ;;  %v2586_v60 = vrot.slane %v7650_v14, 1 }
 0x1ef   : > { %v1254_v23 = vrot.slane %v8228_v17, 1 }
 0x1f0   : > { %v1099_v59 = vsel %vm12877_vm5, %v1094_v44, %v1098_v27 }
 0x1f1   : > { %1291 = vrot.lane.b32.xlu0 %v1252_v43, %s13016_s14 }
 0x1f3   : > { %v8193_v36 = vpop.permute.xlu0 %2924  ;;  %2766 = vrot.lane.b32.xlu1 %v8184_v16, %s13016_s14  ;;  %v2429_v16 = vunpack.c.l.b16 %v2359_v58 }
 0x1f4   : > { %13058 = vst [vmem:[#allocation160_spill] sm:$0xff] %v8193_v36  ;;  %1408 = vrot.lane.b32.xlu2 %v1252_v43, %s13049_s21  ;;  %v848_v36 = vpack.c.bf16 %v798_v38, %v798_v38  ;;  %v2430_v43 = vunpack.c.l.b16 %v2360_v1  ;;  %v8220_v1 = vpack.c.b16 %v2478_v46, %v2478_v46 }
 0x1f5   : > { %v8200_v52 = vpop.permute.xlu1 %1496 }
 0x1f6   : > { %v8202_v7 = vpop.permute.xlu2 %6636  ;;  %v923_v21 = vunpack.c.l.b16 %v848_v36  ;;  %v8217_v51 = vpack.c.b16 %v2430_v43, %v2429_v16  ;;  %13061 = vst [vmem:[#allocation161_spill] sm:$0xff] %v8220_v1  ;;  %v1529_v36 = vsel %vm385_vm1, %v7380_v57, %v7963_v32  ;;  %v6609_v32 = vunpack.i.h.bf16 %v7679_v56 }
 0x1f7   : > { %v1561_v41 = vsel %vm559_vm7, %v1529_v36, %v7977_v37 }
 0x1f8   : > { %v8226_v45 = vpack.c.b16 %v924_v50, %v923_v21  ;;  %v8234_v44 = vshrl.u32 %v8217_v51, 16  ;;  %v8237_v16 = vshll.u32 %v8217_v51, 16  ;;  %v8243_v50 = vshrl.u32 %v8220_v1, 16 }
 0x1f9   : > { %1470 = vrot.lane.b32.xlu0 %v1099_v59, %s12874_s16  ;;  %v1594_v14 = vsel %vm1588_vm8, %v1561_v41, %v8046_v0  ;;  %v6608_v21 = vunpack.i.l.bf16 %v7679_v56  ;;  %v717_v41 = vrot.slane %v6609_v32, 7 }
 0x1fa   : > { %13063 = vst [vmem:[#allocation163_spill] sm:$0xff] %v8234_v44  ;;  %v2882_v27 = vrot.slane %v8234_v44, 1  ;;  %v2883_v57 = vrot.slane %v8237_v16, 2  ;;  %v1253_v43 = vrot.slane %v8226_v45, 1  ;;  %v8256_v46 = vrot.slane %v8243_v50, 1 }
 0x1fb   : > { %v8214_v4 = vpop.permute.xlu0 %1320  ;;  %6671 = vrot.lane.b32.xlu1 %v6670_v33, %s6770_s23  ;;  %13064 = vst [vmem:[#allocation164_spill] sm:$0xff] %v8237_v16  ;;  %v1627_v62 = vsel %vm1621_vm9, %v1594_v14, %v8138_v11  ;;  %v716_v56 = vrot.slane %v6608_v21, 7  ;;  %v13071_v21 = vmax.f32 %v8189_v25, 0.0  ;;  %v1108_v25 = vshll.u32 %v8228_v17, 16 }
 0x1fc   : > { %6666 = vrot.lane.b32.xlu2 %v6670_v33, %s6771_s24  ;;  %v12610_v33 = vshll.u32 %v8220_v1, 16  ;;  %13065 = vst [vmem:[#allocation165_spill] sm:$0xff] %v8243_v50  ;;  %v2884_v9 = vor.u32 %v2883_v57, %v2882_v27  ;;  %v2587_v50 = vor.u32 %v2586_v60, %v7645_v29  ;;  %v1255_v27 = vsel %vm12853_vm3, %v1253_v43, %v1254_v23 }
 0x1fd   : > { %v8222_v38 = vpop.permute.xlu1 %2760  ;;  %13066 = vst [vmem:[#allocation166_spill] sm:$0xff] %v8256_v46  ;;  %v13067_v57 = vshll.u32 %v7677_v26, 16  ;;  %v1103_v23 = vshll.u32 %v8226_v45, 16 }
 0x1fe   : > { %13062 = vst [vmem:[#allocation162_spill] sm:$0xff] %v8222_v38  ;;  %v8224_v58 = vpop.permute.xlu2 %1204  ;;  %v2888_v37 = vrot.slane %v12610_v33, 2 }
 0x1ff   : > { %v2591_v33 = vrot.slane %v13067_v57, 1 }
 0x200   : > { %v2889_v0 = vor.u32 %v2888_v37, %v8256_v46  ;;  %v13070_v37 = vmax.f32 %v8156_v47, 0.0  ;;  %v1101_v47 = vshrl.u32 %v8226_v45, 16 }
 0x201   : > { %1440 = vrot.lane.b32.xlu0 %v8226_v45, %s12870_s28  ;;  %v8281_v14 = vsel %vm12877_vm5, %v2587_v50, %v2591_v33  ;;  %v799_v33 = vsel %vm12855_vm2, 0.0, %v716_v56 }
 0x202   : > { %v8278_v11 = vsel %vm2782_vm6, %v2884_v9, %v2889_v0  ;;  %13069 = vst [vmem:[#allocation168_spill] sm:$0xff] %v8281_v14  ;;  %v718_v9 = vsel %vm12855_vm2, %v716_v56, %v717_v41  ;;  %v851_v56 = vpack.c.bf16 %v799_v33, %v799_v33 }
 0x203   : > { %v8251_v8 = vpop.permute.xlu0 %1285  ;;  %1373 = vrot.lane.b32.xlu1 %v1099_v59, %s12872_s22  ;;  %13068 = vst [vmem:[#allocation167_spill] sm:$0xff] %v8278_v11 }
 0x204   : > { %1210 = vrot.lane.b32.xlu2 %v1099_v59, %s6765_s29  ;;  %v1660_v59 = vsel %vm12880_vm10, %v1627_v62, %v8117_v3  ;;  %v816_v3 = vsel %vm12855_vm2, %v717_v41, 0.0  ;;  %v6675_v62 = vpack.i.bf16 %v13071_v21, %v13070_v37  ;;  %v8306_v41 = vrot.slane %v7902_v55, 1 }
 0x205   : > { %v6642_v36 = vpop.permute.xlu1 %6641  ;;  %v1693_v60 = vsel %vm1687_vm11, %v1660_v59, %v8149_v30  ;;  %v2731_v59 = vrot.slane %v7875_v19, 1  ;;  %v853_v57 = vpack.c.bf16 %v816_v3, %v816_v3 }
 0x206   : > { %v8267_v42 = vpop.permute.xlu2 %1498  ;;  %13073 = vst [vmem:[#allocation170_spill] sm:$0xff] %v8306_v41 }
 0x207   : > { %v8317_v37 = vsel %vm12853_vm3, %v2731_v59, %v8306_v41  ;;  %v980_v3 = vunpack.c.l.b16 %v853_v57 }
 0x208   : > { %13074 = vst [vmem:[#allocation171_spill] sm:$0xff] %v8317_v37 }
 0x209   : > { %1410 = vrot.lane.b32.xlu0 %v1255_v27, %s13049_s21 }
 0x20b   : > { %v1465_v32 = vpop.permute.xlu0 %1464  ;;  %2691 = vrot.lane.b32.xlu1 %v8281_v14, %s6765_s29 }
 0x20c   : > { %v1726_v43 = vsel %vm1720_vm12, %v1693_v60, %v1465_v32  ;;  %1504 = vrot.lane.b32.xlu2 %v1255_v27, %s13009_s25  ;;  %v852_v60 = vpack.c.bf16 %v718_v9, %v718_v9  ;;  %v1105_v32 = vrot.slane %v1103_v23, 1  ;;  %v925_v9 = vunpack.c.l.b16 %v851_v56 }
 0x20d   : > { %v8293_v50 = vpop.permute.xlu1 %1367  ;;  %v1759_v30 = vsel %vm1753_vm13, %v1726_v43, %v8200_v52  ;;  %v6644_v52 = vunpack.i.h.bf16 %v6642_v36  ;;  %v6643_v43 = vunpack.i.l.bf16 %v6642_v36  ;;  %v1110_v36 = vrot.slane %v1108_v25, 1 }
 0x20e   : > { %6373 = vmatmul.msk.bf16.gmra.mxu1 %vm12879_vm14, %v1759_v30  ;;  %v8302_v0 = vpop.permute.xlu2 %2762  ;;  %v926_v23 = vunpack.c.l.b16 %v852_v60  ;;  %v1106_v33 = vor.u32 %v1105_v32, %v1101_v47 }
 0x20f   : > { %13072 = vst [vmem:[#allocation169_spill] sm:$0xff] %v8302_v0  ;;  %v2228_v29 = vrot.slane %v6644_v52, 6  ;;  %v2227_v46 = vrot.slane %v6643_v43, 6  ;;  %v996_v0 = vpack.c.b16 %v980_v3, %v980_v3 }
 0x210   : > { %v8323_v38 = vpack.c.b16 %v926_v23, %v925_v9  ;;  %v1111_v14 = vsel %vm12877_vm5, %v1106_v33, %v1110_v36 }
 0x211   : > { %6676 = vrot.lane.b32.xlu0 %v6675_v62, %s6771_s24  ;;  %v2321_v59 = vsel %vm12876_vm0, %v2228_v29, 0.0  ;;  %v2229_v57 = vsel %vm12876_vm0, %v2227_v46, %v2228_v29  ;;  %v2304_v56 = vsel %vm12876_vm0, 0.0, %v2227_v46  ;;  %v1257_v47 = vrot.slane %v996_v0, 1  ;;  %s6775_s24 = smov 40  }
 0x212   : > { %v1256_v32 = vrot.slane %v8323_v38, 1  ;;  %v2364_v52 = vpack.c.bf16 %v2321_v59, %v2321_v59  ;;  %v2362_v43 = vpack.c.bf16 %v2304_v56, %v2304_v56  ;;  %v2363_v3 = vpack.c.bf16 %v2229_v57, %v2229_v57 }
 0x213   : > { %v8311_v30 = vpop.permute.xlu0 %1434  ;;  %1328 = vrot.lane.b32.xlu1 %v8226_v45, %s6768_s17  ;;  %v2598_v59 = vrot.slane %v7905_v6, 1  ;;  %v1115_v57 = vshll.u32 %v8323_v38, 16  ;;  %v2734_v56 = vrot.slane %v7931_v12, 1 }
 0x214   : > { %2768 = vrot.lane.b32.xlu2 %v8317_v37, %s13016_s14  ;;  %v8340_v29 = vsel %vm12853_vm3, %v1256_v32, %v1257_v47  ;;  %v2432_v33 = vunpack.c.l.b16 %v2363_v3 }
 0x215   : > { %v8321_v21 = vpop.permute.xlu1 %2685  ;;  %v2599_v6 = vor.u32 %v2598_v59, %v7900_v35 }
 0x216   : > { %13075 = vst [vmem:[#allocation172_spill] sm:$0xff] %v8321_v21  ;;  %v6652_v17 = vpop.permute.xlu2 %6651  ;;  %v6618_v21 = vunpack.i.l.bf16 %v7915_v24 }
 0x217   : > { %v6654_v46 = vunpack.i.h.bf16 %v6652_v17  ;;  %v6653_v23 = vunpack.i.l.bf16 %v6652_v17  ;;  %v8352_v17 = vrot.slane %v7935_v54, 1 }
 0x219   : > { %1212 = vrot.lane.b32.xlu0 %v1111_v14, %s6765_s29  ;;  %13077 = vst [vmem:[#allocation174_spill] sm:$0xff] %v8352_v17  ;;  %v2231_v32 = vrot.slane %v6654_v46, 6  ;;  %v2230_v47 = vrot.slane %v6653_v23, 6  ;;  %v8367_v37 = vsel %vm12853_vm3, %v2734_v56, %v8352_v17  ;;  %v1120_v46 = vshll.u32 %v996_v0, 16 }
 0x21a   : > { %13081 = vst [vmem:[#allocation178_spill] sm:$0xff] %v8367_v37  ;;  %v1531_v0 = vsel %vm385_vm1, %v7448_v31, %v8167_v28 }
 0x21b   : > { %v8330_v60 = vpop.permute.xlu0 %1404  ;;  %1293 = vrot.lane.b32.xlu1 %v1255_v27, %s13016_s14  ;;  %v2479_v27 = vunpack.c.l.b16 %v2364_v52  ;;  %v2232_v23 = vsel %vm12876_vm0, %v2230_v47, %v2231_v32  ;;  %v2305_v59 = vsel %vm12876_vm0, 0.0, %v2230_v47  ;;  %v2322_v56 = vsel %vm12876_vm0, %v2231_v32, 0.0 }
 0x21c   : > { %6681 = vrot.lane.b32.xlu2 %v6675_v62, %s6770_s23  ;;  %v2431_v62 = vunpack.c.l.b16 %v2362_v43  ;;  %v1122_v32 = vrot.slane %v1120_v46, 1  ;;  %v2366_v19 = vpack.c.bf16 %v2232_v23, %v2232_v23  ;;  %v1563_v46 = vsel %vm559_vm7, %v1531_v0, %v8088_v49  ;;  %s6774_s23 = smov 36  }
 0x21d   : > { %v8335_v25 = vpop.permute.xlu1 %2926  ;;  %v8356_v43 = vpack.c.b16 %v2479_v27, %v2479_v27  ;;  %v13082_v27 = vshll.u32 %v7902_v55, 16  ;;  %v2365_v55 = vpack.c.bf16 %v2305_v59, %v2305_v59 }
 0x21e   : > { %13076 = vst [vmem:[#allocation173_spill] sm:$0xff] %v8335_v25  ;;  %v8337_v9 = vpop.permute.xlu2 %1369  ;;  %v8358_v3 = vpack.c.b16 %v2432_v33, %v2431_v62  ;;  %v1117_v25 = vrot.slane %v1115_v57, 1  ;;  %v1113_v33 = vshrl.u32 %v8323_v38, 16  ;;  %v2434_v49 = vunpack.c.l.b16 %v2366_v19 }
 0x21f   : > { %13078 = vst [vmem:[#allocation175_spill] sm:$0xff] %v8356_v43  ;;  %v2603_v62 = vrot.slane %v13082_v27, 1  ;;  %v8392_v47 = vshrl.u32 %v8356_v43, 16  ;;  %v13088_v31 = vshll.u32 %v8356_v43, 16  ;;  %v2433_v13 = vunpack.c.l.b16 %v2365_v55 }
 0x220   : > { %13079 = vst [vmem:[#allocation176_spill] sm:$0xff] %v8358_v3  ;;  %v8377_v57 = vshrl.u32 %v8358_v3, 16  ;;  %v1118_v17 = vor.u32 %v1117_v25, %v1113_v33 }
 0x221   : > { %1506 = vrot.lane.b32.xlu0 %v8340_v29, %s13009_s25  ;;  %v8389_v27 = vsel %vm12877_vm5, %v2599_v6, %v2603_v62  ;;  %13086 = vst [vmem:[#allocation182_spill] sm:$0xff] %v8392_v47  ;;  %v2367_v62 = vpack.c.bf16 %v2322_v56, %v2322_v56  ;;  %v2897_v28 = vrot.slane %v13088_v31, 2  ;;  %v1596_v56 = vsel %vm1588_vm8, %v1563_v46, %v8214_v4 }
 0x222   : > { %13083 = vst [vmem:[#allocation179_spill] sm:$0xff] %v8377_v57  ;;  %v2891_v6 = vrot.slane %v8377_v57, 1  ;;  %v8414_v23 = vsel %vm12877_vm5, %v1118_v17, %v1122_v32  ;;  %v1629_v11 = vsel %vm1621_vm9, %v1596_v56, %v8293_v50  ;;  %v8438_v50 = vpack.c.b16 %v2434_v49, %v2433_v13 }
 0x223   : > { %v8344_v36 = vpop.permute.xlu0 %6646  ;;  %1472 = vrot.lane.b32.xlu1 %v1111_v14, %s12874_s16  ;;  %13085 = vst [vmem:[#allocation181_spill] sm:$0xff] %v8389_v27  ;;  %v2480_v0 = vunpack.c.l.b16 %v2367_v62  ;;  %v1533_v13 = vsel %vm385_vm1, %v7608_v20, %v8224_v58 }
 0x224   : > { %1375 = vrot.lane.b32.xlu2 %v1111_v14, %s12872_s22  ;;  %v6619_v14 = vunpack.i.h.bf16 %v7915_v24  ;;  %v8380_v24 = vshll.u32 %v8358_v3, 16  ;;  %v8461_v56 = vshrl.u32 %v8438_v50, 16 }
 0x225   : > { %v8354_v52 = vpop.permute.xlu1 %1322  ;;  %v8440_v62 = vpack.c.b16 %v2480_v0, %v2480_v0 }
 0x226   : > { %v8360_v41 = vpop.permute.xlu2 %2687  ;;  %13084 = vst [vmem:[#allocation180_spill] sm:$0xff] %v8380_v24  ;;  %v2892_v25 = vrot.slane %v8380_v24, 2 }
 0x227   : > { %13080 = vst [vmem:[#allocation177_spill] sm:$0xff] %v8360_v41  ;;  %v720_v41 = vrot.slane %v6619_v14, 7  ;;  %v12639_v58 = vshll.u32 %v8440_v62, 16  ;;  %v8470_v49 = vshrl.u32 %v8440_v62, 16 }
 0x228   : > { %v2893_v59 = vor.u32 %v2892_v25, %v2891_v6  ;;  %13090 = vst [vmem:[#allocation185_spill] sm:$0xff] %v8440_v62 }
 0x229   : > { %2770 = vrot.lane.b32.xlu0 %v8367_v37, %s13016_s14  ;;  %v719_v37 = vrot.slane %v6618_v21, 7  ;;  %v8406_v21 = vrot.slane %v8392_v47, 1  ;;  %v817_v14 = vsel %vm12855_vm2, %v720_v41, 0.0  ;;  %v2610_v47 = vrot.slane %v7958_v39, 1  ;;  %13093 = vst [vmem:[#allocation187_spill] sm:$0xff] %v8461_v56 }
 0x22a   : > { %v856_v17 = vpack.c.bf16 %v817_v14, %v817_v14  ;;  %13094 = vst [vmem:[#allocation188_spill] sm:$0xff] %v8470_v49 }
 0x22b   : > { %v8384_v35 = vpop.permute.xlu0 %1206  ;;  %1442 = vrot.lane.b32.xlu1 %v8323_v38, %s12870_s28  ;;  %13087 = vst [vmem:[#allocation183_spill] sm:$0xff] %v8406_v21  ;;  %v2898_v12 = vor.u32 %v2897_v28, %v8406_v21  ;;  %v800_v31 = vsel %vm12855_vm2, 0.0, %v719_v37  ;;  %v2611_v19 = vor.u32 %v2610_v47, %v7955_v5 }
 0x22c   : > { %2693 = vrot.lane.b32.xlu2 %v8389_v27, %s6765_s29  ;;  %v721_v27 = vsel %vm12855_vm2, %v719_v37, %v720_v41  ;;  %v854_v32 = vpack.c.bf16 %v800_v31, %v800_v31  ;;  %v1662_v37 = vsel %vm12880_vm10, %v1629_v11, %v8173_v15  ;;  %v981_v25 = vunpack.c.l.b16 %v856_v17 }
 0x22d   : > { %v8399_v26 = vpop.permute.xlu1 %1287  ;;  %v8427_v41 = vsel %vm2782_vm6, %v2893_v59, %v2898_v12  ;;  %v855_v6 = vpack.c.bf16 %v721_v27, %v721_v27  ;;  %v1695_v55 = vsel %vm1687_vm11, %v1662_v37, %v8311_v30  ;;  %v13091_v15 = vshll.u32 %v7935_v54, 16 }
 0x22e   : > { %v8403_v33 = vpop.permute.xlu2 %1324  ;;  %13089 = vst [vmem:[#allocation184_spill] sm:$0xff] %v8427_v41  ;;  %v927_v47 = vunpack.c.l.b16 %v854_v32  ;;  %v1565_v59 = vsel %vm559_vm7, %v1533_v13, %v8251_v8  ;;  %v997_v31 = vpack.c.b16 %v981_v25, %v981_v25  ;;  %v2900_v8 = vrot.slane %v8461_v56, 1 }
 0x22f   : > { %v2615_v11 = vrot.slane %v13091_v15, 1  ;;  %v928_v46 = vunpack.c.l.b16 %v855_v6  ;;  %v1598_v20 = vsel %vm1588_vm8, %v1565_v59, %v8354_v52  ;;  %v8483_v52 = vrot.slane %v8470_v49, 1 }
 0x230   : > { %v2906_v6 = vrot.slane %v12639_v58, 2  ;;  %v1631_v37 = vsel %vm1621_vm9, %v1598_v20, %v8337_v9  ;;  %v6628_v13 = vunpack.i.l.bf16 %v8147_v18 }
 0x231   : > { %1377 = vrot.lane.b32.xlu0 %v8414_v23, %s12872_s22  ;;  %v8454_v30 = vsel %vm12877_vm5, %v2611_v19, %v2615_v11  ;;  %v8478_v32 = vpack.c.b16 %v928_v46, %v927_v47  ;;  %13096 = vst [vmem:[#allocation190_spill] sm:$0xff] %v8483_v52  ;;  %v6629_v47 = vunpack.i.h.bf16 %v8147_v18 }
 0x232   : > { %13092 = vst [vmem:[#allocation186_spill] sm:$0xff] %v8454_v30  ;;  %v2907_v15 = vor.u32 %v2906_v6, %v8483_v52  ;;  %v8513_v6 = vrot.slane %v8043_v2, 1  ;;  %v722_v18 = vrot.slane %v6628_v13, 7 }
 0x233   : > { %v1501_v4 = vpop.permute.xlu0 %1500  ;;  %1412 = vrot.lane.b32.xlu1 %v8340_v29, %s13049_s21  ;;  %v1259_v25 = vrot.slane %v8478_v32, 1 }
 0x234   : > { %1330 = vrot.lane.b32.xlu2 %v8323_v38, %s6768_s17  ;;  %13098 = vst [vmem:[#allocation192_spill] sm:$0xff] %v8513_v6 }
 0x235   : > { %v1467_v12 = vpop.permute.xlu1 %1466 }
 0x236   : > { %v1728_v28 = vsel %vm1720_vm12, %v1695_v55, %v1467_v12  ;;  %v8443_v27 = vpop.permute.xlu2 %1289 }
 0x237   : > { %v1761_v14 = vsel %vm1753_vm13, %v1728_v28, %v8267_v42  ;;  %v8464_v42 = vshll.u32 %v8438_v50, 16  ;;  %v1260_v28 = vrot.slane %v997_v31, 1 }
 0x238   : > { %6374 = vmatmul.msk.bf16.gmra.mxu1 %vm12879_vm14, %v1761_v14 }
 0x239   : > { %2695 = vrot.lane.b32.xlu0 %v8454_v30, %s6765_s29  ;;  %v2901_v0 = vrot.slane %v8464_v42, 2  ;;  %v1261_v9 = vsel %vm12853_vm3, %v1259_v25, %v1260_v28 }
 0x23b   : > { %v8472_v17 = vpop.permute.xlu0 %2764  ;;  %1214 = vrot.lane.b32.xlu1 %v8414_v23, %s6765_s29  ;;  %v2902_v55 = vor.u32 %v2901_v0, %v2900_v8  ;;  %v2737_v0 = vrot.slane %v8036_v61, 1 }
 0x23c   : > { %13095 = vst [vmem:[#allocation189_spill] sm:$0xff] %v8472_v17  ;;  %1295 = vrot.lane.b32.xlu2 %v8340_v29, %s13016_s14  ;;  %v1664_v29 = vsel %vm12880_vm10, %v1631_v37, %v8330_v60  ;;  %v1127_v60 = vshll.u32 %v8478_v32, 16  ;;  %v723_v37 = vrot.slane %v6629_v47, 7 }
 0x23d   : > { %v1437_v19 = vpop.permute.xlu1 %1436  ;;  %v8494_v11 = vsel %vm2782_vm6, %v2902_v55, %v2907_v15  ;;  %v1125_v55 = vshrl.u32 %v8478_v32, 16  ;;  %v8521_v25 = vsel %vm12853_vm3, %v2737_v0, %v8513_v6 }
 0x23e   : > { %v1469_v12 = vpop.permute.xlu2 %1468  ;;  %13097 = vst [vmem:[#allocation191_spill] sm:$0xff] %v8494_v11  ;;  %v1697_v14 = vsel %vm1687_vm11, %v1664_v29, %v1437_v19  ;;  %v818_v28 = vsel %vm12855_vm2, %v723_v37, 0.0  ;;  %v801_v29 = vsel %vm12855_vm2, 0.0, %v722_v18 }
 0x23f   : > { %v1730_v59 = vsel %vm1720_vm12, %v1697_v14, %v1469_v12  ;;  %v1132_v12 = vshll.u32 %v997_v31, 16  ;;  %13099 = vst [vmem:[#allocation193_spill] sm:$0xff] %v8521_v25 }
 0x240   : > { %v1763_v19 = vsel %vm1753_vm13, %v1730_v59, %v1501_v4  ;;  %v724_v4 = vsel %vm12855_vm2, %v722_v18, %v723_v37  ;;  %v859_v59 = vpack.c.bf16 %v818_v28, %v818_v28  ;;  %v6639_v37 = vunpack.i.h.bf16 %v8202_v7 }
 0x241   : > { %1332 = vrot.lane.b32.xlu0 %v8478_v32, %s6768_s17  ;;  %v1134_v14 = vrot.slane %v1132_v12, 1  ;;  %v858_v0 = vpack.c.bf16 %v724_v4, %v724_v4  ;;  %v2622_v18 = vrot.slane %v8059_v34, 1  ;;  %v6638_v12 = vunpack.i.l.bf16 %v8202_v7 }
 0x242   : > { %v982_v5 = vunpack.c.l.b16 %v859_v59  ;;  %v13101_v7 = vshll.u32 %v8043_v2, 16 }
 0x243   : > { %v6662_v46 = vpop.permute.xlu0 %6661  ;;  %1508 = vrot.lane.b32.xlu1 %v1261_v9, %s13009_s25 }
 0x244   : > { %1474 = vrot.lane.b32.xlu2 %v8414_v23, %s12874_s16  ;;  %v1129_v23 = vrot.slane %v1127_v60, 1  ;;  %v857_v60 = vpack.c.bf16 %v801_v29, %v801_v29  ;;  %v6664_v58 = vunpack.i.h.bf16 %v6662_v46  ;;  %v6663_v39 = vunpack.i.l.bf16 %v6662_v46 }
 0x245   : > { %v8507_v20 = vpop.permute.xlu1 %1406  ;;  %v726_v29 = vrot.slane %v6639_v37, 7  ;;  %v998_v59 = vpack.c.b16 %v982_v5, %v982_v5  ;;  %v2627_v34 = vrot.slane %v13101_v7, 1 }
 0x246   : > { %v8509_v8 = vpop.permute.xlu2 %1438  ;;  %v1130_v31 = vor.u32 %v1129_v23, %v1125_v55  ;;  %v929_v55 = vunpack.c.l.b16 %v857_v60  ;;  %v930_v23 = vunpack.c.l.b16 %v858_v0  ;;  %v2234_v28 = vrot.slane %v6664_v58, 6 }
 0x247   : > { %v2233_v4 = vrot.slane %v6663_v39, 6  ;;  %v725_v0 = vrot.slane %v6638_v12, 7  ;;  %v819_v58 = vsel %vm12855_vm2, %v726_v29, 0.0  ;;  %v1263_v12 = vrot.slane %v998_v59, 1 }
 0x248   : > { %6375 = vmatmul.msk.bf16.gmra.mxu1 %vm12879_vm14, %v1763_v19  ;;  %v1135_v19 = vsel %vm12877_vm5, %v1130_v31, %v1134_v14  ;;  %v2623_v14 = vor.u32 %v2622_v18, %v8056_v22  ;;  %v8550_v60 = vpack.c.b16 %v930_v23, %v929_v55  ;;  %v2323_v21 = vsel %vm12876_vm0, %v2234_v28, 0.0 }
 0x249   : > { %1297 = vrot.lane.b32.xlu0 %v1261_v9, %s13016_s14  ;;  %v2306_v39 = vsel %vm12876_vm0, 0.0, %v2233_v4  ;;  %v727_v5 = vsel %vm12855_vm2, %v725_v0, %v726_v29  ;;  %v802_v18 = vsel %vm12855_vm2, 0.0, %v725_v0  ;;  %v1535_v29 = vsel %vm385_vm1, %v7761_v10, %v8384_v35 }
 0x24a   : > { %v8561_v37 = vsel %vm12877_vm5, %v2623_v14, %v2627_v34  ;;  %v1262_v23 = vrot.slane %v8550_v60, 1  ;;  %v1139_v34 = vshll.u32 %v8550_v60, 16  ;;  %v862_v22 = vpack.c.bf16 %v819_v58, %v819_v58 }
 0x24b   : > { %v8524_v15 = vpop.permute.xlu0 %1371  ;;  %2772 = vrot.lane.b32.xlu1 %v8521_v25, %s13016_s14  ;;  %13102 = vst [vmem:[#allocation195_spill] sm:$0xff] %v8561_v37  ;;  %v860_v6 = vpack.c.bf16 %v802_v18, %v802_v18  ;;  %v861_v49 = vpack.c.bf16 %v727_v5, %v727_v5  ;;  %v1137_v25 = vshrl.u32 %v8550_v60, 16 }
 0x24c   : > { %1444 = vrot.lane.b32.xlu2 %v8478_v32, %s12870_s28  ;;  %v1264_v17 = vsel %vm12853_vm3, %v1262_v23, %v1263_v12  ;;  %v983_v10 = vunpack.c.l.b16 %v862_v22  ;;  %v2740_v12 = vrot.slane %v8217_v51, 1 }
 0x24d   : > { %v8532_v47 = vpop.permute.xlu1 %6656  ;;  %v931_v35 = vunpack.c.l.b16 %v860_v6  ;;  %v932_v30 = vunpack.c.l.b16 %v861_v49 }
 0x24e   : > { %v8534_v13 = vpop.permute.xlu2 %1408 }
 0x251   : > { %1476 = vrot.lane.b32.xlu0 %v1135_v19, %s12874_s16 }
 0x253   : > { %v8541_v52 = vpop.permute.xlu0 %2689  ;;  %1379 = vrot.lane.b32.xlu1 %v1135_v19, %s12872_s22 }
 0x254   : > { %13100 = vst [vmem:[#allocation194_spill] sm:$0xff] %v8541_v52  ;;  %1414 = vrot.lane.b32.xlu2 %v1261_v9, %s13049_s21  ;;  %v2235_v9 = vsel %vm12876_vm0, %v2233_v4, %v2234_v28  ;;  %v2370_v28 = vpack.c.bf16 %v2323_v21, %v2323_v21  ;;  %v2368_v4 = vpack.c.bf16 %v2306_v39, %v2306_v39 }
 0x255   : > { %v8545_v46 = vpop.permute.xlu1 %1208  ;;  %v2369_v7 = vpack.c.bf16 %v2235_v9, %v2235_v9  ;;  %v1141_v9 = vrot.slane %v1139_v34, 1 }
 0x256   : > { %v8547_v31 = vpop.permute.xlu2 %6666  ;;  %v2481_v52 = vunpack.c.l.b16 %v2370_v28  ;;  %v2435_v21 = vunpack.c.l.b16 %v2368_v4  ;;  %v8601_v28 = vrot.slane %v8220_v1, 1 }
 0x257   : > { %v2436_v39 = vunpack.c.l.b16 %v2369_v7 }
 0x258   : > { %v8588_v18 = vpack.c.b16 %v2481_v52, %v2481_v52  ;;  %13106 = vst [vmem:[#allocation199_spill] sm:$0xff] %v8601_v28  ;;  %v8603_v52 = vpack.c.b16 %v932_v30, %v931_v35  ;;  %v8621_v30 = vsel %vm12853_vm3, %v2740_v12, %v8601_v28 }
 0x259   : > { %1446 = vrot.lane.b32.xlu0 %v8550_v60, %s12870_s28  ;;  %v8590_v23 = vpack.c.b16 %v2436_v39, %v2435_v21  ;;  %13109 = vst [vmem:[#allocation202_spill] sm:$0xff] %v8621_v30 }
 0x25a   : > { %13103 = vst [vmem:[#allocation196_spill] sm:$0xff] %v8588_v18  ;;  %v12661_v7 = vshll.u32 %v8588_v18, 16  ;;  %v8617_v34 = vshrl.u32 %v8588_v18, 16  ;;  %v1265_v35 = vrot.slane %v8603_v52, 1 }
 0x25b   : > { %v8565_v55 = vpop.permute.xlu0 %1326  ;;  %2697 = vrot.lane.b32.xlu1 %v8561_v37, %s6765_s29  ;;  %v1144_v37 = vshll.u32 %v998_v59, 16  ;;  %13104 = vst [vmem:[#allocation197_spill] sm:$0xff] %v8590_v23 }
 0x25c   : > { %1216 = vrot.lane.b32.xlu2 %v1135_v19, %s6765_s29  ;;  %v1567_v19 = vsel %vm559_vm7, %v1535_v29, %v8399_v26  ;;  %v1142_v26 = vor.u32 %v1141_v9, %v1137_v25  ;;  %13108 = vst [vmem:[#allocation201_spill] sm:$0xff] %v8617_v34  ;;  %v8629_v9 = vrot.slane %v8617_v34, 1 }
 0x25d   : > { %v1503_v14 = vpop.permute.xlu1 %1502  ;;  %v1600_v5 = vsel %vm1588_vm8, %v1567_v19, %v8403_v33  ;;  %v1146_v59 = vrot.slane %v1144_v37, 1  ;;  %v999_v33 = vpack.c.b16 %v983_v10, %v983_v10  ;;  %v8614_v37 = vshll.u32 %v8590_v23, 16 }
 0x25e   : > { %v8575_v0 = vpop.permute.xlu2 %1210  ;;  %v1633_v22 = vsel %vm1621_vm9, %v1600_v5, %v8524_v15  ;;  %v8609_v15 = vshrl.u32 %v8590_v23, 16  ;;  %13110 = vst [vmem:[#allocation203_spill] sm:$0xff] %v8629_v9  ;;  %v2915_v19 = vrot.slane %v12661_v7, 2  ;;  %v6649_v7 = vunpack.i.h.bf16 %v8344_v36 }
 0x25f   : > { %v1666_v4 = vsel %vm12880_vm10, %v1633_v22, %v8507_v20  ;;  %v1147_v25 = vsel %vm12877_vm5, %v1142_v26, %v1146_v59  ;;  %v2910_v39 = vrot.slane %v8614_v37, 2  ;;  %v1266_v5 = vrot.slane %v999_v33, 1 }
 0x260   : > { %13107 = vst [vmem:[#allocation200_spill] sm:$0xff] %v8609_v15  ;;  %v2909_v20 = vrot.slane %v8609_v15, 1  ;;  %v1699_v21 = vsel %vm1687_vm11, %v1666_v4, %v8509_v8  ;;  %v12660_v8 = vrot.slane %v8461_v56, 7  ;;  %v2916_v59 = vor.u32 %v2915_v19, %v8629_v9 }
 0x261   : > { %1416 = vrot.lane.b32.xlu0 %v1264_v17, %s13049_s21  ;;  %v8662_v19 = vrot.slane %v8356_v43, 1  ;;  %v1156_v9 = vshll.u32 %v999_v33, 16 }
 0x262   : > { %v2911_v22 = vor.u32 %v2910_v39, %v2909_v20  ;;  %v8648_v4 = vor.u32 %v12660_v8, %v8464_v42  ;;  %v2634_v20 = vrot.slane %v8237_v16, 1  ;;  %v2743_v39 = vrot.slane %v8358_v3, 1 }
 0x263   : > { %v8582_v58 = vpop.permute.xlu0 %1291  ;;  %1334 = vrot.lane.b32.xlu1 %v8550_v60, %s6768_s17  ;;  %13114 = vst [vmem:[#allocation207_spill] sm:$0xff] %v8662_v19  ;;  %v1149_v16 = vshrl.u32 %v8603_v52, 16 }
 0x264   : > { %1510 = vrot.lane.b32.xlu2 %v1264_v17, %s13009_s25  ;;  %13112 = vst [vmem:[#allocation205_spill] sm:$0xff] %v8648_v4  ;;  %v8672_v8 = vsel %vm12853_vm3, %v2743_v39, %v8662_v19  ;;  %v6648_v4 = vunpack.i.l.bf16 %v8344_v36  ;;  %v1158_v19 = vrot.slane %v1156_v9, 1 }
 0x265   : > { %v8595_v6 = vpop.permute.xlu1 %2766  ;;  %13116 = vst [vmem:[#allocation208_spill] sm:$0xff] %v8672_v8 }
 0x266   : > { %13105 = vst [vmem:[#allocation198_spill] sm:$0xff] %v8595_v6  ;;  %v8597_v49 = vpop.permute.xlu2 %1504  ;;  %v728_v36 = vrot.slane %v6648_v4, 7 }
 0x269   : > { %1218 = vrot.lane.b32.xlu0 %v1147_v25, %s6765_s29 }
 0x26b   : > { %v1471_v29 = vpop.permute.xlu0 %1470  ;;  %1299 = vrot.lane.b32.xlu1 %v1264_v17, %s13016_s14 }
 0x26c   : > { %v1732_v10 = vsel %vm1720_vm12, %v1699_v21, %v1471_v29  ;;  %2774 = vrot.lane.b32.xlu2 %v8621_v30, %s13016_s14  ;;  %v8651_v29 = vsel %vm2782_vm6, %v2911_v22, %v2916_v59  ;;  %v1267_v21 = vsel %vm12853_vm3, %v1265_v35, %v1266_v5  ;;  %v2635_v35 = vor.u32 %v2634_v20, %v8234_v44 }
 0x26d   : > { %v8638_v26 = vpop.permute.xlu1 %6671  ;;  %v1765_v17 = vsel %vm1753_vm13, %v1732_v10, %v1503_v14  ;;  %13113 = vst [vmem:[#allocation206_spill] sm:$0xff] %v8651_v29  ;;  %v1151_v10 = vshll.u32 %v8603_v52, 16  ;;  %v13115_v5 = vshll.u32 %v8220_v1, 16 }
 0x26e   : > { %6376 = vmatmul.msk.bf16.gmra.mxu1 %vm12879_vm14, %v1765_v17  ;;  %v8643_v12 = vpop.permute.xlu2 %2768 }
 0x26f   : > { %13111 = vst [vmem:[#allocation204_spill] sm:$0xff] %v8643_v12  ;;  %v2639_v59 = vrot.slane %v13115_v5, 1  ;;  %v2646_v12 = vrot.slane %v8380_v24, 1 }
 0x271   : > { %1512 = vrot.lane.b32.xlu0 %v1267_v21, %s13009_s25  ;;  %v8684_v20 = vsel %vm12877_vm5, %v2635_v35, %v2639_v59  ;;  %v803_v59 = vsel %vm12855_vm2, 0.0, %v728_v36  ;;  %v2647_v9 = vor.u32 %v2646_v12, %v8377_v57  ;;  %v1537_v12 = vsel %vm385_vm1, %v7909_v40, %v8545_v46 }
 0x272   : > { %v863_v4 = vpack.c.bf16 %v803_v59, %v803_v59 }
 0x273   : > { %v8655_v14 = vpop.permute.xlu0 %1440  ;;  %1478 = vrot.lane.b32.xlu1 %v1147_v25, %s12874_s16 }
 0x274   : > { %1381 = vrot.lane.b32.xlu2 %v1147_v25, %s12872_s22  ;;  %v1153_v25 = vrot.slane %v1151_v10, 1  ;;  %v729_v10 = vrot.slane %v6649_v7, 7  ;;  %v933_v6 = vunpack.c.l.b16 %v863_v4  ;;  %v1569_v4 = vsel %vm559_vm7, %v1537_v12, %v8443_v27 }
 0x275   : > { %v1374_v17 = vpop.permute.xlu1 %1373 }
 0x276   : > { %v8665_v22 = vpop.permute.xlu2 %6681  ;;  %v1154_v39 = vor.u32 %v1153_v25, %v1149_v16  ;;  %v820_v33 = vsel %vm12855_vm2, %v729_v10, 0.0  ;;  %v730_v35 = vsel %vm12855_vm2, %v728_v36, %v729_v10  ;;  %v13119_v10 = vshll.u32 %v8356_v43, 16 }
 0x277   : > { %v865_v16 = vpack.c.bf16 %v820_v33, %v820_v33  ;;  %v864_v25 = vpack.c.bf16 %v730_v35, %v730_v35 }
 0x278   : > { %v1159_v34 = vsel %vm12877_vm5, %v1154_v39, %v1158_v19  ;;  %v2651_v36 = vrot.slane %v13119_v10, 1 }
 0x279   : > { %2776 = vrot.lane.b32.xlu0 %v8672_v8, %s13016_s14  ;;  %v984_v39 = vunpack.c.l.b16 %v865_v16  ;;  %v934_v33 = vunpack.c.l.b16 %v864_v25 }
 0x27b   : > { %v8679_v28 = vpop.permute.xlu0 %1410  ;;  %1448 = vrot.lane.b32.xlu1 %v8603_v52, %s12870_s28  ;;  %v1000_v35 = vpack.c.b16 %v984_v39, %v984_v39  ;;  %v8719_v16 = vpack.c.b16 %v934_v33, %v933_v6 }
 0x27c   : > { %2699 = vrot.lane.b32.xlu2 %v8684_v20, %s6765_s29 }
 0x27d   : > { %v8688_v5 = vpop.permute.xlu1 %2691  ;;  %v1268_v40 = vrot.slane %v8719_v16, 1  ;;  %v1269_v46 = vrot.slane %v1000_v35, 1 }
 0x27e   : > { %13117 = vst [vmem:[#allocation209_spill] sm:$0xff] %v8688_v5  ;;  %v8690_v44 = vpop.permute.xlu2 %1375  ;;  %v8709_v5 = vsel %vm12877_vm5, %v2647_v9, %v2651_v36  ;;  %v1602_v9 = vsel %vm1588_vm8, %v1569_v4, %v8565_v55  ;;  %v6658_v36 = vunpack.i.l.bf16 %v8532_v47 }
 0x27f   : > { %13120 = vst [vmem:[#allocation211_spill] sm:$0xff] %v8709_v5  ;;  %v1635_v10 = vsel %vm1621_vm9, %v1602_v9, %v1374_v17  ;;  %v1270_v27 = vsel %vm12853_vm3, %v1268_v40, %v1269_v46  ;;  %v1163_v17 = vshll.u32 %v8719_v16, 16  ;;  %v2746_v9 = vrot.slane %v8438_v50, 1 }
 0x280   : > { %v1668_v6 = vsel %vm12880_vm10, %v1635_v10, %v8534_v13  ;;  %v731_v46 = vrot.slane %v6658_v36, 7  ;;  %v12676_v10 = vrot.slane %v8609_v15, 7 }
 0x281   : > { %1383 = vrot.lane.b32.xlu0 %v1159_v34, %s12872_s22  ;;  %v1701_v12 = vsel %vm1687_vm11, %v1668_v6, %v8655_v14  ;;  %v1539_v14 = vsel %vm385_vm1, %v8136_v48, %v8575_v0  ;;  %v1161_v6 = vshrl.u32 %v8719_v16, 16 }
 0x282   : > { %v1571_v57 = vsel %vm559_vm7, %v1539_v14, %v8582_v58 }
 0x283   : > { %v8698_v7 = vpop.permute.xlu0 %6676  ;;  %1418 = vrot.lane.b32.xlu1 %v1267_v21, %s13049_s21 }
 0x284   : > { %1336 = vrot.lane.b32.xlu2 %v8603_v52, %s6768_s17 }
 0x285   : > { %v1329_v19 = vpop.permute.xlu1 %1328 }
 0x286   : > { %v8704_v24 = vpop.permute.xlu2 %2693 }
 0x287   : > { %13118 = vst [vmem:[#allocation210_spill] sm:$0xff] %v8704_v24 }
 0x289   : > { %2701 = vrot.lane.b32.xlu0 %v8709_v5, %s6765_s29 }
 0x28b   : > { %v8716_v59 = vpop.permute.xlu0 %1212  ;;  %1220 = vrot.lane.b32.xlu1 %v1159_v34, %s6765_s29 }
 0x28c   : > { %1301 = vrot.lane.b32.xlu2 %v1267_v21, %s13016_s14  ;;  %v6659_v21 = vunpack.i.h.bf16 %v8532_v47  ;;  %v8751_v47 = vrot.slane %v8440_v62, 1 }
 0x28d   : > { %v8724_v25 = vpop.permute.xlu1 %1293 }
 0x28e   : > { %v8728_v39 = vpop.permute.xlu2 %1330  ;;  %13121 = vst [vmem:[#allocation212_spill] sm:$0xff] %v8751_v47  ;;  %v732_v40 = vrot.slane %v6659_v21, 7  ;;  %v1604_v21 = vsel %vm1588_vm8, %v1571_v57, %v1329_v19  ;;  %v8772_v48 = vsel %vm12853_vm3, %v2746_v9, %v8751_v47 }
 0x28f   : > { %13123 = vst [vmem:[#allocation214_spill] sm:$0xff] %v8772_v48  ;;  %v1637_v19 = vsel %vm1621_vm9, %v1604_v21, %v8690_v44  ;;  %v2658_v21 = vrot.slane %v8464_v42, 1 }
 0x290   : > { %v733_v0 = vsel %vm12855_vm2, %v731_v46, %v732_v40  ;;  %v821_v57 = vsel %vm12855_vm2, %v732_v40, 0.0  ;;  %v1670_v47 = vsel %vm12880_vm10, %v1637_v19, %v8679_v28  ;;  %v6674_v19 = vunpack.i.h.bf16 %v8638_v26 }
 0x291   : > { %1338 = vrot.lane.b32.xlu0 %v8719_v16, %s6768_s17  ;;  %v2659_v42 = vor.u32 %v2658_v21, %v8461_v56 }
 0x293   : > { %v8739_v55 = vpop.permute.xlu0 %1506  ;;  %1514 = vrot.lane.b32.xlu1 %v1270_v27, %s13009_s25 }
 0x294   : > { %1480 = vrot.lane.b32.xlu2 %v1159_v34, %s12874_s16 }
 0x295   : > { %v1473_v33 = vpop.permute.xlu1 %1472 }
 0x296   : > { %v1734_v13 = vsel %vm1720_vm12, %v1701_v12, %v1473_v33  ;;  %v8747_v4 = vpop.permute.xlu2 %1295  ;;  %v1165_v33 = vrot.slane %v1163_v17, 1  ;;  %v1168_v12 = vshll.u32 %v1000_v35, 16  ;;  %v804_v35 = vsel %vm12855_vm2, 0.0, %v731_v46 }
 0x297   : > { %v1767_v34 = vsel %vm1753_vm13, %v1734_v13, %v8597_v49  ;;  %v8767_v49 = vor.u32 %v12676_v10, %v8614_v37  ;;  %v866_v9 = vpack.c.bf16 %v804_v35, %v804_v35  ;;  %v6669_v46 = vunpack.i.h.bf16 %v8547_v31 }
 0x298   : > { %6377 = vmatmul.msk.bf16.gmra.mxu1 %vm12879_vm14, %v1767_v34  ;;  %v1166_v58 = vor.u32 %v1165_v33, %v1161_v6  ;;  %v1170_v17 = vrot.slane %v1168_v12, 1  ;;  %v867_v34 = vpack.c.bf16 %v733_v0, %v733_v0  ;;  %v6668_v10 = vunpack.i.l.bf16 %v8547_v31 }
 0x299   : > { %1303 = vrot.lane.b32.xlu0 %v1270_v27, %s13016_s14  ;;  %13122 = vst [vmem:[#allocation213_spill] sm:$0xff] %v8767_v49  ;;  %v868_v49 = vpack.c.bf16 %v821_v57, %v821_v57  ;;  %v935_v40 = vunpack.c.l.b16 %v866_v9  ;;  %v735_v12 = vrot.slane %v6669_v46, 7  ;;  %v13125_v9 = vshll.u32 %v8440_v62, 16 }
 0x29a   : > { %v1171_v6 = vsel %vm12877_vm5, %v1166_v58, %v1170_v17  ;;  %v936_v44 = vunpack.c.l.b16 %v867_v34  ;;  %v734_v0 = vrot.slane %v6668_v10, 7 }
 0x29b   : > { %v8776_v36 = vpop.permute.xlu0 %2770  ;;  %2778 = vrot.lane.b32.xlu1 %v8772_v48, %s13016_s14  ;;  %v985_v31 = vunpack.c.l.b16 %v868_v49  ;;  %v822_v58 = vsel %vm12855_vm2, %v735_v12, 0.0  ;;  %v6673_v49 = vunpack.i.l.bf16 %v8638_v26  ;;  %v2663_v34 = vrot.slane %v13125_v9, 1 }
 0x29c   : > { %13124 = vst [vmem:[#allocation215_spill] sm:$0xff] %v8776_v36  ;;  %1450 = vrot.lane.b32.xlu2 %v8719_v16, %s12870_s28  ;;  %v805_v10 = vsel %vm12855_vm2, 0.0, %v734_v0  ;;  %v736_v46 = vsel %vm12855_vm2, %v734_v0, %v735_v12  ;;  %v2237_v26 = vrot.slane %v6674_v19, 6  ;;  %v6683_v9 = vunpack.i.l.bf16 %v8665_v22 }
 0x29d   : > { %v1443_v13 = vpop.permute.xlu1 %1442 }
 0x29e   : > { %v1475_v14 = vpop.permute.xlu2 %1474  ;;  %v1703_v33 = vsel %vm1687_vm11, %v1670_v47, %v1443_v13  ;;  %v8800_v47 = vpack.c.b16 %v936_v44, %v935_v40  ;;  %v8818_v40 = vsel %vm12877_vm5, %v2659_v42, %v2663_v34  ;;  %v2236_v44 = vrot.slane %v6673_v49, 6 }
 0x29f   : > { %v1736_v57 = vsel %vm1720_vm12, %v1703_v33, %v1475_v14  ;;  %v871_v14 = vpack.c.bf16 %v822_v58, %v822_v58  ;;  %v869_v33 = vpack.c.bf16 %v805_v10, %v805_v10  ;;  %13126 = vst [vmem:[#allocation216_spill] sm:$0xff] %v8818_v40  ;;  %v2324_v19 = vsel %vm12876_vm0, %v2237_v26, 0.0 }
 0x2a0   : > { %v1769_v13 = vsel %vm1753_vm13, %v1736_v57, %v8739_v55  ;;  %v870_v55 = vpack.c.bf16 %v736_v46, %v736_v46  ;;  %v1271_v12 = vrot.slane %v8800_v47, 1  ;;  %v2307_v49 = vsel %vm12876_vm0, 0.0, %v2236_v44 }
 0x2a1   : > { %1482 = vrot.lane.b32.xlu0 %v1171_v6, %s12874_s16  ;;  %v986_v58 = vunpack.c.l.b16 %v871_v14  ;;  %v937_v42 = vunpack.c.l.b16 %v869_v33  ;;  %v2238_v34 = vsel %vm12876_vm0, %v2236_v44, %v2237_v26  ;;  %v2373_v14 = vpack.c.bf16 %v2324_v19, %v2324_v19 }
 0x2a2   : > { %v2371_v33 = vpack.c.bf16 %v2307_v49, %v2307_v49  ;;  %v1173_v36 = vshrl.u32 %v8800_v47, 16  ;;  %v2372_v24 = vpack.c.bf16 %v2238_v34, %v2238_v34  ;;  %v2239_v48 = vrot.slane %v6683_v9, 6 }
 0x2a3   : > { %v8793_v35 = vpop.permute.xlu0 %1377  ;;  %1385 = vrot.lane.b32.xlu1 %v1171_v6, %s12872_s22  ;;  %v3062_v19 = vunpack.c.l.b16 %v2373_v14 }
 0x2a4   : > { %1420 = vrot.lane.b32.xlu2 %v1270_v27, %s13049_s21  ;;  %v1001_v27 = vpack.c.b16 %v985_v31, %v985_v31  ;;  %v1175_v31 = vshll.u32 %v8800_v47, 16  ;;  %v3026_v49 = vunpack.c.l.b16 %v2371_v33  ;;  %v2308_v9 = vsel %vm12876_vm0, 0.0, %v2239_v48 }
 0x2a5   : > { %v8798_v28 = vpop.permute.xlu1 %1412  ;;  %v8871_v5 = vpack.c.b16 %v3062_v19, %v3062_v19 }
 0x2a6   : > { %v8803_v17 = vpop.permute.xlu2 %1444  ;;  %v1272_v0 = vrot.slane %v1001_v27, 1  ;;  %v1177_v56 = vrot.slane %v1175_v31, 1  ;;  %v8854_v31 = vrot.slane %v8588_v18, 1 }
 0x2a7   : > { %13129 = vst [vmem:[#allocation219_spill] sm:$0xff] %v8871_v5 }
 0x2a8   : > { %6378 = vmatmul.msk.bf16.gmra.mxu1 %vm12879_vm14, %v1769_v13  ;;  %v6684_v13 = vunpack.i.h.bf16 %v8665_v22  ;;  %v1273_v46 = vsel %vm12853_vm3, %v1271_v12, %v1272_v0  ;;  %v8843_v22 = vpack.c.b16 %v986_v58, %v986_v58  ;;  %v1178_v44 = vor.u32 %v1177_v56, %v1173_v36  ;;  %13128 = vst [vmem:[#allocation218_spill] sm:$0xff] %v8854_v31 }
 0x2a9   : > { %1452 = vrot.lane.b32.xlu0 %v8800_v47, %s12870_s28  ;;  %v6678_v12 = vunpack.i.l.bf16 %v8698_v7  ;;  %v2749_v0 = vrot.slane %v8590_v23, 1  ;;  %v1541_v58 = vsel %vm385_vm1, %v8226_v45, %v8716_v59  ;;  %v3027_v36 = vunpack.c.l.b16 %v2372_v24 }
 0x2aa   : > { %v2240_v8 = vrot.slane %v6684_v13, 6  ;;  %v1275_v45 = vrot.slane %v8843_v22, 1  ;;  %v2374_v59 = vpack.c.bf16 %v2308_v9, %v2308_v9 }
 0x2ab   : > { %v8820_v21 = vpop.permute.xlu0 %2695  ;;  %2703 = vrot.lane.b32.xlu1 %v8818_v40, %s6765_s29  ;;  %v737_v33 = vrot.slane %v6678_v12, 7  ;;  %v1573_v40 = vsel %vm559_vm7, %v1541_v58, %v8724_v25  ;;  %v8880_v25 = vsel %vm12853_vm3, %v2749_v0, %v8854_v31 }
 0x2ac   : > { %13127 = vst [vmem:[#allocation217_spill] sm:$0xff] %v8820_v21  ;;  %1222 = vrot.lane.b32.xlu2 %v1171_v6, %s6765_s29  ;;  %v938_v6 = vunpack.c.l.b16 %v870_v55  ;;  %v1180_v21 = vshll.u32 %v1001_v27, 16  ;;  %v6679_v55 = vunpack.i.h.bf16 %v8698_v7  ;;  %v2325_v13 = vsel %vm12876_vm0, %v2240_v8, 0.0 }
 0x2ad   : > { %v8827_v57 = vpop.permute.xlu1 %1214  ;;  %v2241_v7 = vsel %vm12876_vm0, %v2239_v48, %v2240_v8  ;;  %v2376_v24 = vpack.c.bf16 %v2325_v13, %v2325_v13  ;;  %v8873_v48 = vpack.c.b16 %v3027_v36, %v3026_v49  ;;  %13131 = vst [vmem:[#allocation221_spill] sm:$0xff] %v8880_v25  ;;  %v806_v49 = vsel %vm12855_vm2, 0.0, %v737_v33 }
 0x2ae   : > { %v8829_v10 = vpop.permute.xlu2 %1414  ;;  %v8845_v26 = vpack.c.b16 %v938_v6, %v937_v42  ;;  %v1182_v56 = vrot.slane %v1180_v21, 1  ;;  %v738_v14 = vrot.slane %v6679_v55, 7  ;;  %v2375_v21 = vpack.c.bf16 %v2241_v7, %v2241_v7 }
 0x2af   : > { %13130 = vst [vmem:[#allocation220_spill] sm:$0xff] %v8873_v48  ;;  %v1606_v55 = vsel %vm1588_vm8, %v1573_v40, %v8728_v39  ;;  %v3221_v36 = vunpack.c.l.b16 %v2374_v59  ;;  %v8900_v9 = vshrl.u32 %v8873_v48, 16 }
 0x2b0   : > { %v1183_v6 = vsel %vm12877_vm5, %v1178_v44, %v1182_v56  ;;  %v1274_v34 = vrot.slane %v8845_v26, 1  ;;  %v1187_v8 = vshll.u32 %v8845_v26, 16  ;;  %v1185_v12 = vshrl.u32 %v8845_v26, 16 }
 0x2b1   : > { %1422 = vrot.lane.b32.xlu0 %v1273_v46, %s13049_s21  ;;  %v739_v19 = vsel %vm12855_vm2, %v737_v33, %v738_v14  ;;  %v1639_v58 = vsel %vm1621_vm9, %v1606_v55, %v8793_v35  ;;  %v3257_v56 = vunpack.c.l.b16 %v2376_v24  ;;  %v3222_v39 = vunpack.c.l.b16 %v2375_v21  ;;  %13133 = vst [vmem:[#allocation223_spill] sm:$0xff] %v8900_v9 }
 0x2b2   : > { %v8894_v0 = vsel %vm12853_vm3, %v1274_v34, %v1275_v45  ;;  %v1189_v13 = vrot.slane %v1187_v8, 1  ;;  %v823_v7 = vsel %vm12855_vm2, %v738_v14, 0.0  ;;  %v8903_v33 = vshll.u32 %v8873_v48, 16 }
 0x2b3   : > { %v8839_v30 = vpop.permute.xlu0 %1332  ;;  %1340 = vrot.lane.b32.xlu1 %v8800_v47, %s6768_s17  ;;  %v12698_v35 = vshll.u32 %v8871_v5, 16  ;;  %v872_v55 = vpack.c.bf16 %v806_v49, %v806_v49  ;;  %v873_v31 = vpack.c.bf16 %v739_v19, %v739_v19  ;;  %v1672_v34 = vsel %vm12880_vm10, %v1639_v58, %v8798_v28 }
 0x2b4   : > { %1516 = vrot.lane.b32.xlu2 %v1273_v46, %s13009_s25  ;;  %13134 = vst [vmem:[#allocation224_spill] sm:$0xff] %v8903_v33  ;;  %v8909_v45 = vshrl.u32 %v8871_v5, 16  ;;  %v1192_v14 = vshll.u32 %v8843_v22, 16  ;;  %v2670_v24 = vrot.slane %v8614_v37, 1  ;;  %v3143_v59 = vrot.slane %v8900_v9, 1 }
 0x2b5   : > { %v8850_v27 = vpop.permute.xlu1 %1508  ;;  %v3144_v21 = vrot.slane %v8903_v33, 2  ;;  %v8917_v8 = vpack.c.b16 %v3257_v56, %v3257_v56  ;;  %v1190_v19 = vor.u32 %v1189_v13, %v1185_v12  ;;  %v3149_v28 = vrot.slane %v12698_v35, 2 }
 0x2b6   : > { %v8859_v42 = vpop.permute.xlu2 %1216  ;;  %13135 = vst [vmem:[#allocation225_spill] sm:$0xff] %v8909_v45  ;;  %v8920_v49 = vrot.slane %v8909_v45, 1  ;;  %v8924_v58 = vpack.c.b16 %v3222_v39, %v3221_v36  ;;  %v1705_v22 = vsel %vm1687_vm11, %v1672_v34, %v8803_v17  ;;  %v1311_v9 = vunpack.c.l.b16 %v872_v55 }
 0x2b7   : > { %13136 = vst [vmem:[#allocation226_spill] sm:$0xff] %v8917_v8  ;;  %v1312_v56 = vunpack.c.l.b16 %v873_v31  ;;  %v1194_v39 = vrot.slane %v1192_v14, 1  ;;  %v2671_v34 = vor.u32 %v2670_v24, %v8609_v15  ;;  %vm3858_vm2 = vcmask 457728  }
 0x2b8   : > { %13137 = vst [vmem:[#allocation227_spill] sm:$0xff] %v8920_v49  ;;  %v3150_v13 = vor.u32 %v3149_v28, %v8920_v49  ;;  %v8950_v14 = vshll.u32 %v8924_v58, 16  ;;  %v12699_v28 = vshll.u32 %v8917_v8, 16 }
 0x2b9   : > { %1224 = vrot.lane.b32.xlu0 %v1183_v6, %s6765_s29  ;;  %13138 = vst [vmem:[#allocation228_spill] sm:$0xff] %v8924_v58  ;;  %v1195_v31 = vsel %vm12877_vm5, %v1190_v19, %v1194_v39 }
 0x2ba   : > { %13143 = vst [vmem:[#allocation232_spill] sm:$0xff] %v8950_v14 }
 0x2bb   : > { %v8875_v44 = vpop.permute.xlu0 %1297  ;;  %1305 = vrot.lane.b32.xlu1 %v1273_v46, %s13016_s14 }
 0x2bc   : > { %2780 = vrot.lane.b32.xlu2 %v8880_v25, %s13016_s14  ;;  %v3145_v25 = vor.u32 %v3144_v21, %v3143_v59  ;;  %v8944_v21 = vpack.c.b16 %v1312_v56, %v1311_v9  ;;  %v3339_v9 = vrot.slane %v8950_v14, 2  ;;  %v3344_v56 = vrot.slane %v12699_v28, 2 }
 0x2bd   : > { %v8891_v46 = vpop.permute.xlu1 %2772 }
 0x2be   : > { %13132 = vst [vmem:[#allocation222_spill] sm:$0xff] %v8891_v46  ;;  %v8896_v40 = vpop.permute.xlu2 %1510  ;;  %v874_v46 = vpack.c.bf16 %v823_v7, %v823_v7  ;;  %v8938_v7 = vsel %vm2782_vm6, %v3145_v25, %v3150_v13  ;;  %v8955_v25 = vshrl.u32 %v8917_v8, 16  ;;  %v1352_v13 = vshll.u32 %v8944_v21, 16 }
 0x2bf   : > { %13140 = vst [vmem:[#allocation230_spill] sm:$0xff] %v8938_v7  ;;  %v1350_v28 = vshrl.u32 %v8944_v21, 16  ;;  %v13187_v7 = vld [vmem:[#allocation121_spill] sm:$0xff] }
 0x2c0   : > { %v1347_v55 = vunpack.c.l.b16 %v874_v46  ;;  %13144 = vst [vmem:[#allocation233_spill] sm:$0xff] %v8955_v25  ;;  %v8957_v46 = vpop.f32.mrf.mxu1  ;;  %v1354_v15 = vrot.slane %v1352_v13, 1 }
 0x2c1   : > { %1518 = vrot.lane.b32.xlu0 %v8894_v0, %s13009_s25 }
 0x2c3   : > { %v1477_v37 = vpop.permute.xlu0 %1476  ;;  %1484 = vrot.lane.b32.xlu1 %v1183_v6, %s12874_s16 }
 0x2c4   : > { %v1738_v12 = vsel %vm1720_vm12, %v1705_v22, %v1477_v37  ;;  %1387 = vrot.lane.b32.xlu2 %v1183_v6, %s12872_s22  ;;  %v13141_v6 = vshll.u32 %v8588_v18, 16  ;;  %v8967_v37 = vrot.slane %v8955_v25, 1 }
 0x2c5   : > { %v1380_v45 = vpop.permute.xlu1 %1379  ;;  %v1771_v36 = vsel %vm1753_vm13, %v1738_v12, %v8850_v27  ;;  %v8947_v27 = vshrl.u32 %v8924_v58, 16  ;;  %v1348_v12 = vpack.c.b16 %v1347_v55, %v1347_v55 }
 0x2c6   : > { %6379 = vmatmul.msk.bf16.gmra.mxu1 %vm12879_vm14, %v1771_v36  ;;  %v8935_v17 = vpop.permute.xlu2 %2774  ;;  %v2675_v59 = vrot.slane %v13141_v6, 1  ;;  %13145 = vst [vmem:[#allocation234_spill] sm:$0xff] %v8967_v37 }
 0x2c7   : > { %13139 = vst [vmem:[#allocation229_spill] sm:$0xff] %v8935_v17  ;;  %v3338_v24 = vrot.slane %v8947_v27, 1  ;;  %v12703_v39 = vrot.slane %v8947_v27, 7  ;;  %v1357_v49 = vshll.u32 %v1348_v12, 16 }
 0x2c8   : > { %13142 = vst [vmem:[#allocation231_spill] sm:$0xff] %v8947_v27  ;;  %v8964_v22 = vsel %vm12877_vm5, %v2671_v34, %v2675_v59  ;;  %v3345_v34 = vor.u32 %v3344_v56, %v8967_v37  ;;  %v1355_v56 = vor.u32 %v1354_v15, %v1350_v28  ;;  %v1543_v37 = vsel %vm385_vm1, %v8323_v38, %v8827_v57  ;;  %v13150_v57 = vld [vmem:[#allocation117_spill] sm:$0xff] }
 0x2c9   : > { %1389 = vrot.lane.b32.xlu0 %v1195_v31, %s12872_s22  ;;  %v3340_v36 = vor.u32 %v3339_v9, %v3338_v24  ;;  %v8984_v55 = vor.u32 %v12703_v39, %v8950_v14  ;;  %v8991_v9 = vpop.f32.mrf.mxu1  ;;  %v1575_v25 = vsel %vm559_vm7, %v1543_v37, %v8747_v4  ;;  %v13168_v27 = vld [vmem:[#allocation69_spill] sm:$0xff]  ;;  %v13169_v14 = vld [vmem:[#allocation68_spill] sm:$0xff] }
 0x2ca   : > { %v2953_v58 = vrot.slane %v13169_v14, 2  ;;  %v13172_v14 = vld [vmem:[#allocation105_spill] sm:$0xff] }
 0x2cb   : > { %v1447_v19 = vpop.permute.xlu0 %1446  ;;  %1454 = vrot.lane.b32.xlu1 %v8845_v26, %s12870_s28  ;;  %v8979_v35 = vsel %vm2782_vm6, %v3340_v36, %v3345_v34  ;;  %13148 = vst [vmem:[#allocation237_spill] sm:$0xff] %v8984_v55  ;;  %v1359_v36 = vrot.slane %v1357_v49, 1 }
 0x2cc   : > { %2705 = vrot.lane.b32.xlu2 %v8964_v22, %s6765_s29  ;;  %13147 = vst [vmem:[#allocation236_spill] sm:$0xff] %v8979_v35  ;;  %v1608_v35 = vsel %vm1588_vm8, %v1575_v25, %v8839_v30 }
 0x2cd   : > { %v8975_v6 = vpop.permute.xlu1 %2697  ;;  %v1360_v13 = vsel %vm12877_vm5, %v1355_v56, %v1359_v36  ;;  %v1393_v56 = vrot.slane %v8944_v21, 1  ;;  %v1394_v36 = vrot.slane %v1348_v12, 1  ;;  %v1641_v38 = vsel %vm1621_vm9, %v1608_v35, %v1380_v45  ;;  %v9033_v35 = vld [vmem:[%s12347_s4] ss:$0 sm:$0xff] }
 0x2ce   : > { %13146 = vst [vmem:[#allocation235_spill] sm:$0xff] %v8975_v6  ;;  %v1382_v59 = vpop.permute.xlu2 %1381 }
 0x2d1   : > { %1344 = vrot.lane.b32.xlu0 %v8944_v21, %s6768_s17  ;;  %v9009_v49 = vpop.f32.mrf.mxu1 }
 0x2d3   : > { %v1417_v24 = vpop.permute.xlu0 %1416  ;;  %1424 = vrot.lane.b32.xlu1 %v8894_v0, %s13049_s21 }
 0x2d4   : > { %1342 = vrot.lane.b32.xlu2 %v8845_v26, %s6768_s17 }
 0x2d5   : > { %v1335_v34 = vpop.permute.xlu1 %1334 }
 0x2d6   : > { %v8995_v39 = vpop.permute.xlu2 %2699 }
 0x2d7   : > { %13149 = vst [vmem:[#allocation238_spill] sm:$0xff] %v8995_v39  ;;  %v1674_v39 = vsel %vm12880_vm10, %v1641_v38, %v8829_v10  ;;  %v1545_v10 = vsel %vm385_vm1, %v8478_v32, %v8859_v42 }
 0x2d8   : > { %v1707_v4 = vsel %vm1687_vm11, %v1674_v39, %v1447_v19  ;;  %v1856_v39 = vadd.f32 %v9033_v35, %v8957_v46 }
 0x2d9   : > { %1488 = vrot.lane.b32.xlu0 %v1360_v13, %s12874_s16  ;;  %v1862_v12 = vpop.f32.mrf.mxu1 }
 0x2db   : > { %v8999_v55 = vpop.permute.xlu0 %1218  ;;  %1226 = vrot.lane.b32.xlu1 %v1195_v31, %s6765_s29 }
 0x2dc   : > { %1307 = vrot.lane.b32.xlu2 %v8894_v0, %s13016_s14  ;;  %v1395_v0 = vsel %vm12853_vm3, %v1393_v56, %v1394_v36  ;;  %v13152_v36 = vld [vmem:[#allocation120_spill] sm:$0xff] }
 0x2dd   : > { %v9007_v15 = vpop.permute.xlu1 %1299  ;;  %v9055_v38 = vshrl.u32 %v13152_v36, 16 }
 0x2de   : > { %v9011_v28 = vpop.permute.xlu2 %1336 }
 0x2df   : > { %13153 = vst [vmem:[#allocation239_spill] sm:$0xff] %v9055_v38 }
 0x2e1   : > { %2930 = vrot.lane.b32.xlu0 %v13150_v57, %s6768_s17 }
 0x2e3   : > { %v1513_v17 = vpop.permute.xlu0 %1512  ;;  %1520 = vrot.lane.b32.xlu1 %v1395_v0, %s13009_s25 }
 0x2e4   : > { %1486 = vrot.lane.b32.xlu2 %v1195_v31, %s12874_s16  ;;  %v1577_v31 = vsel %vm559_vm7, %v1545_v10, %v8875_v44  ;;  %v1935_v44 = vmax.f32 %v1856_v39, 0.0  ;;  %v9067_v10 = vrot.slane %v9055_v38, 1  ;;  %v13160_v38 = vld [vmem:[#allocation34_spill] sm:$0xff] }
 0x2e5   : > { %v1479_v37 = vpop.permute.xlu1 %1478  ;;  %v1610_v19 = vsel %vm1588_vm8, %v1577_v31, %v1335_v34  ;;  %v13158_v31 = vshll.u32 %v13152_v36, 16 }
 0x2e6   : > { %v1740_v30 = vsel %vm1720_vm12, %v1707_v4, %v1479_v37  ;;  %v9028_v25 = vpop.permute.xlu2 %1301  ;;  %v1643_v32 = vsel %vm1621_vm9, %v1610_v19, %v1382_v59  ;;  %v9057_v4 = vpop.f32.mrf.mxu1  ;;  %v13154_v37 = vld [vmem:[#allocation112_spill] sm:$0xff]  ;;  %13157 = vst [vmem:[#allocation240_spill] sm:$0xff] %v9067_v10 }
 0x2e7   : > { %v1773_v45 = vsel %vm1753_vm13, %v1740_v30, %v8896_v40  ;;  %v1676_v34 = vsel %vm12880_vm10, %v1643_v32, %v1417_v24  ;;  %v13156_v30 = vld [vmem:[#allocation130_spill] sm:$0xff]  ;;  %v2834_v19 = vrot.slane %v13158_v31, 2 }
 0x2e8   : > { %6380 = vmatmul.msk.bf16.gmra.mxu1 %vm12879_vm14, %v1773_v45  ;;  %v2829_v45 = vrot.slane %v13156_v30, 2 }
 0x2e9   : > { %2936 = vrot.lane.b32.xlu0 %v8032_v53, %s6768_s17 }
 0x2eb   : > { %v9048_v56 = vpop.permute.xlu0 %2776  ;;  %1391 = vrot.lane.b32.xlu1 %v1360_v13, %s12872_s22 }
 0x2ec   : > { %13151 = vst [vmem:[#allocation117_spill] sm:$0xff] %v9048_v56  ;;  %1456 = vrot.lane.b32.xlu2 %v8944_v21, %s12870_s28  ;;  %v13155_v21 = vld [vmem:[#allocation138_spill] sm:$0xff] }
 0x2ed   : > { %v1449_v42 = vpop.permute.xlu1 %1448  ;;  %v2828_v59 = vrot.slane %v13155_v21, 1  ;;  %v13159_v21 = vld [vmem:[#allocation32_spill] sm:$0xff] }
 0x2ee   : > { %v1481_v40 = vpop.permute.xlu2 %1480  ;;  %v1709_v46 = vsel %vm1687_vm11, %v1676_v34, %v1449_v42  ;;  %v2835_v34 = vor.u32 %v2834_v19, %v9067_v10  ;;  %v9078_v30 = vpop.f32.mrf.mxu1  ;;  %v2949_v31 = vrot.slane %v13159_v21, 2 }
 0x2ef   : > { %v1742_v24 = vsel %vm1720_vm12, %v1709_v46, %v1481_v40  ;;  %v2950_v40 = vrot.slane %v13160_v38, 2 }
 0x2f0   : > { %v1775_v42 = vsel %vm1753_vm13, %v1742_v24, %v1513_v17  ;;  %v1863_v24 = vadd.f32 %v9033_v35, %v1862_v12 }
 0x2f1   : > { %1999 = vrot.lane.b32.xlu0 %v1935_v44, %s13016_s14  ;;  %v2830_v44 = vor.u32 %v2829_v45, %v2828_v59  ;;  %v9096_v45 = vsel %vm12854_vm4, %v2949_v31, %v2950_v40  ;;  %v1547_v31 = vsel %vm385_vm1, %v8550_v60, %v8999_v55  ;;  %v13164_v60 = vld [vmem:[#allocation167_spill] sm:$0xff]  ;;  %v13165_v55 = vld [vmem:[#allocation80_spill] sm:$0xff] }
 0x2f2   : > { %13162 = vst [vmem:[#allocation242_spill] sm:$0xff] %v9096_v45  ;;  %v1938_v10 = vmax.f32 %v1863_v24, 0.0  ;;  %v1579_v56 = vsel %vm559_vm7, %v1547_v31, %v9007_v15  ;;  %v2958_v24 = vrot.slane %v13165_v55, 2 }
 0x2f3   : > { %v1384_v13 = vpop.permute.xlu0 %1383  ;;  %2932 = vrot.lane.b32.xlu1 %v13154_v37, %s6768_s17  ;;  %v9087_v17 = vsel %vm2782_vm6, %v2830_v44, %v2835_v34  ;;  %v13163_v44 = vld [vmem:[#allocation141_spill] sm:$0xff]  ;;  %v1858_v34 = vadd.f32 %v9033_v35, %v8991_v9  ;;  %v1612_v9 = vsel %vm1588_vm8, %v1579_v56, %v9011_v28  ;;  %vm12878_vm6 = vcmask 326656  }
 0x2f4   : > { %1426 = vrot.lane.b32.xlu2 %v1395_v0, %s13049_s21  ;;  %v1645_v15 = vsel %vm1621_vm9, %v1612_v9, %v1384_v13 }
 0x2f5   : > { %v1419_v39 = vpop.permute.xlu1 %1418  ;;  %v1936_v12 = vmax.f32 %v1858_v34, 0.0  ;;  %v13166_v34 = vld [vmem:[#allocation79_spill] sm:$0xff] }
 0x2f6   : > { %v1451_v32 = vpop.permute.xlu2 %1450  ;;  %v1870_v19 = vpop.f32.mrf.mxu1  ;;  %v2959_v8 = vrot.slane %v13166_v34, 2 }
 0x2f8   : > { %6381 = vmatmul.msk.bf16.gmra.mxu1 %vm12879_vm14, %v1775_v42  ;;  %v9137_v28 = vsel %vm12854_vm4, %v2958_v24, %v2959_v8  ;;  %v2967_v8 = vrot.slane %v13172_v14, 2 }
 0x2f9   : > { %2942 = vrot.lane.b32.xlu0 %v8427_v41, %s6768_s17  ;;  %13170 = vst [vmem:[#allocation68_spill] sm:$0xff] %v9137_v28 }
 0x2fb   : > { %v9082_v46 = vpop.permute.xlu0 %2701  ;;  %2938 = vrot.lane.b32.xlu1 %v8102_v63, %s6768_s17 }
 0x2fc   : > { %13161 = vst [vmem:[#allocation241_spill] sm:$0xff] %v9082_v46  ;;  %2928 = vrot.lane.b32.xlu2 %v9087_v17, %s6768_s17 }
 0x2fd   : > { %v9091_v0 = vpop.permute.xlu1 %1220 }
 0x2fe   : > { %v9093_v59 = vpop.permute.xlu2 %1420  ;;  %v9120_v6 = vpop.f32.mrf.mxu1 }
 0x301   : > { %2994 = vrot.lane.b32.xlu0 %v9096_v45, %s12872_s22  ;;  %v1678_v45 = vsel %vm12880_vm10, %v1645_v15, %v1419_v39  ;;  %v13173_v39 = vld [vmem:[#allocation107_spill] sm:$0xff] }
 0x302   : > { %v1711_v13 = vsel %vm1687_vm11, %v1678_v45, %v1451_v32  ;;  %v2968_v24 = vrot.slane %v13173_v39, 2 }
 0x303   : > { %v9101_v42 = vpop.permute.xlu0 %1338  ;;  %2944 = vrot.lane.b32.xlu1 %v8494_v11, %s6768_s17 }
 0x304   : > { %2934 = vrot.lane.b32.xlu2 %v13163_v44, %s6768_s17  ;;  %v2964_v44 = vrot.slane %v13187_v7, 2 }
 0x305   : > { %v1515_v38 = vpop.permute.xlu1 %1514 }
 0x306   : > { %v9112_v40 = vpop.permute.xlu2 %1222  ;;  %v9155_v32 = vpop.f32.mrf.mxu1 }
 0x309   : > { %2005 = vrot.lane.b32.xlu0 %v1938_v10, %s13016_s14 }
 0x30b   : > { %v9117_v46 = vpop.permute.xlu0 %1303  ;;  %2001 = vrot.lane.b32.xlu1 %v1936_v12, %s13016_s14  ;;  %v2952_v12 = vrot.slane %v13168_v27, 2 }
 0x30c   : > { %2940 = vrot.lane.b32.xlu2 %v13164_v60, %s6768_s17 }
 0x30d   : > { %v9129_v31 = vpop.permute.xlu1 %2778  ;;  %v9142_v56 = vsel %vm12854_vm4, %v2952_v12, %v2953_v58  ;;  %v1861_v58 = vadd.f32 %v9033_v35, %v9009_v49  ;;  %v13175_v12 = vld [vmem:[#allocation97_spill] sm:$0xff]  ;;  %v1871_v49 = vadd.f32 %v9033_v35, %v1870_v19 }
 0x30e   : > { %13167 = vst [vmem:[#allocation80_spill] sm:$0xff] %v9129_v31  ;;  %v9131_v10 = vpop.permute.xlu2 %1516 }
 0x30f   : > { %13171 = vst [vmem:[#allocation243_spill] sm:$0xff] %v9142_v56 }
 0x311   : > { %3000 = vrot.lane.b32.xlu0 %v9137_v28, %s12872_s22  ;;  %v9163_v28 = vsel %vm12854_vm4, %v2967_v8, %v2968_v24 }
 0x312   : > { %13177 = vst [vmem:[#allocation245_spill] sm:$0xff] %v9163_v28 }
 0x313   : > { %v1483_v9 = vpop.permute.xlu0 %1482  ;;  %2996 = vrot.lane.b32.xlu1 %v9142_v56, %s12872_s22 }
 0x314   : > { %v1744_v34 = vsel %vm1720_vm12, %v1711_v13, %v1483_v9  ;;  %2946 = vrot.lane.b32.xlu2 %v8651_v29, %s6768_s17  ;;  %v2961_v13 = vrot.slane %v13175_v12, 2  ;;  %v13176_v9 = vld [vmem:[#allocation96_spill] sm:$0xff] }
 0x315   : > { %v1386_v15 = vpop.permute.xlu1 %1385  ;;  %v1777_v31 = vsel %vm1753_vm13, %v1744_v34, %v1515_v38  ;;  %v2962_v56 = vrot.slane %v13176_v9, 2  ;;  %v1937_v38 = vmax.f32 %v1861_v58, 0.0  ;;  %v1941_v9 = vmax.f32 %v1871_v49, 0.0  ;;  %v13180_v58 = vld [vmem:[#allocation75_spill] sm:$0xff] }
 0x316   : > { %v9157_v45 = vpop.permute.xlu2 %2780  ;;  %6382 = vmatmul.msk.bf16.gmra.mxu1 %vm12879_vm14, %v1777_v31  ;;  %v1866_v31 = vadd.f32 %v9033_v35, %v9057_v4  ;;  %v13183_v4 = vld [vmem:[#allocation131_spill] sm:$0xff] }
 0x317   : > { %13174 = vst [vmem:[#allocation244_spill] sm:$0xff] %v9157_v45  ;;  %v9168_v34 = vsel %vm12854_vm4, %v2961_v13, %v2962_v56  ;;  %v2955_v45 = vrot.slane %v13180_v58, 2  ;;  %v13181_v56 = vld [vmem:[#allocation73_spill] sm:$0xff]  ;;  %v2976_v49 = vrot.slane %v13183_v4, 2 }
 0x318   : > { %13178 = vst [vmem:[#allocation246_spill] sm:$0xff] %v9168_v34  ;;  %v2956_v13 = vrot.slane %v13181_v56, 2  ;;  %v1939_v19 = vmax.f32 %v1866_v31, 0.0  ;;  %v13185_v31 = vld [vmem:[#allocation98_spill] sm:$0xff] }
 0x319   : > { %3006 = vrot.lane.b32.xlu0 %v9163_v28, %s12872_s22  ;;  %v1877_v28 = vpop.f32.mrf.mxu1  ;;  %v2970_v60 = vrot.slane %v13185_v31, 2 }
 0x31b   : > { %v1453_v39 = vpop.permute.xlu0 %1452  ;;  %3002 = vrot.lane.b32.xlu1 %v9168_v34, %s12872_s22 }
 0x31c   : > { %2003 = vrot.lane.b32.xlu2 %v1937_v38, %s13016_s14  ;;  %v9187_v38 = vsel %vm12854_vm4, %v2955_v45, %v2956_v13 }
 0x31d   : > { %v9176_v8 = vpop.permute.xlu1 %2703  ;;  %13182 = vst [vmem:[#allocation248_spill] sm:$0xff] %v9187_v38 }
 0x31e   : > { %13179 = vst [vmem:[#allocation247_spill] sm:$0xff] %v9176_v8  ;;  %v9178_v24 = vpop.permute.xlu2 %1387  ;;  %v2977_v8 = vrot.slane %v7935_v54, 2 }
 0x320   : > { %v9202_v13 = vsel %vm12854_vm4, %v2976_v49, %v2977_v8  ;;  %v2985_v8 = vrot.slane %v8358_v3, 2  ;;  %v1868_v49 = vadd.f32 %v9033_v35, %v9078_v30 }
 0x321   : > { %2011 = vrot.lane.b32.xlu0 %v1941_v9, %s13016_s14  ;;  %v13186_v9 = vld [vmem:[#allocation102_spill] sm:$0xff]  ;;  %v9199_v45 = vpop.f32.mrf.mxu1  ;;  %13188 = vst [vmem:[#allocation98_spill] sm:$0xff] %v9202_v13 }
 0x322   : > { %v2971_v11 = vrot.slane %v13186_v9, 2  ;;  %v1940_v30 = vmax.f32 %v1868_v49, 0.0 }
 0x323   : > { %v9183_v29 = vpop.permute.xlu0 %1422  ;;  %2007 = vrot.lane.b32.xlu1 %v1939_v19, %s13016_s14  ;;  %v2965_v19 = vrot.slane %v13152_v36, 2  ;;  %v1549_v36 = vsel %vm385_vm1, %v8603_v52, %v9091_v0 }
 0x324   : > { %2998 = vrot.lane.b32.xlu2 %v9187_v38, %s12872_s22  ;;  %v9207_v54 = vsel %vm12854_vm4, %v2970_v60, %v2971_v11  ;;  %v2986_v11 = vrot.slane %v8356_v43, 2  ;;  %v1581_v52 = vsel %vm559_vm7, %v1549_v36, %v9028_v25 }
 0x325   : > { %v1341_v34 = vpop.permute.xlu1 %1340  ;;  %13189 = vst [vmem:[#allocation121_spill] sm:$0xff] %v9207_v54  ;;  %v9214_v9 = vsel %vm12854_vm4, %v2964_v44, %v2965_v19  ;;  %v2979_v44 = vrot.slane %v8036_v61, 2  ;;  %v2980_v19 = vrot.slane %v8043_v2, 2  ;;  %v1614_v0 = vsel %vm1588_vm8, %v1581_v52, %v9101_v42 }
 0x326   : > { %v9193_v56 = vpop.permute.xlu2 %2705  ;;  %13190 = vst [vmem:[#allocation249_spill] sm:$0xff] %v9214_v9  ;;  %v1647_v43 = vsel %vm1621_vm9, %v1614_v0, %v1386_v15  ;;  %v1878_v2 = vadd.f32 %v9033_v35, %v1877_v28  ;;  %v1873_v42 = vadd.f32 %v9033_v35, %v9120_v6  ;;  %v13194_v0 = vld [vmem:[#allocation128_spill] sm:$0xff] }
 0x327   : > { %13184 = vst [vmem:[#allocation131_spill] sm:$0xff] %v9193_v56  ;;  %v9244_v38 = vsel %vm12854_vm4, %v2979_v44, %v2980_v19  ;;  %v1680_v36 = vsel %vm12880_vm10, %v1647_v43, %v9093_v59  ;;  %v13193_v19 = vld [vmem:[#allocation124_spill] sm:$0xff]  ;;  %v2974_v43 = vrot.slane %v13194_v0, 2  ;;  %v1551_v59 = vsel %vm385_vm1, %v8719_v16, %v9112_v40 }
 0x328   : > { %13192 = vst [vmem:[#allocation251_spill] sm:$0xff] %v9244_v38  ;;  %v1713_v15 = vsel %vm1687_vm11, %v1680_v36, %v1453_v39  ;;  %v1944_v28 = vmax.f32 %v1878_v2, 0.0  ;;  %v2973_v52 = vrot.slane %v13193_v19, 2  ;;  %v1942_v6 = vmax.f32 %v1873_v42, 0.0 }
 0x329   : > { %3012 = vrot.lane.b32.xlu0 %v9202_v13, %s12872_s22  ;;  %v9236_v13 = vsel %vm12854_vm4, %v2985_v8, %v2986_v11  ;;  %v1583_v39 = vsel %vm559_vm7, %v1551_v59, %v9117_v46  ;;  %v2988_v46 = vrot.slane %v8438_v50, 2 }
 0x32a   : > { %13191 = vst [vmem:[#allocation250_spill] sm:$0xff] %v9236_v13  ;;  %v9272_v36 = vsel %vm12854_vm4, %v2973_v52, %v2974_v43 }
 0x32b   : > { %v9209_v56 = vpop.permute.xlu0 %1224  ;;  %3008 = vrot.lane.b32.xlu1 %v9207_v54, %s12872_s22  ;;  %13195 = vst [vmem:[#allocation124_spill] sm:$0xff] %v9272_v36 }
 0x32c   : > { %3004 = vrot.lane.b32.xlu2 %v9214_v9, %s12872_s22  ;;  %v9241_v9 = vpop.f32.mrf.mxu1 }
 0x32d   : > { %v9223_v60 = vpop.permute.xlu1 %1305 }
 0x32e   : > { %v9227_v54 = vpop.permute.xlu2 %1342 }
 0x331   : > { %3018 = vrot.lane.b32.xlu0 %v9236_v13, %s12872_s22 }
 0x333   : > { %v1519_v25 = vpop.permute.xlu0 %1518  ;;  %3014 = vrot.lane.b32.xlu1 %v9244_v38, %s12872_s22 }
 0x334   : > { %2009 = vrot.lane.b32.xlu2 %v1940_v30, %s13016_s14  ;;  %v1885_v2 = vpop.f32.mrf.mxu1  ;;  %v1616_v30 = vsel %vm1588_vm8, %v1583_v39, %v1341_v34  ;;  %v2982_v34 = vrot.slane %v8217_v51, 2 }
 0x335   : > { %v1485_v8 = vpop.permute.xlu1 %1484  ;;  %v1649_v16 = vsel %vm1621_vm9, %v1616_v30, %v9178_v24 }
 0x336   : > { %v1746_v11 = vsel %vm1720_vm12, %v1713_v15, %v1485_v8  ;;  %v9256_v49 = vpop.permute.xlu2 %1307  ;;  %v2989_v15 = vrot.slane %v8440_v62, 2  ;;  %v2983_v8 = vrot.slane %v8220_v1, 2 }
 0x337   : > { %v1779_v44 = vsel %vm1753_vm13, %v1746_v11, %v9131_v10  ;;  %v1682_v11 = vsel %vm12880_vm10, %v1649_v16, %v9183_v29  ;;  %v1553_v16 = vsel %vm385_vm1, %v8800_v47, %v9209_v56 }
 0x338   : > { %6383 = vmatmul.msk.bf16.gmra.mxu1 %vm12879_vm14, %v1779_v44  ;;  %v9288_v24 = vsel %vm12854_vm4, %v2988_v46, %v2989_v15  ;;  %v9293_v52 = vsel %vm12854_vm4, %v2982_v34, %v2983_v8  ;;  %v2991_v8 = vrot.slane %v8590_v23, 2 }
 0x339   : > { %2017 = vrot.lane.b32.xlu0 %v1944_v28, %s13016_s14  ;;  %13196 = vst [vmem:[#allocation252_spill] sm:$0xff] %v9288_v24 }
 0x33a   : > { %13197 = vst [vmem:[#allocation253_spill] sm:$0xff] %v9293_v52 }
 0x33b   : > { %v1390_v10 = vpop.permute.xlu0 %1389  ;;  %2013 = vrot.lane.b32.xlu1 %v1942_v6, %s13016_s14  ;;  %v1876_v6 = vadd.f32 %v9033_v35, %v9155_v32  ;;  %v1585_v32 = vsel %vm559_vm7, %v1553_v16, %v9223_v60 }
 0x33c   : > { %3010 = vrot.lane.b32.xlu2 %v9272_v36, %s12872_s22  ;;  %v9295_v43 = vpop.f32.mrf.mxu1 }
 0x33d   : > { %v1455_v40 = vpop.permute.xlu1 %1454 }
 0x33e   : > { %v1487_v42 = vpop.permute.xlu2 %1486  ;;  %v1715_v28 = vsel %vm1687_vm11, %v1682_v11, %v1455_v40  ;;  %v1943_v40 = vmax.f32 %v1876_v6, 0.0  ;;  %v2992_v11 = vrot.slane %v8588_v18, 2 }
 0x33f   : > { %v1748_v59 = vsel %vm1720_vm12, %v1715_v28, %v1487_v42  ;;  %v1886_v42 = vadd.f32 %v9033_v35, %v1885_v2  ;;  %v1618_v2 = vsel %vm1588_vm8, %v1585_v32, %v9227_v54 }
 0x340   : > { %v1781_v30 = vsel %vm1753_vm13, %v1748_v59, %v1519_v25  ;;  %v1881_v25 = vadd.f32 %v9033_v35, %v9199_v45  ;;  %v1651_v28 = vsel %vm1621_vm9, %v1618_v2, %v1390_v10  ;;  %v9330_v6 = vsel %vm12854_vm4, %v2991_v8, %v2992_v11  ;;  %v13203_v8 = vld [vmem:[#allocation63_spill] sm:$0xff] }
 0x341   : > { %3029 = vrot.lane.b32.xlu0 %v13159_v21, %s13049_s21  ;;  %v1947_v34 = vmax.f32 %v1886_v42, 0.0  ;;  %13199 = vst [vmem:[#allocation255_spill] sm:$0xff] %v9330_v6 }
 0x342   : > { %v1945_v60 = vmax.f32 %v1881_v25, 0.0  ;;  %v1883_v25 = vadd.f32 %v9033_v35, %v9241_v9  ;;  %v13204_v9 = vld [vmem:[#allocation71_spill] sm:$0xff] }
 0x343   : > { %v1345_v44 = vpop.permute.xlu0 %1344  ;;  %3020 = vrot.lane.b32.xlu1 %v9288_v24, %s12872_s22 }
 0x344   : > { %3016 = vrot.lane.b32.xlu2 %v9293_v52, %s12872_s22  ;;  %v9317_v47 = vpop.f32.mrf.mxu1 }
 0x345   : > { %v1425_v29 = vpop.permute.xlu1 %1424 }
 0x346   : > { %v1457_v39 = vpop.permute.xlu2 %1456  ;;  %v1684_v59 = vsel %vm12880_vm10, %v1651_v28, %v1425_v29  ;;  %v1946_v28 = vmax.f32 %v1883_v25, 0.0 }
 0x347   : > { %v1717_v54 = vsel %vm1687_vm11, %v1684_v59, %v1457_v39  ;;  %v1888_v59 = vadd.f32 %v9033_v35, %v9295_v43 }
 0x348   : > { %6384 = vmatmul.msk.bf16.gmra.mxu1 %vm12879_vm14, %v1781_v30 }
 0x349   : > { %3035 = vrot.lane.b32.xlu0 %v13165_v55, %s13049_s21 }
 0x34b   : > { %v1489_v46 = vpop.permute.xlu0 %1488  ;;  %3031 = vrot.lane.b32.xlu1 %v13168_v27, %s13049_s21 }
 0x34c   : > { %2015 = vrot.lane.b32.xlu2 %v1943_v40, %s13016_s14  ;;  %v1750_v30 = vsel %vm1720_vm12, %v1717_v54, %v1489_v46  ;;  %v1892_v42 = vpop.f32.mrf.mxu1 }
 0x34d   : > { %v1227_v15 = vpop.permute.xlu1 %1226 }
 0x34e   : > { %v1427_v56 = vpop.permute.xlu2 %1426  ;;  %v1555_v40 = vsel %vm385_vm1, %v8845_v26, %v1227_v15 }
 0x34f   : > { %v1587_v39 = vsel %vm559_vm7, %v1555_v40, %v9256_v49 }
 0x350   : > { %v1620_v26 = vsel %vm1588_vm8, %v1587_v39, %v1345_v44  ;;  %v1893_v44 = vadd.f32 %v9033_v35, %v1892_v42  ;;  %v1948_v42 = vmax.f32 %v1888_v59, 0.0 }
 0x351   : > { %2023 = vrot.lane.b32.xlu0 %v1947_v34, %s13016_s14 }
 0x353   : > { %v9326_v45 = vpop.permute.xlu0 %2930  ;;  %2019 = vrot.lane.b32.xlu1 %v1945_v60, %s13016_s14 }
 0x354   : > { %13198 = vst [vmem:[#allocation254_spill] sm:$0xff] %v9326_v45  ;;  %3022 = vrot.lane.b32.xlu2 %v9330_v6, %s12872_s22  ;;  %v1895_v2 = vpop.f32.mrf.mxu1 }
 0x355   : > { %v1521_v10 = vpop.permute.xlu1 %1520 }
 0x356   : > { %v1783_v16 = vsel %vm1753_vm13, %v1750_v30, %v1521_v10  ;;  %v9337_v29 = vpop.permute.xlu2 %2928  ;;  %v1950_v10 = vmax.f32 %v1893_v44, 0.0 }
 0x357   : > { %13200 = vst [vmem:[#allocation256_spill] sm:$0xff] %v9337_v29  ;;  %v13256_v29 = vld [vmem:[#allocation125_spill] sm:$0xff] }
 0x358   : > { %6385 = vmatmul.msk.bf16.gmra.mxu1 %vm12879_vm14, %v1783_v16  ;;  %v13207_v16 = vld [vmem:[#allocation64_spill] sm:$0xff] }
 0x359   : > { %3041 = vrot.lane.b32.xlu0 %v13172_v14, %s13049_s21 }
 0x35b   : > { %v9346_v32 = vpop.permute.xlu0 %2936  ;;  %3037 = vrot.lane.b32.xlu1 %v13175_v12, %s13049_s21 }
 0x35c   : > { %13201 = vst [vmem:[#allocation257_spill] sm:$0xff] %v9346_v32  ;;  %3033 = vrot.lane.b32.xlu2 %v13180_v58, %s13049_s21  ;;  %v1897_v39 = vpop.f32.mrf.mxu1 }
 0x35d   : > { %v1392_v46 = vpop.permute.xlu1 %1391 }
 0x35e   : > { %v1653_v15 = vsel %vm1621_vm9, %v1620_v26, %v1392_v46  ;;  %v9356_v34 = vpop.permute.xlu2 %2934 }
 0x35f   : > { %13202 = vst [vmem:[#allocation258_spill] sm:$0xff] %v9356_v34  ;;  %v1686_v49 = vsel %vm12880_vm10, %v1653_v15, %v1427_v56 }
 0x360   : > { %v1719_v11 = vsel %vm1687_vm11, %v1686_v49, %v13203_v8  ;;  %v1891_v8 = vadd.f32 %v9033_v35, %v9317_v47  ;;  %v1896_v47 = vadd.f32 %v9033_v35, %v1895_v2 }
 0x361   : > { %3047 = vrot.lane.b32.xlu0 %v13183_v4, %s13049_s21  ;;  %v1752_v56 = vsel %vm1720_vm12, %v1719_v11, %v13204_v9 }
 0x362   : > { %v1785_v40 = vsel %vm1753_vm13, %v1752_v56, %v13207_v16  ;;  %v1951_v16 = vmax.f32 %v1896_v47, 0.0 }
 0x363   : > { %v2000_v60 = vpop.permute.xlu0 %1999  ;;  %3043 = vrot.lane.b32.xlu1 %v13185_v31, %s13049_s21 }
 0x364   : > { %2096 = vst.msk [vmem:[%s7176_s26] sm:$0xff] %vm2095_vm15, %v2000_v60  ;;  %2021 = vrot.lane.b32.xlu2 %v1946_v28, %s13016_s14  ;;  %v1949_v28 = vmax.f32 %v1891_v8, 0.0  ;;  %v13216_v8 = vld [vmem:[#allocation83_spill] sm:$0xff] }
 0x365   : > { %v9373_v54 = vpop.permute.xlu1 %2932  ;;  %v1900_v25 = vpop.f32.mrf.mxu1 }
 0x366   : > { %13205 = vst [vmem:[#allocation63_spill] sm:$0xff] %v9373_v54  ;;  %v9375_v30 = vpop.permute.xlu2 %2940  ;;  %v1901_v44 = vadd.f32 %v9033_v35, %v1900_v25 }
 0x367   : > { %13206 = vst [vmem:[#allocation71_spill] sm:$0xff] %v9375_v30 }
 0x368   : > { %6386 = vmatmul.msk.bf16.gmra.mxu1 %vm12879_vm14, %v1785_v40 }
 0x369   : > { %2029 = vrot.lane.b32.xlu0 %v1950_v10, %s13016_s14  ;;  %v1953_v10 = vmax.f32 %v1901_v44, 0.0 }
 0x36b   : > { %v9381_v26 = vpop.permute.xlu0 %2942  ;;  %2025 = vrot.lane.b32.xlu1 %v1948_v42, %s13016_s14 }
 0x36c   : > { %13208 = vst [vmem:[#allocation64_spill] sm:$0xff] %v9381_v26  ;;  %3039 = vrot.lane.b32.xlu2 %v13187_v7, %s13049_s21 }
 0x36d   : > { %v9386_v43 = vpop.permute.xlu1 %2938  ;;  %v1902_v9 = vpop.f32.mrf.mxu1 }
 0x36e   : > { %13209 = vst [vmem:[#allocation259_spill] sm:$0xff] %v9386_v43  ;;  %v9388_v46 = vpop.permute.xlu2 %2946 }
 0x36f   : > { %13210 = vst [vmem:[#allocation260_spill] sm:$0xff] %v9388_v46 }
 0x371   : > { %3053 = vrot.lane.b32.xlu0 %v8358_v3, %s13049_s21 }
 0x373   : > { %v9392_v15 = vpop.permute.xlu0 %2994  ;;  %3049 = vrot.lane.b32.xlu1 %v8036_v61, %s13049_s21 }
 0x374   : > { %3045 = vrot.lane.b32.xlu2 %v13193_v19, %s13049_s21 }
 0x375   : > { %v9398_v49 = vpop.permute.xlu1 %2944  ;;  %v1905_v2 = vpop.f32.mrf.mxu1 }
 0x376   : > { %13211 = vst [vmem:[#allocation261_spill] sm:$0xff] %v9398_v49  ;;  %v2004_v11 = vpop.permute.xlu2 %2003  ;;  %v1906_v0 = vadd.f32 %v9033_v35, %v1905_v2 }
 0x377   : > { %2098 = vst.msk [vmem:[%s7176_s26 + $0x10] sm:$0xff] %vm2095_vm15, %v2004_v11 }
 0x378   : > { %v1955_v46 = vmax.f32 %v1906_v0, 0.0  ;;  %v13235_v0 = vld [vmem:[#allocation168_spill] sm:$0xff] }
 0x379   : > { %3059 = vrot.lane.b32.xlu0 %v8873_v48, %s13049_s21 }
 0x37b   : > { %v2006_v60 = vpop.permute.xlu0 %2005  ;;  %3055 = vrot.lane.b32.xlu1 %v8438_v50, %s13049_s21 }
 0x37c   : > { %2099 = vst.msk [vmem:[%s7176_s26 + $0x18] sm:$0xff] %vm2095_vm15, %v2006_v60  ;;  %2027 = vrot.lane.b32.xlu2 %v1949_v28, %s13016_s14  ;;  %v13218_v28 = vld [vmem:[#allocation37_spill] sm:$0xff]  ;;  %v1898_v60 = vadd.f32 %v9033_v35, %v1897_v39  ;;  %v1903_v39 = vadd.f32 %v9033_v35, %v1902_v9 }
 0x37d   : > { %v2002_v56 = vpop.permute.xlu1 %2001 }
 0x37e   : > { %2097 = vst.msk [vmem:[%s7176_s26 + $0x8] sm:$0xff] %vm2095_vm15, %v2002_v56  ;;  %v9415_v59 = vpop.permute.xlu2 %2998  ;;  %v1907_v56 = vpop.f32.mrf.mxu1 }
 0x37f   : > { %13212 = vst [vmem:[#allocation262_spill] sm:$0xff] %v9415_v59  ;;  %v1908_v18 = vadd.f32 %v9033_v35, %v1907_v56 }
 0x381   : > { %2035 = vrot.lane.b32.xlu0 %v1953_v10, %s13016_s14  ;;  %v13220_v10 = vld [vmem:[#allocation144_spill] sm:$0xff]  ;;  %v1956_v59 = vmax.f32 %v1908_v18, 0.0 }
 0x383   : > { %v9418_v40 = vpop.permute.xlu0 %3000  ;;  %2031 = vrot.lane.b32.xlu1 %v1951_v16, %s13016_s14  ;;  %v1952_v16 = vmax.f32 %v1898_v60, 0.0  ;;  %v1954_v60 = vmax.f32 %v1903_v39, 0.0  ;;  %v13230_v39 = vld [vmem:[#allocation115_spill] sm:$0xff] }
 0x384   : > { %13213 = vst [vmem:[#allocation263_spill] sm:$0xff] %v9418_v40  ;;  %3051 = vrot.lane.b32.xlu2 %v8217_v51, %s13049_s21 }
 0x385   : > { %v9423_v42 = vpop.permute.xlu1 %2996 }
 0x386   : > { %13214 = vst [vmem:[#allocation264_spill] sm:$0xff] %v9423_v42  ;;  %v9425_v25 = vpop.permute.xlu2 %3004 }
 0x387   : > { %13215 = vst [vmem:[#allocation265_spill] sm:$0xff] %v9425_v25 }
 0x389   : > { %3080 = vrot.lane.b32.xlu0 %v13216_v8, %s12870_s28 }
 0x38b   : > { %v9429_v11 = vpop.permute.xlu0 %3006  ;;  %3076 = vrot.lane.b32.xlu1 %v13218_v28, %s12870_s28  ;;  %v13221_v28 = vld [vmem:[#allocation93_spill] sm:$0xff] }
 0x38c   : > { %13217 = vst [vmem:[#allocation83_spill] sm:$0xff] %v9429_v11  ;;  %3057 = vrot.lane.b32.xlu2 %v8590_v23, %s13049_s21 }
 0x38d   : > { %v9435_v44 = vpop.permute.xlu1 %3002 }
 0x38e   : > { %13219 = vst [vmem:[#allocation37_spill] sm:$0xff] %v9435_v44  ;;  %v2010_v47 = vpop.permute.xlu2 %2009  ;;  %v13268_v44 = vld [vmem:[#allocation202_spill] sm:$0xff] }
 0x38f   : > { %2101 = vst.msk [vmem:[%s7176_s26 + $0x28] sm:$0xff] %vm2095_vm15, %v2010_v47 }
 0x391   : > { %3086 = vrot.lane.b32.xlu0 %v13220_v10, %s12870_s28 }
 0x393   : > { %v2012_v62 = vpop.permute.xlu0 %2011  ;;  %3082 = vrot.lane.b32.xlu1 %v13221_v28, %s12870_s28  ;;  %v1910_v18 = vpop.f32.mrf.mxu1 }
 0x394   : > { %2102 = vst.msk [vmem:[%s7176_s26 + $0x30] sm:$0xff] %vm2095_vm15, %v2012_v62  ;;  %2033 = vrot.lane.b32.xlu2 %v1952_v16, %s13016_s14  ;;  %v13224_v62 = vld [vmem:[#allocation72_spill] sm:$0xff] }
 0x395   : > { %v2008_v1 = vpop.permute.xlu1 %2007 }
 0x396   : > { %2100 = vst.msk [vmem:[%s7176_s26 + $0x20] sm:$0xff] %vm2095_vm15, %v2008_v1  ;;  %v9451_v47 = vpop.permute.xlu2 %3010  ;;  %v13227_v1 = vld [vmem:[#allocation181_spill] sm:$0xff] }
 0x397   : > { %13222 = vst [vmem:[#allocation144_spill] sm:$0xff] %v9451_v47 }
 0x399   : > { %2041 = vrot.lane.b32.xlu0 %v1956_v59, %s13016_s14  ;;  %v13229_v59 = vld [vmem:[#allocation155_spill] sm:$0xff] }
 0x39b   : > { %v9454_v56 = vpop.permute.xlu0 %3012  ;;  %2037 = vrot.lane.b32.xlu1 %v1954_v60, %s13016_s14  ;;  %v1912_v32 = vpop.f32.mrf.mxu1 }
 0x39c   : > { %13223 = vst [vmem:[#allocation93_spill] sm:$0xff] %v9454_v56  ;;  %3078 = vrot.lane.b32.xlu2 %v13224_v62, %s12870_s28 }
 0x39d   : > { %v9459_v16 = vpop.permute.xlu1 %3008 }
 0x39e   : > { %13225 = vst [vmem:[#allocation72_spill] sm:$0xff] %v9459_v16  ;;  %v9461_v9 = vpop.permute.xlu2 %3016 }
 0x39f   : > { %13226 = vst [vmem:[#allocation266_spill] sm:$0xff] %v9461_v9  ;;  %v1911_v9 = vadd.f32 %v9033_v35, %v1910_v18 }
 0x3a1   : > { %3092 = vrot.lane.b32.xlu0 %v13227_v1, %s12870_s28 }
 0x3a3   : > { %v9465_v42 = vpop.permute.xlu0 %3018  ;;  %3088 = vrot.lane.b32.xlu1 %v13229_v59, %s12870_s28 }
 0x3a4   : > { %13228 = vst [vmem:[#allocation181_spill] sm:$0xff] %v9465_v42  ;;  %3084 = vrot.lane.b32.xlu2 %v13230_v39, %s12870_s28  ;;  %v13232_v42 = vld [vmem:[#allocation186_spill] sm:$0xff] }
 0x3a5   : > { %v9471_v60 = vpop.permute.xlu1 %3014 }
 0x3a6   : > { %13231 = vst [vmem:[#allocation155_spill] sm:$0xff] %v9471_v60  ;;  %v2016_v26 = vpop.permute.xlu2 %2015 }
 0x3a7   : > { %2104 = vst.msk [vmem:[%s7176_s26 + $0x40] sm:$0xff] %vm2095_vm15, %v2016_v26  ;;  %v1957_v26 = vmax.f32 %v1911_v9, 0.0 }
 0x3a9   : > { %3098 = vrot.lane.b32.xlu0 %v8684_v20, %s12870_s28 }
 0x3ab   : > { %v2018_v56 = vpop.permute.xlu0 %2017  ;;  %3094 = vrot.lane.b32.xlu1 %v13232_v42, %s12870_s28 }
 0x3ac   : > { %2105 = vst.msk [vmem:[%s7176_s26 + $0x48] sm:$0xff] %vm2095_vm15, %v2018_v56  ;;  %2039 = vrot.lane.b32.xlu2 %v1955_v46, %s13016_s14 }
 0x3ad   : > { %v2014_v30 = vpop.permute.xlu1 %2013 }
 0x3ae   : > { %2103 = vst.msk [vmem:[%s7176_s26 + $0x38] sm:$0xff] %vm2095_vm15, %v2014_v30  ;;  %v9486_v2 = vpop.permute.xlu2 %3022  ;;  %v3069_v30 = vrot.slane %v8903_v33, 1  ;;  %v13243_v33 = vshll.u32 %v8871_v5, 16 }
 0x3af   : > { %13233 = vst [vmem:[#allocation115_spill] sm:$0xff] %v9486_v2  ;;  %v13240_v2 = vld [vmem:[#allocation195_spill] sm:$0xff] }
 0x3b3   : > { %v9488_v11 = vpop.permute.xlu0 %3029  ;;  %2043 = vrot.lane.b32.xlu1 %v1957_v26, %s13016_s14  ;;  %v13239_v26 = vld [vmem:[#allocation211_spill] sm:$0xff] }
 0x3b4   : > { %13234 = vst [vmem:[#allocation186_spill] sm:$0xff] %v9488_v11  ;;  %3090 = vrot.lane.b32.xlu2 %v13235_v0, %s12870_s28 }
 0x3b5   : > { %v1915_v56 = vpop.f32.mrf.mxu1  ;;  %v9493_v49 = vpop.permute.xlu1 %3020 }
 0x3b6   : > { %13236 = vst [vmem:[#allocation168_spill] sm:$0xff] %v9493_v49  ;;  %v1916_v46 = vadd.f32 %v9033_v35, %v1915_v56  ;;  %v9496_v18 = vpop.permute.xlu2 %3033  ;;  %v1913_v56 = vadd.f32 %v9033_v35, %v1912_v32 }
 0x3b7   : > { %13237 = vst [vmem:[#allocation267_spill] sm:$0xff] %v9496_v18  ;;  %v13242_v18 = vld [vmem:[#allocation223_spill] sm:$0xff] }
 0x3b8   : > { %v1959_v47 = vmax.f32 %v1916_v46, 0.0  ;;  %v1958_v45 = vmax.f32 %v1913_v56, 0.0 }
 0x3ba   : > { %2047 = vrot.lane.b32.xlu0 %v1959_v47, %s13016_s14  ;;  %v3070_v47 = vor.u32 %v3069_v30, %v13242_v18 }
 0x3bb   : > { %v9500_v9 = vpop.permute.xlu0 %3035  ;;  %3100 = vrot.lane.b32.xlu1 %v13239_v26, %s12870_s28 }
 0x3bc   : > { %13238 = vst [vmem:[#allocation268_spill] sm:$0xff] %v9500_v9  ;;  %3096 = vrot.lane.b32.xlu2 %v13240_v2, %s12870_s28  ;;  %v3074_v9 = vrot.slane %v13243_v33, 1 }
 0x3bd   : > { %v1917_v34 = vpop.f32.mrf.mxu1  ;;  %v9506_v49 = vpop.permute.xlu1 %3031 }
 0x3be   : > { %13241 = vst [vmem:[#allocation211_spill] sm:$0xff] %v9506_v49  ;;  %v2022_v46 = vpop.permute.xlu2 %2021  ;;  %v9517_v60 = vsel %vm12877_vm5, %v3070_v47, %v3074_v9  ;;  %v1918_v32 = vadd.f32 %v9033_v35, %v1917_v34  ;;  %v13246_v9 = vld [vmem:[#allocation70_spill] sm:$0xff] }
 0x3bf   : > { %2107 = vst.msk [vmem:[%s7176_s26 + $0x58] sm:$0xff] %vm2095_vm15, %v2022_v46 }
 0x3c0   : > { %13244 = vst [vmem:[#allocation195_spill] sm:$0xff] %v9517_v60  ;;  %v1960_v56 = vmax.f32 %v1918_v32, 0.0 }
 0x3c2   : > { %3104 = vrot.lane.b32.xlu0 %v8964_v22, %s12870_s28 }
 0x3c3   : > { %v2024_v40 = vpop.permute.xlu0 %2023  ;;  %3106 = vrot.lane.b32.xlu1 %v9517_v60, %s12870_s28 }
 0x3c4   : > { %2108 = vst.msk [vmem:[%s7176_s26 + $0x60] sm:$0xff] %vm2095_vm15, %v2024_v40  ;;  %2045 = vrot.lane.b32.xlu2 %v1958_v45, %s13016_s14  ;;  %v13248_v40 = vld [vmem:[#allocation216_spill] sm:$0xff] }
 0x3c5   : > { %v1920_v30 = vpop.f32.mrf.mxu1  ;;  %v2020_v46 = vpop.permute.xlu1 %2019 }
 0x3c6   : > { %2106 = vst.msk [vmem:[%s7176_s26 + $0x50] sm:$0xff] %vm2095_vm15, %v2020_v46  ;;  %v9527_v33 = vpop.permute.xlu2 %3039 }
 0x3c7   : > { %13245 = vst [vmem:[#allocation269_spill] sm:$0xff] %v9527_v33 }
 0x3ca   : > { %3113 = vrot.lane.b32.xlu0 %v13246_v9, %s12874_s16 }
 0x3cb   : > { %v9531_v47 = vpop.permute.xlu0 %3041  ;;  %2049 = vrot.lane.b32.xlu1 %v1960_v56, %s13016_s14  ;;  %v13253_v56 = vld [vmem:[#allocation42_spill] sm:$0xff] }
 0x3cc   : > { %13247 = vst [vmem:[#allocation70_spill] sm:$0xff] %v9531_v47  ;;  %3102 = vrot.lane.b32.xlu2 %v13248_v40, %s12870_s28  ;;  %v13252_v47 = vld [vmem:[#allocation76_spill] sm:$0xff] }
 0x3cd   : > { %v1922_v45 = vpop.f32.mrf.mxu1  ;;  %v9536_v34 = vpop.permute.xlu1 %3037 }
 0x3ce   : > { %13249 = vst [vmem:[#allocation216_spill] sm:$0xff] %v9536_v34  ;;  %v1923_v18 = vadd.f32 %v9033_v35, %v1922_v45  ;;  %v9539_v46 = vpop.permute.xlu2 %3045  ;;  %v1921_v45 = vadd.f32 %v9033_v35, %v1920_v30 }
 0x3cf   : > { %13250 = vst [vmem:[#allocation270_spill] sm:$0xff] %v9539_v46 }
 0x3d0   : > { %v1962_v32 = vmax.f32 %v1923_v18, 0.0  ;;  %v1961_v18 = vmax.f32 %v1921_v45, 0.0  ;;  %v13258_v45 = vld [vmem:[#allocation159_spill] sm:$0xff] }
 0x3d2   : > { %2053 = vrot.lane.b32.xlu0 %v1962_v32, %s13016_s14  ;;  %v13255_v32 = vld [vmem:[#allocation101_spill] sm:$0xff] }
 0x3d3   : > { %v9542_v49 = vpop.permute.xlu0 %3047  ;;  %3115 = vrot.lane.b32.xlu1 %v13252_v47, %s12874_s16 }
 0x3d4   : > { %13251 = vst [vmem:[#allocation271_spill] sm:$0xff] %v9542_v49  ;;  %3111 = vrot.lane.b32.xlu2 %v13253_v56, %s12874_s16 }
 0x3d5   : > { %v1925_v43 = vpop.f32.mrf.mxu1  ;;  %v9548_v25 = vpop.permute.xlu1 %3043 }
 0x3d6   : > { %13254 = vst [vmem:[#allocation76_spill] sm:$0xff] %v9548_v25  ;;  %v2028_v34 = vpop.permute.xlu2 %2027  ;;  %v1926_v56 = vadd.f32 %v9033_v35, %v1925_v43 }
 0x3d7   : > { %2110 = vst.msk [vmem:[%s7176_s26 + $0x70] sm:$0xff] %vm2095_vm15, %v2028_v34 }
 0x3d8   : > { %v1963_v34 = vmax.f32 %v1926_v56, 0.0 }
 0x3da   : > { %3119 = vrot.lane.b32.xlu0 %v13255_v32, %s12874_s16 }
 0x3db   : > { %v2030_v49 = vpop.permute.xlu0 %2029  ;;  %3121 = vrot.lane.b32.xlu1 %v13256_v29, %s12874_s16 }
 0x3dc   : > { %2111 = vst.msk [vmem:[%s7176_s26 + $0x78] sm:$0xff] %vm2095_vm15, %v2030_v49  ;;  %2051 = vrot.lane.b32.xlu2 %v1961_v18, %s13016_s14  ;;  %v13260_v49 = vld [vmem:[#allocation82_spill] sm:$0xff] }
 0x3dd   : > { %v1927_v25 = vpop.f32.mrf.mxu1  ;;  %v2026_v46 = vpop.permute.xlu1 %2025 }
 0x3de   : > { %2109 = vst.msk [vmem:[%s7176_s26 + $0x68] sm:$0xff] %vm2095_vm15, %v2026_v46  ;;  %v9563_v30 = vpop.permute.xlu2 %3051 }
 0x3df   : > { %13257 = vst [vmem:[#allocation42_spill] sm:$0xff] %v9563_v30 }
 0x3e2   : > { %3125 = vrot.lane.b32.xlu0 %v13258_v45, %s12874_s16 }
 0x3e3   : > { %v9567_v16 = vpop.permute.xlu0 %3053  ;;  %2055 = vrot.lane.b32.xlu1 %v1963_v34, %s13016_s14  ;;  %v13265_v34 = vld [vmem:[#allocation142_spill] sm:$0xff] }
 0x3e4   : > { %13259 = vst [vmem:[#allocation101_spill] sm:$0xff] %v9567_v16  ;;  %3117 = vrot.lane.b32.xlu2 %v13260_v49, %s12874_s16  ;;  %v13264_v16 = vld [vmem:[#allocation171_spill] sm:$0xff] }
 0x3e5   : > { %v1930_v18 = vpop.f32.mrf.mxu1  ;;  %v9572_v43 = vpop.permute.xlu1 %3049 }
 0x3e6   : > { %13261 = vst [vmem:[#allocation125_spill] sm:$0xff] %v9572_v43  ;;  %v1931_v54 = vadd.f32 %v9033_v35, %v1930_v18  ;;  %v9575_v46 = vpop.permute.xlu2 %3057  ;;  %v1928_v43 = vadd.f32 %v9033_v35, %v1927_v25 }
 0x3e7   : > { %13262 = vst [vmem:[#allocation159_spill] sm:$0xff] %v9575_v46 }
 0x3e8   : > { %v1965_v56 = vmax.f32 %v1931_v54, 0.0  ;;  %v1964_v46 = vmax.f32 %v1928_v43, 0.0 }
 0x3ea   : > { %2059 = vrot.lane.b32.xlu0 %v1965_v56, %s13016_s14  ;;  %v13267_v56 = vld [vmem:[#allocation193_spill] sm:$0xff] }
 0x3eb   : > { %v9578_v30 = vpop.permute.xlu0 %3059  ;;  %3127 = vrot.lane.b32.xlu1 %v13264_v16, %s12874_s16 }
 0x3ec   : > { %13263 = vst [vmem:[#allocation82_spill] sm:$0xff] %v9578_v30  ;;  %3123 = vrot.lane.b32.xlu2 %v13265_v34, %s12874_s16 }
 0x3ed   : > { %v9584_v33 = vpop.permute.xlu1 %3055  ;;  %v1932_v54 = vpop.f32.mrf.mxu1 }
 0x3ee   : > { %13266 = vst [vmem:[#allocation142_spill] sm:$0xff] %v9584_v33  ;;  %v2034_v18 = vpop.permute.xlu2 %2033  ;;  %v1933_v33 = vadd.f32 %v9033_v35, %v1932_v54  ;;  %v13277_v54 = vld [vmem:[#allocation221_spill] sm:$0xff] }
 0x3ef   : > { %2113 = vst.msk [vmem:[%s7176_s26 + $0x88] sm:$0xff] %vm2095_vm15, %v2034_v18  ;;  %v13270_v18 = vld [vmem:[#allocation214_spill] sm:$0xff] }
 0x3f0   : > { %v1966_v43 = vmax.f32 %v1933_v33, 0.0 }
 0x3f2   : > { %3131 = vrot.lane.b32.xlu0 %v13267_v56, %s12874_s16 }
 0x3f3   : > { %v2036_v30 = vpop.permute.xlu0 %2035  ;;  %3133 = vrot.lane.b32.xlu1 %v13268_v44, %s12874_s16  ;;  %v3108_v44 = vrot.slane %v8873_v48, 1 }
 0x3f4   : > { %2114 = vst.msk [vmem:[%s7176_s26 + $0x90] sm:$0xff] %vm2095_vm15, %v2036_v30  ;;  %2057 = vrot.lane.b32.xlu2 %v1964_v46, %s13016_s14  ;;  %v13272_v30 = vld [vmem:[#allocation178_spill] sm:$0xff] }
 0x3f5   : > { %v2032_v16 = vpop.permute.xlu1 %2031 }
 0x3f6   : > { %2112 = vst.msk [vmem:[%s7176_s26 + $0x80] sm:$0xff] %vm2095_vm15, %v2032_v16  ;;  %v9599_v25 = vpop.permute.xlu2 %3078  ;;  %v13275_v16 = vld [vmem:[#allocation46_spill] sm:$0xff] }
 0x3f7   : > { %13269 = vst [vmem:[#allocation272_spill] sm:$0xff] %v9599_v25 }
 0x3fa   : > { %3137 = vrot.lane.b32.xlu0 %v13270_v18, %s12874_s16  ;;  %v13282_v18 = vld [vmem:[#allocation74_spill] sm:$0xff] }
 0x3fb   : > { %v9603_v56 = vpop.permute.xlu0 %3080  ;;  %2061 = vrot.lane.b32.xlu1 %v1966_v43, %s13016_s14 }
 0x3fc   : > { %13271 = vst [vmem:[#allocation273_spill] sm:$0xff] %v9603_v56  ;;  %3129 = vrot.lane.b32.xlu2 %v13272_v30, %s12874_s16  ;;  %v13278_v56 = vld [vmem:[#allocation208_spill] sm:$0xff] }
 0x3fd   : > { %v9608_v46 = vpop.permute.xlu1 %3076 }
 0x3fe   : > { %13273 = vst [vmem:[#allocation178_spill] sm:$0xff] %v9608_v46  ;;  %v9610_v35 = vpop.permute.xlu2 %3084 }
 0x3ff   : > { %13274 = vst [vmem:[#allocation274_spill] sm:$0xff] %v9610_v35  ;;  %v9626_v35 = vrot.slane %v8871_v5, 1 }
 0x401   : > { %13280 = vst [vmem:[#allocation275_spill] sm:$0xff] %v9626_v35 }
 0x402   : > { %3152 = vrot.lane.b32.xlu0 %v13275_v16, %s13009_s25  ;;  %v13281_v16 = vld [vmem:[#allocation95_spill] sm:$0xff] }
 0x403   : > { %v9614_v33 = vpop.permute.xlu0 %3086  ;;  %3139 = vrot.lane.b32.xlu1 %v13277_v54, %s12874_s16  ;;  %v9634_v54 = vsel %vm12853_vm3, %v3108_v44, %v9626_v35  ;;  %v13286_v44 = vld [vmem:[#allocation88_spill] sm:$0xff] }
 0x404   : > { %13276 = vst [vmem:[#allocation46_spill] sm:$0xff] %v9614_v33  ;;  %3135 = vrot.lane.b32.xlu2 %v13278_v56, %s12874_s16 }
 0x405   : > { %v9620_v43 = vpop.permute.xlu1 %3082  ;;  %13283 = vst [vmem:[#allocation276_spill] sm:$0xff] %v9634_v54 }
 0x406   : > { %13279 = vst [vmem:[#allocation208_spill] sm:$0xff] %v9620_v43  ;;  %v2040_v25 = vpop.permute.xlu2 %2039 }
 0x407   : > { %2116 = vst.msk [vmem:[%s7176_s26 + $0xa0] sm:$0xff] %vm2095_vm15, %v2040_v25 }
 0x40a   : > { %3158 = vrot.lane.b32.xlu0 %v13281_v16, %s13009_s25 }
 0x40b   : > { %v2042_v33 = vpop.permute.xlu0 %2041  ;;  %3154 = vrot.lane.b32.xlu1 %v13282_v18, %s13009_s25  ;;  %v13285_v18 = vld [vmem:[#allocation118_spill] sm:$0xff] }
 0x40c   : > { %2117 = vst.msk [vmem:[%s7176_s26 + $0xa8] sm:$0xff] %vm2095_vm15, %v2042_v33  ;;  %3141 = vrot.lane.b32.xlu2 %v9634_v54, %s12874_s16 }
 0x40d   : > { %v2038_v25 = vpop.permute.xlu1 %2037 }
 0x40e   : > { %2115 = vst.msk [vmem:[%s7176_s26 + $0x98] sm:$0xff] %vm2095_vm15, %v2038_v25  ;;  %v9642_v43 = vpop.permute.xlu2 %3090 }
 0x40f   : > { %13284 = vst [vmem:[#allocation277_spill] sm:$0xff] %v9642_v43 }
 0x412   : > { %3164 = vrot.lane.b32.xlu0 %v13150_v57, %s13009_s25 }
 0x413   : > { %3160 = vrot.lane.b32.xlu1 %v13285_v18, %s13009_s25  ;;  %v9654_v16 = vpop.permute.xlu0 %3092  ;;  %v13305_v18 = vld [vmem:[#allocation68_spill] sm:$0xff] }
 0x414   : > { %3156 = vrot.lane.b32.xlu2 %v13286_v44, %s13009_s25  ;;  %13289 = vst [vmem:[#allocation279_spill] sm:$0xff] %v9654_v16 }
 0x415   : > { %v9650_v33 = vpop.permute.xlu1 %3088 }
 0x416   : > { %13287 = vst [vmem:[#allocation88_spill] sm:$0xff] %v9650_v33  ;;  %v9652_v35 = vpop.permute.xlu2 %3096  ;;  %v13292_v33 = vld [vmem:[#allocation141_spill] sm:$0xff] }
 0x417   : > { %13288 = vst [vmem:[#allocation278_spill] sm:$0xff] %v9652_v35 }
 0x41a   : > { %3170 = vrot.lane.b32.xlu0 %v8032_v53, %s13009_s25 }
 0x41b   : > { %3166 = vrot.lane.b32.xlu1 %v13154_v37, %s13009_s25  ;;  %v9670_v35 = vpop.permute.xlu0 %3098 }
 0x41c   : > { %3162 = vrot.lane.b32.xlu2 %v9087_v17, %s13009_s25  ;;  %13291 = vst [vmem:[#allocation281_spill] sm:$0xff] %v9670_v35 }
 0x41d   : > { %v9662_v25 = vpop.permute.xlu1 %3094 }
 0x41e   : > { %13290 = vst [vmem:[#allocation280_spill] sm:$0xff] %v9662_v25  ;;  %v2046_v43 = vpop.permute.xlu2 %2045  ;;  %v13294_v25 = vld [vmem:[#allocation230_spill] sm:$0xff] }
 0x41f   : > { %2119 = vst.msk [vmem:[%s7176_s26 + $0xb8] sm:$0xff] %vm2095_vm15, %v2046_v43  ;;  %v13295_v43 = vld [vmem:[#allocation191_spill] sm:$0xff] }
 0x422   : > { %3176 = vrot.lane.b32.xlu0 %v8427_v41, %s13009_s25 }
 0x423   : > { %3172 = vrot.lane.b32.xlu1 %v8102_v63, %s13009_s25  ;;  %v13296_v63 = vld [vmem:[#allocation167_spill] sm:$0xff] }
 0x424   : > { %3168 = vrot.lane.b32.xlu2 %v13292_v33, %s13009_s25 }
 0x425   : > { %v2044_v16 = vpop.permute.xlu1 %2043 }
 0x426   : > { %2118 = vst.msk [vmem:[%s7176_s26 + $0xb0] sm:$0xff] %vm2095_vm15, %v2044_v16  ;;  %v9676_v37 = vpop.permute.xlu2 %3102  ;;  %v13299_v16 = vld [vmem:[#allocation248_spill] sm:$0xff] }
 0x427   : > { %13293 = vst [vmem:[#allocation141_spill] sm:$0xff] %v9676_v37  ;;  %v13300_v37 = vld [vmem:[#allocation242_spill] sm:$0xff] }
 0x42a   : > { %3182 = vrot.lane.b32.xlu0 %v13294_v25, %s13009_s25 }
 0x42b   : > { %3178 = vrot.lane.b32.xlu1 %v13295_v43, %s13009_s25  ;;  %v13302_v43 = vld [vmem:[#allocation206_spill] sm:$0xff] }
 0x42c   : > { %v2048_v41 = vpop.permute.xlu0 %2047  ;;  %3174 = vrot.lane.b32.xlu2 %v13296_v63, %s13009_s25 }
 0x42d   : > { %2120 = vst.msk [vmem:[%s7176_s26 + $0xc0] sm:$0xff] %vm2095_vm15, %v2048_v41  ;;  %v9686_v35 = vpop.permute.xlu1 %3100 }
 0x42e   : > { %13297 = vst [vmem:[#allocation282_spill] sm:$0xff] %v9686_v35  ;;  %v9688_v53 = vpop.permute.xlu2 %3111  ;;  %v13304_v35 = vld [vmem:[#allocation249_spill] sm:$0xff] }
 0x42f   : > { %13298 = vst [vmem:[#allocation283_spill] sm:$0xff] %v9688_v53 }
 0x432   : > { %3191 = vrot.lane.b32.xlu0 %v13299_v16, %s6774_s23 }
 0x433   : > { %3187 = vrot.lane.b32.xlu1 %v13300_v37, %s6774_s23  ;;  %v13307_v37 = vld [vmem:[#allocation243_spill] sm:$0xff] }
 0x434   : > { %v9694_v25 = vpop.permute.xlu0 %3104  ;;  %3180 = vrot.lane.b32.xlu2 %v13302_v43, %s13009_s25 }
 0x435   : > { %13301 = vst [vmem:[#allocation242_spill] sm:$0xff] %v9694_v25  ;;  %v9698_v63 = vpop.permute.xlu1 %3106 }
 0x436   : > { %13303 = vst [vmem:[#allocation284_spill] sm:$0xff] %v9698_v63  ;;  %v2052_v41 = vpop.permute.xlu2 %2051 }
 0x437   : > { %2122 = vst.msk [vmem:[%s7176_s26 + $0xd0] sm:$0xff] %vm2095_vm15, %v2052_v41  ;;  %v13309_v41 = vld [vmem:[#allocation245_spill] sm:$0xff] }
 0x43a   : > { %3197 = vrot.lane.b32.xlu0 %v13304_v35, %s6774_s23 }
 0x43b   : > { %3193 = vrot.lane.b32.xlu1 %v13305_v18, %s6774_s23  ;;  %v13310_v18 = vld [vmem:[#allocation246_spill] sm:$0xff] }
 0x43c   : > { %v9706_v16 = vpop.permute.xlu0 %3113  ;;  %3189 = vrot.lane.b32.xlu2 %v13307_v37, %s6774_s23 }
 0x43d   : > { %13306 = vst [vmem:[#allocation285_spill] sm:$0xff] %v9706_v16  ;;  %v2050_v25 = vpop.permute.xlu1 %2049 }
 0x43e   : > { %2121 = vst.msk [vmem:[%s7176_s26 + $0xc8] sm:$0xff] %vm2095_vm15, %v2050_v25  ;;  %v9712_v43 = vpop.permute.xlu2 %3117  ;;  %v13312_v25 = vld [vmem:[#allocation98_spill] sm:$0xff] }
 0x43f   : > { %13308 = vst [vmem:[#allocation243_spill] sm:$0xff] %v9712_v43 }
 0x442   : > { %3203 = vrot.lane.b32.xlu0 %v9272_v36, %s6774_s23 }
 0x443   : > { %3199 = vrot.lane.b32.xlu1 %v13309_v41, %s6774_s23  ;;  %v13313_v41 = vld [vmem:[#allocation121_spill] sm:$0xff] }
 0x444   : > { %v2054_v63 = vpop.permute.xlu0 %2053  ;;  %3195 = vrot.lane.b32.xlu2 %v13310_v18, %s6774_s23 }
 0x445   : > { %2123 = vst.msk [vmem:[%s7176_s26 + $0xd8] sm:$0xff] %vm2095_vm15, %v2054_v63  ;;  %v9722_v16 = vpop.permute.xlu1 %3115 }
 0x446   : > { %13311 = vst [vmem:[#allocation286_spill] sm:$0xff] %v9722_v16  ;;  %v9724_v35 = vpop.permute.xlu2 %3123 }
 0x44a   : > { %3209 = vrot.lane.b32.xlu0 %v9293_v52, %s6774_s23  ;;  %v3184_v52 = vrot.slane %v8873_v48, 2 }
 0x44b   : > { %3205 = vrot.lane.b32.xlu1 %v13312_v25, %s6774_s23 }
 0x44c   : > { %v9730_v43 = vpop.permute.xlu0 %3119  ;;  %3201 = vrot.lane.b32.xlu2 %v13313_v41, %s6774_s23 }
 0x44d   : > { %v9734_v36 = vpop.permute.xlu1 %3121 }
 0x44e   : > { %13314 = vst [vmem:[#allocation287_spill] sm:$0xff] %v9734_v36  ;;  %v2058_v18 = vpop.permute.xlu2 %2057 }
 0x44f   : > { %2125 = vst.msk [vmem:[%s7176_s26 + $0xe8] sm:$0xff] %vm2095_vm15, %v2058_v18  ;;  %v3185_v18 = vrot.slane %v8871_v5, 2 }
 0x452   : > { %3215 = vrot.lane.b32.xlu0 %v9330_v6, %s6774_s23 }
 0x453   : > { %3211 = vrot.lane.b32.xlu1 %v9236_v13, %s6774_s23  ;;  %v9755_v13 = vsel %vm12854_vm4, %v3184_v52, %v3185_v18 }
 0x454   : > { %v9742_v63 = vpop.permute.xlu0 %3125  ;;  %3207 = vrot.lane.b32.xlu2 %v9244_v38, %s6774_s23  ;;  %13316 = vst [vmem:[#allocation289_spill] sm:$0xff] %v9755_v13 }
 0x455   : > { %v2056_v16 = vpop.permute.xlu1 %2055 }
 0x456   : > { %2124 = vst.msk [vmem:[%s7176_s26 + $0xe0] sm:$0xff] %vm2095_vm15, %v2056_v16  ;;  %v9748_v25 = vpop.permute.xlu2 %3129 }
 0x457   : > { %13315 = vst [vmem:[#allocation288_spill] sm:$0xff] %v9748_v25 }
 0x45a   : > { %3226 = vrot.lane.b32.xlu0 %v13180_v58, %s6775_s24 }
 0x45b   : > { %3217 = vrot.lane.b32.xlu1 %v9755_v13, %s6774_s23 }
 0x45c   : > { %3213 = vrot.lane.b32.xlu2 %v9288_v24, %s6774_s23  ;;  %v2060_v16 = vpop.permute.xlu0 %2059  ;;  %s6776_s23 = smov 44  }
 0x45d   : > { %2126 = vst.msk [vmem:[%s7176_s26 + $0xf0] sm:$0xff] %vm2095_vm15, %v2060_v16  ;;  %v9763_v6 = vpop.permute.xlu1 %3127 }
 0x45e   : > { %13317 = vst [vmem:[#allocation290_spill] sm:$0xff] %v9763_v6  ;;  %v9765_v5 = vpop.permute.xlu2 %3135 }
 0x45f   : > { %13318 = vst [vmem:[#allocation291_spill] sm:$0xff] %v9765_v5 }
 0x462   : > { %3232 = vrot.lane.b32.xlu0 %v13187_v7, %s6775_s24 }
 0x463   : > { %3228 = vrot.lane.b32.xlu1 %v13165_v55, %s6775_s24 }
 0x464   : > { %3224 = vrot.lane.b32.xlu2 %v13168_v27, %s6775_s24  ;;  %v9773_v52 = vpop.permute.xlu0 %3131 }
 0x465   : > { %13319 = vst [vmem:[#allocation292_spill] sm:$0xff] %v9773_v52  ;;  %v9775_v18 = vpop.permute.xlu1 %3133 }
 0x466   : > { %13320 = vst [vmem:[#allocation293_spill] sm:$0xff] %v9775_v18  ;;  %v9777_v13 = vpop.permute.xlu2 %3141 }
 0x467   : > { %13321 = vst [vmem:[#allocation294_spill] sm:$0xff] %v9777_v13 }
 0x46a   : > { %3238 = vrot.lane.b32.xlu0 %v13193_v19, %s6775_s24 }
 0x46b   : > { %3234 = vrot.lane.b32.xlu1 %v13172_v14, %s6775_s24 }
 0x46c   : > { %3230 = vrot.lane.b32.xlu2 %v13175_v12, %s6775_s24  ;;  %v9785_v16 = vpop.permute.xlu0 %3137 }
 0x46d   : > { %13322 = vst [vmem:[#allocation295_spill] sm:$0xff] %v9785_v16  ;;  %v2062_v58 = vpop.permute.xlu1 %2061 }
 0x46e   : > { %2127 = vst.msk [vmem:[%s7176_s26 + $0xf8] sm:$0xff] %vm2095_vm15, %v2062_v58  ;;  %v9789_v27 = vpop.permute.xlu2 %3156  ;;  %vm3759_vm15 = vcmask 359424  }
 0x46f   : > { %13323 = vst [vmem:[#allocation296_spill] sm:$0xff] %v9789_v27 }
 0x472   : > { %3244 = vrot.lane.b32.xlu0 %v8217_v51, %s6775_s24 }
 0x473   : > { %3240 = vrot.lane.b32.xlu1 %v13183_v4, %s6775_s24 }
 0x474   : > { %3236 = vrot.lane.b32.xlu2 %v13185_v31, %s6775_s24  ;;  %v9797_v24 = vpop.permute.xlu0 %3152 }
 0x475   : > { %13324 = vst [vmem:[#allocation297_spill] sm:$0xff] %v9797_v24  ;;  %v9799_v38 = vpop.permute.xlu1 %3139 }
 0x476   : > { %13325 = vst [vmem:[#allocation298_spill] sm:$0xff] %v9799_v38  ;;  %v9801_v13 = vpop.permute.xlu2 %3162 }
 0x477   : > { %13326 = vst [vmem:[#allocation299_spill] sm:$0xff] %v9801_v13 }
 0x47a   : > { %3250 = vrot.lane.b32.xlu0 %v8590_v23, %s6775_s24 }
 0x47b   : > { %3246 = vrot.lane.b32.xlu1 %v8358_v3, %s6775_s24 }
 0x47c   : > { %3242 = vrot.lane.b32.xlu2 %v8036_v61, %s6775_s24  ;;  %v9809_v58 = vpop.permute.xlu0 %3158 }
 0x47d   : > { %13327 = vst [vmem:[#allocation300_spill] sm:$0xff] %v9809_v58  ;;  %v9811_v27 = vpop.permute.xlu1 %3154 }
 0x47e   : > { %13328 = vst [vmem:[#allocation301_spill] sm:$0xff] %v9811_v27  ;;  %v9813_v16 = vpop.permute.xlu2 %3168 }
 0x47f   : > { %13329 = vst [vmem:[#allocation302_spill] sm:$0xff] %v9813_v16 }
 0x482   : > { %3271 = vrot.lane.b32.xlu0 %v13224_v62, %s6776_s23  ;;  %v13331_v62 = vld [vmem:[#allocation228_spill] sm:$0xff] }
 0x483   : > { %3252 = vrot.lane.b32.xlu1 %v8873_v48, %s6775_s24 }
 0x484   : > { %3248 = vrot.lane.b32.xlu2 %v8438_v50, %s6775_s24  ;;  %v9821_v41 = vpop.permute.xlu0 %3164 }
 0x485   : > { %v9823_v52 = vpop.permute.xlu1 %3160 }
 0x486   : > { %v9825_v3 = vpop.permute.xlu2 %3174 }
 0x487   : > { %13330 = vst [vmem:[#allocation303_spill] sm:$0xff] %v9825_v3 }
 0x48a   : > { %3277 = vrot.lane.b32.xlu0 %v13230_v39, %s6776_s23 }
 0x48b   : > { %3273 = vrot.lane.b32.xlu1 %v13216_v8, %s6776_s23 }
 0x48c   : > { %3254 = vrot.lane.b32.xlu2 %v13331_v62, %s6775_s24  ;;  %v9833_v58 = vpop.permute.xlu0 %3170  ;;  %s6777_s24 = smov 48  }
 0x48d   : > { %13332 = vst [vmem:[#allocation304_spill] sm:$0xff] %v9833_v58  ;;  %v9835_v27 = vpop.permute.xlu1 %3166 }
 0x48e   : > { %v9837_v48 = vpop.permute.xlu2 %3180 }
 0x48f   : > { %13333 = vst [vmem:[#allocation305_spill] sm:$0xff] %v9837_v48 }
 0x492   : > { %3283 = vrot.lane.b32.xlu0 %v13235_v0, %s6776_s23 }
 0x493   : > { %3279 = vrot.lane.b32.xlu1 %v13220_v10, %s6776_s23 }
 0x494   : > { %3275 = vrot.lane.b32.xlu2 %v13221_v28, %s6776_s23  ;;  %v9845_v39 = vpop.permute.xlu0 %3176 }
 0x495   : > { %13334 = vst [vmem:[#allocation306_spill] sm:$0xff] %v9845_v39  ;;  %v9847_v8 = vpop.permute.xlu1 %3172  ;;  %v13339_v39 = vld [vmem:[#allocation232_spill] sm:$0xff] }
 0x496   : > { %13335 = vst [vmem:[#allocation307_spill] sm:$0xff] %v9847_v8  ;;  %v9849_v5 = vpop.permute.xlu2 %3189  ;;  %v3264_v23 = vrot.slane %v13339_v39, 1 }
 0x497   : > { %13336 = vst [vmem:[#allocation308_spill] sm:$0xff] %v9849_v5 }
 0x49a   : > { %3289 = vrot.lane.b32.xlu0 %v13240_v2, %s6776_s23  ;;  %v13341_v2 = vld [vmem:[#allocation231_spill] sm:$0xff] }
 0x49b   : > { %3285 = vrot.lane.b32.xlu1 %v13227_v1, %s6776_s23  ;;  %v3265_v5 = vor.u32 %v3264_v23, %v13341_v2 }
 0x49c   : > { %3281 = vrot.lane.b32.xlu2 %v13229_v59, %s6776_s23  ;;  %v9857_v0 = vpop.permute.xlu0 %3182 }
 0x49d   : > { %13337 = vst [vmem:[#allocation309_spill] sm:$0xff] %v9857_v0  ;;  %v9859_v10 = vpop.permute.xlu1 %3178 }
 0x49e   : > { %13338 = vst [vmem:[#allocation310_spill] sm:$0xff] %v9859_v10  ;;  %v9861_v28 = vpop.permute.xlu2 %3195  ;;  %v13342_v10 = vld [vmem:[#allocation226_spill] sm:$0xff] }
 0x49f   : > { %v13343_v8 = vshll.u32 %v13342_v10, 16 }
 0x4a1   : > { %v3269_v48 = vrot.slane %v13343_v8, 1 }
 0x4a2   : > { %3295 = vrot.lane.b32.xlu0 %v13248_v40, %s6776_s23  ;;  %v13346_v40 = vld [vmem:[#allocation65_spill] sm:$0xff] }
 0x4a3   : > { %3291 = vrot.lane.b32.xlu1 %v8684_v20, %s6776_s23  ;;  %v9878_v39 = vsel %vm12877_vm5, %v3265_v5, %v3269_v48  ;;  %v3447_v5 = vsel %vm385_vm1, %v13159_v21, %v13346_v40  ;;  %v13348_v40 = vld [vmem:[#allocation67_spill] sm:$0xff] }
 0x4a4   : > { %3287 = vrot.lane.b32.xlu2 %v13232_v42, %s6776_s23  ;;  %v9870_v1 = vpop.permute.xlu0 %3191  ;;  %13344 = vst [vmem:[#allocation311_spill] sm:$0xff] %v9878_v39 }
 0x4a5   : > { %13340 = vst [vmem:[#allocation232_spill] sm:$0xff] %v9870_v1  ;;  %v3188_v59 = vpop.permute.xlu1 %3187 }
 0x4a6   : > { %v9873_v0 = vpop.permute.xlu2 %3201 }
 0x4aa   : > { %3301 = vrot.lane.b32.xlu0 %v9878_v39, %s6776_s23  ;;  %v13370_v39 = vld [vmem:[#allocation269_spill] sm:$0xff] }
 0x4ab   : > { %3297 = vrot.lane.b32.xlu1 %v8964_v22, %s6776_s23  ;;  %v13347_v22 = vld [vmem:[#allocation66_spill] sm:$0xff] }
 0x4ac   : > { %3293 = vrot.lane.b32.xlu2 %v13239_v26, %s6776_s23  ;;  %v9886_v20 = vpop.permute.xlu0 %3197  ;;  %v3477_v26 = vsel %vm559_vm7, %v3447_v5, %v13347_v22 }
 0x4ad   : > { %v9888_v23 = vpop.permute.xlu1 %3193 }
 0x4ae   : > { %13345 = vst [vmem:[#allocation312_spill] sm:$0xff] %v9888_v23  ;;  %v9890_v42 = vpop.permute.xlu2 %3207  ;;  %v9911_v23 = vsel %vm1588_vm8, %v3477_v26, %v13348_v40 }
 0x4af   : > { %13349 = vst [vmem:[#allocation65_spill] sm:$0xff] %v9911_v23 }
 0x4b2   : > { %3310 = vrot.lane.b32.xlu0 %v13260_v49, %s6777_s24 }
 0x4b3   : > { %3306 = vrot.lane.b32.xlu1 %v13246_v9, %s6777_s24  ;;  %v9916_v9 = vsel %vm1621_vm9, %v9911_v23, %v9392_v15 }
 0x4b4   : > { %3299 = vrot.lane.b32.xlu2 %v9517_v60, %s6776_s23  ;;  %v9901_v48 = vpop.permute.xlu0 %3203  ;;  %13350 = vst [vmem:[#allocation66_spill] sm:$0xff] %v9916_v9  ;;  %v3567_v49 = vsel %vm12880_vm10, %v9916_v9, %v9488_v11  ;;  %s6778_s23 = smov 52   ;;  %v13365_v9 = vld [vmem:[#allocation162_spill] sm:$0xff] }
 0x4b5   : > { %v9905_v8 = vpop.permute.xlu1 %3199  ;;  %v3599_v5 = vsel %vm1687_vm11, %v3567_v49, %v9608_v46  ;;  %v13371_v60 = vld [vmem:[#allocation46_spill] sm:$0xff] }
 0x4b6   : > { %v9907_v2 = vpop.permute.xlu2 %3213  ;;  %v3631_v22 = vsel %vm1720_vm12, %v3599_v5, %v9688_v53 }
 0x4b7   : > { %v3663_v26 = vsel %vm1753_vm13, %v3631_v22, %v9797_v24  ;;  %v9977_v24 = vrot.slane %v13342_v10, 1 }
 0x4ba   : > { %3316 = vrot.lane.b32.xlu0 %v13265_v34, %s6777_s24  ;;  %v3695_v34 = vsel %vm12879_vm14, %v3663_v26, %v3188_v59  ;;  %v13352_v59 = vld [vmem:[#allocation193_spill] sm:$0xff]  ;;  %v13355_v26 = vld [vmem:[#allocation214_spill] sm:$0xff] }
 0x4bb   : > { %3312 = vrot.lane.b32.xlu1 %v13255_v32, %s6777_s24  ;;  %13358 = vst [vmem:[#allocation214_spill] sm:$0xff] %v9977_v24 }
 0x4bc   : > { %3308 = vrot.lane.b32.xlu2 %v13252_v47, %s6777_s24  ;;  %v9931_v15 = vpop.permute.xlu0 %3209 }
 0x4bd   : > { %v9935_v40 = vpop.permute.xlu1 %3205 }
 0x4be   : > { %v3225_v49 = vpop.permute.xlu2 %3224 }
 0x4bf   : > { %v3728_v46 = vsel %vm12878_vm6, %v3695_v34, %v3225_v49 }
 0x4c2   : > { %3322 = vrot.lane.b32.xlu0 %v13272_v30, %s6777_s24  ;;  %v13353_v30 = vld [vmem:[#allocation171_spill] sm:$0xff] }
 0x4c3   : > { %3318 = vrot.lane.b32.xlu1 %v13258_v45, %s6777_s24 }
 0x4c4   : > { %3314 = vrot.lane.b32.xlu2 %v13256_v29, %s6777_s24  ;;  %v9945_v47 = vpop.permute.xlu0 %3215 }
 0x4c5   : > { %v9947_v32 = vpop.permute.xlu1 %3211 }
 0x4c6   : > { %v9949_v5 = vpop.permute.xlu2 %3230 }
 0x4c7   : > { %13351 = vst [vmem:[#allocation67_spill] sm:$0xff] %v9949_v5 }
 0x4ca   : > { %3328 = vrot.lane.b32.xlu0 %v13278_v56, %s6777_s24  ;;  %v13356_v56 = vld [vmem:[#allocation202_spill] sm:$0xff] }
 0x4cb   : > { %3324 = vrot.lane.b32.xlu1 %v13352_v59, %s6777_s24 }
 0x4cc   : > { %3320 = vrot.lane.b32.xlu2 %v13353_v30, %s6777_s24  ;;  %v9957_v22 = vpop.permute.xlu0 %3226  ;;  %v3303_v30 = vrot.slane %v13331_v62, 1 }
 0x4cd   : > { %13354 = vst [vmem:[#allocation193_spill] sm:$0xff] %v9957_v22  ;;  %v9959_v45 = vpop.permute.xlu1 %3217 }
 0x4ce   : > { %v9961_v29 = vpop.permute.xlu2 %3236 }
 0x4d2   : > { %3334 = vrot.lane.b32.xlu0 %v9634_v54, %s6777_s24 }
 0x4d3   : > { %3330 = vrot.lane.b32.xlu1 %v13355_v26, %s6777_s24  ;;  %v9983_v26 = vsel %vm12853_vm3, %v3303_v30, %v9977_v24  ;;  %v13362_v30 = vld [vmem:[#allocation74_spill] sm:$0xff]  ;;  %vm3792_vm3 = vcmask 392192  }
 0x4d4   : > { %3326 = vrot.lane.b32.xlu2 %v13356_v56, %s6777_s24  ;;  %v9969_v34 = vpop.permute.xlu0 %3232  ;;  %13359 = vst [vmem:[#allocation202_spill] sm:$0xff] %v9983_v26  ;;  %v13360_v56 = vld [vmem:[#allocation221_spill] sm:$0xff] }
 0x4d5   : > { %v9971_v49 = vpop.permute.xlu1 %3228 }
 0x4d6   : > { %13357 = vst [vmem:[#allocation171_spill] sm:$0xff] %v9971_v49  ;;  %v9973_v59 = vpop.permute.xlu2 %3242 }
 0x4da   : > { %3349 = vrot.lane.b32.xlu0 %v13286_v44, %s6778_s23  ;;  %v13361_v44 = vld [vmem:[#allocation95_spill] sm:$0xff] }
 0x4db   : > { %3336 = vrot.lane.b32.xlu1 %v9983_v26, %s6777_s24 }
 0x4dc   : > { %3332 = vrot.lane.b32.xlu2 %v13360_v56, %s6777_s24  ;;  %v9989_v53 = vpop.permute.xlu0 %3238  ;;  %v13363_v56 = vld [vmem:[#allocation172_spill] sm:$0xff]  ;;  %s6779_s24 = smov 56  }
 0x4dd   : > { %v3235_v11 = vpop.permute.xlu1 %3234  ;;  %v3455_v22 = vsel %vm385_vm1, %v13175_v12, %v13363_v56  ;;  %v13369_v56 = vld [vmem:[#allocation37_spill] sm:$0xff]  ;;  %v13372_v12 = vld [vmem:[#allocation167_spill] sm:$0xff] }
 0x4de   : > { %v9991_v23 = vpop.permute.xlu2 %3248  ;;  %v3485_v26 = vsel %vm559_vm7, %v3455_v22, %v13365_v9  ;;  %v13373_v9 = vld [vmem:[#allocation209_spill] sm:$0xff] }
 0x4df   : > { %v3461_v22 = vsel %vm385_vm1, %v13185_v31, %v13373_v9 }
 0x4e2   : > { %3355 = vrot.lane.b32.xlu0 %v9087_v17, %s6778_s23  ;;  %v13364_v17 = vld [vmem:[#allocation118_spill] sm:$0xff] }
 0x4e3   : > { %3351 = vrot.lane.b32.xlu1 %v13361_v44, %s6778_s23 }
 0x4e4   : > { %3347 = vrot.lane.b32.xlu2 %v13362_v30, %s6778_s23  ;;  %v9999_v5 = vpop.permute.xlu0 %3244 }
 0x4e5   : > { %v3241_v49 = vpop.permute.xlu1 %3240 }
 0x4e6   : > { %v10001_v1 = vpop.permute.xlu2 %3254 }
 0x4ea   : > { %3361 = vrot.lane.b32.xlu0 %v13292_v33, %s6778_s23  ;;  %v13367_v33 = vld [vmem:[#allocation173_spill] sm:$0xff] }
 0x4eb   : > { %3357 = vrot.lane.b32.xlu1 %v13150_v57, %s6778_s23  ;;  %v10022_v54 = vsel %vm1588_vm8, %v3485_v26, %v13367_v33  ;;  %v13374_v33 = vld [vmem:[#allocation147_spill] sm:$0xff] }
 0x4ec   : > { %3353 = vrot.lane.b32.xlu2 %v13364_v17, %s6778_s23  ;;  %v10012_v44 = vpop.permute.xlu0 %3250  ;;  %13368 = vst [vmem:[#allocation95_spill] sm:$0xff] %v10022_v54  ;;  %v3545_v57 = vsel %vm1621_vm9, %v10022_v54, %v13369_v56 }
 0x4ed   : > { %v10014_v30 = vpop.permute.xlu1 %3246  ;;  %v3577_v17 = vsel %vm12880_vm10, %v3545_v57, %v13370_v39  ;;  %v13375_v57 = vld [vmem:[#allocation112_spill] sm:$0xff] }
 0x4ee   : > { %v10018_v24 = vpop.permute.xlu2 %3275  ;;  %v3609_v21 = vsel %vm1687_vm11, %v3577_v17, %v13371_v60  ;;  %v13379_v39 = vld [vmem:[#allocation72_spill] sm:$0xff] }
 0x4ef   : > { %13366 = vst [vmem:[#allocation221_spill] sm:$0xff] %v10018_v24  ;;  %v3641_v26 = vsel %vm1720_vm12, %v3609_v21, %v9734_v36  ;;  %v13376_v21 = vld [vmem:[#allocation198_spill] sm:$0xff] }
 0x4f0   : > { %v3673_v56 = vsel %vm1753_vm13, %v3641_v26, %v9801_v13  ;;  %v3491_v36 = vsel %vm559_vm7, %v3461_v22, %v13376_v21  ;;  %v13377_v26 = vld [vmem:[#allocation63_spill] sm:$0xff]  ;;  %v13382_v22 = vld [vmem:[#allocation270_spill] sm:$0xff] }
 0x4f1   : > { %v10056_v13 = vsel %vm1588_vm8, %v3491_v36, %v13377_v26  ;;  %v13383_v36 = vld [vmem:[#allocation279_spill] sm:$0xff] }
 0x4f2   : > { %3367 = vrot.lane.b32.xlu0 %v13372_v12, %s6778_s23  ;;  %v3705_v12 = vsel %vm12879_vm14, %v3673_v56, %v9886_v20  ;;  %13378 = vst [vmem:[#allocation74_spill] sm:$0xff] %v10056_v13  ;;  %v13380_v20 = vld [vmem:[#allocation157_spill] sm:$0xff] }
 0x4f3   : > { %3363 = vrot.lane.b32.xlu1 %v13374_v33, %s6778_s23  ;;  %v3738_v33 = vsel %vm12878_vm6, %v3705_v12, %v3235_v11  ;;  %v3453_v56 = vsel %vm385_vm1, %v13165_v55, %v13380_v20  ;;  %v13386_v20 = vld [vmem:[#allocation184_spill] sm:$0xff] }
 0x4f4   : > { %3359 = vrot.lane.b32.xlu2 %v13375_v57, %s6778_s23  ;;  %v3272_v17 = vpop.permute.xlu0 %3271 }
 0x4f5   : > { %v10047_v24 = vsel %vm3759_vm15, %v3728_v46, %v3272_v17  ;;  %v10049_v9 = vpop.permute.xlu1 %3252  ;;  %v3551_v46 = vsel %vm1621_vm9, %v10056_v13, %v13379_v39  ;;  %v13381_v17 = vld [vmem:[#allocation177_spill] sm:$0xff] }
 0x4f6   : > { %v3282_v60 = vpop.permute.xlu2 %3281  ;;  %v3457_v11 = vsel %vm385_vm1, %v13187_v7, %v13381_v17  ;;  %v3583_v12 = vsel %vm12880_vm10, %v3551_v46, %v13382_v22  ;;  %v13387_v17 = vld [vmem:[#allocation152_spill] sm:$0xff]  ;;  %v13388_v46 = vld [vmem:[#allocation169_spill] sm:$0xff] }
 0x4f7   : > { %v10059_v57 = vsel %vm3759_vm15, %v3738_v33, %v3282_v60  ;;  %v3615_v21 = vsel %vm1687_vm11, %v3583_v12, %v13383_v36  ;;  %v13384_v60 = vld [vmem:[#allocation206_spill] sm:$0xff]  ;;  %v13385_v33 = vld [vmem:[#allocation235_spill] sm:$0xff]  ;;  %v3483_v13 = vsel %vm559_vm7, %v3453_v56, %v13387_v17  ;;  %v3487_v22 = vsel %vm559_vm7, %v3457_v11, %v13388_v46  ;;  %v13394_v56 = vld [vmem:[#allocation256_spill] sm:$0xff] }
 0x4f8   : > { %v3467_v39 = vsel %vm385_vm1, %v8036_v61, %v13385_v33  ;;  %v3647_v26 = vsel %vm1720_vm12, %v3615_v21, %v9763_v6  ;;  %v13391_v33 = vld [vmem:[#allocation160_spill] sm:$0xff]  ;;  %v13393_v6 = vld [vmem:[#allocation194_spill] sm:$0xff]  ;;  %v10102_v17 = vsel %vm1588_vm8, %v3487_v22, %v13394_v56  ;;  %v13400_v56 = vld [vmem:[#allocation259_spill] sm:$0xff] }
 0x4f9   : > { %v3679_v12 = vsel %vm1753_vm13, %v3647_v26, %v9813_v16  ;;  %v10095_v21 = vsel %vm1588_vm8, %v3483_v13, %v13391_v33  ;;  %13395 = vst [vmem:[#allocation162_spill] sm:$0xff] %v10102_v17  ;;  %v13397_v46 = vld [vmem:[#allocation210_spill] sm:$0xff]  ;;  %v13399_v33 = vld [vmem:[#allocation265_spill] sm:$0xff] }
 0x4fa   : > { %3373 = vrot.lane.b32.xlu0 %v13384_v60, %s6778_s23  ;;  %v13389_v60 = vld [vmem:[#allocation154_spill] sm:$0xff]  ;;  %13392 = vst [vmem:[#allocation118_spill] sm:$0xff] %v10095_v21  ;;  %v3711_v11 = vsel %vm12879_vm14, %v3679_v12, %v9901_v48  ;;  %v13402_v48 = vld [vmem:[#allocation263_spill] sm:$0xff] }
 0x4fb   : > { %3369 = vrot.lane.b32.xlu1 %v13386_v20, %s6778_s23  ;;  %v3459_v20 = vsel %vm385_vm1, %v13172_v14, %v13393_v6  ;;  %v3547_v6 = vsel %vm1621_vm9, %v10102_v17, %v13399_v33  ;;  %v3744_v16 = vsel %vm12878_vm6, %v3711_v11, %v3241_v49  ;;  %v3543_v12 = vsel %vm1621_vm9, %v10095_v21, %v13402_v48  ;;  %v13405_v49 = vld [vmem:[#allocation216_spill] sm:$0xff]  ;;  %v13408_v48 = vld [vmem:[#allocation42_spill] sm:$0xff] }
 0x4fc   : > { %3365 = vrot.lane.b32.xlu2 %v13389_v60, %s6778_s23  ;;  %v10091_v36 = vpop.permute.xlu0 %3277  ;;  %v3463_v60 = vsel %vm385_vm1, %v13193_v19, %v13397_v46  ;;  %v3575_v11 = vsel %vm12880_vm10, %v3543_v12, %v13405_v49  ;;  %v13406_v17 = vld [vmem:[#allocation88_spill] sm:$0xff] }
 0x4fd   : > { %13390 = vst [vmem:[#allocation172_spill] sm:$0xff] %v10091_v36  ;;  %v10106_v26 = vpop.permute.xlu1 %3273  ;;  %v13398_v36 = vld [vmem:[#allocation222_spill] sm:$0xff] }
 0x4fe   : > { %13396 = vst [vmem:[#allocation173_spill] sm:$0xff] %v10106_v26  ;;  %v3497_v13 = vsel %vm559_vm7, %v3467_v39, %v13398_v36  ;;  %v3288_v22 = vpop.permute.xlu2 %3287  ;;  %v13403_v26 = vld [vmem:[#allocation70_spill] sm:$0xff]  ;;  %v13404_v39 = vld [vmem:[#allocation155_spill] sm:$0xff] }
 0x4ff   : > { %v10119_v54 = vsel %vm1588_vm8, %v3497_v13, %v13400_v56  ;;  %v3579_v46 = vsel %vm12880_vm10, %v3547_v6, %v13403_v26  ;;  %v10127_v36 = vsel %vm3759_vm15, %v3744_v16, %v3288_v22  ;;  %v13407_v56 = vld [vmem:[#allocation189_spill] sm:$0xff]  ;;  %v13409_v6 = vld [vmem:[#allocation274_spill] sm:$0xff]  ;;  %v13410_v26 = vld [vmem:[#allocation204_spill] sm:$0xff] }
 0x500   : > { %13401 = vst [vmem:[#allocation37_spill] sm:$0xff] %v10119_v54  ;;  %v3557_v33 = vsel %vm1621_vm9, %v10119_v54, %v13404_v39  ;;  %v3611_v13 = vsel %vm1687_vm11, %v3579_v46, %v13406_v17  ;;  %v3489_v14 = vsel %vm559_vm7, %v3459_v20, %v13407_v56  ;;  %v3607_v16 = vsel %vm1687_vm11, %v3575_v11, %v13409_v6  ;;  %v13411_v54 = vld [vmem:[#allocation281_spill] sm:$0xff]  ;;  %v13414_v56 = vld [vmem:[#allocation254_spill] sm:$0xff] }
 0x501   : > { %v3589_v21 = vsel %vm12880_vm10, %v3557_v33, %v13408_v48  ;;  %v3643_v22 = vsel %vm1720_vm12, %v3611_v13, %v9724_v35  ;;  %v3493_v39 = vsel %vm559_vm7, %v3463_v60, %v13410_v26  ;;  %v3639_v46 = vsel %vm1720_vm12, %v3607_v16, %v9730_v43  ;;  %v13412_v33 = vld [vmem:[#allocation247_spill] sm:$0xff]  ;;  %v13413_v13 = vld [vmem:[#allocation230_spill] sm:$0xff] }
 0x502   : > { %v3621_v12 = vsel %vm1687_vm11, %v3589_v21, %v13411_v54  ;;  %v3675_v20 = vsel %vm1753_vm13, %v3643_v22, %v9821_v41  ;;  %3382 = vrot.lane.b32.xlu0 %v13307_v37, %s6779_s24  ;;  %v3473_v11 = vsel %vm385_vm1, %v8438_v50, %v13412_v33  ;;  %v3671_v21 = vsel %vm1753_vm13, %v3639_v46, %v9823_v52  ;;  %v13415_v46 = vld [vmem:[#allocation191_spill] sm:$0xff] }
 0x503   : > { %v3653_v26 = vsel %vm1720_vm12, %v3621_v12, %v9775_v18  ;;  %v3707_v60 = vsel %vm12879_vm14, %v3675_v20, %v9905_v8  ;;  %3375 = vrot.lane.b32.xlu1 %v13413_v13, %s6778_s23  ;;  %v10167_v16 = vsel %vm1588_vm8, %v3489_v14, %v13414_v56  ;;  %v3703_v22 = vsel %vm12879_vm14, %v3671_v21, %v9861_v28  ;;  %v13416_v20 = vld [vmem:[#allocation258_spill] sm:$0xff]  ;;  %v13418_v21 = vld [vmem:[#allocation80_spill] sm:$0xff]  ;;  %v13430_v18 = vld [vmem:[#allocation277_spill] sm:$0xff] }
 0x504   : > { %v3685_v37 = vsel %vm1753_vm13, %v3653_v26, %v9825_v3  ;;  %v3740_v12 = vsel %vm12878_vm6, %v3707_v60, %v9961_v29  ;;  %3371 = vrot.lane.b32.xlu2 %v13415_v46, %s6778_s23  ;;  %v3284_v8 = vpop.permute.xlu0 %3283  ;;  %v10179_v33 = vsel %vm1588_vm8, %v3493_v39, %v13416_v20  ;;  %v3736_v26 = vsel %vm12878_vm6, %v3703_v22, %v9969_v34  ;;  %v13419_v60 = vld [vmem:[#allocation144_spill] sm:$0xff]  ;;  %v13422_v22 = vld [vmem:[#allocation83_spill] sm:$0xff]  ;;  %v13428_v3 = vld [vmem:[#allocation238_spill] sm:$0xff] }
 0x505   : > { %13417 = vst [vmem:[#allocation167_spill] sm:$0xff] %v10179_v33  ;;  %v3717_v14 = vsel %vm12879_vm14, %v3685_v37, %v9931_v15  ;;  %v10186_v56 = vsel %vm3759_vm15, %v3740_v12, %v3284_v8  ;;  %v3280_v28 = vpop.permute.xlu1 %3279  ;;  %v3503_v29 = vsel %vm559_vm7, %v3473_v11, %v13418_v21  ;;  %v3553_v46 = vsel %vm1621_vm9, %v10179_v33, %v13419_v60  ;;  %v13420_v37 = vld [vmem:[#allocation261_spill] sm:$0xff]  ;;  %v13423_v11 = vld [vmem:[#allocation271_spill] sm:$0xff]  ;;  %v13630_v33 = vld [vmem:[#allocation164_spill] sm:$0xff] }
 0x506   : > { %v3750_v39 = vsel %vm12878_vm6, %v3717_v14, %v10014_v30  ;;  %v10196_v20 = vsel %vm3759_vm15, %v3736_v26, %v3280_v28  ;;  %v3294_v15 = vpop.permute.xlu2 %3293  ;;  %v10200_v34 = vsel %vm1588_vm8, %v3503_v29, %v13420_v37  ;;  %v3549_v12 = vsel %vm1621_vm9, %v10167_v16, %v13422_v22  ;;  %v13424_v60 = vld [vmem:[#allocation217_spill] sm:$0xff]  ;;  %v13425_v14 = vld [vmem:[#allocation168_spill] sm:$0xff]  ;;  %v13433_v48 = vld [vmem:[#allocation215_spill] sm:$0xff] }
 0x507   : > { %13421 = vst [vmem:[#allocation209_spill] sm:$0xff] %v10200_v34  ;;  %v3585_v8 = vsel %vm12880_vm10, %v3553_v46, %v13423_v11  ;;  %v10208_v21 = vsel %vm3759_vm15, %v3750_v39, %v3294_v15  ;;  %v3465_v30 = vsel %vm385_vm1, %v13183_v4, %v13424_v60  ;;  %v3563_v26 = vsel %vm1621_vm9, %v10200_v34, %v13425_v14  ;;  %v13426_v28 = vld [vmem:[#allocation76_spill] sm:$0xff]  ;;  %v13429_v39 = vld [vmem:[#allocation159_spill] sm:$0xff]  ;;  %v13431_v14 = vld [vmem:[#allocation242_spill] sm:$0xff] }
 0x508   : > { %v3581_v29 = vsel %vm12880_vm10, %v3549_v12, %v13426_v28  ;;  %v13427_v37 = vld [vmem:[#allocation280_spill] sm:$0xff]  ;;  %v3469_v46 = vsel %vm385_vm1, %v8217_v51, %v13428_v3  ;;  %v3595_v15 = vsel %vm12880_vm10, %v3563_v26, %v13429_v39  ;;  %v13432_v3 = vld [vmem:[#allocation246_spill] sm:$0xff]  ;;  %v3495_v26 = vsel %vm559_vm7, %v3465_v30, %v13433_v48  ;;  %v13436_v39 = vld [vmem:[#allocation305_spill] sm:$0xff] }
 0x509   : > { %v3617_v22 = vsel %vm1687_vm11, %v3585_v8, %v13427_v37  ;;  %v3613_v60 = vsel %vm1687_vm11, %v3581_v29, %v13430_v18  ;;  %v3627_v34 = vsel %vm1687_vm11, %v3595_v15, %v13431_v14  ;;  %v13435_v14 = vld [vmem:[#allocation229_spill] sm:$0xff]  ;;  %v13437_v30 = vld [vmem:[#allocation236_spill] sm:$0xff] }
 0x50a   : > { %v3649_v54 = vsel %vm1720_vm12, %v3617_v22, %v9748_v25  ;;  %v3645_v12 = vsel %vm1720_vm12, %v3613_v60, %v9742_v63  ;;  %3388 = vrot.lane.b32.xlu0 %v13432_v3, %s6779_s24  ;;  %v3659_v29 = vsel %vm1720_vm12, %v3627_v34, %v9799_v38  ;;  %v13434_v60 = vld [vmem:[#allocation248_spill] sm:$0xff] }
 0x50b   : > { %v3681_v8 = vsel %vm1753_vm13, %v3649_v54, %v9833_v58  ;;  %v3677_v22 = vsel %vm1753_vm13, %v3645_v12, %v9835_v27  ;;  %3384 = vrot.lane.b32.xlu1 %v13434_v60, %s6779_s24  ;;  %v3499_v54 = vsel %vm559_vm7, %v3469_v46, %v13435_v14  ;;  %v3691_v3 = vsel %vm1753_vm13, %v3659_v29, %v13436_v39  ;;  %v13449_v39 = vld [vmem:[#allocation278_spill] sm:$0xff] }
 0x50c   : > { %v3713_v15 = vsel %vm12879_vm14, %v3681_v8, %v9935_v40  ;;  %v3709_v48 = vsel %vm12879_vm14, %v3677_v22, %v9873_v0  ;;  %3377 = vrot.lane.b32.xlu2 %v13437_v30, %s6778_s23  ;;  %v3290_v12 = vpop.permute.xlu0 %3289  ;;  %v13438_v40 = vld [vmem:[#allocation71_spill] sm:$0xff]  ;;  %v3723_v46 = vsel %vm12879_vm14, %v3691_v3, %v9945_v47  ;;  %v13440_v22 = vld [vmem:[#allocation257_spill] sm:$0xff]  ;;  %s6780_s23 = smov 60   ;;  %v13521_v58 = vld [vmem:[#allocation170_spill] sm:$0xff] }
 0x50d   : > { %v3746_v34 = vsel %vm12878_vm6, %v3713_v15, %v9973_v59  ;;  %v10259_v8 = vsel %vm1588_vm8, %v3499_v54, %v13438_v40  ;;  %v3742_v14 = vsel %vm12878_vm6, %v3709_v48, %v9989_v53  ;;  %v3286_v0 = vpop.permute.xlu1 %3285  ;;  %v10270_v59 = vsel %vm1588_vm8, %v3495_v26, %v13440_v22  ;;  %v13442_v15 = vld [vmem:[#allocation266_spill] sm:$0xff]  ;;  %v13443_v53 = vld [vmem:[#allocation93_spill] sm:$0xff] }
 0x50e   : > { %13439 = vst [vmem:[#allocation147_spill] sm:$0xff] %v10259_v8  ;;  %v10266_v29 = vsel %vm3759_vm15, %v3746_v34, %v3290_v12  ;;  %v3559_v60 = vsel %vm1621_vm9, %v10259_v8, %v13442_v15  ;;  %v3756_v54 = vsel %vm12878_vm6, %v3723_v46, %v10049_v9  ;;  %v10278_v47 = vsel %vm3759_vm15, %v3742_v14, %v3286_v0  ;;  %v3300_v3 = vpop.permute.xlu2 %3299  ;;  %v13444_v34 = vld [vmem:[#allocation101_spill] sm:$0xff]  ;;  %v13446_v15 = vld [vmem:[#allocation282_spill] sm:$0xff]  ;;  %v13447_v46 = vld [vmem:[#allocation131_spill] sm:$0xff] }
 0x50f   : > { %13441 = vst [vmem:[#allocation112_spill] sm:$0xff] %v10270_v59  ;;  %v3555_v48 = vsel %vm1621_vm9, %v10270_v59, %v13443_v53  ;;  %v3591_v12 = vsel %vm12880_vm10, %v3559_v60, %v13444_v34  ;;  %v10286_v26 = vsel %vm3759_vm15, %v3756_v54, %v3300_v3  ;;  %v13445_v40 = vld [vmem:[#allocation125_spill] sm:$0xff]  ;;  %v13450_v53 = vld [vmem:[#allocation291_spill] sm:$0xff]  ;;  %v13452_v34 = vld [vmem:[#allocation176_spill] sm:$0xff] }
 0x510   : > { %v3587_v22 = vsel %vm12880_vm10, %v3555_v48, %v13445_v40  ;;  %v3623_v9 = vsel %vm1687_vm11, %v3591_v12, %v13446_v15  ;;  %v13448_v14 = vld [vmem:[#allocation197_spill] sm:$0xff]  ;;  %v13453_v3 = vld [vmem:[#allocation292_spill] sm:$0xff]  ;;  %v13454_v40 = vld [vmem:[#allocation306_spill] sm:$0xff] }
 0x511   : > { %v3475_v0 = vsel %vm385_vm1, %v13448_v14, %v13447_v46  ;;  %v3619_v38 = vsel %vm1687_vm11, %v3587_v22, %v13449_v39  ;;  %v3655_v8 = vsel %vm1720_vm12, %v3623_v9, %v13450_v53  ;;  %v13451_v60 = vld [vmem:[#allocation241_spill] sm:$0xff]  ;;  %v13456_v46 = vld [vmem:[#allocation307_spill] sm:$0xff]  ;;  %v13458_v53 = vld [vmem:[#allocation244_spill] sm:$0xff] }
 0x512   : > { %v3471_v54 = vsel %vm385_vm1, %v13452_v34, %v13451_v60  ;;  %v3651_v48 = vsel %vm1720_vm12, %v3619_v38, %v13453_v3  ;;  %v3687_v12 = vsel %vm1753_vm13, %v3655_v8, %v13454_v40  ;;  %v13455_v15 = vld [vmem:[#allocation121_spill] sm:$0xff]  ;;  %v3505_v60 = vsel %vm559_vm7, %v3475_v0, %v13458_v53 }
 0x513   : > { %3394 = vrot.lane.b32.xlu0 %v13455_v15, %s6779_s24  ;;  %v3683_v59 = vsel %vm1753_vm13, %v3651_v48, %v13456_v46  ;;  %v3719_v22 = vsel %vm12879_vm14, %v3687_v12, %v9947_v32  ;;  %v13457_v9 = vld [vmem:[#allocation249_spill] sm:$0xff]  ;;  %v13459_v15 = vld [vmem:[#allocation68_spill] sm:$0xff] }
 0x514   : > { %3390 = vrot.lane.b32.xlu1 %v13457_v9, %s6779_s24  ;;  %v3715_v38 = vsel %vm12879_vm14, %v3683_v59, %v9890_v42  ;;  %v3752_v8 = vsel %vm12878_vm6, %v3719_v22, %v9991_v23  ;;  %3386 = vrot.lane.b32.xlu2 %v13459_v15, %s6779_s24  ;;  %v3296_v40 = vpop.permute.xlu0 %3295  ;;  %v13460_v48 = vld [vmem:[#allocation117_spill] sm:$0xff]  ;;  %v13461_v32 = vld [vmem:[#allocation260_spill] sm:$0xff]  ;;  %v13465_v22 = vld [vmem:[#allocation115_spill] sm:$0xff] }
 0x515   : > { %v3501_v46 = vsel %vm559_vm7, %v3471_v54, %v13460_v48  ;;  %v10326_v12 = vsel %vm1588_vm8, %v3505_v60, %v13461_v32  ;;  %v3748_v0 = vsel %vm12878_vm6, %v3715_v38, %v9999_v5  ;;  %v10331_v53 = vsel %vm3759_vm15, %v3752_v8, %v3296_v40  ;;  %v3292_v42 = vpop.permute.xlu1 %3291  ;;  %v13463_v59 = vld [vmem:[#allocation64_spill] sm:$0xff]  ;;  %v13466_v60 = vld [vmem:[#allocation181_spill] sm:$0xff]  ;;  %v13467_v38 = vld [vmem:[#allocation82_spill] sm:$0xff] }
 0x516   : > { %13462 = vst [vmem:[#allocation198_spill] sm:$0xff] %v10326_v12  ;;  %v10335_v23 = vsel %vm1588_vm8, %v3501_v46, %v13463_v59  ;;  %v3565_v9 = vsel %vm1621_vm9, %v10326_v12, %v13465_v22  ;;  %v3781_v54 = vsel %vm3759_vm15, %v3748_v0, %v3292_v42  ;;  %v10341_v15 = vpop.permute.xlu2 %3308  ;;  %v13468_v8 = vld [vmem:[#allocation142_spill] sm:$0xff]  ;;  %v13469_v46 = vld [vmem:[#allocation284_spill] sm:$0xff]  ;;  %v13470_v59 = vld [vmem:[#allocation141_spill] sm:$0xff] }
 0x517   : > { %13464 = vst [vmem:[#allocation63_spill] sm:$0xff] %v10335_v23  ;;  %v3561_v5 = vsel %vm1621_vm9, %v10335_v23, %v13466_v60  ;;  %v3597_v40 = vsel %vm12880_vm10, %v3565_v9, %v13467_v38  ;;  %v13471_v12 = vld [vmem:[#allocation294_spill] sm:$0xff]  ;;  %v13472_v42 = vld [vmem:[#allocation295_spill] sm:$0xff]  ;;  %v13473_v39 = vld [vmem:[#allocation309_spill] sm:$0xff] }
 0x518   : > { %v3593_v48 = vsel %vm12880_vm10, %v3561_v5, %v13468_v8  ;;  %v3629_v32 = vsel %vm1687_vm11, %v3597_v40, %v13469_v46  ;;  %v13474_v9 = vld [vmem:[#allocation251_spill] sm:$0xff]  ;;  %v13475_v38 = vld [vmem:[#allocation310_spill] sm:$0xff]  ;;  %v13503_v46 = vld [vmem:[#allocation188_spill] sm:$0xff] }
 0x519   : > { %v3625_v22 = vsel %vm1687_vm11, %v3593_v48, %v13470_v59  ;;  %v3661_v0 = vsel %vm1720_vm12, %v3629_v32, %v13471_v12  ;;  %v13476_v48 = vld [vmem:[#allocation124_spill] sm:$0xff] }
 0x51a   : > { %v3657_v3 = vsel %vm1720_vm12, %v3625_v22, %v13472_v42  ;;  %v3693_v60 = vsel %vm1753_vm13, %v3661_v0, %v13473_v39  ;;  %v13477_v0 = vld [vmem:[#allocation245_spill] sm:$0xff] }
 0x51b   : > { %3400 = vrot.lane.b32.xlu0 %v13474_v9, %s6779_s24  ;;  %v3689_v5 = vsel %vm1753_vm13, %v3657_v3, %v13475_v38  ;;  %v3725_v40 = vsel %vm12879_vm14, %v3693_v60, %v9959_v45  ;;  %v13504_v38 = vld [vmem:[#allocation165_spill] sm:$0xff] }
 0x51c   : > { %3396 = vrot.lane.b32.xlu1 %v13476_v48, %s6779_s24  ;;  %v3721_v32 = vsel %vm12879_vm14, %v3689_v5, %v9907_v2  ;;  %v3758_v22 = vsel %vm12878_vm6, %v3725_v40, %v10001_v1  ;;  %3392 = vrot.lane.b32.xlu2 %v13477_v0, %s6779_s24  ;;  %v3302_v39 = vpop.permute.xlu0 %3301  ;;  %v13478_v5 = vld [vmem:[#allocation252_spill] sm:$0xff]  ;;  %v13479_v1 = vld [vmem:[#allocation253_spill] sm:$0xff]  ;;  %v13480_v40 = vld [vmem:[#allocation98_spill] sm:$0xff]  ;;  %v3379_v48 = vrot.slane %v13331_v62, 2 }
 0x51d   : > { %v3754_v9 = vsel %vm12878_vm6, %v3721_v32, %v10012_v44  ;;  %v3791_v3 = vsel %vm3759_vm15, %v3758_v22, %v3302_v39  ;;  %v3298_v12 = vpop.permute.xlu1 %3297 }
 0x51e   : > { %v3787_v45 = vsel %vm3759_vm15, %v3754_v9, %v3298_v12  ;;  %v3315_v60 = vpop.permute.xlu2 %3314  ;;  %v3380_v12 = vrot.slane %v13342_v10, 2  ;;  %v13481_v9 = vld [vmem:[#allocation255_spill] sm:$0xff] }
 0x51f   : > { %v3802_v2 = vsel %vm3792_vm3, %v10196_v20, %v3315_v60  ;;  %v13482_v60 = vld [vmem:[#allocation250_spill] sm:$0xff] }
 0x520   : > { %v3381_v0 = vsel %vm12854_vm4, %v3379_v48, %v3380_v12  ;;  %v13485_v48 = vld [vmem:[#allocation75_spill] sm:$0xff]  ;;  %v13486_v12 = vld [vmem:[#allocation289_spill] sm:$0xff]  ;;  %vm12860_vm4 = vcmask 424960  }
 0x523   : > { %3406 = vrot.lane.b32.xlu0 %v13478_v5, %s6779_s24 }
 0x524   : > { %3402 = vrot.lane.b32.xlu1 %v13479_v1, %s6779_s24  ;;  %3398 = vrot.lane.b32.xlu2 %v13480_v40, %s6779_s24  ;;  %v10386_v44 = vpop.permute.xlu0 %3310 }
 0x525   : > { %v3307_v39 = vpop.permute.xlu1 %3306 }
 0x526   : > { %v3794_v32 = vsel %vm3792_vm3, %v10047_v24, %v3307_v39  ;;  %v3321_v20 = vpop.permute.xlu2 %3320 }
 0x527   : > { %v3808_v22 = vsel %vm3792_vm3, %v10278_v47, %v3321_v20  ;;  %v13484_v47 = vld [vmem:[#allocation97_spill] sm:$0xff] }
 0x52b   : > { %3412 = vrot.lane.b32.xlu0 %v3381_v0, %s6779_s24 }
 0x52c   : > { %3408 = vrot.lane.b32.xlu1 %v13481_v9, %s6779_s24  ;;  %3404 = vrot.lane.b32.xlu2 %v13482_v60, %s6779_s24  ;;  %v3317_v5 = vpop.permute.xlu0 %3316 }
 0x52d   : > { %v3804_v1 = vsel %vm3792_vm3, %v10059_v57, %v3317_v5  ;;  %v10402_v40 = vpop.permute.xlu1 %3312 }
 0x52e   : > { %13483 = vst [vmem:[#allocation72_spill] sm:$0xff] %v10402_v40  ;;  %v3327_v24 = vpop.permute.xlu2 %3326  ;;  %v13575_v40 = vld [vmem:[#allocation119_spill] sm:$0xff] }
 0x52f   : > { %v3814_v39 = vsel %vm3792_vm3, %v3781_v54, %v3327_v24 }
 0x533   : > { %3418 = vrot.lane.b32.xlu0 %v13484_v47, %s6780_s23 }
 0x534   : > { %3414 = vrot.lane.b32.xlu1 %v13485_v48, %s6780_s23  ;;  %3410 = vrot.lane.b32.xlu2 %v13486_v12, %s6779_s24  ;;  %v3323_v20 = vpop.permute.xlu0 %3322 }
 0x535   : > { %v3810_v0 = vsel %vm3792_vm3, %v10127_v36, %v3323_v20  ;;  %v3319_v57 = vpop.permute.xlu1 %3318 }
 0x536   : > { %v3806_v9 = vsel %vm3792_vm3, %v10186_v56, %v3319_v57  ;;  %v3333_v60 = vpop.permute.xlu2 %3332  ;;  %v13489_v57 = vld [vmem:[#allocation92_spill] sm:$0xff] }
 0x537   : > { %v3820_v54 = vsel %vm3792_vm3, %v3787_v45, %v3333_v60  ;;  %v13491_v60 = vld [vmem:[#allocation220_spill] sm:$0xff] }
 0x53b   : > { %3424 = vrot.lane.b32.xlu0 %v13185_v31, %s6780_s23 }
 0x53c   : > { %3420 = vrot.lane.b32.xlu1 %v13187_v7, %s6780_s23  ;;  %3416 = vrot.lane.b32.xlu2 %v13165_v55, %s6780_s23  ;;  %v3329_v5 = vpop.permute.xlu0 %3328  ;;  %v13487_v7 = vld [vmem:[#allocation105_spill] sm:$0xff] }
 0x53d   : > { %v3816_v36 = vsel %vm3792_vm3, %v10208_v21, %v3329_v5  ;;  %v3325_v24 = vpop.permute.xlu1 %3324 }
 0x53e   : > { %v3812_v56 = vsel %vm3792_vm3, %v10266_v29, %v3325_v24  ;;  %v3348_v47 = vpop.permute.xlu2 %3347 }
 0x53f   : > { %v3827_v45 = vsel %vm12860_vm4, %v3794_v32, %v3348_v47 }
 0x543   : > { %3430 = vrot.lane.b32.xlu0 %v8036_v61, %s6780_s23 }
 0x544   : > { %3426 = vrot.lane.b32.xlu1 %v13193_v19, %s6780_s23  ;;  %3422 = vrot.lane.b32.xlu2 %v13487_v7, %s6780_s23  ;;  %v3335_v55 = vpop.permute.xlu0 %3334  ;;  %v13493_v7 = vld [vmem:[#allocation111_spill] sm:$0xff] }
 0x545   : > { %v3822_v31 = vsel %vm3792_vm3, %v10286_v26, %v3335_v55  ;;  %v3331_v21 = vpop.permute.xlu1 %3330  ;;  %v13494_v55 = vld [vmem:[#allocation73_spill] sm:$0xff] }
 0x546   : > { %v3818_v29 = vsel %vm3792_vm3, %v10331_v53, %v3331_v21  ;;  %v10437_v12 = vpop.permute.xlu2 %3353  ;;  %v13495_v21 = vshrl.u32 %v13494_v55, 16 }
 0x547   : > { %13488 = vst [vmem:[#allocation157_spill] sm:$0xff] %v10437_v12 }
 0x54b   : > { %3436 = vrot.lane.b32.xlu0 %v8438_v50, %s6780_s23 }
 0x54c   : > { %3432 = vrot.lane.b32.xlu1 %v8217_v51, %s6780_s23  ;;  %3428 = vrot.lane.b32.xlu2 %v13183_v4, %s6780_s23  ;;  %v10445_v61 = vpop.permute.xlu0 %3349 }
 0x54d   : > { %v3337_v19 = vpop.permute.xlu1 %3336 }
 0x54e   : > { %v3824_v26 = vsel %vm3792_vm3, %v3791_v3, %v3337_v19  ;;  %v3360_v32 = vpop.permute.xlu2 %3359 }
 0x54f   : > { %v3839_v20 = vsel %vm12860_vm4, %v3806_v9, %v3360_v32  ;;  %v13490_v9 = vld [vmem:[#allocation32_spill] sm:$0xff] }
 0x553   : > { %3442 = vrot.lane.b32.xlu0 %v13331_v62, %s6780_s23 }
 0x554   : > { %3438 = vrot.lane.b32.xlu1 %v13448_v14, %s6780_s23  ;;  %3434 = vrot.lane.b32.xlu2 %v13452_v34, %s6780_s23  ;;  %v3356_v51 = vpop.permute.xlu0 %3355 }
 0x555   : > { %v3835_v50 = vsel %vm12860_vm4, %v3802_v2, %v3356_v51  ;;  %v10456_v4 = vpop.permute.xlu1 %3351 }
 0x556   : > { %v3366_v53 = vpop.permute.xlu2 %3365 }
 0x557   : > { %v3845_v3 = vsel %vm12860_vm4, %v3812_v56, %v3366_v53  ;;  %v13492_v56 = vld [vmem:[#allocation110_spill] sm:$0xff] }
 0x55b   : > { %3926 = vrot.lane.b32.xlu0 %v13489_v57, %s6765_s29 }
 0x55c   : > { %3444 = vrot.lane.b32.xlu1 %v13490_v9, %s6780_s23  ;;  %3440 = vrot.lane.b32.xlu2 %v13491_v60, %s6780_s23  ;;  %v3362_v14 = vpop.permute.xlu0 %3361  ;;  %v13497_v9 = vld [vmem:[#allocation103_spill] sm:$0xff]  ;;  %s13714_s23 = smov 28  }
 0x55d   : > { %v3841_v34 = vsel %vm12860_vm4, %v3808_v22, %v3362_v14  ;;  %v3358_v5 = vpop.permute.xlu1 %3357  ;;  %v13498_v14 = vld [vmem:[#allocation239_spill] sm:$0xff] }
 0x55e   : > { %v3837_v2 = vsel %vm12860_vm4, %v3804_v1, %v3358_v5  ;;  %v3372_v24 = vpop.permute.xlu2 %3371 }
 0x55f   : > { %v3851_v47 = vsel %vm12860_vm4, %v3818_v29, %v3372_v24  ;;  %v13496_v29 = vld [vmem:[#allocation140_spill] sm:$0xff] }
 0x563   : > { %3932 = vrot.lane.b32.xlu0 %v13492_v56, %s6765_s29 }
 0x564   : > { %3928 = vrot.lane.b32.xlu1 %v13493_v7, %s6765_s29  ;;  %3924 = vrot.lane.b32.xlu2 %v13495_v21, %s6765_s29  ;;  %v3368_v19 = vpop.permute.xlu0 %3367 }
 0x565   : > { %v3847_v32 = vsel %vm12860_vm4, %v3814_v39, %v3368_v19  ;;  %v3364_v22 = vpop.permute.xlu1 %3363 }
 0x566   : > { %v3843_v51 = vsel %vm12860_vm4, %v3810_v0, %v3364_v22  ;;  %v3378_v1 = vpop.permute.xlu2 %3377  ;;  %v13499_v0 = vld [vmem:[#allocation182_spill] sm:$0xff]  ;;  %v13501_v22 = vld [vmem:[#allocation129_spill] sm:$0xff] }
 0x567   : > { %v3857_v53 = vsel %vm12860_vm4, %v3824_v26, %v3378_v1  ;;  %v13500_v26 = vld [vmem:[#allocation151_spill] sm:$0xff] }
 0x56b   : > { %3938 = vrot.lane.b32.xlu0 %v13496_v29, %s6765_s29 }
 0x56c   : > { %3934 = vrot.lane.b32.xlu1 %v13497_v9, %s6765_s29  ;;  %3930 = vrot.lane.b32.xlu2 %v13498_v14, %s6765_s29  ;;  %v3374_v5 = vpop.permute.xlu0 %3373 }
 0x56d   : > { %v3853_v24 = vsel %vm12860_vm4, %v3820_v54, %v3374_v5  ;;  %v3370_v21 = vpop.permute.xlu1 %3369 }
 0x56e   : > { %v3849_v39 = vsel %vm12860_vm4, %v3816_v36, %v3370_v21  ;;  %v10486_v19 = vpop.permute.xlu2 %3386  ;;  %v13502_v21 = vld [vmem:[#allocation195_spill] sm:$0xff] }
 0x573   : > { %3944 = vrot.lane.b32.xlu0 %v13499_v0, %s6765_s29  ;;  %v13520_v0 = vld [vmem:[#allocation192_spill] sm:$0xff] }
 0x574   : > { %3940 = vrot.lane.b32.xlu1 %v13500_v26, %s6765_s29  ;;  %3936 = vrot.lane.b32.xlu2 %v13501_v22, %s6765_s29  ;;  %v3383_v1 = vpop.permute.xlu0 %3382 }
 0x575   : > { %v3860_v60 = vsel %vm3858_vm2, %v3827_v45, %v3383_v1  ;;  %v3376_v57 = vpop.permute.xlu1 %3375 }
 0x576   : > { %v3855_v54 = vsel %vm12860_vm4, %v3822_v31, %v3376_v57  ;;  %v3393_v5 = vpop.permute.xlu2 %3392  ;;  %v13506_v31 = vld [vmem:[#allocation233_spill] sm:$0xff]  ;;  %vm3891_vm4 = vcmask 490496  }
 0x577   : > { %v3870_v36 = vsel %vm3858_vm2, %v3837_v2, %v3393_v5  ;;  %v13507_v57 = vld [vmem:[#allocation225_spill] sm:$0xff] }
 0x578   : > { %v13508_v2 = vld [vmem:[#allocation201_spill] sm:$0xff] }
 0x57b   : > { %3950 = vrot.lane.b32.xlu0 %v13502_v21, %s6765_s29 }
 0x57c   : > { %3946 = vrot.lane.b32.xlu1 %v13503_v46, %s6765_s29  ;;  %3942 = vrot.lane.b32.xlu2 %v13504_v38, %s6765_s29  ;;  %v10503_v42 = vpop.permute.xlu0 %3388 }
 0x57d   : > { %13505 = vst [vmem:[#allocation177_spill] sm:$0xff] %v10503_v42  ;;  %v10505_v59 = vpop.permute.xlu1 %3384 }
 0x57e   : > { %v3399_v45 = vpop.permute.xlu2 %3398 }
 0x57f   : > { %v3876_v1 = vsel %vm3858_vm2, %v3843_v51, %v3399_v45  ;;  %v13509_v51 = vld [vmem:[#allocation81_spill] sm:$0xff]  ;;  %v13510_v45 = vld [vmem:[#allocation44_spill] sm:$0xff] }
 0x583   : > { %3956 = vrot.lane.b32.xlu0 %v13506_v31, %s6765_s29  ;;  %v13511_v31 = vld [vmem:[#allocation311_spill] sm:$0xff] }
 0x584   : > { %3952 = vrot.lane.b32.xlu1 %v13507_v57, %s6765_s29  ;;  %3948 = vrot.lane.b32.xlu2 %v13508_v2, %s6765_s29 }
 0x585   : > { %v3395_v5 = vpop.permute.xlu0 %3394 }
 0x586   : > { %v3872_v21 = vsel %vm3858_vm2, %v3839_v20, %v3395_v5  ;;  %v3391_v8 = vpop.permute.xlu1 %3390  ;;  %v3405_v10 = vpop.permute.xlu2 %3404 }
 0x587   : > { %v3868_v23 = vsel %vm3858_vm2, %v3835_v50, %v3391_v8  ;;  %v3882_v62 = vsel %vm3858_vm2, %v3849_v39, %v3405_v10  ;;  %v13512_v10 = vld [vmem:[#allocation137_spill] sm:$0xff]  ;;  %v13513_v50 = vld [vmem:[#allocation99_spill] sm:$0xff]  ;;  %v13514_v39 = vrot.slane %v13494_v55, 1 }
 0x58b   : > { %3962 = vrot.lane.b32.xlu0 %v13509_v51, %s13016_s14 }
 0x58c   : > { %3958 = vrot.lane.b32.xlu1 %v13510_v45, %s6765_s29  ;;  %3954 = vrot.lane.b32.xlu2 %v13511_v31, %s6765_s29  ;;  %s12868_s29 = smov 64  }
 0x58d   : > { %v3401_v57 = vpop.permute.xlu0 %3400 }
 0x58e   : > { %v3878_v2 = vsel %vm3858_vm2, %v3845_v3, %v3401_v57  ;;  %v3397_v46 = vpop.permute.xlu1 %3396  ;;  %v3411_v5 = vpop.permute.xlu2 %3410 }
 0x58f   : > { %v3874_v20 = vsel %vm3858_vm2, %v3841_v34, %v3397_v46  ;;  %v3888_v8 = vsel %vm3858_vm2, %v3855_v54, %v3411_v5  ;;  %v13515_v34 = vld [vmem:[#allocation174_spill] sm:$0xff]  ;;  %v13517_v5 = vld [vmem:[#allocation123_spill] sm:$0xff] }
 0x590   : > { %v13516_v54 = vld [vmem:[#allocation158_spill] sm:$0xff] }
 0x593   : > { %3968 = vrot.lane.b32.xlu0 %v13512_v10, %s13016_s14 }
 0x594   : > { %3964 = vrot.lane.b32.xlu1 %v13513_v50, %s13016_s14  ;;  %3960 = vrot.lane.b32.xlu2 %v13514_v39, %s13016_s14 }
 0x595   : > { %v3407_v51 = vpop.permute.xlu0 %3406 }
 0x596   : > { %v3884_v45 = vsel %vm3858_vm2, %v3851_v47, %v3407_v51  ;;  %v3403_v3 = vpop.permute.xlu1 %3402  ;;  %v10535_v46 = vpop.permute.xlu2 %3416 }
 0x597   : > { %v3880_v57 = vsel %vm3858_vm2, %v3847_v32, %v3403_v3  ;;  %v13519_v3 = vld [vmem:[#allocation207_spill] sm:$0xff] }
 0x59b   : > { %3974 = vrot.lane.b32.xlu0 %v13515_v34, %s13016_s14 }
 0x59c   : > { %3970 = vrot.lane.b32.xlu1 %v13516_v54, %s13016_s14  ;;  %3966 = vrot.lane.b32.xlu2 %v13517_v5, %s13016_s14 }
 0x59d   : > { %v3413_v31 = vpop.permute.xlu0 %3412 }
 0x59e   : > { %v3890_v39 = vsel %vm3858_vm2, %v3857_v53, %v3413_v31  ;;  %v3409_v55 = vpop.permute.xlu1 %3408  ;;  %v3423_v51 = vpop.permute.xlu2 %3422 }
 0x59f   : > { %v3886_v47 = vsel %vm3858_vm2, %v3853_v24, %v3409_v55  ;;  %v10546_v32 = vsel %vm3891_vm4, %v3868_v23, %v3423_v51  ;;  %v13525_v23 = vld [vmem:[#allocation276_spill] sm:$0xff] }
 0x5a0   : > { %13518 = vst [vmem:[#allocation206_spill] sm:$0xff] %v10546_v32  ;;  %v13526_v51 = vld [vmem:[#allocation212_spill] sm:$0xff]  ;;  %v13527_v32 = vld [vmem:[#allocation199_spill] sm:$0xff] }
 0x5a3   : > { %3980 = vrot.lane.b32.xlu0 %v13519_v3, %s13016_s14 }
 0x5a4   : > { %3976 = vrot.lane.b32.xlu1 %v13520_v0, %s13016_s14  ;;  %3972 = vrot.lane.b32.xlu2 %v13521_v58, %s13016_s14 }
 0x5a5   : > { %v10554_v42 = vpop.permute.xlu0 %3418 }
 0x5a6   : > { %13522 = vst [vmem:[#allocation235_spill] sm:$0xff] %v10554_v42  ;;  %v3415_v53 = vpop.permute.xlu1 %3414  ;;  %v3429_v55 = vpop.permute.xlu2 %3428 }
 0x5a7   : > { %v10557_v31 = vsel %vm3891_vm4, %v3860_v60, %v3415_v53  ;;  %v10560_v24 = vsel %vm3891_vm4, %v3874_v20, %v3429_v55  ;;  %v13531_v20 = vld [vmem:[#allocation214_spill] sm:$0xff]  ;;  %v13532_v55 = vld [vmem:[#allocation275_spill] sm:$0xff] }
 0x5a8   : > { %13523 = vst [vmem:[#allocation184_spill] sm:$0xff] %v10557_v31 }
 0x5a9   : > { %13524 = vst [vmem:[#allocation152_spill] sm:$0xff] %v10560_v24 }
 0x5ab   : > { %3986 = vrot.lane.b32.xlu0 %v13525_v23, %s13016_s14  ;;  %v13533_v23 = vld [vmem:[#allocation218_spill] sm:$0xff] }
 0x5ac   : > { %3982 = vrot.lane.b32.xlu1 %v13526_v51, %s13016_s14  ;;  %3978 = vrot.lane.b32.xlu2 %v13527_v32, %s13016_s14  ;;  %v13561_v51 = vld [vmem:[#allocation234_spill] sm:$0xff] }
 0x5ad   : > { %v3425_v3 = vpop.permute.xlu0 %3424 }
 0x5ae   : > { %v10569_v25 = vsel %vm3891_vm4, %v3870_v36, %v3425_v3  ;;  %v10571_v12 = vpop.permute.xlu1 %3420  ;;  %v3435_v60 = vpop.permute.xlu2 %3434 }
 0x5af   : > { %13528 = vst [vmem:[#allocation169_spill] sm:$0xff] %v10569_v25  ;;  %v10574_v53 = vsel %vm3891_vm4, %v3880_v57, %v3435_v60  ;;  %v13537_v60 = vld [vmem:[#allocation94_spill] sm:$0xff] }
 0x5b0   : > { %13529 = vst [vmem:[#allocation154_spill] sm:$0xff] %v10571_v12 }
 0x5b1   : > { %13530 = vst [vmem:[#allocation160_spill] sm:$0xff] %v10574_v53  ;;  %v13538_v53 = vld [vmem:[#allocation38_spill] sm:$0xff] }
 0x5b3   : > { %3992 = vrot.lane.b32.xlu0 %v13531_v20, %s13016_s14  ;;  %v13539_v20 = vld [vmem:[#allocation202_spill] sm:$0xff] }
 0x5b4   : > { %3988 = vrot.lane.b32.xlu1 %v13532_v55, %s13016_s14  ;;  %3984 = vrot.lane.b32.xlu2 %v13533_v23, %s13016_s14 }
 0x5b5   : > { %v3431_v31 = vpop.permute.xlu0 %3430 }
 0x5b6   : > { %v10583_v24 = vsel %vm3891_vm4, %v3876_v1, %v3431_v31  ;;  %v3427_v36 = vpop.permute.xlu1 %3426  ;;  %v3441_v25 = vpop.permute.xlu2 %3440 }
 0x5b7   : > { %13534 = vst [vmem:[#allocation194_spill] sm:$0xff] %v10583_v24  ;;  %v10586_v3 = vsel %vm3891_vm4, %v3872_v21, %v3427_v36  ;;  %v10589_v57 = vsel %vm3891_vm4, %v3886_v47, %v3441_v25  ;;  %v13543_v25 = vld [vmem:[#allocation113_spill] sm:$0xff]  ;;  %v13544_v47 = vld [vmem:[#allocation114_spill] sm:$0xff] }
 0x5b8   : > { %13535 = vst [vmem:[#allocation256_spill] sm:$0xff] %v10586_v3 }
 0x5b9   : > { %13536 = vst [vmem:[#allocation210_spill] sm:$0xff] %v10589_v57  ;;  %v13545_v57 = vld [vmem:[#allocation84_spill] sm:$0xff] }
 0x5bb   : > { %3998 = vrot.lane.b32.xlu0 %v13537_v60, %s6768_s17 }
 0x5bc   : > { %3994 = vrot.lane.b32.xlu1 %v13538_v53, %s13016_s14  ;;  %3990 = vrot.lane.b32.xlu2 %v13539_v20, %s13016_s14 }
 0x5bd   : > { %v3437_v55 = vpop.permute.xlu0 %3436 }
 0x5be   : > { %v10598_v1 = vsel %vm3891_vm4, %v3882_v62, %v3437_v55  ;;  %v3433_v31 = vpop.permute.xlu1 %3432  ;;  %v10603_v36 = vpop.permute.xlu2 %3924 }
 0x5bf   : > { %13540 = vst [vmem:[#allocation222_spill] sm:$0xff] %v10598_v1  ;;  %v10601_v21 = vsel %vm3891_vm4, %v3878_v2, %v3433_v31  ;;  %v13548_v31 = vld [vmem:[#allocation143_spill] sm:$0xff]  ;;  %v13550_v1 = vld [vmem:[#allocation240_spill] sm:$0xff] }
 0x5c0   : > { %13541 = vst [vmem:[#allocation265_spill] sm:$0xff] %v10601_v21 }
 0x5c1   : > { %13542 = vst [vmem:[#allocation259_spill] sm:$0xff] %v10603_v36  ;;  %v13549_v36 = vld [vmem:[#allocation106_spill] sm:$0xff] }
 0x5c3   : > { %4004 = vrot.lane.b32.xlu0 %v13543_v25, %s6768_s17 }
 0x5c4   : > { %4000 = vrot.lane.b32.xlu1 %v13544_v47, %s6768_s17  ;;  %3996 = vrot.lane.b32.xlu2 %v13545_v57, %s6768_s17 }
 0x5c5   : > { %v3443_v24 = vpop.permute.xlu0 %3442 }
 0x5c6   : > { %v10612_v60 = vsel %vm3891_vm4, %v3888_v8, %v3443_v24  ;;  %v3439_v62 = vpop.permute.xlu1 %3438  ;;  %v10617_v2 = vpop.permute.xlu2 %3930 }
 0x5c7   : > { %13546 = vst [vmem:[#allocation263_spill] sm:$0xff] %v10612_v60  ;;  %v10615_v55 = vsel %vm3891_vm4, %v3884_v45, %v3439_v62  ;;  %v13553_v45 = vld [vmem:[#allocation183_spill] sm:$0xff]  ;;  %v13554_v62 = vld [vmem:[#allocation153_spill] sm:$0xff]  ;;  %v13555_v60 = vld [vmem:[#allocation134_spill] sm:$0xff] }
 0x5c8   : > { %13547 = vst [vmem:[#allocation155_spill] sm:$0xff] %v10615_v55 }
 0x5cb   : > { %4010 = vrot.lane.b32.xlu0 %v13548_v31, %s6768_s17 }
 0x5cc   : > { %4006 = vrot.lane.b32.xlu1 %v13549_v36, %s6768_s17  ;;  %4002 = vrot.lane.b32.xlu2 %v13550_v1, %s6768_s17 }
 0x5cd   : > { %v10625_v57 = vpop.permute.xlu0 %3926 }
 0x5ce   : > { %v3445_v21 = vpop.permute.xlu1 %3444  ;;  %v10630_v24 = vpop.permute.xlu2 %3936 }
 0x5cf   : > { %v10628_v8 = vsel %vm3891_vm4, %v3890_v39, %v3445_v21  ;;  %13552 = vst [vmem:[#allocation88_spill] sm:$0xff] %v10630_v24  ;;  %v13557_v39 = vld [vmem:[#allocation190_spill] sm:$0xff] }
 0x5d0   : > { %13551 = vst [vmem:[#allocation216_spill] sm:$0xff] %v10628_v8  ;;  %v13558_v21 = vld [vmem:[#allocation166_spill] sm:$0xff] }
 0x5d3   : > { %4016 = vrot.lane.b32.xlu0 %v13553_v45, %s6768_s17 }
 0x5d4   : > { %4012 = vrot.lane.b32.xlu1 %v13554_v62, %s6768_s17  ;;  %4008 = vrot.lane.b32.xlu2 %v13555_v60, %s6768_s17  ;;  %v13629_v62 = vld [vmem:[#allocation163_spill] sm:$0xff] }
 0x5d5   : > { %v10638_v55 = vpop.permute.xlu0 %3932  ;;  %v12867_v11 = vrot.slane %v13629_v62, 7 }
 0x5d6   : > { %v10640_v53 = vpop.permute.xlu1 %3928  ;;  %v10642_v20 = vpop.permute.xlu2 %3942 }
 0x5d7   : > { %13556 = vst [vmem:[#allocation189_spill] sm:$0xff] %v10642_v20  ;;  %v13562_v20 = vld [vmem:[#allocation227_spill] sm:$0xff] }
 0x5db   : > { %4022 = vrot.lane.b32.xlu0 %v13413_v13, %s6768_s17  ;;  %v13563_v13 = vld [vmem:[#allocation203_spill] sm:$0xff] }
 0x5dc   : > { %4018 = vrot.lane.b32.xlu1 %v13557_v39, %s6768_s17  ;;  %4014 = vrot.lane.b32.xlu2 %v13558_v21, %s6768_s17 }
 0x5dd   : > { %v10650_v8 = vpop.permute.xlu0 %3938 }
 0x5de   : > { %13559 = vst [vmem:[#allocation274_spill] sm:$0xff] %v10650_v8  ;;  %v10652_v23 = vpop.permute.xlu1 %3934  ;;  %v10654_v3 = vpop.permute.xlu2 %3948  ;;  %v13567_v8 = vld [vmem:[#allocation91_spill] sm:$0xff] }
 0x5df   : > { %13560 = vst [vmem:[#allocation204_spill] sm:$0xff] %v10654_v3  ;;  %v4032_v21 = vrot.slane %v13567_v8, 7  ;;  %v13568_v3 = vld [vmem:[#allocation45_spill] sm:$0xff] }
 0x5e0   : > { %v13574_v8 = vld [vmem:[#allocation89_spill] sm:$0xff] }
 0x5e1   : > { %v4033_v24 = vor.u32 %v4032_v21, %v13574_v8  ;;  %v13584_v8 = vld [vmem:[#allocation145_spill] sm:$0xff] }
 0x5e3   : > { %4028 = vrot.lane.b32.xlu0 %v13561_v51, %s6768_s17 }
 0x5e4   : > { %4024 = vrot.lane.b32.xlu1 %v13562_v20, %s6768_s17  ;;  %4020 = vrot.lane.b32.xlu2 %v13563_v13, %s6768_s17  ;;  %v13570_v20 = vld [vmem:[#allocation138_spill] sm:$0xff] }
 0x5e5   : > { %v10662_v45 = vpop.permute.xlu0 %3944  ;;  %v4036_v13 = vrot.slane %v13570_v20, 7 }
 0x5e6   : > { %13564 = vst [vmem:[#allocation247_spill] sm:$0xff] %v10662_v45  ;;  %v10664_v39 = vpop.permute.xlu1 %3940  ;;  %v10666_v32 = vpop.permute.xlu2 %3954 }
 0x5e7   : > { %13565 = vst [vmem:[#allocation230_spill] sm:$0xff] %v10664_v39  ;;  %v13573_v39 = vld [vmem:[#allocation130_spill] sm:$0xff] }
 0x5e8   : > { %13566 = vst [vmem:[#allocation254_spill] sm:$0xff] %v10666_v32  ;;  %v4037_v32 = vor.u32 %v4036_v13, %v13573_v39 }
 0x5eb   : > { %4064 = vrot.lane.b32.xlu0 %v4032_v21, %s12872_s22 }
 0x5ec   : > { %4030 = vrot.lane.b32.xlu1 %v13568_v3, %s6768_s17  ;;  %4026 = vrot.lane.b32.xlu2 %v13437_v30, %s6768_s17  ;;  %v13597_v30 = vld [vmem:[#allocation107_spill] sm:$0xff] }
 0x5ed   : > { %v10674_v51 = vpop.permute.xlu0 %3950 }
 0x5ee   : > { %13569 = vst [vmem:[#allocation191_spill] sm:$0xff] %v10674_v51  ;;  %v10677_v12 = vpop.permute.xlu1 %3946  ;;  %v10679_v45 = vpop.permute.xlu2 %3960 }
 0x5ef   : > { %13571 = vst [vmem:[#allocation258_spill] sm:$0xff] %v10677_v12  ;;  %v13578_v12 = vld [vmem:[#allocation108_spill] sm:$0xff] }
 0x5f0   : > { %13572 = vst [vmem:[#allocation80_spill] sm:$0xff] %v10679_v45  ;;  %v13579_v45 = vrot.slane %v13578_v12, 7  ;;  %v13585_v12 = vld [vmem:[#allocation146_spill] sm:$0xff] }
 0x5f3   : > { %4070 = vrot.lane.b32.xlu0 %v4037_v32, %s12872_s22  ;;  %v13580_v32 = vld [vmem:[#allocation109_spill] sm:$0xff] }
 0x5f4   : > { %4066 = vrot.lane.b32.xlu1 %v13575_v40, %s12872_s22  ;;  %4062 = vrot.lane.b32.xlu2 %v4033_v24, %s12872_s22  ;;  %v13581_v39 = vrot.slane %v13580_v32, 7 }
 0x5f5   : > { %v10687_v3 = vpop.permute.xlu0 %3956 }
 0x5f6   : > { %13576 = vst [vmem:[#allocation144_spill] sm:$0xff] %v10687_v3  ;;  %v10689_v51 = vpop.permute.xlu1 %3952  ;;  %v10691_v20 = vpop.permute.xlu2 %3966 }
 0x5f7   : > { %13577 = vst [vmem:[#allocation261_spill] sm:$0xff] %v10689_v51  ;;  %v13593_v51 = vld [vmem:[#allocation120_spill] sm:$0xff] }
 0x5fb   : > { %4076 = vrot.lane.b32.xlu0 %v13579_v45, %s12872_s22 }
 0x5fc   : > { %4072 = vrot.lane.b32.xlu1 %v4036_v13, %s12872_s22  ;;  %4068 = vrot.lane.b32.xlu2 %v13581_v39, %s12872_s22  ;;  %v13587_v39 = vld [vmem:[#allocation100_spill] sm:$0xff] }
 0x5fd   : > { %v10700_v21 = vpop.permute.xlu0 %3962 }
 0x5fe   : > { %v10702_v40 = vpop.permute.xlu1 %3958  ;;  %v10704_v24 = vpop.permute.xlu2 %3972 }
 0x5ff   : > { %13582 = vst [vmem:[#allocation83_spill] sm:$0xff] %v10702_v40  ;;  %v13588_v40 = vrot.slane %v13587_v39, 7 }
 0x600   : > { %13583 = vst [vmem:[#allocation217_spill] sm:$0xff] %v10704_v24 }
 0x603   : > { %4156 = vrot.lane.b32.xlu0 %v13493_v7, %s12870_s28  ;;  %v13589_v7 = vld [vmem:[#allocation96_spill] sm:$0xff] }
 0x604   : > { %4078 = vrot.lane.b32.xlu1 %v13584_v8, %s12872_s22  ;;  %4074 = vrot.lane.b32.xlu2 %v13585_v12, %s12872_s22 }
 0x605   : > { %v10712_v45 = vpop.permute.xlu0 %3968 }
 0x606   : > { %v10714_v13 = vpop.permute.xlu1 %3964  ;;  %v10716_v32 = vpop.permute.xlu2 %3978 }
 0x607   : > { %13586 = vst [vmem:[#allocation168_spill] sm:$0xff] %v10716_v32 }
 0x60b   : > { %4080 = vrot.lane.b32.xlu0 %v13588_v40, %s12872_s22 }
 0x60c   : > { %4188 = vrot.lane.b32.xlu1 %v13513_v50, %s12874_s16  ;;  %4124 = vrot.lane.b32.xlu2 %v13589_v7, %s13049_s21 }
 0x60d   : > { %v10725_v8 = vpop.permute.xlu0 %3974 }
 0x60e   : > { %13590 = vst [vmem:[#allocation76_spill] sm:$0xff] %v10725_v8  ;;  %v10727_v3 = vpop.permute.xlu1 %3970  ;;  %v10729_v12 = vpop.permute.xlu2 %3984 }
 0x60f   : > { %13591 = vst [vmem:[#allocation238_spill] sm:$0xff] %v10727_v3 }
 0x610   : > { %13592 = vst [vmem:[#allocation277_spill] sm:$0xff] %v10729_v12 }
 0x613   : > { %4190 = vrot.lane.b32.xlu0 %v13517_v5, %s12874_s16 }
 0x614   : > { %4126 = vrot.lane.b32.xlu1 %v13593_v51, %s13049_s21  ;;  %4220 = vrot.lane.b32.xlu2 %v13544_v47, %s13009_s25 }
 0x615   : > { %v10737_v40 = vpop.permute.xlu0 %3980 }
 0x616   : > { %13594 = vst [vmem:[#allocation246_spill] sm:$0xff] %v10737_v40  ;;  %v10739_v50 = vpop.permute.xlu1 %3976  ;;  %v10741_v39 = vpop.permute.xlu2 %3990 }
 0x617   : > { %13595 = vst [vmem:[#allocation215_spill] sm:$0xff] %v10739_v50 }
 0x618   : > { %13596 = vst [vmem:[#allocation248_spill] sm:$0xff] %v10741_v39  ;;  %v13601_v39 = vld [vmem:[#allocation156_spill] sm:$0xff] }
 0x61b   : > { %4128 = vrot.lane.b32.xlu0 %v13597_v30, %s13049_s21 }
 0x61c   : > { %4222 = vrot.lane.b32.xlu1 %v13550_v1, %s13009_s25  ;;  %4158 = vrot.lane.b32.xlu2 %v13498_v14, %s12870_s28 }
 0x61d   : > { %v10749_v5 = vpop.permute.xlu0 %3986 }
 0x61e   : > { %13598 = vst [vmem:[#allocation229_spill] sm:$0xff] %v10749_v5  ;;  %v10751_v12 = vpop.permute.xlu1 %3982  ;;  %v10753_v47 = vpop.permute.xlu2 %3996  ;;  %v13604_v5 = vld [vmem:[#allocation102_spill] sm:$0xff] }
 0x61f   : > { %13599 = vst [vmem:[#allocation71_spill] sm:$0xff] %v10751_v12 }
 0x620   : > { %13600 = vst [vmem:[#allocation257_spill] sm:$0xff] %v10753_v47  ;;  %v13605_v47 = vld [vmem:[#allocation127_spill] sm:$0xff] }
 0x621   : > { %v13606_v12 = vrot.slane %v13605_v47, 7 }
 0x623   : > { %4224 = vrot.lane.b32.xlu0 %v13543_v25, %s13009_s25 }
 0x624   : > { %4160 = vrot.lane.b32.xlu1 %v13492_v56, %s12870_s28  ;;  %4082 = vrot.lane.b32.xlu2 %v13601_v39, %s12872_s22 }
 0x625   : > { %v10761_v40 = vpop.permute.xlu0 %3992 }
 0x626   : > { %13602 = vst [vmem:[#allocation266_spill] sm:$0xff] %v10761_v40  ;;  %v10763_v1 = vpop.permute.xlu1 %3988  ;;  %v10765_v14 = vpop.permute.xlu2 %4002  ;;  %v13609_v40 = vld [vmem:[#allocation135_spill] sm:$0xff] }
 0x627   : > { %13603 = vst [vmem:[#allocation93_spill] sm:$0xff] %v10763_v1  ;;  %v12864_v32 = vrot.slane %v13609_v40, 7  ;;  %v13610_v1 = vld [vmem:[#allocation136_spill] sm:$0xff] }
 0x629   : > { %v4045_v50 = vor.u32 %v12864_v32, %v13610_v1 }
 0x62b   : > { %4130 = vrot.lane.b32.xlu0 %v13604_v5, %s13049_s21 }
 0x62c   : > { %4084 = vrot.lane.b32.xlu1 %v13606_v12, %s12872_s22  ;;  %4192 = vrot.lane.b32.xlu2 %v13512_v10, %s12874_s16 }
 0x62d   : > { %v3999_v56 = vpop.permute.xlu0 %3998 }
 0x62e   : > { %v10774_v25 = vpop.permute.xlu1 %3994  ;;  %v10776_v39 = vpop.permute.xlu2 %4008 }
 0x62f   : > { %13607 = vst [vmem:[#allocation131_spill] sm:$0xff] %v10774_v25 }
 0x630   : > { %13608 = vst [vmem:[#allocation197_spill] sm:$0xff] %v10776_v39  ;;  %v13615_v39 = vld [vmem:[#allocation128_spill] sm:$0xff] }
 0x633   : > { %4194 = vrot.lane.b32.xlu0 %v13516_v54, %s12874_s16 }
 0x634   : > { %4086 = vrot.lane.b32.xlu2 %v4045_v50, %s12872_s22 }
 0x635   : > { %v10785_v12 = vpop.permute.xlu0 %4004 }
 0x636   : > { %v10787_v47 = vpop.permute.xlu1 %4000  ;;  %v10789_v10 = vpop.permute.xlu2 %4014 }
 0x637   : > { %13611 = vst [vmem:[#allocation241_spill] sm:$0xff] %v10789_v10 }
 0x63c   : > { %4162 = vrot.lane.b32.xlu2 %v13497_v9, %s12870_s28 }
 0x63d   : > { %v10793_v25 = vpop.permute.xlu0 %4010 }
 0x63e   : > { %13612 = vst [vmem:[#allocation176_spill] sm:$0xff] %v10793_v25  ;;  %v10795_v8 = vpop.permute.xlu1 %4006  ;;  %v10797_v54 = vpop.permute.xlu2 %4020 }
 0x63f   : > { %13613 = vst [vmem:[#allocation121_spill] sm:$0xff] %v10795_v8  ;;  %v4049_v8 = vor.u32 %v12867_v11, %v13630_v33  ;;  %v13632_v11 = vld [vmem:[#allocation95_spill] sm:$0xff] }
 0x640   : > { %13614 = vst [vmem:[#allocation249_spill] sm:$0xff] %v10797_v54  ;;  %v13622_v54 = vld [vmem:[#allocation133_spill] sm:$0xff] }
 0x644   : > { %4132 = vrot.lane.b32.xlu2 %v13615_v39, %s13049_s21 }
 0x645   : > { %v10801_v1 = vpop.permute.xlu0 %4016 }
 0x646   : > { %13616 = vst [vmem:[#allocation244_spill] sm:$0xff] %v10801_v1  ;;  %v10803_v50 = vpop.permute.xlu1 %4012  ;;  %v10805_v32 = vpop.permute.xlu2 %4026 }
 0x647   : > { %13617 = vst [vmem:[#allocation68_spill] sm:$0xff] %v10803_v50 }
 0x648   : > { %13618 = vst [vmem:[#allocation117_spill] sm:$0xff] %v10805_v32 }
 0x64c   : > { %4196 = vrot.lane.b32.xlu2 %v13521_v58, %s12874_s16 }
 0x64d   : > { %v10809_v10 = vpop.permute.xlu0 %4022 }
 0x64e   : > { %13619 = vst [vmem:[#allocation260_spill] sm:$0xff] %v10809_v10  ;;  %v10811_v9 = vpop.permute.xlu1 %4018  ;;  %v10813_v25 = vpop.permute.xlu2 %4062  ;;  %v13627_v10 = vld [vmem:[#allocation149_spill] sm:$0xff] }
 0x64f   : > { %13620 = vst [vmem:[#allocation64_spill] sm:$0xff] %v10811_v9  ;;  %v12865_v50 = vrot.slane %v13627_v10, 7 }
 0x650   : > { %13621 = vst [vmem:[#allocation115_spill] sm:$0xff] %v10813_v25 }
 0x654   : > { %4134 = vrot.lane.b32.xlu2 %v13622_v54, %s13049_s21 }
 0x655   : > { %v10817_v24 = vpop.permute.xlu0 %4028 }
 0x656   : > { %13623 = vst [vmem:[#allocation181_spill] sm:$0xff] %v10817_v24  ;;  %v10819_v39 = vpop.permute.xlu1 %4024  ;;  %v4069_v1 = vpop.permute.xlu2 %4068  ;;  %v13628_v24 = vld [vmem:[#allocation118_spill] sm:$0xff] }
 0x657   : > { %13624 = vst [vmem:[#allocation251_spill] sm:$0xff] %v10819_v39 }
 0x65c   : > { %4198 = vrot.lane.b32.xlu2 %v13515_v34, %s12874_s16 }
 0x65d   : > { %v10823_v32 = vpop.permute.xlu0 %4064 }
 0x65e   : > { %13625 = vst [vmem:[#allocation124_spill] sm:$0xff] %v10823_v32  ;;  %v10825_v58 = vpop.permute.xlu1 %4030  ;;  %v4075_v9 = vpop.permute.xlu2 %4074 }
 0x65f   : > { %13626 = vst [vmem:[#allocation245_spill] sm:$0xff] %v10825_v58 }
 0x664   : > { %4092 = vrot.lane.b32.xlu2 %v12865_v50, %s12872_s22 }
 0x665   : > { %v4071_v25 = vpop.permute.xlu0 %4070 }
 0x666   : > { %v4067_v54 = vpop.permute.xlu1 %4066  ;;  %v4125_v37 = vpop.permute.xlu2 %4124 }
 0x667   : > { %v4363_v39 = vsel %vm1621_vm9, %v13628_v24, %v4067_v54 }
 0x668   : > { %v4423_v58 = vsel %vm12880_vm10, %v4363_v39, %v13405_v49  ;;  %v13631_v39 = vld [vmem:[#allocation79_spill] sm:$0xff] }
 0x669   : > { %v4471_v50 = vsel %vm1687_vm11, %v4423_v58, %v13409_v6  ;;  %v4253_v42 = vsel %vm385_vm1, %v13631_v39, %v10625_v57 }
 0x66a   : > { %v4519_v24 = vsel %vm1720_vm12, %v4471_v50, %v9730_v43  ;;  %v4289_v58 = vsel %vm559_vm7, %v4253_v42, %v10700_v21  ;;  %v4367_v43 = vsel %vm1621_vm9, %v13632_v11, %v4071_v25 }
 0x66b   : > { %v4567_v49 = vsel %vm1753_vm13, %v4519_v24, %v9823_v52  ;;  %v4325_v33 = vsel %vm1588_vm8, %v4289_v58, %v3999_v56  ;;  %v13633_v52 = vld [vmem:[#allocation269_spill] sm:$0xff]  ;;  %v13634_v58 = vld [vmem:[#allocation46_spill] sm:$0xff] }
 0x66c   : > { %4168 = vrot.lane.b32.xlu2 %v13500_v26, %s12870_s28  ;;  %v4365_v50 = vsel %vm1621_vm9, %v4325_v33, %v4069_v1  ;;  %v4426_v24 = vsel %vm12880_vm10, %v4367_v43, %v13633_v52  ;;  %v4622_v1 = vshrl.u32 %v4567_v49, 16  ;;  %v4255_v43 = vsel %vm385_vm1, %v13589_v7, %v10640_v53  ;;  %v13635_v52 = vld [vmem:[#allocation287_spill] sm:$0xff] }
 0x66d   : > { %v10835_v34 = vpop.permute.xlu0 %4076  ;;  %v4425_v48 = vsel %vm12880_vm10, %v4365_v50, %v4125_v37  ;;  %v4474_v11 = vsel %vm1687_vm11, %v4426_v24, %v13634_v58  ;;  %v13636_v24 = vld [vmem:[#allocation299_spill] sm:$0xff] }
 0x66e   : > { %v4073_v32 = vpop.permute.xlu1 %4072  ;;  %v4221_v6 = vpop.permute.xlu2 %4220 }
 0x674   : > { %4094 = vrot.lane.b32.xlu2 %v4049_v8, %s12872_s22  ;;  %v4624_v8 = vshll.u32 %v4567_v49, 16 }
 0x675   : > { %v4157_v26 = vpop.permute.xlu0 %4156 }
 0x676   : > { %v10848_v54 = vpop.permute.xlu1 %4078  ;;  %v4473_v57 = vsel %vm1687_vm11, %v4425_v48, %v4157_v26  ;;  %v4626_v21 = vrot.slane %v4624_v8, 1  ;;  %v4159_v33 = vpop.permute.xlu2 %4158  ;;  %v4522_v48 = vsel %vm1720_vm12, %v4474_v11, %v13635_v52  ;;  %v4291_v26 = vsel %vm559_vm7, %v4255_v43, %v10714_v13 }
 0x677   : > { %v4327_v8 = vsel %vm1588_vm8, %v4291_v26, %v10787_v47  ;;  %v13638_v47 = vld [vmem:[#allocation70_spill] sm:$0xff] }
 0x678   : > { %v4627_v50 = vor.u32 %v4626_v21, %v4622_v1  ;;  %v4369_v53 = vsel %vm1621_vm9, %v4327_v8, %v4073_v32  ;;  %v13637_v21 = vld [vmem:[#allocation162_spill] sm:$0xff] }
 0x679   : > { %v4371_v13 = vsel %vm1621_vm9, %v13637_v21, %v4075_v9 }
 0x67a   : > { %v4429_v11 = vsel %vm12880_vm10, %v4371_v13, %v13638_v47  ;;  %v13641_v47 = vrot.slane %v13627_v10, 7  ;;  %v6456_v10 = vld [vmem:[%s12348_s5 + $0x28] sm:$0xff] }
 0x67b   : > { %v4477_v9 = vsel %vm1687_vm11, %v4429_v11, %v13406_v17 }
 0x67d   : > { %v10862_v3 = vpop.permute.xlu0 %4080 }
 0x67e   : > { %v4189_v39 = vpop.permute.xlu1 %4188  ;;  %v10889_v58 = vpop.permute.xlu2 %4082 }
 0x67f   : > { %v4521_v42 = vsel %vm1720_vm12, %v4473_v57, %v4189_v39  ;;  %v4570_v57 = vsel %vm1753_vm13, %v4522_v48, %v13636_v24 }
 0x680   : > { %v4569_v56 = vsel %vm1753_vm13, %v4521_v42, %v4221_v6  ;;  %v4634_v42 = vshll.u32 %v4570_v57, 16  ;;  %v4632_v52 = vshrl.u32 %v4570_v57, 16 }
 0x681   : > { %v4628_v25 = vshll.u32 %v4569_v56, 16 }
 0x683   : > { %v4630_v37 = vrot.slane %v4628_v25, 1 }
 0x685   : > { %v4191_v39 = vpop.permute.xlu0 %4190  ;;  %v4631_v6 = vsel %vm12877_vm5, %v4627_v50, %v4630_v37  ;;  %v4636_v37 = vrot.slane %v4634_v42, 1 }
 0x686   : > { %4774 = vrot.lane.b32.xlu1 %v4631_v6, %s12868_s29  ;;  %v4127_v49 = vpop.permute.xlu1 %4126  ;;  %v4525_v6 = vsel %vm1720_vm12, %v4477_v9, %v9724_v35  ;;  %v13647_v9 = vld [vmem:[#allocation180_spill] sm:$0xff] }
 0x687   : > { %v4428_v7 = vsel %vm12880_vm10, %v4369_v53, %v4127_v49  ;;  %v4637_v26 = vor.u32 %v4636_v37, %v4632_v52  ;;  %v13644_v37 = vrot.slane %v13629_v62, 7  ;;  %v6451_v62 = vld [vmem:[%s12348_s5] sm:$0xff] }
 0x688   : > { %v4476_v56 = vsel %vm1687_vm11, %v4428_v7, %v4159_v33  ;;  %v4257_v33 = vsel %vm385_vm1, %v13593_v51, %v10617_v2 }
 0x689   : > { %v4524_v1 = vsel %vm1720_vm12, %v4476_v56, %v4191_v39  ;;  %v13640_v56 = vld [vmem:[#allocation150_spill] sm:$0xff] }
 0x68a   : > { %v4047_v11 = vor.u32 %v13641_v47, %v13640_v56 }
 0x68d   : > { %v4129_v25 = vpop.permute.xlu0 %4128 }
 0x68e   : > { %4226 = vrot.lane.b32.xlu1 %v13549_v36, %s13009_s25  ;;  %v4223_v32 = vpop.permute.xlu1 %4222  ;;  %v4293_v36 = vsel %vm559_vm7, %v4257_v33, %v10691_v20  ;;  %v4573_v20 = vsel %vm1753_vm13, %v4525_v6, %v9821_v41  ;;  %v13650_v6 = vld [vmem:[#allocation272_spill] sm:$0xff] }
 0x68f   : > { %v4572_v50 = vsel %vm1753_vm13, %v4524_v1, %v4223_v32  ;;  %v4329_v39 = vsel %vm1588_vm8, %v4293_v36, %v10765_v14  ;;  %v4193_v14 = vpop.permute.xlu2 %4192  ;;  %v4642_v41 = vshrl.u32 %v4573_v20, 16  ;;  %v6454_v32 = vld [vmem:[%s12348_s5 + $0x18] sm:$0xff]  ;;  %v13649_v36 = vld [vmem:[#allocation66_spill] sm:$0xff] }
 0x690   : > { %v4638_v43 = vshll.u32 %v4572_v50, 16  ;;  %v4373_v17 = vsel %vm1621_vm9, %v4329_v39, %v10835_v34  ;;  %v4644_v34 = vshll.u32 %v4573_v20, 16  ;;  %v6452_v50 = vld [vmem:[%s12348_s5 + $0x8] sm:$0xff] }
 0x691   : > { %v4431_v51 = vsel %vm12880_vm10, %v4373_v17, %v4129_v25  ;;  %v13651_v17 = vld [vmem:[#allocation285_spill] sm:$0xff] }
 0x692   : > { %v4640_v48 = vrot.slane %v4638_v43, 1  ;;  %v4646_v7 = vrot.slane %v4644_v34, 1  ;;  %v13646_v43 = vld [vmem:[#allocation179_spill] sm:$0xff] }
 0x693   : > { %v4050_v52 = vrot.slane %v13646_v43, 7  ;;  %v13725_v43 = vld [vmem:[#allocation188_spill] sm:$0xff] }
 0x694   : > { %v4641_v8 = vsel %vm12877_vm5, %v4637_v26, %v4640_v48  ;;  %v4647_v21 = vor.u32 %v4646_v7, %v4642_v41  ;;  %v13648_v26 = vld [vmem:[#allocation211_spill] sm:$0xff] }
 0x695   : > { %4776 = vrot.lane.b32.xlu0 %v4641_v8, %s12868_s29  ;;  %v4225_v35 = vpop.permute.xlu0 %4224  ;;  %v4051_v33 = vor.u32 %v4050_v52, %v13647_v9  ;;  %v3569_v39 = vsel %vm12880_vm10, %v13649_v36, %v13648_v26  ;;  %v13665_v9 = vld [vmem:[#allocation286_spill] sm:$0xff]  ;;  %v13667_v36 = vld [vmem:[#allocation296_spill] sm:$0xff] }
 0x696   : > { %4164 = vrot.lane.b32.xlu1 %v13501_v22, %s12870_s28  ;;  %v4161_v2 = vpop.permute.xlu1 %4160  ;;  %v13639_v22 = vrot.slane %v13609_v40, 7  ;;  %v4849_v40 = vld [vmem:[%s12348_s5 + $0x30] sm:$0x3]  ;;  %v3601_v8 = vsel %vm1687_vm11, %v3569_v39, %v13650_v6 }
 0x697   : > { %v4479_v49 = vsel %vm1687_vm11, %v4431_v51, %v4161_v2  ;;  %v4879_v25 = vunpack.c.l.b16 %v4849_v40  ;;  %v10971_v48 = vpop.permute.xlu2 %4086  ;;  %v3633_v51 = vsel %vm1720_vm12, %v3601_v8, %v13651_v17 }
 0x698   : > { %v4527_v24 = vsel %vm1720_vm12, %v4479_v49, %v4193_v14  ;;  %v13652_v14 = vld [vmem:[#allocation301_spill] sm:$0xff] }
 0x699   : > { %v4575_v57 = vsel %vm1753_vm13, %v4527_v24, %v4225_v35  ;;  %v4886_v1 = vpack.c.b16 %v4879_v25, %v4879_v25  ;;  %v3665_v49 = vsel %vm1753_vm13, %v3633_v51, %v13652_v14  ;;  %v13653_v35 = vld [vmem:[#allocation308_spill] sm:$0xff] }
 0x69a   : > { %v4648_v53 = vshll.u32 %v4575_v57, 16  ;;  %v13659_v25 = vld [vmem:[#allocation104_spill] sm:$0xff] }
 0x69b   : > { %v13668_v51 = vld [vmem:[#allocation232_spill] sm:$0xff] }
 0x69c   : > { %v4650_v42 = vrot.slane %v4648_v53, 1  ;;  %v13655_v53 = vld [vmem:[#allocation173_spill] sm:$0xff] }
 0x69d   : > { %4228 = vrot.lane.b32.xlu0 %v13555_v60, %s13009_s25  ;;  %v13642_v60 = vld [vmem:[#allocation148_spill] sm:$0xff]  ;;  %v4131_v34 = vpop.permute.xlu0 %4130 }
 0x69e   : > { %4088 = vrot.lane.b32.xlu1 %v13639_v22, %s12872_s22  ;;  %v4651_v13 = vsel %vm12877_vm5, %v4647_v21, %v4650_v42  ;;  %v10985_v20 = vpop.permute.xlu1 %4084  ;;  %vm4804_vm5 = vcmask 523264   ;;  %v13657_v21 = vld [vmem:[#allocation122_spill] sm:$0xff] }
 0x69f   : > { %v4163_v41 = vpop.permute.xlu2 %4162 }
 0x6a5   : > { %4778 = vrot.lane.b32.xlu0 %v4651_v13, %s12868_s29  ;;  %v13658_v13 = vld [vmem:[#allocation69_spill] sm:$0xff]  ;;  %s13681_s29 = smov 64  }
 0x6a6   : > { %4166 = vrot.lane.b32.xlu1 %v13496_v29, %s12870_s28  ;;  %v4927_v29 = vsel %vm12876_vm0, %v4886_v1, 0  ;;  %vm13656_vm0 = vcmask 424960   ;;  %v3449_v56 = vsel %vm385_vm1, %v13658_v13, %v13657_v21  ;;  %v13674_v21 = vld [vmem:[#allocation290_spill] sm:$0xff] }
 0x6a7   : > { %6458 = vmatpush.bf16.msra.mxu2 %v4927_v29  ;;  %4930 = vmatpush.bf16.msrb.mxu0 %v4927_v29  ;;  %v4133_v39 = vpop.permute.xlu2 %4132 }
 0x6ab   : > { %6459 = vmatpush.bf16.msra.mxu2 %v6456_v10  ;;  %4931 = vmatpush.bf16.msrb.mxu0 %v6456_v10 }
 0x6ad   : > { %4230 = vrot.lane.b32.xlu0 %v13548_v31, %s13009_s25  ;;  %v6455_v31 = vld [vmem:[%s12348_s5 + $0x20] sm:$0xff] }
 0x6ae   : > { %4090 = vrot.lane.b32.xlu1 %v4047_v11, %s12872_s22  ;;  %s14056_s22 = sand.u32 1, %s6753_s10  }
 0x6af   : > { %6460 = vmatpush.bf16.msra.mxu2 %v6455_v31  ;;  %4932 = vmatpush.bf16.msrb.mxu0 %v6455_v31 }
 0x6b3   : > { %6461 = vmatpush.bf16.msra.mxu2 %v6454_v32  ;;  %4933 = vmatpush.bf16.msrb.mxu0 %v6454_v32 }
 0x6b5   : > { %4136 = vrot.lane.b32.xlu0 %v13642_v60, %s13049_s21 }
 0x6bd   : > { %4200 = vrot.lane.b32.xlu0 %v13520_v0, %s12874_s16  ;;  %v6453_v0 = vld [vmem:[%s12348_s5 + $0x10] sm:$0xff]  ;;  %s13645_s16 = smov 24  }
 0x6be   : > { %6462 = vmatpush.bf16.msra.mxu2 %v6453_v0  ;;  %4934 = vmatpush.bf16.msrb.mxu0 %v6453_v0  ;;  %v4195_v0 = vpop.permute.xlu0 %4194 }
 0x6c2   : > { %6463 = vmatpush.bf16.msra.mxu2 %v6452_v50  ;;  %4935 = vmatpush.bf16.msrb.mxu0 %v6452_v50  ;;  %v13664_v50 = vld [vmem:[#allocation273_spill] sm:$0xff] }
 0x6c5   : > { %4096 = vrot.lane.b32.xlu0 %v13644_v37, %s13643_s0  ;;  %v13663_v37 = vld [vmem:[#allocation267_spill] sm:$0xff] }
 0x6c6   : > { %6464 = vmatpush.bf16.msra.mxu2 %v6451_v62  ;;  %4936 = vmatpush.bf16.msrb.mxu0 %v6451_v62 }
 0x6cd   : > { %4170 = vrot.lane.b32.xlu0 %v13504_v38, %s13645_s16  ;;  %v4375_v38 = vsel %vm1621_vm9, %v10167_v16, %v10848_v54  ;;  %v3697_v16 = vsel %vm12879_vm14, %v3665_v49, %v13653_v35  ;;  %v13654_v54 = vld [vmem:[#allocation193_spill] sm:$0xff]  ;;  %v13669_v49 = vld [vmem:[#allocation171_spill] sm:$0xff] }
 0x6ce   : > { %v4432_v2 = vsel %vm12880_vm10, %v4375_v38, %v13426_v28  ;;  %v3730_v24 = vsel %vm12878_vm6, %v3697_v16, %v13654_v54  ;;  %vm4893_vm6 = vcmask 818176   ;;  %v13671_v16 = vld [vmem:[#allocation279_spill] sm:$0xff] }
 0x6cf   : > { %v4480_v57 = vsel %vm1687_vm11, %v4432_v2, %v13430_v18  ;;  %v3763_v22 = vsel %vm3759_vm15, %v3730_v24, %v13655_v53 }
 0x6d0   : > { %v3796_v28 = vsel %vm3792_vm3, %v3763_v22, %v10341_v15  ;;  %v4528_v42 = vsel %vm1720_vm12, %v4480_v57, %v9742_v63  ;;  %v4259_v15 = vsel %vm385_vm1, %v13597_v30, %v10638_v55 }
 0x6d1   : > { %v3829_v7 = vsel %vm13656_vm0, %v3796_v28, %v10445_v61  ;;  %v4295_v63 = vsel %vm559_vm7, %v4259_v15, %v10712_v45  ;;  %v4576_v11 = vsel %vm1753_vm13, %v4528_v42, %v9835_v27  ;;  %v13661_v45 = vld [vmem:[#allocation264_spill] sm:$0xff]  ;;  %v13662_v27 = vld [vmem:[#allocation74_spill] sm:$0xff]  ;;  %vm13670_vm0 = vcmask 326656  }
 0x6d2   : > { %v3862_v18 = vsel %vm3858_vm2, %v3829_v7, %v10505_v59  ;;  %v3479_v59 = vsel %vm559_vm7, %v3449_v56, %v13659_v25  ;;  %v4331_v1 = vsel %vm1588_vm8, %v4295_v63, %v10785_v12  ;;  %v4379_v10 = vsel %vm1621_vm9, %v13662_v27, %v10889_v58  ;;  %v13677_v15 = vld [vmem:[#allocation132_spill] sm:$0xff]  ;;  %v13682_v25 = vld [vmem:[#allocation302_spill] sm:$0xff] }
 0x6d3   : > { %v3895_v47 = vsel %vm3891_vm4, %v3862_v18, %v10535_v46  ;;  %v13660_v46 = vld [vmem:[#allocation126_spill] sm:$0xff]  ;;  %v4377_v55 = vsel %vm1621_vm9, %v4331_v1, %v10862_v3  ;;  %v4654_v32 = vshll.u32 %v4576_v11, 16  ;;  %v4652_v57 = vshrl.u32 %v4576_v11, 16 }
 0x6d4   : > { %v3509_v30 = vsel %vm1588_vm8, %v3479_v59, %v13660_v46  ;;  %v4434_v31 = vsel %vm12880_vm10, %v4377_v55, %v4131_v34  ;;  %v13672_v34 = vld [vmem:[#allocation221_spill] sm:$0xff]  ;;  %v13675_v18 = vld [vmem:[#allocation238_spill] sm:$0xff] }
 0x6d5   : > { %4098 = vrot.lane.b32.xlu0 %v4051_v33, %s13643_s0  ;;  %v3539_v29 = vsel %vm1621_vm9, %v3509_v30, %v13661_v45  ;;  %v13666_v33 = vld [vmem:[#allocation270_spill] sm:$0xff]  ;;  %v4482_v26 = vsel %vm1687_vm11, %v4434_v31, %v4163_v41  ;;  %v4656_v17 = vrot.slane %v4654_v32, 1  ;;  %v4261_v41 = vsel %vm385_vm1, %v13604_v5, %v10652_v23  ;;  %v13683_v30 = vld [vmem:[#allocation116_spill] sm:$0xff]  ;;  %v4197_v45 = vpop.permute.xlu2 %4196 }
 0x6d6   : > { %v3571_v12 = vsel %vm12880_vm10, %v3539_v29, %v13663_v37  ;;  %v4435_v38 = vsel %vm12880_vm10, %v4379_v10, %v13666_v33  ;;  %v4530_v6 = vsel %vm1720_vm12, %v4482_v26, %v4195_v0  ;;  %v13684_v29 = vld [vmem:[#allocation139_spill] sm:$0xff]  ;;  %v13685_v32 = vld [vmem:[#allocation262_spill] sm:$0xff] }
 0x6d7   : > { %v3603_v62 = vsel %vm1687_vm11, %v3571_v12, %v13664_v50  ;;  %v4483_v54 = vsel %vm1687_vm11, %v4435_v38, %v13671_v16  ;;  %v4657_v7 = vor.u32 %v4656_v17, %v4652_v57  ;;  %v13686_v37 = vld [vmem:[#allocation167_spill] sm:$0xff]  ;;  %v13687_v50 = vld [vmem:[#allocation268_spill] sm:$0xff] }
 0x6d8   : > { %v3635_v3 = vsel %vm1720_vm12, %v3603_v62, %v13665_v9  ;;  %v4531_v13 = vsel %vm1720_vm12, %v4483_v54, %v13674_v21  ;;  %v4383_v12 = vsel %vm1621_vm9, %v13686_v37, %v10971_v48  ;;  %v13688_v9 = vld [vmem:[#allocation208_spill] sm:$0xff]  ;;  %v13689_v33 = vld [vmem:[#allocation243_spill] sm:$0xff] }
 0x6d9   : > { %v3667_v58 = vsel %vm1753_vm13, %v3635_v3, %v13667_v36  ;;  %v13690_v26 = vld [vmem:[#allocation271_spill] sm:$0xff]  ;;  %v13697_v57 = vld [vmem:[#allocation280_spill] sm:$0xff] }
 0x6da   : > { %v3699_v2 = vsel %vm12879_vm14, %v3667_v58, %v13668_v51  ;;  %vm13673_vm14 = vcmask 424960   ;;  %v4438_v36 = vsel %vm12880_vm10, %v4383_v12, %v13690_v26  ;;  %v13695_v54 = vld [vmem:[#allocation67_spill] sm:$0xff]  ;;  %v13713_v12 = vld [vmem:[#allocation166_spill] sm:$0xff] }
 0x6db   : > { %v3732_v35 = vsel %vm13670_vm0, %v3699_v2, %v13669_v49  ;;  %vm13676_vm0 = vsmask.f32 7424 }
 0x6dc   : > { %v3765_v53 = vsel %vm3759_vm15, %v3732_v35, %v13672_v34  ;;  %v4486_v34 = vsel %vm1687_vm11, %v4438_v36, %v13697_v57  ;;  %v13728_v57 = vld [vmem:[#allocation200_spill] sm:$0xff] }
 0x6dd   : > { %v3798_v22 = vsel %vm3792_vm3, %v3765_v53, %v10386_v44  ;;  %v13698_v53 = vld [vmem:[#allocation172_spill] sm:$0xff]  ;;  %v4135_v21 = vpop.permute.xlu2 %4134 }
 0x6de   : > { %v3831_v42 = vsel %vm13673_vm14, %v3798_v22, %v10456_v4  ;;  %v13679_v4 = vld [vmem:[#allocation235_spill] sm:$0xff]  ;;  %vm13694_vm14 = vcmask 293888  }
 0x6df   : > { %v3864_v56 = vsel %vm3858_vm2, %v3831_v42, %v10486_v19  ;;  %v4579_v19 = vsel %vm1753_vm13, %v4531_v13, %v13682_v25  ;;  %v13699_v42 = vld [vmem:[#allocation72_spill] sm:$0xff]  ;;  %v13700_v13 = vld [vmem:[#allocation157_spill] sm:$0xff] }
 0x6e0   : > { %v3897_v11 = vsel %vm3891_vm4, %v3864_v56, %v13679_v4  ;;  %v4664_v31 = vshll.u32 %v4579_v19, 16  ;;  %v4662_v16 = vshrl.u32 %v4579_v19, 16  ;;  %v13706_v4 = vld [vmem:[#allocation177_spill] sm:$0xff] }
 0x6e1   : > { %v13709_v19 = vld [vmem:[#allocation197_spill] sm:$0xff] }
 0x6e2   : > { %v4666_v48 = vrot.slane %v4664_v31, 1 }
 0x6e5   : > { %v4199_v37 = vpop.permute.xlu2 %4198 }
 0x6f8   : > { %v4775_v61 = vpop.permute.xlu1 %4774 }
 0x6f9   : > { %v4808_v40 = vsel %vm4804_vm5, %v3895_v47, %v4775_v61  ;;  %v4297_v47 = vsel %vm559_vm7, %v4261_v41, %v13675_v18  ;;  %v13678_v61 = vld [vmem:[#allocation75_spill] sm:$0xff]  ;;  %v13702_v18 = vld [vmem:[#allocation88_spill] sm:$0xff] }
 0x6fa   : > { %6412 = vmatmul.msk.bf16.vlgmr.msra.gmra.mxu2 %vm4893_vm6, %v4808_v40  ;;  %v3451_v63 = vsel %vm385_vm1, %v13678_v61, %v13677_v15  ;;  %v13680_v40 = vld [vmem:[#allocation121_spill] sm:$0xff]  ;;  %v13704_v15 = vld [vmem:[#allocation288_spill] sm:$0xff] }
 0x6fb   : > { %v4333_v23 = vsel %vm1588_vm8, %v4297_v47, %v13680_v40  ;;  %v3481_v55 = vsel %vm559_vm7, %v3451_v63, %v13683_v30  ;;  %v13703_v47 = vld [vmem:[#allocation128_spill] sm:$0xff]  ;;  %v4534_v61 = vsel %vm1720_vm12, %v4486_v34, %v13704_v15  ;;  %v13707_v40 = vld [vmem:[#allocation217_spill] sm:$0xff]  ;;  %v13729_v34 = vrot.slane %v13728_v57, 7 }
 0x6fc   : > { %v4381_v59 = vsel %vm1621_vm9, %v4333_v23, %v10985_v20  ;;  %v11086_v27 = vsel %vm1588_vm8, %v3481_v55, %v13684_v29  ;;  %v13711_v30 = vld [vmem:[#allocation304_spill] sm:$0xff]  ;;  %v13750_v57 = vld [vmem:[#allocation293_spill] sm:$0xff] }
 0x6fd   : > { %v4437_v10 = vsel %vm12880_vm10, %v4381_v59, %v4133_v39  ;;  %v3541_v20 = vsel %vm1621_vm9, %v11086_v27, %v13685_v32  ;;  %v4582_v55 = vsel %vm1753_vm13, %v4534_v61, %v13711_v30 }
 0x6fe   : > { %v3573_v62 = vsel %vm12880_vm10, %v3541_v20, %v13687_v50  ;;  %vm13701_vm10 = vcmask 424960   ;;  %v4674_v32 = vshll.u32 %v4582_v55, 16 }
 0x6ff   : > { %v3605_v3 = vsel %vm1687_vm11, %v3573_v62, %v13688_v9 }
 0x700   : > { %v4227_v8 = vpop.permute.xlu1 %4226  ;;  %v3637_v38 = vsel %vm1720_vm12, %v3605_v3, %v13689_v33  ;;  %v13715_v3 = vld [vmem:[#allocation199_spill] sm:$0xff] }
 0x701   : > { %v4578_v14 = vsel %vm1753_vm13, %v4530_v6, %v4227_v8  ;;  %v13691_v6 = vld [vmem:[#allocation153_spill] sm:$0xff]  ;;  %v13692_v8 = vld [vmem:[#allocation300_spill] sm:$0xff] }
 0x702   : > { %v4658_v24 = vshll.u32 %v4578_v14, 16  ;;  %v3669_v17 = vsel %vm1753_vm13, %v3637_v38, %v13692_v8  ;;  %v13693_v14 = vld [vmem:[#allocation312_spill] sm:$0xff]  ;;  %v4676_v38 = vrot.slane %v4674_v32, 1 }
 0x703   : > { %v3701_v49 = vsel %vm13694_vm14, %v3669_v17, %v13693_v14  ;;  %vm13705_vm14 = vsmask.f32 7424  ;;  %v13717_v17 = vld [vmem:[#allocation175_spill] sm:$0xff]  ;;  %v13720_v14 = vld [vmem:[#allocation182_spill] sm:$0xff] }
 0x704   : > { %v4660_v28 = vrot.slane %v4658_v24, 1 }
 0x706   : > { %v4661_v44 = vsel %vm13676_vm0, %v4657_v7, %v4660_v28  ;;  %vm13696_vm0 = vcmask 326656   ;;  %v4667_v7 = vor.u32 %v4666_v48, %v4662_v16  ;;  %v13723_v16 = vld [vmem:[#allocation185_spill] sm:$0xff] }
 0x707   : > { %v4777_v5 = vpop.permute.xlu0 %4776  ;;  %4780 = vrot.lane.b32.xlu1 %v4661_v44, %s13681_s29  ;;  %v3734_v24 = vsel %vm13696_vm0, %v3701_v49, %v13695_v54  ;;  %v4263_v44 = vsel %vm385_vm1, %v13703_v47, %v13702_v18  ;;  %v13721_v49 = vld [vmem:[#allocation187_spill] sm:$0xff]  ;;  %v13724_v54 = vld [vmem:[#allocation205_spill] sm:$0xff] }
 0x708   : > { %v4165_v1 = vpop.permute.xlu1 %4164  ;;  %v4810_v46 = vsel %vm4804_vm5, %v3897_v11, %v4777_v5  ;;  %v3767_v22 = vsel %vm3759_vm15, %v3734_v24, %v13698_v53  ;;  %v4299_v23 = vsel %vm559_vm7, %v4263_v44, %v13707_v40  ;;  %v13708_v5 = vld [vmem:[#allocation154_spill] sm:$0xff]  ;;  %v13727_v24 = vld [vmem:[#allocation213_spill] sm:$0xff] }
 0x709   : > { %v4485_v0 = vsel %vm1687_vm11, %v4437_v10, %v4165_v1  ;;  %v3800_v41 = vsel %vm3792_vm3, %v3767_v22, %v13699_v42  ;;  %v4335_v59 = vsel %vm1588_vm8, %v4299_v23, %v13709_v19  ;;  %vm13716_vm3 = vmmov %vm13705_vm14  ;;  %v13730_v53 = vld [vmem:[#allocation201_spill] sm:$0xff]  ;;  %v13731_v22 = vld [vmem:[#allocation223_spill] sm:$0xff] }
 0x70a   : > { %6413 = vmatmul.msk.bf16.gmra.mxu2 %vm4893_vm6, %v4810_v46  ;;  %v4533_v39 = vsel %vm1720_vm12, %v4485_v0, %v4197_v45  ;;  %v3833_v56 = vsel %vm13701_vm10, %v3800_v41, %v13700_v13  ;;  %v13710_v46 = vld [vmem:[#allocation161_spill] sm:$0xff]  ;;  %v13738_v23 = vld [vmem:[#allocation274_spill] sm:$0xff]  ;;  %vm13749_vm0 = vmmov %vm13716_vm3 }
 0x70b   : > { %v3866_v11 = vsel %vm3858_vm2, %v3833_v56, %v13706_v4  ;;  %vm13712_vm2 = vcmask 162816   ;;  %v13733_v56 = vld [vmem:[#allocation112_spill] sm:$0xff]  ;;  %v13734_v44 = vld [vmem:[#allocation125_spill] sm:$0xff] }
 0x70c   : > { %v3899_v25 = vsel %vm3891_vm4, %v3866_v11, %v13708_v5  ;;  %vm13735_vm4 = vmmov %vm13712_vm2  ;;  %v13737_v11 = vld [vmem:[#allocation292_spill] sm:$0xff]  ;;  %v13739_v5 = vld [vmem:[#allocation133_spill] sm:$0xff] }
 0x70d   : > { %vm13744_vm10 = vmmov %vm13712_vm2 }
 0x70e   : > { %vm13747_vm15 = vmmov %vm13712_vm2 }
 0x70f   : > { %v4229_v58 = vpop.permute.xlu0 %4228  ;;  %4232 = vrot.lane.b32.xlu1 %v13691_v6, %s13009_s25 }
 0x710   : > { %v4581_v51 = vsel %vm1753_vm13, %v4533_v39, %v4229_v58  ;;  %v4089_v2 = vpop.permute.xlu1 %4088  ;;  %v4672_v58 = vshrl.u32 %v4582_v55, 16  ;;  %v13741_v55 = vld [vmem:[#allocation307_spill] sm:$0xff] }
 0x711   : > { %v4668_v35 = vshll.u32 %v4581_v51, 16  ;;  %v4385_v45 = vsel %vm1621_vm9, %v4335_v59, %v4089_v2  ;;  %v13718_v51 = vld [vmem:[#allocation207_spill] sm:$0xff] }
 0x712   : > { %v4440_v31 = vsel %vm13712_vm2, %v4385_v45, %v4135_v21  ;;  %v4677_v6 = vor.u32 %v4676_v38, %v4672_v58  ;;  %v13719_v2 = vld [vmem:[#allocation183_spill] sm:$0xff]  ;;  %v4093_v21 = vpop.permute.xlu2 %4092 }
 0x713   : > { %v4670_v28 = vrot.slane %v4668_v35, 1  ;;  %v13722_v35 = vrot.slane %v13721_v49, 7 }
 0x715   : > { %v4671_v63 = vsel %vm13705_vm14, %v4667_v7, %v4670_v28  ;;  %v4056_v28 = vrot.slane %v13731_v22, 7  ;;  %v13732_v7 = vld [vmem:[#allocation224_spill] sm:$0xff]  ;;  %vm13756_vm14 = vmmov %vm13712_vm2 }
 0x716   : > { %4782 = vrot.lane.b32.xlu2 %v4671_v63, %s13681_s29  ;;  %v13736_v63 = vld [vmem:[#allocation278_spill] sm:$0xff]  ;;  %v13778_v22 = vld [vmem:[#allocation228_spill] sm:$0xff] }
 0x717   : > { %v4779_v1 = vpop.permute.xlu0 %4778  ;;  %4138 = vrot.lane.b32.xlu1 %v13710_v46, %s13049_s21  ;;  %v4057_v42 = vor.u32 %v4056_v28, %v13732_v7  ;;  %v13751_v7 = vld [vmem:[#allocation230_spill] sm:$0xff] }
 0x718   : > { %v4812_v29 = vsel %vm4804_vm5, %v3899_v25, %v4779_v1  ;;  %v4167_v10 = vpop.permute.xlu1 %4166  ;;  %v4265_v25 = vsel %vm385_vm1, %v13739_v5, %v13738_v23  ;;  %v13740_v1 = vld [vmem:[#allocation76_spill] sm:$0xff]  ;;  %v13758_v5 = vld [vmem:[#allocation190_spill] sm:$0xff] }
 0x719   : > { %v4488_v20 = vsel %vm1687_vm11, %v4440_v31, %v4167_v10  ;;  %v4301_v30 = vsel %vm559_vm7, %v4265_v25, %v13740_v1  ;;  %v13743_v31 = vld [vmem:[#allocation176_spill] sm:$0xff] }
 0x71a   : > { %6414 = vmatmul.msk.bf16.gmra.mxu2 %vm4893_vm6, %v4812_v29  ;;  %v4536_v62 = vsel %vm1720_vm12, %v4488_v20, %v4199_v37  ;;  %v4169_v61 = vpop.permute.xlu2 %4168  ;;  %v13742_v29 = vld [vmem:[#allocation206_spill] sm:$0xff]  ;;  %v4337_v32 = vsel %vm1588_vm8, %v4301_v30, %v13743_v31 }
 0x71b   : > { %v4389_v20 = vsel %vm1621_vm9, %v4337_v32, %v4093_v21  ;;  %v13760_v31 = vld [vmem:[#allocation282_spill] sm:$0xff] }
 0x71e   : > { %4234 = vrot.lane.b32.xlu2 %v13713_v12, %s13009_s25 }
 0x71f   : > { %v4231_v0 = vpop.permute.xlu0 %4230  ;;  %4202 = vrot.lane.b32.xlu1 %v13715_v3, %s13714_s23 }
 0x720   : > { %v4584_v26 = vsel %vm1753_vm13, %v4536_v62, %v4231_v0  ;;  %v4091_v13 = vpop.permute.xlu1 %4090  ;;  %v13745_v62 = vld [vmem:[#allocation37_spill] sm:$0xff] }
 0x721   : > { %v4678_v36 = vshll.u32 %v4584_v26, 16  ;;  %v4387_v18 = vsel %vm1621_vm9, %v13733_v56, %v4091_v13  ;;  %v13753_v13 = vld [vmem:[#allocation215_spill] sm:$0xff] }
 0x722   : > { %v4441_v15 = vsel %vm13735_vm4, %v4387_v18, %v13734_v44  ;;  %v4095_v37 = vpop.permute.xlu2 %4094  ;;  %v13754_v18 = vld [vmem:[#allocation303_spill] sm:$0xff]  ;;  %v13755_v44 = vld [vmem:[#allocation68_spill] sm:$0xff]  ;;  %vm13771_vm4 = vmmov %vm13712_vm2 }
 0x723   : > { %v4680_v39 = vrot.slane %v4678_v36, 1  ;;  %v4489_v4 = vsel %vm1687_vm11, %v4441_v15, %v13736_v63  ;;  %v4391_v3 = vsel %vm1621_vm9, %v13745_v62, %v4095_v37  ;;  %v13761_v62 = vld [vmem:[#allocation196_spill] sm:$0xff] }
 0x724   : > { %v4537_v40 = vsel %vm1720_vm12, %v4489_v4, %v13737_v11 }
 0x725   : > { %v4681_v48 = vsel %vm13716_vm3, %v4677_v6, %v4680_v39  ;;  %v4585_v45 = vsel %vm1753_vm13, %v4537_v40, %v13741_v55  ;;  %v13746_v39 = vld [vmem:[#allocation42_spill] sm:$0xff]  ;;  %v13757_v40 = vld [vmem:[#allocation147_spill] sm:$0xff]  ;;  %v13759_v55 = vld [vmem:[#allocation101_spill] sm:$0xff] }
 0x726   : > { %4140 = vrot.lane.b32.xlu2 %v13717_v17, %s13049_s21  ;;  %4784 = vrot.lane.b32.xlu0 %v4681_v48, %s13681_s29  ;;  %v4684_v0 = vshll.u32 %v4585_v45, 16  ;;  %v4444_v6 = vsel %vm13747_vm15, %v4391_v3, %v13746_v39  ;;  %vm13762_vm3 = vmmov %vm13749_vm0 }
 0x727   : > { %4100 = vrot.lane.b32.xlu1 %v4050_v52, %s13643_s0  ;;  %v13726_v52 = vld [vmem:[#allocation212_spill] sm:$0xff]  ;;  %v4137_v41 = vpop.permute.xlu0 %4136  ;;  %vm13795_vm15 = vmmov %vm13712_vm2 }
 0x728   : > { %v4443_v12 = vsel %vm13744_vm10, %v4389_v20, %v4137_v41  ;;  %v4686_v58 = vrot.slane %v4684_v0, 1  ;;  %v13752_v41 = vld [vmem:[#allocation169_spill] sm:$0xff]  ;;  %vm13773_vm10 = vmmov %vm13749_vm0 }
 0x729   : > { %v4491_v38 = vsel %vm1687_vm11, %v4443_v12, %v4169_v61 }
 0x72e   : > { %4204 = vrot.lane.b32.xlu2 %v13718_v51, %s13714_s23  ;;  %4236 = vrot.lane.b32.xlu0 %v13719_v2, %s13009_s25 }
 0x72f   : > { %4172 = vrot.lane.b32.xlu1 %v13720_v14, %s13645_s16  ;;  %v4201_v47 = vpop.permute.xlu0 %4200  ;;  %v4682_v14 = vshrl.u32 %v4585_v45, 16 }
 0x730   : > { %v4539_v26 = vsel %vm1720_vm12, %v4491_v38, %v4201_v47  ;;  %v13763_v38 = vld [vmem:[#allocation291_spill] sm:$0xff] }
 0x736   : > { %4104 = vrot.lane.b32.xlu2 %v13722_v35, %s13643_s0  ;;  %4142 = vrot.lane.b32.xlu0 %v13723_v16, %s13049_s21  ;;  %v13748_v35 = vld [vmem:[#allocation281_spill] sm:$0xff] }
 0x737   : > { %4102 = vrot.lane.b32.xlu1 %v13724_v54, %s13643_s0  ;;  %v4097_v19 = vpop.permute.xlu0 %4096  ;;  %v4492_v54 = vsel %vm1687_vm11, %v4444_v6, %v13748_v35  ;;  %v13765_v6 = vld [vmem:[#allocation189_spill] sm:$0xff] }
 0x738   : > { %v13768_v35 = vld [vmem:[#allocation241_spill] sm:$0xff] }
 0x73e   : > { %4174 = vrot.lane.b32.xlu2 %v13725_v43, %s13645_s16  ;;  %4206 = vrot.lane.b32.xlu0 %v13726_v52, %s13714_s23  ;;  %v4687_v52 = vor.u32 %v4686_v58, %v4682_v14  ;;  %v13764_v58 = vld [vmem:[#allocation256_spill] sm:$0xff]  ;;  %v13767_v14 = vld [vmem:[#allocation306_spill] sm:$0xff] }
 0x73f   : > { %v4171_v51 = vpop.permute.xlu0 %4170 }
 0x746   : > { %4106 = vrot.lane.b32.xlu2 %v13727_v24, %s13643_s0  ;;  %4108 = vrot.lane.b32.xlu0 %v13729_v34, %s13643_s0  ;;  %v4540_v34 = vsel %vm1720_vm12, %v4492_v54, %v13750_v57  ;;  %v13770_v57 = vld [vmem:[#allocation203_spill] sm:$0xff] }
 0x747   : > { %v4588_v47 = vsel %vm1753_vm13, %v4540_v34, %v13754_v18  ;;  %v4099_v63 = vpop.permute.xlu0 %4098 }
 0x748   : > { %v4694_v11 = vshll.u32 %v4588_v47, 16  ;;  %v4395_v23 = vsel %vm1621_vm9, %v13757_v40, %v4099_v63  ;;  %v13774_v63 = vld [vmem:[#allocation225_spill] sm:$0xff] }
 0x74a   : > { %v4696_v30 = vrot.slane %v4694_v11, 1  ;;  %v13777_v11 = vld [vmem:[#allocation237_spill] sm:$0xff] }
 0x74e   : > { %4176 = vrot.lane.b32.xlu0 %v13730_v53, %s13645_s16 }
 0x756   : > { %4110 = vrot.lane.b32.xlu0 %v4057_v42, %s13643_s0  ;;  %v4267_v42 = vsel %vm385_vm1, %v13642_v60, %v13751_v7 }
 0x757   : > { %v4303_v56 = vsel %vm559_vm7, %v4267_v42, %v13753_v13 }
 0x758   : > { %v4339_v15 = vsel %vm1588_vm8, %v4303_v56, %v13755_v44 }
 0x759   : > { %v4393_v61 = vsel %vm1621_vm9, %v4339_v15, %v4097_v19  ;;  %v4447_v19 = vsel %vm13712_vm2, %v4395_v23, %v13759_v55  ;;  %v13772_v15 = vld [vmem:[#allocation219_spill] sm:$0xff] }
 0x75a   : > { %v4495_v32 = vsel %vm1687_vm11, %v4447_v19, %v13760_v31  ;;  %v13781_v23 = vld [vmem:[#allocation311_spill] sm:$0xff]  ;;  %v13787_v19 = vld [vmem:[#allocation36_spill] sm:$0xff]  ;;  %v13790_v31 = vld [vmem:[#allocation38_spill] sm:$0xff] }
 0x770   : > { %v4783_v49 = vpop.permute.xlu2 %4782 }
 0x771   : > { %v4816_v21 = vsel %vm4804_vm5, %v13752_v41, %v4783_v49 }
 0x778   : > { %v4235_v4 = vpop.permute.xlu2 %4234 }
 0x779   : > { %v4781_v59 = vpop.permute.xlu1 %4780 }
 0x77a   : > { %v4814_v10 = vsel %vm4804_vm5, %v13742_v29, %v4781_v59 }
 0x77b   : > { %6415 = vmatmul.msk.bf16.gmra.mxu2 %vm4893_vm6, %v4814_v10  ;;  %v4692_v10 = vshrl.u32 %v4588_v47, 16 }
 0x77d   : > { %v4697_v37 = vor.u32 %v4696_v30, %v4692_v10  ;;  %v13786_v30 = vld [vmem:[#allocation35_spill] sm:$0xff]  ;;  %v13789_v10 = vld [vmem:[#allocation34_spill] sm:$0xff] }
 0x77e   : > { %v4060_v55 = vrot.slane %v13786_v30, 7 }
 0x780   : > { %v4141_v12 = vpop.permute.xlu2 %4140 }
 0x781   : > { %v4233_v36 = vpop.permute.xlu1 %4232 }
 0x782   : > { %v4587_v48 = vsel %vm1753_vm13, %v4539_v26, %v4233_v36  ;;  %v4543_v26 = vsel %vm1720_vm12, %v4495_v32, %v13763_v38 }
 0x783   : > { %v4688_v2 = vshll.u32 %v4587_v48, 16  ;;  %v4269_v48 = vsel %vm385_vm1, %v13710_v46, %v13765_v6  ;;  %v4591_v49 = vsel %vm1753_vm13, %v4543_v26, %v13767_v14  ;;  %v13793_v26 = vld [vmem:[#allocation94_spill] sm:$0xff]  ;;  %v13796_v6 = vld [vmem:[#allocation141_spill] sm:$0xff]  ;;  %v13798_v14 = vld [vmem:[#allocation247_spill] sm:$0xff] }
 0x784   : > { %v4702_v18 = vshrl.u32 %v4591_v49, 16 }
 0x785   : > { %v4690_v43 = vrot.slane %v4688_v2, 1 }
 0x787   : > { %v4691_v24 = vsel %vm13749_vm0, %v4687_v52, %v4690_v43  ;;  %v4704_v52 = vshll.u32 %v4591_v49, 16  ;;  %v4271_v49 = vsel %vm385_vm1, %v13717_v17, %v13798_v14  ;;  %vm13803_vm0 = vmmov %vm13712_vm2  ;;  %v13816_v14 = vld [vmem:[#allocation198_spill] sm:$0xff] }
 0x788   : > { %4786 = vrot.lane.b32.xlu1 %v4691_v24, %s13681_s29  ;;  %v13769_v24 = vld [vmem:[#allocation218_spill] sm:$0xff]  ;;  %vm13808_vm2 = vmmov %vm13762_vm3 }
 0x789   : > { %v4139_v53 = vpop.permute.xlu1 %4138 }
 0x78a   : > { %v4446_v60 = vsel %vm13756_vm14, %v4393_v61, %v4139_v53  ;;  %v4205_v53 = vpop.permute.xlu2 %4204  ;;  %vm13806_vm14 = vmmov %vm13803_vm0 }
 0x78b   : > { %6416 = vmatmul.msk.bf16.gmra.mxu2 %vm4893_vm6, %v4816_v21  ;;  %v4494_v25 = vsel %vm1687_vm11, %v4446_v60, %v4171_v51  ;;  %v13766_v51 = vld [vmem:[#allocation168_spill] sm:$0xff]  ;;  %v4706_v21 = vrot.slane %v4704_v52, 1  ;;  %v13776_v60 = vld [vmem:[#allocation227_spill] sm:$0xff] }
 0x78c   : > { %v4305_v2 = vsel %vm559_vm7, %v4269_v48, %v13766_v51  ;;  %v13797_v51 = vld [vmem:[#allocation295_spill] sm:$0xff] }
 0x78d   : > { %v4341_v54 = vsel %vm1588_vm8, %v4305_v2, %v13768_v35  ;;  %v4707_v44 = vor.u32 %v4706_v21, %v4702_v18 }
 0x790   : > { %4238 = vrot.lane.b32.xlu1 %v13758_v5, %s13009_s25  ;;  %v13782_v5 = vld [vmem:[#allocation226_spill] sm:$0xff] }
 0x791   : > { %v4203_v59 = vpop.permute.xlu1 %4202 }
 0x792   : > { %v4542_v1 = vsel %vm1720_vm12, %v4494_v25, %v4203_v59  ;;  %v13783_v25 = vld [vmem:[#allocation202_spill] sm:$0xff]  ;;  %v13784_v59 = vld [vmem:[#allocation233_spill] sm:$0xff] }
 0x793   : > { %v4590_v45 = vsel %vm1753_vm13, %v4542_v1, %v4235_v4  ;;  %v13775_v4 = vld [vmem:[#allocation275_spill] sm:$0xff]  ;;  %v13785_v1 = vld [vmem:[#allocation236_spill] sm:$0xff] }
 0x794   : > { %v4698_v29 = vshll.u32 %v4590_v45, 16  ;;  %v4061_v45 = vor.u32 %v4060_v55, %v13787_v19 }
 0x796   : > { %v4700_v20 = vrot.slane %v4698_v29, 1  ;;  %v13788_v29 = vld [vmem:[#allocation234_spill] sm:$0xff] }
 0x798   : > { %v4785_v0 = vpop.permute.xlu0 %4784  ;;  %4144 = vrot.lane.b32.xlu1 %v13761_v62, %s13049_s21  ;;  %v4701_v3 = vsel %vm13762_vm3, %v4697_v37, %v4700_v20  ;;  %v4105_v20 = vpop.permute.xlu2 %4104  ;;  %v13791_v37 = vld [vmem:[#allocation79_spill] sm:$0xff]  ;;  %vm13815_vm3 = vmmov %vm13803_vm0 }
 0x799   : > { %4788 = vrot.lane.b32.xlu2 %v4701_v3, %s13681_s29  ;;  %v4101_v36 = vpop.permute.xlu1 %4100  ;;  %v4818_v39 = vsel %vm4804_vm5, %v13764_v58, %v4785_v0  ;;  %v13792_v0 = vld [vmem:[#allocation63_spill] sm:$0xff] }
 0x79a   : > { %v4397_v43 = vsel %vm1621_vm9, %v4341_v54, %v4101_v36  ;;  %v13794_v36 = vld [vmem:[#allocation142_spill] sm:$0xff] }
 0x79b   : > { %6417 = vmatmul.msk.bf16.gmra.mxu2 %vm4893_vm6, %v4818_v39  ;;  %v4449_v46 = vsel %vm13771_vm4, %v4397_v43, %v4141_v12  ;;  %v13799_v43 = vld [vmem:[#allocation246_spill] sm:$0xff]  ;;  %vm13819_vm4 = vmmov %vm13803_vm0 }
 0x79c   : > { %v4307_v52 = vsel %vm559_vm7, %v4271_v49, %v13799_v43 }
 0x7a0   : > { %4208 = vrot.lane.b32.xlu1 %v13769_v24, %s13714_s23  ;;  %v4237_v42 = vpop.permute.xlu0 %4236  ;;  %v4175_v39 = vpop.permute.xlu2 %4174  ;;  %v13800_v24 = vld [vmem:[#allocation310_spill] sm:$0xff] }
 0x7a1   : > { %4240 = vrot.lane.b32.xlu2 %v13770_v57, %s13009_s25  ;;  %v4173_v34 = vpop.permute.xlu1 %4172 }
 0x7a2   : > { %v4497_v7 = vsel %vm1687_vm11, %v4449_v46, %v4173_v34  ;;  %v13801_v46 = vld [vmem:[#allocation152_spill] sm:$0xff] }
 0x7a3   : > { %v4545_v41 = vsel %vm1720_vm12, %v4497_v7, %v4205_v53  ;;  %v13802_v53 = vld [vmem:[#allocation244_spill] sm:$0xff] }
 0x7a4   : > { %v4593_v13 = vsel %vm1753_vm13, %v4545_v41, %v4237_v42  ;;  %v4343_v7 = vsel %vm1588_vm8, %v4307_v52, %v13802_v53 }
 0x7a5   : > { %v4708_v56 = vshll.u32 %v4593_v13, 16  ;;  %v4401_v42 = vsel %vm1621_vm9, %v4343_v7, %v4105_v20  ;;  %v13804_v13 = vld [vmem:[#allocation209_spill] sm:$0xff]  ;;  %v13810_v20 = vld [vmem:[#allocation258_spill] sm:$0xff] }
 0x7a7   : > { %v4710_v47 = vrot.slane %v4708_v56, 1 }
 0x7a8   : > { %4112 = vrot.lane.b32.xlu1 %v4056_v28, %s13643_s0  ;;  %v13779_v28 = vld [vmem:[#allocation231_spill] sm:$0xff]  ;;  %v4143_v32 = vpop.permute.xlu0 %4142  ;;  %v4107_v41 = vpop.permute.xlu2 %4106 }
 0x7a9   : > { %4146 = vrot.lane.b32.xlu2 %v13772_v15, %s13049_s21  ;;  %v4711_v61 = vsel %vm13773_vm10, %v4707_v44, %v4710_v47  ;;  %v13780_v40 = vrot.slane %v13779_v28, 7  ;;  %v4103_v12 = vpop.permute.xlu1 %4102  ;;  %v4452_v17 = vsel %vm13803_vm0, %v4401_v42, %v4143_v32  ;;  %v4403_v56 = vsel %vm1621_vm9, %v13804_v13, %v4107_v41  ;;  %v13820_v42 = vld [vmem:[#allocation284_spill] sm:$0xff]  ;;  %vm13821_vm10 = vmmov %vm13808_vm2 }
 0x7aa   : > { %4790 = vrot.lane.b32.xlu0 %v4711_v61, %s13681_s29  ;;  %v4399_v3 = vsel %vm1621_vm9, %v13792_v0, %v4103_v12  ;;  %v4500_v18 = vsel %vm1687_vm11, %v4452_v17, %v4175_v39  ;;  %v13811_v12 = vld [vmem:[#allocation194_spill] sm:$0xff] }
 0x7ab   : > { %v4450_v58 = vsel %vm13795_vm15, %v4399_v3, %v13794_v36  ;;  %v13812_v3 = vld [vmem:[#allocation71_spill] sm:$0xff]  ;;  %vm13830_vm15 = vmmov %vm13803_vm0 }
 0x7ac   : > { %v4498_v48 = vsel %vm1687_vm11, %v4450_v58, %v13796_v6  ;;  %v13814_v58 = vld [vmem:[#allocation64_spill] sm:$0xff]  ;;  %vm13832_vm0 = vmmov %vm13808_vm2 }
 0x7ad   : > { %v4546_v2 = vsel %vm1720_vm12, %v4498_v48, %v13797_v51 }
 0x7ae   : > { %v4594_v57 = vsel %vm1753_vm13, %v4546_v2, %v13800_v24 }
 0x7af   : > { %v4714_v21 = vshll.u32 %v4594_v57, 16 }
 0x7b0   : > { %4178 = vrot.lane.b32.xlu1 %v13774_v63, %s13645_s16  ;;  %v4207_v38 = vpop.permute.xlu0 %4206  ;;  %v13805_v63 = vld [vmem:[#allocation159_spill] sm:$0xff] }
 0x7b1   : > { %4210 = vrot.lane.b32.xlu2 %v13775_v4, %s13714_s23  ;;  %v4548_v47 = vsel %vm1720_vm12, %v4500_v18, %v4207_v38  ;;  %v4716_v61 = vrot.slane %v4714_v21, 1  ;;  %v4453_v4 = vsel %vm13806_vm14, %v4403_v56, %v13805_v63  ;;  %v13822_v18 = vld [vmem:[#allocation294_spill] sm:$0xff]  ;;  %vm13838_vm14 = vmmov %vm13815_vm3 }
 0x7b2   : > { %4242 = vrot.lane.b32.xlu0 %v13776_v60, %s13009_s25 }
 0x7b8   : > { %4114 = vrot.lane.b32.xlu1 %v13777_v11, %s13643_s0  ;;  %v4109_v35 = vpop.permute.xlu0 %4108 }
 0x7b9   : > { %4148 = vrot.lane.b32.xlu2 %v13778_v22, %s13049_s21 }
 0x7ba   : > { %4116 = vrot.lane.b32.xlu0 %v13780_v40, %s13643_s0  ;;  %v4712_v40 = vshrl.u32 %v4594_v57, 16 }
 0x7bc   : > { %v4717_v19 = vor.u32 %v4716_v61, %v4712_v40  ;;  %v13823_v61 = vld [vmem:[#allocation204_spill] sm:$0xff] }
 0x7bd   : > { %v4275_v63 = vsel %vm385_vm1, %v13761_v62, %v13823_v61  ;;  %v13828_v62 = vld [vmem:[#allocation44_spill] sm:$0xff] }
 0x7c0   : > { %4180 = vrot.lane.b32.xlu1 %v13781_v23, %s13645_s16  ;;  %v4177_v11 = vpop.permute.xlu0 %4176 }
 0x7c1   : > { %4150 = vrot.lane.b32.xlu2 %v13782_v5, %s13049_s21 }
 0x7c2   : > { %4212 = vrot.lane.b32.xlu0 %v13783_v25, %s13714_s23  ;;  %v13807_v25 = vld [vmem:[#allocation242_spill] sm:$0xff] }
 0x7c8   : > { %v4111_v48 = vpop.permute.xlu0 %4110 }
 0x7c9   : > { %4182 = vrot.lane.b32.xlu2 %v13784_v59, %s13645_s16  ;;  %v4501_v59 = vsel %vm1687_vm11, %v4453_v4, %v13807_v25  ;;  %v4407_v49 = vsel %vm1621_vm9, %v13816_v14, %v4111_v48  ;;  %v11414_v48 = vpop.f32.mrf.mxu2 }
 0x7ca   : > { %4244 = vrot.lane.b32.xlu0 %v13785_v1, %s13009_s25 }
 0x7d1   : > { %4246 = vrot.lane.b32.xlu2 %v13788_v29, %s13009_s25  ;;  %v13809_v29 = vld [vmem:[#allocation298_spill] sm:$0xff] }
 0x7d2   : > { %4118 = vrot.lane.b32.xlu0 %v4061_v45, %s13643_s0 }
 0x7d9   : > { %4152 = vrot.lane.b32.xlu2 %v13789_v10, %s13049_s21 }
 0x7e1   : > { %4216 = vrot.lane.b32.xlu2 %v13790_v31, %s13714_s23  ;;  %v4549_v31 = vsel %vm1720_vm12, %v4501_v59, %v13809_v29 }
 0x7e9   : > { %4122 = vrot.lane.b32.xlu2 %v13791_v37, %s13049_s21  ;;  %v4273_v37 = vsel %vm385_vm1, %v13723_v16, %v13810_v20  ;;  %s6275_s21 = sshll.u32 %s7176_s26, 4  ;;  %s6276_s21 = int_to_ptr.vmem [resolvable:$true] %s6275_s21 }
 0x7ea   : > { %v4309_v38 = vsel %vm559_vm7, %v4273_v37, %v13812_v3 }
 0x7eb   : > { %v4345_v39 = vsel %vm1588_vm8, %v4309_v38, %v13814_v58  ;;  %v13831_v58 = vld [vmem:[#allocation92_spill] sm:$0xff] }
 0x7ec   : > { %v4405_v6 = vsel %vm1621_vm9, %v4345_v39, %v4109_v35 }
 0x7f1   : > { %4218 = vrot.lane.b32.xlu2 %v13793_v26, %s13009_s25  ;;  %v13813_v26 = vld [vmem:[#allocation305_spill] sm:$0xff] }
 0x7f2   : > { %v4597_v36 = vsel %vm1753_vm13, %v4549_v31, %v13813_v26 }
 0x7f3   : > { %v4789_v23 = vpop.permute.xlu2 %4788  ;;  %v4724_v2 = vshll.u32 %v4597_v36, 16  ;;  %v4722_v7 = vshrl.u32 %v4597_v36, 16 }
 0x7f4   : > { %v4822_v0 = vsel %vm4804_vm5, %v13811_v12, %v4789_v23  ;;  %v13827_v23 = vld [vmem:[#allocation249_spill] sm:$0xff] }
 0x7f5   : > { %v4726_v57 = vrot.slane %v4724_v2, 1 }
 0x7f7   : > { %v4727_v21 = vor.u32 %v4726_v57, %v4722_v7  ;;  %v13834_v57 = vld [vmem:[#allocation191_spill] sm:$0xff] }
 0x7fa   : > { %v4787_v54 = vpop.permute.xlu1 %4786 }
 0x7fb   : > { %v4820_v34 = vsel %vm4804_vm5, %v13801_v46, %v4787_v54  ;;  %v4241_v51 = vpop.permute.xlu2 %4240  ;;  %v13817_v54 = vld [vmem:[#allocation214_spill] sm:$0xff] }
 0x7fc   : > { %6418 = vmatmul.msk.bf16.gmra.mxu2 %vm4893_vm6, %v4820_v34  ;;  %v13818_v46 = vld [vmem:[#allocation82_spill] sm:$0xff] }
 0x7fd   : > { %v4456_v35 = vsel %vm13819_vm4, %v4407_v49, %v13818_v46  ;;  %v13835_v46 = vld [vmem:[#allocation220_spill] sm:$0xff] }
 0x7fe   : > { %v4504_v41 = vsel %vm1687_vm11, %v4456_v35, %v13820_v42  ;;  %v4277_v35 = vsel %vm385_vm1, %v13835_v46, %v13834_v57  ;;  %v13837_v42 = vld [vmem:[#allocation260_spill] sm:$0xff] }
 0x802   : > { %v4239_v44 = vpop.permute.xlu1 %4238 }
 0x803   : > { %v4596_v60 = vsel %vm1753_vm13, %v4548_v47, %v4239_v44  ;;  %v4147_v13 = vpop.permute.xlu2 %4146  ;;  %v4552_v47 = vsel %vm1720_vm12, %v4504_v41, %v13822_v18 }
 0x804   : > { %v4718_v28 = vshll.u32 %v4596_v60, 16  ;;  %v13824_v60 = vld [vmem:[#allocation277_spill] sm:$0xff] }
 0x806   : > { %v4720_v1 = vrot.slane %v4718_v28, 1  ;;  %v13825_v28 = vld [vmem:[#allocation309_spill] sm:$0xff] }
 0x807   : > { %v4600_v30 = vsel %vm1753_vm13, %v4552_v47, %v13825_v28 }
 0x808   : > { %v4721_v45 = vsel %vm13808_vm2, %v4717_v19, %v4720_v1  ;;  %v4734_v1 = vshll.u32 %v4600_v30, 16  ;;  %v13829_v19 = vld [vmem:[#allocation45_spill] sm:$0xff]  ;;  %v4732_v38 = vshrl.u32 %v4600_v30, 16  ;;  %vm13845_vm2 = vmmov %vm13815_vm3 }
 0x809   : > { %4792 = vrot.lane.b32.xlu1 %v4721_v45, %s13681_s29  ;;  %vm13850_vm4 = vmmov %vm13845_vm2 }
 0x80a   : > { %v4145_v32 = vpop.permute.xlu1 %4144  ;;  %v4736_v12 = vrot.slane %v4734_v1, 1  ;;  %v13843_v1 = vld [vmem:[#allocation254_spill] sm:$0xff] }
 0x80b   : > { %v4455_v16 = vsel %vm13815_vm3, %v4405_v6, %v4145_v32  ;;  %v4211_v31 = vpop.permute.xlu2 %4210  ;;  %v13833_v6 = vld [vmem:[#allocation81_spill] sm:$0xff]  ;;  %vm13849_vm3 = vmmov %vm13845_vm2 }
 0x80c   : > { %6419 = vmatmul.msk.bf16.gmra.mxu2 %vm4893_vm6, %v4822_v0  ;;  %v4503_v43 = vsel %vm1687_vm11, %v4455_v16, %v4177_v11  ;;  %v4311_v11 = vsel %vm559_vm7, %v4275_v63, %v13824_v60  ;;  %v4737_v36 = vor.u32 %v4736_v12, %v4732_v38  ;;  %v13840_v63 = vld [vmem:[#allocation93_spill] sm:$0xff] }
 0x80d   : > { %v4347_v25 = vsel %vm1588_vm8, %v4311_v11, %v13827_v23  ;;  %v13841_v11 = vld [vmem:[#allocation251_spill] sm:$0xff] }
 0x811   : > { %4214 = vrot.lane.b32.xlu1 %v13817_v54, %s13714_s23 }
 0x812   : > { %v4209_v52 = vpop.permute.xlu1 %4208 }
 0x813   : > { %v4551_v24 = vsel %vm1720_vm12, %v4503_v43, %v4209_v52  ;;  %v4149_v14 = vpop.permute.xlu2 %4148 }
 0x814   : > { %v4599_v34 = vsel %vm1753_vm13, %v4551_v24, %v4241_v51  ;;  %v11416_v51 = vpop.f32.mrf.mxu2 }
 0x815   : > { %v4728_v53 = vshll.u32 %v4599_v34, 16  ;;  %v13836_v34 = vld [vmem:[#allocation229_spill] sm:$0xff] }
 0x817   : > { %v4730_v17 = vrot.slane %v4728_v53, 1  ;;  %v4313_v53 = vsel %vm559_vm7, %v4277_v35, %v13836_v34  ;;  %v13851_v34 = vld [vmem:[#allocation178_spill] sm:$0xff] }
 0x818   : > { %v4349_v41 = vsel %vm1588_vm8, %v4313_v53, %v13837_v42 }
 0x819   : > { %4120 = vrot.lane.b32.xlu1 %v4060_v55, %s13643_s0  ;;  %v4731_v56 = vsel %vm13821_vm10, %v4727_v21, %v4730_v17  ;;  %v13826_v55 = vld [vmem:[#allocation265_spill] sm:$0xff]  ;;  %vm13852_vm10 = vcmask 1040384  }
 0x81a   : > { %4794 = vrot.lane.b32.xlu0 %v4731_v56, %s13681_s29  ;;  %v4113_v44 = vpop.permute.xlu1 %4112 }
 0x81b   : > { %v4409_v59 = vsel %vm1621_vm9, %v4347_v25, %v4113_v44  ;;  %v4151_v52 = vpop.permute.xlu2 %4150  ;;  %v13839_v44 = vld [vmem:[#allocation261_spill] sm:$0xff] }
 0x81c   : > { %v4791_v4 = vpop.permute.xlu0 %4790  ;;  %v4458_v45 = vsel %vm13830_vm15, %v4409_v59, %v4147_v13  ;;  %v11418_v16 = vpop.f32.mrf.mxu2  ;;  %v4279_v61 = vsel %vm385_vm1, %v13772_v15, %v13839_v44  ;;  %vm13853_vm15 = vmmov %vm13852_vm10 }
 0x81d   : > { %v4824_v40 = vsel %vm4804_vm5, %v13826_v55, %v4791_v4  ;;  %v4315_v4 = vsel %vm559_vm7, %v4279_v61, %v13840_v63 }
 0x81e   : > { %6420 = vmatmul.msk.bf16.gmra.mxu2 %vm4893_vm6, %v4824_v40  ;;  %v4351_v28 = vsel %vm1588_vm8, %v4315_v4, %v13841_v11  ;;  %v13842_v40 = vld [vmem:[#allocation160_spill] sm:$0xff] }
 0x821   : > { %4184 = vrot.lane.b32.xlu1 %v13828_v62, %s13645_s16  ;;  %v4281_v62 = vsel %vm385_vm1, %v13778_v22, %v13843_v1 }
 0x822   : > { %4248 = vrot.lane.b32.xlu0 %v13829_v19, %s13009_s25  ;;  %v4179_v29 = vpop.permute.xlu1 %4178 }
 0x823   : > { %v4506_v32 = vsel %vm1687_vm11, %v4458_v45, %v4179_v29  ;;  %v4183_v21 = vpop.permute.xlu2 %4182  ;;  %v13844_v45 = vld [vmem:[#allocation248_spill] sm:$0xff] }
 0x824   : > { %v4243_v20 = vpop.permute.xlu0 %4242  ;;  %v4554_v37 = vsel %vm1720_vm12, %v4506_v32, %v4211_v31  ;;  %v11420_v2 = vpop.f32.mrf.mxu2  ;;  %v4317_v29 = vsel %vm559_vm7, %v4281_v62, %v13844_v45  ;;  %v13859_v62 = vld [vmem:[#allocation131_spill] sm:$0xff]  ;;  %v13860_v45 = vld [vmem:[#allocation297_spill] sm:$0xff] }
 0x825   : > { %v4602_v0 = vsel %vm1753_vm13, %v4554_v37, %v4243_v20  ;;  %v13846_v20 = vld [vmem:[#allocation117_spill] sm:$0xff] }
 0x826   : > { %v4738_v3 = vshll.u32 %v4602_v0, 16  ;;  %v4353_v37 = vsel %vm1588_vm8, %v4317_v29, %v13846_v20  ;;  %v13847_v0 = vld [vmem:[#allocation65_spill] sm:$0xff] }
 0x828   : > { %v4740_v26 = vrot.slane %v4738_v3, 1 }
 0x82a   : > { %4154 = vrot.lane.b32.xlu0 %v13831_v58, %s13645_s16  ;;  %v4741_v39 = vsel %vm13832_vm0, %v4737_v36, %v4740_v26  ;;  %v4115_v54 = vpop.permute.xlu1 %4114  ;;  %v6782_v58 = vmov -inf  }
 0x82b   : > { %4796 = vrot.lane.b32.xlu1 %v4741_v39, %s13681_s29  ;;  %v4411_v13 = vsel %vm1621_vm9, %v4349_v41, %v4115_v54  ;;  %v4247_v15 = vpop.permute.xlu2 %4246  ;;  %v11464_v39 = vrot.slane %v6782_v58, 7 }
 0x82c   : > { %v4117_v49 = vpop.permute.xlu0 %4116  ;;  %v11422_v43 = vpop.f32.mrf.mxu2  ;;  %v4460_v18 = vsel %vm13838_vm14, %v4411_v13, %v4149_v14  ;;  %vm13864_vm14 = vcmask 1046528  }
 0x82d   : > { %v4413_v25 = vsel %vm1621_vm9, %v4351_v28, %v4117_v49  ;;  %v11479_v41 = vsel %vm13852_vm10, -inf, %v11464_v39  ;;  %v5444_v63 = vrot.slane %v11464_v39, 1  ;;  %v5589_v4 = vrot.slane %v11464_v39, 2  ;;  %v13855_v28 = vld [vmem:[#allocation144_spill] sm:$0xff]  ;;  %vm13867_vm10 = vmmov %vm13850_vm4 }
 0x82e   : > { %v4462_v31 = vsel %vm13845_vm2, %v4413_v25, %v4151_v52  ;;  %v5443_v61 = vrot.slane %v11479_v41, 1  ;;  %v13857_v25 = vld [vmem:[#allocation222_spill] sm:$0xff]  ;;  %vm13865_vm2 = vmmov %vm13864_vm14 }
 0x82f   : > { %v4510_v38 = vsel %vm1687_vm11, %v4462_v31, %v4183_v21  ;;  %v5361_v21 = vsel %vm13853_vm15, %v11464_v39, -inf  ;;  %vm13868_vm15 = vmmov %vm13850_vm4 }
 0x830   : > { %v5446_v11 = vrot.slane %v5361_v21, 1  ;;  %v5591_v31 = vrot.slane %v5361_v21, 2 }
 0x832   : > { %v4181_v7 = vpop.permute.xlu1 %4180 }
 0x833   : > { %4186 = vrot.lane.b32.xlu1 %v13833_v6, %s13714_s23  ;;  %v4508_v47 = vsel %vm1687_vm11, %v4460_v18, %v4181_v7  ;;  %v13848_v6 = vld [vmem:[#allocation186_spill] sm:$0xff]  ;;  %v4153_v46 = vpop.permute.xlu2 %4152 }
 0x834   : > { %v4213_v24 = vpop.permute.xlu0 %4212  ;;  %v11431_v17 = vpop.f32.mrf.mxu2 }
 0x835   : > { %v4556_v55 = vsel %vm1720_vm12, %v4508_v47, %v4213_v24 }
 0x83c   : > { %v4245_v56 = vpop.permute.xlu0 %4244  ;;  %v11443_v30 = vpop.f32.mrf.mxu2 }
 0x83d   : > { %v4604_v59 = vsel %vm1753_vm13, %v4556_v55, %v4245_v56  ;;  %v13854_v56 = vld [vmem:[#allocation283_spill] sm:$0xff]  ;;  %v4283_v55 = vsel %vm385_vm1, %v13782_v5, %v13855_v28 }
 0x83e   : > { %v4744_v32 = vshll.u32 %v4604_v59, 16  ;;  %v4742_v24 = vshrl.u32 %v4604_v59, 16 }
 0x840   : > { %v4746_v36 = vrot.slane %v4744_v32, 1  ;;  %v13861_v32 = vld [vmem:[#allocation181_spill] sm:$0xff] }
 0x842   : > { %v4747_v35 = vor.u32 %v4746_v36, %v4742_v24 }
 0x844   : > { %v4119_v19 = vpop.permute.xlu0 %4118  ;;  %v11471_v52 = vpop.f32.mrf.mxu2 }
 0x845   : > { %v4415_v12 = vsel %vm1621_vm9, %v4353_v37, %v4119_v19  ;;  %v4418_v3 = vsel %vm1621_vm9, %v13847_v0, %v4119_v19  ;;  %v13862_v37 = vld [vmem:[#allocation245_spill] sm:$0xff] }
 0x846   : > { %v4463_v14 = vsel %vm13849_vm3, %v4415_v12, %v13848_v6  ;;  %v4466_v49 = vsel %vm13850_vm4, %v4418_v3, %v13848_v6  ;;  %v6690_v0 = vld [vmem:[%s6891_s27] sm:$0xff]  ;;  %v11524_v6 = vsel %vm13864_vm14, %v5443_v61, %v5444_v63  ;;  %vm13866_vm3 = vcmask 1045504  }
 0x847   : > { %v4511_v53 = vsel %vm1687_vm11, %v4463_v14, %v13851_v34  ;;  %v4514_v7 = vsel %vm1687_vm11, %v4466_v49, %v13851_v34  ;;  %v5378_v3 = vmax.f32 %v6690_v0, %v11479_v41  ;;  %vm13872_vm14 = vcmask 1040384  }
 0x848   : > { %v4559_v18 = vsel %vm1720_vm12, %v4511_v53, %v13854_v56  ;;  %v4562_v47 = vsel %vm1720_vm12, %v4514_v7, %v13854_v56 }
 0x849   : > { %v4607_v29 = vsel %vm1753_vm13, %v4559_v18, %v13860_v45  ;;  %v4610_v5 = vsel %vm1753_vm13, %v4562_v47, %v13860_v45  ;;  %v5555_v21 = vmax.f32 %v5378_v3, %v11524_v6 }
 0x84a   : > { %v4764_v14 = vshll.u32 %v4610_v5, 16  ;;  %v4754_v49 = vshll.u32 %v4607_v29, 16 }
 0x84c   : > { %v11519_v36 = vpop.f32.mrf.mxu2 }
 0x87b   : > { %v4793_v60 = vpop.permute.xlu1 %4792 }
 0x87c   : > { %v4826_v23 = vsel %vm4804_vm5, %v13842_v40, %v4793_v60  ;;  %v13856_v40 = vld [vmem:[#allocation83_spill] sm:$0xff] }
 0x87d   : > { %6421 = vmatmul.msk.bf16.gmra.mxu2 %vm4893_vm6, %v4826_v23  ;;  %v4285_v23 = vsel %vm385_vm1, %v13789_v10, %v13856_v40  ;;  %v5588_v10 = vrot.slane %v11479_v41, 2  ;;  %v4762_v40 = vshrl.u32 %v4610_v5, 16 }
 0x87e   : > { %v4321_v19 = vsel %vm559_vm7, %v4285_v23, %v13859_v62  ;;  %v4752_v23 = vshrl.u32 %v4607_v29, 16  ;;  %v11561_v29 = vpop.f32.mrf.mxu2 }
 0x87f   : > { %v4357_v12 = vsel %vm1588_vm8, %v4321_v19, %v13862_v37 }
 0x883   : > { %v4215_v26 = vpop.permute.xlu1 %4214 }
 0x884   : > { %v4558_v22 = vsel %vm1720_vm12, %v4510_v38, %v4215_v26  ;;  %v13863_v38 = vld [vmem:[#allocation115_spill] sm:$0xff] }
 0x885   : > { %v4606_v54 = vsel %vm1753_vm13, %v4558_v22, %v4247_v15  ;;  %v13858_v15 = vld [vmem:[#allocation266_spill] sm:$0xff]  ;;  %v4359_v26 = vsel %vm1621_vm9, %v11086_v27, %v13863_v38  ;;  %v11532_v27 = vsel %vm13866_vm3, %v5588_v10, %v5589_v4 }
 0x886   : > { %v4748_v57 = vshll.u32 %v4606_v54, 16  ;;  %v4319_v1 = vsel %vm559_vm7, %v4283_v55, %v13858_v15  ;;  %v6691_v54 = vld [vmem:[%s6891_s27 + $0x8] sm:$0xff]  ;;  %v4420_v34 = vsel %vm13850_vm4, %v4359_v26, %v13687_v50  ;;  %v4766_v50 = vrot.slane %v4764_v14, 1 }
 0x887   : > { %v4355_v20 = vsel %vm1588_vm8, %v4319_v1, %v13861_v32  ;;  %v5379_v24 = vmax.f32 %v6691_v54, %v11464_v39  ;;  %v5700_v10 = vmax.f32 %v5555_v21, %v11532_v27  ;;  %v13874_v32 = vld [vmem:[#allocation73_spill] sm:$0xff] }
 0x888   : > { %v4750_v42 = vrot.slane %v4748_v57, 1  ;;  %v11529_v57 = vsel %vm13865_vm2, %v5444_v63, %v5446_v11  ;;  %v4756_v63 = vrot.slane %v4754_v49, 1  ;;  %v4767_v19 = vor.u32 %v4766_v50, %v4762_v40  ;;  %v5924_v54 = vld [vmem:[%s12350_s7] sm:$0x3]  ;;  %v13886_v50 = vld [vmem:[#allocation7_spill] sm:$0xff] }
 0x889   : > { %vm13876_vm2 = vsmask.f32 7424 }
 0x88a   : > { %v4751_v13 = vsel %vm13832_vm0, %v4747_v35, %v4750_v42  ;;  %v4217_v35 = vpop.permute.xlu2 %4216  ;;  %vm13869_vm0 = vmmov %vm13866_vm3  ;;  %v4757_v45 = vor.u32 %v4756_v63, %v4752_v23 }
 0x88b   : > { %4798 = vrot.lane.b32.xlu0 %v4751_v13, %s13681_s29  ;;  %v4121_v44 = vpop.permute.xlu1 %4120  ;;  %v11540_v13 = vsel %vm13869_vm0, %v5589_v4, %v5591_v31  ;;  %v13873_v31 = vld [vmem:[#allocation259_spill] sm:$0xff]  ;;  %vm13877_vm3 = vmmov %vm13876_vm2 }
 0x88c   : > { %v4795_v60 = vpop.permute.xlu0 %4794  ;;  %v4417_v22 = vsel %vm1621_vm9, %v4355_v20, %v4121_v44  ;;  %v4419_v58 = vsel %vm1621_vm9, %v4357_v12, %v4121_v44  ;;  %v4251_v20 = vsel %vm385_vm1, %v13874_v32, %v13873_v31  ;;  %v13875_v12 = vld [vmem:[#allocation80_spill] sm:$0xff] }
 0x88d   : > { %v4828_v59 = vsel %vm4804_vm5, %v13857_v25, %v4795_v60  ;;  %v4465_v53 = vsel %vm13867_vm10, %v4417_v22, %v4153_v46  ;;  %v4467_v7 = vsel %vm13868_vm15, %v4419_v58, %v4153_v46  ;;  %v5556_v60 = vmax.f32 %v5379_v24, %v11529_v57  ;;  %v13870_v25 = vld [vmem:[#allocation6_spill] sm:$0xff]  ;;  %v13878_v22 = vld [vmem:[#allocation257_spill] sm:$0xff]  ;;  %v13879_v24 = vld [vmem:[#allocation11_spill] sm:$0xff] }
 0x88e   : > { %6422 = vmatmul.msk.bf16.gmra.mxu2 %vm4893_vm6, %v4828_v59  ;;  %v4468_v46 = vsel %vm1687_vm11, %v4420_v34, %v13688_v9  ;;  %v13871_v59 = vrot.slane %v13870_v25, 7  ;;  %v4287_v0 = vsel %vm559_vm7, %v4251_v20, %v13875_v12  ;;  %v13880_v34 = vld [vmem:[#allocation8_spill] sm:$0xff]  ;;  %vm13882_vm7 = vcmask 1041408   ;;  %vm13891_vm10 = vmmov %vm13869_vm0 }
 0x88f   : > { %v5701_v9 = vmax.f32 %v5556_v60, %v11540_v13  ;;  %v4516_v5 = vsel %vm1720_vm12, %v4468_v46, %v13689_v33  ;;  %v4323_v58 = vsel %vm1588_vm8, %v4287_v0, %v13878_v22  ;;  %vm13884_vm8 = vcmask 1046528   ;;  %v13887_v60 = vld [vmem:[#allocation9_spill] sm:$0xff]  ;;  %vm13892_vm15 = vmmov %vm13869_vm0  ;;  %v13893_v25 = vld [vmem:[#allocation12_spill] sm:$0xff] }
 0x890   : > { %v5363_v15 = vsel %vm13872_vm14, %v13871_v59, -inf  ;;  %v4564_v33 = vsel %vm1753_vm13, %v4516_v5, %v13692_v8  ;;  %vm13885_vm4 = vmmov %vm13884_vm8  ;;  %v13888_v46 = vmax.f32 %v13887_v60, %v13879_v24  ;;  %v13894_v59 = vld [vmem:[#allocation10_spill] sm:$0xff]  ;;  %v13899_v32 = vld [vmem:[#allocation124_spill] sm:$0xff]  ;;  %vm13900_vm0 = vcmask 162816  }
 0x891   : > { %v5456_v37 = vrot.slane %v5363_v15, 1  ;;  %v5601_v26 = vrot.slane %v5363_v15, 2  ;;  %v5733_v63 = vmax.f32 %v5701_v9, %v13886_v50  ;;  %v13895_v15 = vmax.f32 %v13893_v25, %v13894_v59 }
 0x892   : > { %v4123_v14 = vpop.permute.xlu2 %4122  ;;  %v4361_v20 = vsel %vm1621_vm9, %v4323_v58, %v13899_v32  ;;  %vm13902_vm9 = vmmov %vm13872_vm14  ;;  %v13910_v32 = vld [vmem:[#allocation18_spill] sm:$0xff] }
 0x893   : > { %v4185_v42 = vpop.permute.xlu1 %4184  ;;  %vm13908_vm14 = vmmov %vm13891_vm10 }
 0x894   : > { %v4513_v56 = vsel %vm1687_vm11, %v4465_v53, %v4185_v42  ;;  %v4515_v18 = vsel %vm1687_vm11, %v4467_v7, %v4185_v42  ;;  %v4249_v47 = vpop.permute.xlu0 %4248  ;;  %v5454_v53 = vrot.slane %v13880_v34, 1  ;;  %v5598_v7 = vrot.slane %v13879_v24, 2  ;;  %v13881_v42 = vld [vmem:[#allocation155_spill] sm:$0xff] }
 0x895   : > { %v4561_v44 = vsel %vm1720_vm12, %v4513_v56, %v4217_v35  ;;  %v4563_v61 = vsel %vm1720_vm12, %v4515_v18, %v4217_v35  ;;  %v5453_v35 = vrot.slane %v13879_v24, 1  ;;  %v5978_v56 = vsel %vm13882_vm7, %v5924_v54, 0 }
 0x896   : > { %v4609_v11 = vsel %vm1753_vm13, %v4561_v44, %v4249_v47  ;;  %v4611_v4 = vsel %vm1753_vm13, %v4563_v61, %v4249_v47  ;;  %v5599_v18 = vrot.slane %v13880_v34, 2  ;;  %v13883_v47 = vld [vmem:[#allocation5_spill] sm:$0xff]  ;;  %5987 = vmatpush.bf16.msra.mxu3 %v5978_v56  ;;  %v5457_v61 = vsel %vm13885_vm4, %v5454_v53, %v5456_v37 }
 0x897   : > { %v4758_v28 = vshll.u32 %v4609_v11, 16  ;;  %v4768_v55 = vshll.u32 %v4611_v4, 16  ;;  %v5732_v8 = vmax.f32 %v5700_v10, %v13883_v47  ;;  %v5455_v44 = vsel %vm13884_vm8, %v5453_v35, %v5454_v53  ;;  %v13889_v4 = vld [vmem:[#allocation15_spill] sm:$0xff]  ;;  %vm13921_vm8 = vmmov %vm13885_vm4 }
 0x898   : > { %v5559_v11 = vmax.f32 %v13888_v46, %v5455_v44  ;;  %v5600_v40 = vsel %vm13891_vm10, %v5598_v7, %v5599_v18  ;;  %v5602_v23 = vsel %vm13892_vm15, %v5599_v18, %v5601_v26  ;;  %v4614_v37 = vshll.u32 %v4564_v33, 16 }
 0x899   : > { %v4760_v1 = vrot.slane %v4758_v28, 1  ;;  %v4770_v62 = vrot.slane %v4768_v55, 1  ;;  %v13890_v28 = vmax.f32 %v13889_v4, %v13880_v34  ;;  %v5773_v9 = vmax.f32 %v5732_v8, %v13894_v59 }
 0x89a   : > { %v5704_v12 = vmax.f32 %v5559_v11, %v5600_v40  ;;  %v4422_v54 = vsel %vm13900_vm0, %v4361_v20, %v4123_v14  ;;  %v4219_v58 = vpop.permute.xlu2 %4218  ;;  %v4616_v56 = vrot.slane %v4614_v37, 1  ;;  %v11622_v14 = vld [vmem:[%s12349_s6] ss:$0 sm:$0xff]  ;;  %v13912_v37 = vld [vmem:[#allocation19_spill] sm:$0xff]  ;;  %vm13929_vm0 = vmmov %vm13885_vm4 }
 0x89b   : > { %v4771_v3 = vsel %vm13876_vm2, %v4767_v19, %v4770_v62  ;;  %v4761_v38 = vsel %vm13877_vm3, %v4757_v45, %v4760_v1  ;;  %v5560_v55 = vmax.f32 %v13890_v28, %v5457_v61  ;;  %v5734_v1 = vmax.f32 %v13895_v15, %v13879_v24  ;;  %v13896_v62 = vld [vmem:[#allocation13_spill] sm:$0xff]  ;;  %v13897_v19 = vld [vmem:[#allocation14_spill] sm:$0xff]  ;;  %vm13915_vm3 = vmmov %vm13902_vm9 }
 0x89c   : > { %4802 = vrot.lane.b32.xlu2 %v4771_v3, %s13681_s29  ;;  %4800 = vrot.lane.b32.xlu1 %v4761_v38, %s13681_s29  ;;  %v13898_v45 = vmax.f32 %v13896_v62, %v13897_v19  ;;  %v5774_v31 = vmax.f32 %v5733_v63, %v13897_v19  ;;  %v4155_v5 = vpop.permute.xlu0 %4154  ;;  %v5805_v26 = vmax.f32 %v5773_v9, %v13879_v24  ;;  %v13901_v24 = vrot.slane %v13889_v4, 7  ;;  %vm13918_vm7 = vmmov %vm13915_vm3 }
 0x89d   : > { %v4797_v49 = vpop.permute.xlu1 %4796  ;;  %v5705_v0 = vmax.f32 %v5560_v55, %v5602_v23  ;;  %v5775_v3 = vmax.f32 %v5734_v1, %v5600_v40  ;;  %v4470_v35 = vsel %vm1687_vm11, %v4422_v54, %v4155_v5  ;;  %v4944_v28 = vadd.f32 %v11622_v14, %v11414_v48  ;;  %vm13903_vm11 = vmmov %vm13876_vm2  ;;  %v13904_v55 = vld [vmem:[#allocation17_spill] sm:$0xff] }
 0x89e   : > { %v4830_v21 = vsel %vm4804_vm5, %v13881_v42, %v4797_v49  ;;  %v5735_v10 = vmax.f32 %v13898_v45, %v13880_v34  ;;  %v5806_v22 = vmax.f32 %v5774_v31, %v13880_v34  ;;  %v11610_v49 = vpop.f32.mrf.mxu2  ;;  %v5844_v7 = vmax.f32 %v5805_v26, %v5455_v44  ;;  %vm13909_vm2 = vmmov %vm13891_vm10 }
 0x89f   : > { %6423 = vmatmul.msk.bf16.gmra.mxu2 %vm4893_vm6, %v4830_v21  ;;  %v5364_v34 = vsel %vm13902_vm9, %v13901_v24, -inf  ;;  %v4612_v44 = vshrl.u32 %v4564_v33, 16  ;;  %v5603_v33 = vrot.slane %v13904_v55, 2  ;;  %v5736_v1 = vmax.f32 %v5704_v12, %v13904_v55  ;;  %v13916_v24 = vld [vmem:[#allocation23_spill] sm:$0xff]  ;;  %vm13922_vm10 = vmmov %vm13909_vm2 }
 0x8a0   : > { %v5776_v38 = vmax.f32 %v5735_v10, %v5602_v23  ;;  %v5845_v42 = vmax.f32 %v5806_v22, %v5457_v61  ;;  %v5876_v47 = vmax.f32 %v5844_v7, %v5600_v40  ;;  %v5461_v46 = vrot.slane %v5364_v34, 1  ;;  %vm13923_vm15 = vmmov %vm13909_vm2 }
 0x8a1   : > { %v4617_v60 = vor.u32 %v4616_v56, %v4612_v44  ;;  %v5606_v11 = vrot.slane %v5364_v34, 2  ;;  %v5458_v40 = vrot.slane %v13904_v55, 1  ;;  %v5807_v48 = vmax.f32 %v5775_v3, %v13904_v55  ;;  %vm13930_vm9 = vmmov %vm13929_vm0 }
 0x8a2   : > { %v5877_v8 = vmax.f32 %v5845_v42, %v5602_v23  ;;  %v13905_v23 = vld [vmem:[#allocation16_spill] sm:$0xff]  ;;  %v13911_v20 = vmax.f32 %v13910_v32, %v13904_v55  ;;  %v4951_v56 = vadd.f32 %v11622_v14, %v11420_v2  ;;  %v13917_v34 = vrot.slane %v13916_v24, 7  ;;  %v13919_v2 = vld [vmem:[#allocation21_spill] sm:$0xff] }
 0x8a3   : > { %v5459_v25 = vrot.slane %v13905_v23, 1  ;;  %v5604_v59 = vrot.slane %v13905_v23, 2  ;;  %v5737_v62 = vmax.f32 %v5705_v0, %v13905_v23  ;;  %v5808_v19 = vmax.f32 %v5776_v38, %v13905_v23 }
 0x8a4   : > { %v5908_v61 = vpack.c.bf16 %v5877_v8, %v5876_v47  ;;  %v13913_v12 = vmax.f32 %v13912_v37, %v13905_v23  ;;  %v4959_v8 = vadd.f32 %v11622_v14, %v11443_v30  ;;  %v5608_v30 = vrot.slane %v13919_v2, 2 }
 0x8a5   : > { %v4187_v53 = vpop.permute.xlu1 %4186  ;;  %v5605_v9 = vsel %vm13908_vm14, %v5603_v33, %v5604_v59  ;;  %v5607_v31 = vsel %vm13909_vm2, %v5604_v59, %v5606_v11  ;;  %vm13941_vm14 = vmmov %vm13929_vm0 }
 0x8a6   : > { %v4518_v21 = vsel %vm1720_vm12, %v4470_v35, %v4187_v53  ;;  %6427 = vmatmul.msk.bf16.vlgmr.msra.gmra.mxu3 %vm385_vm1, %v5908_v61  ;;  %v11633_v15 = vpop.f32.mrf.mxu2  ;;  %vm13906_vm12 = vmmov %vm13885_vm4  ;;  %v5777_v26 = vmax.f32 %v5736_v1, %v5605_v9  ;;  %v5778_v3 = vmax.f32 %v5737_v62, %v5607_v31  ;;  %v5020_v53 = vmax.f32 %v4944_v28, 0.0 }
 0x8a7   : > { %v4566_v18 = vsel %vm1753_vm13, %v4518_v21, %v4219_v58  ;;  %v5460_v45 = vsel %vm13906_vm12, %v5458_v40, %v5459_v25  ;;  %vm13907_vm13 = vmmov %vm13885_vm4  ;;  %v5026_v11 = vmax.f32 %v4959_v8, 0.0  ;;  %v5463_v28 = vrot.slane %v13919_v2, 1 }
 0x8a8   : > { %v4618_v50 = vshll.u32 %v4566_v18, 16  ;;  %v5462_v10 = vsel %vm13907_vm13, %v5459_v25, %v5461_v46  ;;  %v5561_v5 = vmax.f32 %v13911_v20, %v5460_v45  ;;  %v5846_v22 = vmax.f32 %v5807_v48, %v5460_v45  ;;  %vm13936_vm12 = vmmov %vm13909_vm2 }
 0x8a9   : > { %v5562_v0 = vmax.f32 %v13913_v12, %v5462_v10  ;;  %v5847_v38 = vmax.f32 %v5808_v19, %v5462_v10  ;;  %v13914_v18 = vrot.slane %v13912_v37, 7  ;;  %v5809_v33 = vmax.f32 %v5777_v26, %v13919_v2  ;;  %v13924_v10 = vld [vmem:[#allocation22_spill] sm:$0xff]  ;;  %v13927_v26 = vld [vmem:[#allocation25_spill] sm:$0xff]  ;;  %vm13938_vm13 = vmmov %vm13915_vm3 }
 0x8aa   : > { %v4620_v63 = vrot.slane %v4618_v50, 1  ;;  %v5706_v54 = vmax.f32 %v5561_v5, %v5605_v9  ;;  %v5878_v7 = vmax.f32 %v5846_v22, %v5605_v9  ;;  %v5366_v50 = vsel %vm13918_vm7, %v13917_v34, -inf  ;;  %v13928_v22 = vld [vmem:[#allocation24_spill] sm:$0xff]  ;;  %v13933_v34 = vld [vmem:[#allocation27_spill] sm:$0xff] }
 0x8ab   : > { %v5707_v35 = vmax.f32 %v5562_v0, %v5607_v31  ;;  %v5879_v42 = vmax.f32 %v5847_v38, %v5607_v31  ;;  %v5365_v47 = vsel %vm13915_vm3, %v13914_v18, -inf  ;;  %v5616_v46 = vrot.slane %v5366_v50, 2  ;;  %vm13943_vm3 = vmmov %vm13922_vm10 }
 0x8ac   : > { %v4621_v4 = vsel %vm13903_vm11, %v4617_v60, %v4620_v63  ;;  %v5466_v44 = vrot.slane %v5365_v47, 1  ;;  %v5611_v61 = vrot.slane %v5365_v47, 2  ;;  %v5023_v63 = vmax.f32 %v4951_v56, 0.0  ;;  %v13931_v47 = vld [vmem:[#allocation26_spill] sm:$0xff]  ;;  %vm13935_vm11 = vmmov %vm13909_vm2 }
 0x8ad   : > { %4772 = vrot.lane.b32.xlu0 %v4621_v4, %s13681_s29  ;;  %v5909_v58 = vpack.c.bf16 %v5879_v42, %v5878_v7  ;;  %v5471_v60 = vrot.slane %v5366_v50, 1  ;;  %v13920_v4 = vld [vmem:[#allocation20_spill] sm:$0xff]  ;;  %v5738_v23 = vmax.f32 %v5706_v54, %v13919_v2  ;;  %v13925_v9 = vmax.f32 %v13924_v10, %v13919_v2  ;;  %vm13942_vm2 = vmmov %vm13929_vm0 }
 0x8ae   : > { %v11650_v21 = vpop.f32.mrf.mxu2  ;;  %v5464_v55 = vrot.slane %v13920_v4, 1  ;;  %v5609_v40 = vrot.slane %v13920_v4, 2  ;;  %v5739_v25 = vmax.f32 %v5707_v35, %v13920_v4  ;;  %v5810_v59 = vmax.f32 %v5778_v3, %v13920_v4  ;;  %vm13944_vm7 = vmmov %vm13943_vm3 }
 0x8af   : > { %v13926_v32 = vmax.f32 %v13916_v24, %v13920_v4  ;;  %v5468_v3 = vrot.slane %v13927_v26, 1  ;;  %v5469_v38 = vrot.slane %v13928_v22, 1  ;;  %v5614_v7 = vrot.slane %v13928_v22, 2 }
 0x8b0   : > { %v5465_v1 = vsel %vm13921_vm8, %v5463_v28, %v5464_v55  ;;  %v5467_v62 = vsel %vm13885_vm4, %v5464_v55, %v5466_v44  ;;  %v5610_v48 = vsel %vm13922_vm10, %v5608_v30, %v5609_v40  ;;  %v5612_v19 = vsel %vm13923_vm15, %v5609_v40, %v5611_v61  ;;  %vm13950_vm8 = vmmov %vm13938_vm13 }
 0x8b1   : > { %v5563_v31 = vmax.f32 %v13925_v9, %v5465_v1  ;;  %v5564_v20 = vmax.f32 %v13926_v32, %v5467_v62  ;;  %v5779_v5 = vmax.f32 %v5738_v23, %v5610_v48  ;;  %v5780_v37 = vmax.f32 %v5739_v25, %v5612_v19  ;;  %vm13953_vm4 = vmmov %vm13929_vm0 }
 0x8b2   : > { %v5848_v12 = vmax.f32 %v5809_v33, %v5465_v1  ;;  %v5849_v0 = vmax.f32 %v5810_v59, %v5467_v62  ;;  %v5470_v56 = vsel %vm13929_vm0, %v5468_v3, %v5469_v38  ;;  %v5472_v18 = vsel %vm13930_vm9, %v5469_v38, %v5471_v60  ;;  %vm13954_vm10 = vmmov %vm13929_vm0 }
 0x8b3   : > { %v5708_v54 = vmax.f32 %v5563_v31, %v5610_v48  ;;  %v5709_v35 = vmax.f32 %v5564_v20, %v5612_v19  ;;  %v13932_v8 = vmax.f32 %v13931_v47, %v13927_v26  ;;  %v13934_v50 = vmax.f32 %v13933_v34, %v13928_v22  ;;  %v13945_v47 = vld [vmem:[#allocation30_spill] sm:$0xff]  ;;  %vm13955_vm15 = vmmov %vm13943_vm3 }
 0x8b4   : > { %v5880_v42 = vmax.f32 %v5848_v12, %v5610_v48  ;;  %v5811_v60 = vmax.f32 %v5779_v5, %v13927_v26  ;;  %v5812_v40 = vmax.f32 %v5780_v37, %v13928_v22  ;;  %v4966_v23 = vadd.f32 %v11622_v14, %v11561_v29  ;;  %vm13956_vm0 = vmmov %vm13943_vm3 }
 0x8b5   : > { %5086 = vrot.lane.b32.xlu0 %v5020_v53, %s13643_s0  ;;  %v5613_v53 = vrot.slane %v13927_v26, 2  ;;  %v5565_v24 = vmax.f32 %v13932_v8, %v5470_v56  ;;  %v5566_v44 = vmax.f32 %v13934_v50, %v5472_v18  ;;  %v5740_v28 = vmax.f32 %v5708_v54, %v13927_v26  ;;  %vm13963_vm9 = vmmov %vm13950_vm8 }
 0x8b6   : > { %6428 = vmatmul.msk.bf16.gmra.mxu3 %vm385_vm1, %v5909_v58  ;;  %v11676_v45 = vpop.f32.mrf.mxu2  ;;  %v5881_v58 = vmax.f32 %v5849_v0, %v5612_v19  ;;  %v5741_v4 = vmax.f32 %v5709_v35, %v13928_v22  ;;  %v5850_v59 = vmax.f32 %v5811_v60, %v5470_v56  ;;  %v5029_v48 = vmax.f32 %v4966_v23, 0.0  ;;  %v13939_v0 = vld [vmem:[#allocation29_spill] sm:$0xff] }
 0x8b7   : > { %v5615_v61 = vsel %vm13935_vm11, %v5613_v53, %v5614_v7  ;;  %v4974_v10 = vadd.f32 %v11622_v14, %v11650_v21  ;;  %v13937_v20 = vrot.slane %v13933_v34, 7  ;;  %v5473_v26 = vrot.slane %v13939_v0, 1  ;;  %v13940_v21 = vld [vmem:[#allocation28_spill] sm:$0xff]  ;;  %v13947_v34 = vld [vmem:[#allocation31_spill] sm:$0xff]  ;;  %vm13966_vm11 = vmmov %vm13942_vm2 }
 0x8b8   : > { %v5910_v2 = vpack.c.bf16 %v5881_v58, %v5880_v42  ;;  %v5710_v55 = vmax.f32 %v5565_v24, %v5615_v61  ;;  %v5781_v25 = vmax.f32 %v5740_v28, %v5615_v61  ;;  %v5882_v1 = vmax.f32 %v5850_v59, %v5615_v61 }
 0x8b9   : > { %v5032_v9 = vmax.f32 %v4974_v10, 0.0  ;;  %v5367_v5 = vsel %vm13938_vm13, %v13937_v20, -inf  ;;  %v5474_v3 = vrot.slane %v13940_v21, 1  ;;  %v5618_v22 = vrot.slane %v13939_v0, 2  ;;  %vm13968_vm13 = vmmov %vm13956_vm0 }
 0x8ba   : > { %v5476_v37 = vrot.slane %v5367_v5, 1  ;;  %v5621_v12 = vrot.slane %v5367_v5, 2  ;;  %v5619_v38 = vrot.slane %v13940_v21, 2  ;;  %v5742_v54 = vmax.f32 %v5710_v55, %v13939_v0 }
 0x8bb   : > { %v5813_v53 = vmax.f32 %v5781_v25, %v13939_v0  ;;  %v5475_v42 = vsel %vm13941_vm14, %v5473_v26, %v5474_v3  ;;  %v13946_v8 = vmax.f32 %v13945_v47, %v13939_v0  ;;  %v13948_v50 = vmax.f32 %v13947_v34, %v13940_v21  ;;  %v13957_v26 = vld [vmem:[#allocation40_spill] sm:$0xff]  ;;  %vm13969_vm14 = vmmov %vm13956_vm0 }
 0x8bc   : > { %v5477_v58 = vsel %vm13942_vm2, %v5474_v3, %v5476_v37  ;;  %v5620_v56 = vsel %vm13943_vm3, %v5618_v22, %v5619_v38  ;;  %v13949_v25 = vrot.slane %v13947_v34, 7  ;;  %v13959_v22 = vld [vmem:[#allocation41_spill] sm:$0xff]  ;;  %vm13979_vm3 = vmmov %vm13953_vm4 }
 0x8bd   : > { %5092 = vrot.lane.b32.xlu0 %v5023_v63, %s13643_s0  ;;  %v5617_v63 = vsel %vm13936_vm12, %v5614_v7, %v5616_v46  ;;  %v5851_v46 = vmax.f32 %v5812_v40, %v5472_v18  ;;  %v5622_v18 = vsel %vm13944_vm7, %v5619_v38, %v5621_v12  ;;  %v5567_v24 = vmax.f32 %v13946_v8, %v5475_v42  ;;  %vm13967_vm12 = vmmov %vm13942_vm2 }
 0x8be   : > { %v5711_v30 = vmax.f32 %v5566_v44, %v5617_v63  ;;  %v5782_v33 = vmax.f32 %v5741_v4, %v5617_v63  ;;  %v5568_v44 = vmax.f32 %v13948_v50, %v5477_v58  ;;  %v5783_v61 = vmax.f32 %v5742_v54, %v5620_v56  ;;  %v13961_v50 = vld [vmem:[#allocation210_spill] sm:$0xff]  ;;  %vm13975_vm2 = vmmov %vm13950_vm8 }
 0x8bf   : > { %v5883_v62 = vmax.f32 %v5851_v46, %v5617_v63  ;;  %v5712_v4 = vmax.f32 %v5567_v24, %v5620_v56  ;;  %vm13980_vm7 = vmmov %vm13979_vm3 }
 0x8c0   : > { %v5743_v35 = vmax.f32 %v5711_v30, %v13940_v21  ;;  %v5814_v7 = vmax.f32 %v5782_v33, %v13940_v21  ;;  %v5713_v60 = vmax.f32 %v5568_v44, %v5622_v18  ;;  %v5368_v33 = vsel %vm13950_vm8, %v13949_v25, -inf  ;;  %v13965_v25 = vld [vmem:[#allocation43_spill] sm:$0xff]  ;;  %vm13981_vm8 = vmmov %vm13956_vm0 }
 0x8c1   : > { %v5911_v19 = vpack.c.bf16 %v5883_v62, %v5882_v1  ;;  %v5481_v59 = vrot.slane %v5368_v33, 1  ;;  %v5626_v46 = vrot.slane %v5368_v33, 2  ;;  %v13951_v1 = vld [vmem:[#allocation39_spill] sm:$0xff]  ;;  %v5484_v33 = vrot.slane %v13965_v25, 1 }
 0x8c2   : > { %v5784_v63 = vmax.f32 %v5743_v35, %v5622_v18  ;;  %v5853_v28 = vmax.f32 %v5814_v7, %v5477_v58  ;;  %v5478_v62 = vrot.slane %v13951_v1, 1  ;;  %v5623_v10 = vrot.slane %v13951_v1, 2 }
 0x8c3   : > { %v13958_v21 = vmax.f32 %v13957_v26, %v13951_v1 }
 0x8c4   : > { %v5885_v30 = vmax.f32 %v5853_v28, %v5622_v18 }
 0x8c5   : > { %5098 = vrot.lane.b32.xlu0 %v5026_v11, %s13643_s0  ;;  %v11705_v11 = vpop.f32.mrf.mxu2 }
 0x8c6   : > { %6429 = vmatmul.msk.bf16.gmra.mxu3 %vm385_vm1, %v5910_v2  ;;  %v5852_v2 = vmax.f32 %v5813_v53, %v5475_v42 }
 0x8c8   : > { %v5884_v55 = vmax.f32 %v5852_v2, %v5620_v56 }
 0x8ca   : > { %v5912_v40 = vpack.c.bf16 %v5885_v30, %v5884_v55  ;;  %v13964_v30 = vld [vmem:[#allocation47_spill] sm:$0xff] }
 0x8cd   : > { %5104 = vrot.lane.b32.xlu0 %v5029_v48, %s13643_s0  ;;  %v4980_v31 = vpop.f32.mrf.mxu2  ;;  %v13952_v48 = vld [vmem:[#allocation33_spill] sm:$0xff] }
 0x8ce   : > { %v4981_v29 = vadd.f32 %v11622_v14, %v4980_v31  ;;  %v5744_v31 = vmax.f32 %v5712_v4, %v13951_v1  ;;  %v5816_v20 = vmax.f32 %v5784_v63, %v13952_v48  ;;  %v13960_v38 = vmax.f32 %v13959_v22, %v13952_v48 }
 0x8d0   : > { %v5035_v32 = vmax.f32 %v4981_v29, 0.0  ;;  %v5745_v29 = vmax.f32 %v5713_v60, %v13952_v48 }
 0x8d5   : > { %5110 = vrot.lane.b32.xlu0 %v5032_v9, %s13643_s0  ;;  %v11737_v23 = vpop.f32.mrf.mxu2  ;;  %v5624_v9 = vrot.slane %v13952_v48, 2 }
 0x8d6   : > { %6430 = vmatmul.msk.bf16.gmra.mxu3 %vm385_vm1, %v5911_v19  ;;  %v5479_v19 = vrot.slane %v13952_v48, 1 }
 0x8d7   : > { %v5625_v12 = vsel %vm13955_vm15, %v5623_v10, %v5624_v9  ;;  %v5627_v0 = vsel %vm13956_vm0, %v5624_v9, %v5626_v46  ;;  %v5629_v46 = vrot.slane %v13965_v25, 2  ;;  %vm13993_vm15 = vmmov %vm13979_vm3 }
 0x8d8   : > { %v5480_v5 = vsel %vm13953_vm4, %v5478_v62, %v5479_v19  ;;  %v5482_v37 = vsel %vm13954_vm10, %v5479_v19, %v5481_v59  ;;  %v5785_v35 = vmax.f32 %v5744_v31, %v5625_v12  ;;  %v5786_v7 = vmax.f32 %v5745_v29, %v5627_v0  ;;  %vm13986_vm4 = vmmov %vm13956_vm0 }
 0x8d9   : > { %v5569_v3 = vmax.f32 %v13958_v21, %v5480_v5  ;;  %v5570_v54 = vmax.f32 %v13960_v38, %v5482_v37  ;;  %v5855_v58 = vmax.f32 %v5816_v20, %v5482_v37  ;;  %v5628_v59 = vrot.slane %v13964_v30, 2  ;;  %v13970_v20 = vld [vmem:[#allocation48_spill] sm:$0xff]  ;;  %vm13988_vm10 = vmmov %vm13975_vm2 }
 0x8da   : > { %v5817_v48 = vmax.f32 %v5785_v35, %v13964_v30  ;;  %v5818_v19 = vmax.f32 %v5786_v7, %v13965_v25 }
 0x8db   : > { %v5714_v56 = vmax.f32 %v5569_v3, %v5625_v12  ;;  %v5715_v18 = vmax.f32 %v5570_v54, %v5627_v0  ;;  %v5887_v8 = vmax.f32 %v5855_v58, %v5627_v0  ;;  %v5630_v31 = vsel %vm13968_vm13, %v5628_v59, %v5629_v46  ;;  %vm14007_vm13 = vmmov %vm13975_vm2 }
 0x8dd   : > { %5116 = vrot.lane.b32.xlu0 %v5035_v32, %s13643_s0  ;;  %v5815_v32 = vmax.f32 %v5783_v61, %v13951_v1  ;;  %v11760_v53 = vpop.f32.mrf.mxu2  ;;  %v13962_v61 = vrot.slane %v13959_v22, 7  ;;  %v5746_v1 = vmax.f32 %v5714_v56, %v13964_v30  ;;  %v5747_v62 = vmax.f32 %v5715_v18, %v13965_v25 }
 0x8df   : > { %v5854_v42 = vmax.f32 %v5815_v32, %v5480_v5  ;;  %v5369_v63 = vsel %vm13963_vm9, %v13962_v61, -inf  ;;  %v13971_v5 = vmax.f32 %v13970_v20, %v13964_v30  ;;  %v5787_v21 = vmax.f32 %v5746_v1, %v5630_v31  ;;  %v13982_v1 = vld [vmem:[#allocation52_spill] sm:$0xff] }
 0x8e0   : > { %v5486_v4 = vrot.slane %v5369_v63, 1  ;;  %v5631_v60 = vrot.slane %v5369_v63, 2  ;;  %v13978_v63 = vld [vmem:[#allocation50_spill] sm:$0xff]  ;;  %vm5178_vm9 = vcmask 195712  }
 0x8e1   : > { %v5886_v47 = vmax.f32 %v5854_v42, %v5625_v12  ;;  %v13972_v12 = vld [vmem:[#allocation49_spill] sm:$0xff] }
 0x8e2   : > { %v5487_v9 = vsel %vm13967_vm12, %v5484_v33, %v5486_v4  ;;  %v5632_v29 = vsel %vm13969_vm14, %v5629_v46, %v5631_v60  ;;  %v13973_v0 = vmax.f32 %v13972_v12, %v13965_v25  ;;  %v13974_v7 = vrot.slane %v13972_v12, 7  ;;  %vm14004_vm12 = vmmov %vm13975_vm2 }
 0x8e3   : > { %v5913_v24 = vpack.c.bf16 %v5887_v8, %v5886_v47  ;;  %v5788_v3 = vmax.f32 %v5747_v62, %v5632_v29  ;;  %v5857_v38 = vmax.f32 %v5818_v19, %v5487_v9  ;;  %v5634_v4 = vrot.slane %v13978_v63, 2  ;;  %v13984_v19 = vld [vmem:[#allocation53_spill] sm:$0xff]  ;;  %vm14010_vm14 = vmmov %vm13979_vm3 }
 0x8e4   : > { %v5572_v26 = vmax.f32 %v13973_v0, %v5487_v9  ;;  %v5370_v42 = vsel %vm13975_vm2, %v13974_v7, -inf }
 0x8e5   : > { %v5889_v56 = vmax.f32 %v5857_v38, %v5632_v29  ;;  %v5491_v47 = vrot.slane %v5370_v42, 1  ;;  %v5820_v25 = vmax.f32 %v5788_v3, %v13978_v63 }
 0x8e6   : > { %6431 = vmatmul.msk.bf16.gmra.mxu3 %vm385_vm1, %v5912_v40  ;;  %v5483_v40 = vrot.slane %v13964_v30, 1  ;;  %v5717_v35 = vmax.f32 %v5572_v26, %v5632_v29 }
 0x8e8   : > { %v5485_v10 = vsel %vm13966_vm11, %v5483_v40, %v5484_v33  ;;  %v5749_v30 = vmax.f32 %v5717_v35, %v13978_v63  ;;  %vm14001_vm11 = vmmov %vm13975_vm2 }
 0x8e9   : > { %v5571_v37 = vmax.f32 %v13971_v5, %v5485_v10  ;;  %v5856_v22 = vmax.f32 %v5817_v48, %v5485_v10  ;;  %v13985_v10 = vmax.f32 %v13984_v19, %v13978_v63  ;;  %vm14011_vm2 = vmmov %vm13979_vm3 }
 0x8eb   : > { %v5716_v54 = vmax.f32 %v5571_v37, %v5630_v31  ;;  %v5888_v58 = vmax.f32 %v5856_v22, %v5630_v31 }
 0x8ed   : > { %v5914_v18 = vpack.c.bf16 %v5889_v56, %v5888_v58 }
 0x8f6   : > { %6432 = vmatmul.msk.bf16.gmra.mxu3 %vm385_vm1, %v5913_v24  ;;  %v5636_v24 = vrot.slane %v5370_v42, 2  ;;  %v4803_v7 = vpop.permute.xlu2 %4802 }
 0x8f8   : > { %v5637_v31 = vsel %vm13986_vm4, %v5634_v4, %v5636_v24  ;;  %v13990_v24 = vld [vmem:[#allocation184_spill] sm:$0xff]  ;;  %vm14018_vm4 = vmmov %vm14011_vm2 }
 0x8f9   : > { %v5790_v20 = vmax.f32 %v5749_v30, %v5637_v31 }
 0x8fd   : > { %v4799_v34 = vpop.permute.xlu0 %4798 }
 0x8fe   : > { %v4832_v44 = vsel %vm4804_vm5, %v13961_v50, %v4799_v34  ;;  %v13976_v34 = vld [vmem:[#allocation263_spill] sm:$0xff] }
 0x8ff   : > { %6424 = vmatmul.msk.bf16.gmra.mxu2 %vm4893_vm6, %v4832_v44  ;;  %v13977_v44 = vld [vmem:[#allocation51_spill] sm:$0xff] }
 0x900   : > { %v4988_v2 = vpop.f32.mrf.mxu2  ;;  %v5488_v61 = vrot.slane %v13977_v44, 1  ;;  %v5819_v40 = vmax.f32 %v5787_v21, %v13977_v44  ;;  %v13983_v62 = vmax.f32 %v13982_v1, %v13977_v44 }
 0x901   : > { %v4989_v28 = vadd.f32 %v11622_v14, %v4988_v2  ;;  %v5489_v2 = vrot.slane %v13978_v63, 1 }
 0x903   : > { %v5038_v55 = vmax.f32 %v4989_v28, 0.0  ;;  %v5633_v28 = vrot.slane %v13977_v44, 2  ;;  %v5490_v33 = vsel %vm13979_vm3, %v5488_v61, %v5489_v2  ;;  %v5492_v59 = vsel %vm13980_vm7, %v5489_v2, %v5491_v47  ;;  %v13992_v61 = vld [vmem:[#allocation54_spill] sm:$0xff]  ;;  %vm14013_vm7 = vmmov %vm13956_vm0 }
 0x904   : > { %v5573_v48 = vmax.f32 %v13983_v62, %v5490_v33  ;;  %v5574_v9 = vmax.f32 %v13985_v10, %v5492_v59  ;;  %v5858_v5 = vmax.f32 %v5819_v40, %v5490_v33  ;;  %v5859_v37 = vmax.f32 %v5820_v25, %v5492_v59  ;;  %v13995_v59 = vld [vmem:[#allocation55_spill] sm:$0xff]  ;;  %v13997_v62 = vld [vmem:[#allocation56_spill] sm:$0xff] }
 0x905   : > { %5122 = vrot.lane.b32.xlu0 %v5038_v55, %s13643_s0  ;;  %v5748_v55 = vmax.f32 %v5716_v54, %v13977_v44  ;;  %v5635_v46 = vsel %vm13981_vm8, %v5633_v28, %v5634_v4  ;;  %v13987_v54 = vrot.slane %v13984_v19, 7  ;;  %v5494_v63 = vrot.slane %v13992_v61, 1  ;;  %vm14017_vm8 = vmmov %vm14011_vm2 }
 0x906   : > { %6433 = vmatmul.msk.bf16.gmra.mxu3 %vm385_vm1, %v5914_v18  ;;  %v5718_v12 = vmax.f32 %v5573_v48, %v5635_v46  ;;  %v5719_v0 = vmax.f32 %v5574_v9, %v5637_v31  ;;  %v5890_v26 = vmax.f32 %v5858_v5, %v5635_v46  ;;  %v5891_v21 = vmax.f32 %v5859_v37, %v5637_v31  ;;  %v13989_v18 = vld [vmem:[#allocation216_spill] sm:$0xff] }
 0x907   : > { %v5789_v29 = vmax.f32 %v5748_v55, %v5635_v46  ;;  %v5371_v35 = vsel %vm13988_vm10, %v13987_v54, -inf  ;;  %v4836_v47 = vsel %vm4804_vm5, %v13989_v18, %v4803_v7  ;;  %v5639_v28 = vrot.slane %v13992_v61, 2  ;;  %v14002_v54 = vld [vmem:[#allocation60_spill] sm:$0xff]  ;;  %v14005_v18 = vld [vmem:[#allocation59_spill] sm:$0xff]  ;;  %vm14019_vm10 = vmmov %vm13956_vm0 }
 0x908   : > { %v11783_v32 = vpop.f32.mrf.mxu2  ;;  %v5915_v3 = vpack.c.bf16 %v5891_v21, %v5890_v26  ;;  %v5496_v58 = vrot.slane %v5371_v35, 1  ;;  %v5641_v56 = vrot.slane %v5371_v35, 2  ;;  %v5751_v55 = vmax.f32 %v5719_v0, %v13992_v61 }
 0x909   : > { %v5822_v33 = vmax.f32 %v5790_v20, %v13992_v61  ;;  %v13998_v48 = vmax.f32 %v13997_v62, %v13992_v61  ;;  %v14003_v35 = vrot.slane %v14002_v54, 7 }
 0x90a   : > { %v5642_v9 = vsel %vm13956_vm0, %v5639_v28, %v5641_v56 }
 0x90b   : > { %v5792_v0 = vmax.f32 %v5751_v55, %v5642_v9  ;;  %v5373_v7 = vsel %vm14004_vm12, %v14003_v35, -inf  ;;  %v6692_v55 = vld [vmem:[%s6891_s27 + $0xc0] sm:$0xff]  ;;  %vm14025_vm12 = vmmov %vm14011_vm2 }
 0x90e   : > { %v4801_v8 = vpop.permute.xlu1 %4800 }
 0x90f   : > { %v4834_v50 = vsel %vm4804_vm5, %v13976_v34, %v4801_v8 }
 0x910   : > { %6425 = vmatmul.msk.bf16.gmra.mxu2 %vm4893_vm6, %v4834_v50  ;;  %v13991_v50 = vld [vmem:[#allocation57_spill] sm:$0xff] }
 0x911   : > { %v11802_v60 = vpop.f32.mrf.mxu2  ;;  %v5493_v44 = vrot.slane %v13991_v50, 1  ;;  %v5638_v2 = vrot.slane %v13991_v50, 2  ;;  %v5750_v4 = vmax.f32 %v5718_v12, %v13991_v50  ;;  %v5821_v30 = vmax.f32 %v5789_v29, %v13991_v50 }
 0x912   : > { %v13996_v46 = vmax.f32 %v13995_v59, %v13991_v50 }
 0x913   : > { %v5495_v40 = vsel %vm13993_vm15, %v5493_v44, %v5494_v63  ;;  %v14008_v44 = vld [vmem:[#allocation61_spill] sm:$0xff]  ;;  %vm14020_vm15 = vmmov %vm14001_vm11 }
 0x914   : > { %v5575_v1 = vmax.f32 %v13996_v46, %v5495_v40  ;;  %v5860_v29 = vmax.f32 %v5821_v30, %v5495_v40  ;;  %v5498_v61 = vrot.slane %v14008_v44, 1  ;;  %v5282_v30 = vrot.slane %v6692_v55, 7 }
 0x916   : > { %6434 = vmatmul.msk.bf16.gmra.mxu3 %vm385_vm1, %v5915_v3 }
 0x919   : > { %v4995_v22 = vpop.f32.mrf.mxu2 }
 0x91a   : > { %v4996_v38 = vadd.f32 %v11622_v14, %v4995_v22  ;;  %v14000_v22 = vrot.slane %v13997_v62, 7 }
 0x91c   : > { %v5041_v42 = vmax.f32 %v4996_v38, 0.0  ;;  %v5372_v38 = vsel %vm14001_vm11, %v14000_v22, -inf }
 0x91e   : > { %5128 = vrot.lane.b32.xlu0 %v5041_v42, %s13643_s0  ;;  %v5501_v42 = vrot.slane %v5372_v38, 1 }
 0x91f   : > { %v4773_v8 = vpop.permute.xlu0 %4772 }
 0x920   : > { %v4806_v34 = vsel %vm4804_vm5, %v13990_v24, %v4773_v8  ;;  %6426 = vmatmul.msk.bf16.gmra.mxu2 %vm4893_vm6, %v4836_v47  ;;  %vm13994_vm5 = vmmov %vm13979_vm3  ;;  %v14006_v47 = vrot.slane %v14005_v18, 7  ;;  %v5506_v24 = vrot.slane %v5373_v7, 1 }
 0x921   : > { %6411 = vmatmul.msk.bf16.vlgmr.msrb.gmra.mxu0 %vm4893_vm6, %v4806_v34  ;;  %v5497_v25 = vsel %vm13994_vm5, %v5494_v63, %v5496_v58  ;;  %vm13999_vm6 = vmmov %vm13956_vm0  ;;  %v5646_v58 = vrot.slane %v5372_v38, 2  ;;  %v5651_v34 = vrot.slane %v5373_v7, 2  ;;  %v14009_v63 = vld [vmem:[#allocation58_spill] sm:$0xff] }
 0x922   : > { %v5576_v19 = vmax.f32 %v13998_v48, %v5497_v25  ;;  %v5640_v10 = vsel %vm13999_vm6, %v5638_v2, %v5639_v28  ;;  %v5861_v5 = vmax.f32 %v5822_v33, %v5497_v25  ;;  %v5356_v8 = vsel %vm14007_vm13, -inf, %v14006_v47  ;;  %vm14012_vm3 = vmmov %vm13956_vm0 }
 0x923   : > { %v5791_v31 = vmax.f32 %v5750_v4, %v5640_v10  ;;  %v5720_v37 = vmax.f32 %v5575_v1, %v5640_v10  ;;  %v5892_v20 = vmax.f32 %v5860_v29, %v5640_v10  ;;  %v5499_v2 = vrot.slane %v14009_v63, 1  ;;  %vm14021_vm5 = vmmov %vm13956_vm0 }
 0x924   : > { %v5721_v12 = vmax.f32 %v5576_v19, %v5642_v9  ;;  %v5893_v26 = vmax.f32 %v5861_v5, %v5642_v9  ;;  %v5643_v28 = vrot.slane %v14008_v44, 2  ;;  %v5644_v4 = vrot.slane %v14009_v63, 2  ;;  %vm14022_vm6 = vmmov %vm14001_vm11 }
 0x925   : > { %v5752_v40 = vmax.f32 %v5720_v37, %v14008_v44  ;;  %v5823_v33 = vmax.f32 %v5791_v31, %v14008_v44  ;;  %v5500_v59 = vsel %vm14010_vm14, %v5498_v61, %v5499_v2  ;;  %v5502_v46 = vsel %vm14011_vm2, %v5499_v2, %v5501_v42  ;;  %vm14023_vm0 = vmmov %vm14022_vm6 }
 0x926   : > { %v5916_v3 = vpack.c.bf16 %v5893_v26, %v5892_v20  ;;  %v5753_v25 = vmax.f32 %v5721_v12, %v14009_v63  ;;  %v5645_v1 = vsel %vm14012_vm3, %v5643_v28, %v5644_v4  ;;  %v5647_v62 = vsel %vm14013_vm7, %v5644_v4, %v5646_v58  ;;  %v6693_v20 = vld [vmem:[%s6891_s27 + $0xc8] sm:$0xff]  ;;  %vm14024_vm11 = vmmov %vm14011_vm2 }
 0x927   : > { %v5087_v21 = vpop.permute.xlu0 %5086  ;;  %v14014_v48 = vmax.f32 %v14005_v18, %v14008_v44  ;;  %v14015_v10 = vmax.f32 %v14002_v54, %v14009_v63  ;;  %v5793_v29 = vmax.f32 %v5752_v40, %v5645_v1  ;;  %v5824_v31 = vmax.f32 %v5792_v0, %v14009_v63  ;;  %v14016_v26 = vld [vmem:[#allocation62_spill] sm:$0xff]  ;;  %vm14026_vm13 = vmmov %vm14012_vm3 }
 0x928   : > { %5181 = vst.msk [vmem:[%s7176_s26 + $0x10] sm:$0xff] %vm5178_vm9, %v5087_v21  ;;  %6435 = vmatmul.msk.bf16.gmra.mxu3 %vm385_vm1, %v5916_v3  ;;  %v5794_v5 = vmax.f32 %v5753_v25, %v5647_v62  ;;  %v5862_v37 = vmax.f32 %v5823_v33, %v5500_v59  ;;  %v5402_v12 = vmax.f32 %v6692_v55, %v5356_v8  ;;  %v5503_v38 = vrot.slane %v5356_v8, 1  ;;  %vm14027_vm14 = vmmov %vm14012_vm3 }
 0x929   : > { %v11856_v56 = vpop.f32.mrf.mxu3  ;;  %v5577_v19 = vmax.f32 %v14014_v48, %v5500_v59  ;;  %v5578_v9 = vmax.f32 %v14015_v10, %v5502_v46  ;;  %v5403_v21 = vmax.f32 %v6693_v20, %v14016_v26  ;;  %v5504_v35 = vrot.slane %v14016_v26, 1  ;;  %vm14028_vm2 = vmmov %vm14023_vm0 }
 0x92a   : > { %v5863_v42 = vmax.f32 %v5824_v31, %v5502_v46  ;;  %v5894_v54 = vmax.f32 %v5862_v37, %v5645_v1  ;;  %v5648_v58 = vrot.slane %v5356_v8, 2  ;;  %v5649_v18 = vrot.slane %v14016_v26, 2  ;;  %vm14029_vm3 = vmmov %vm14023_vm0 }
 0x92b   : > { %v5722_v3 = vmax.f32 %v5577_v19, %v5645_v1  ;;  %v5723_v22 = vmax.f32 %v5578_v9, %v5647_v62  ;;  %v5283_v47 = vrot.slane %v6693_v20, 7  ;;  %v5507_v44 = vsel %vm14018_vm4, %v5504_v35, %v5506_v24  ;;  %vm14030_vm7 = vmmov %vm14023_vm0 }
 0x92c   : > { %v5895_v63 = vmax.f32 %v5863_v42, %v5647_v62  ;;  %v5580_v28 = vmax.f32 %v5403_v21, %v5507_v44  ;;  %v5650_v4 = vsel %vm14019_vm10, %v5648_v58, %v5649_v18  ;;  %v11895_v55 = vsel %vm14020_vm15, -inf, %v5282_v30  ;;  %vm14032_vm10 = vmmov %vm14021_vm5 }
 0x92d   : > { %v5754_v61 = vmax.f32 %v5722_v3, %v5356_v8  ;;  %v5652_v40 = vsel %vm14021_vm5, %v5649_v18, %v5651_v34  ;;  %v5755_v25 = vmax.f32 %v5723_v22, %v14016_v26  ;;  %v5825_v24 = vmax.f32 %v5793_v29, %v5356_v8  ;;  %vm14033_vm15 = vmmov %vm14021_vm5 }
 0x92e   : > { %v5917_v59 = vpack.c.bf16 %v5895_v63, %v5894_v54  ;;  %v5725_v1 = vmax.f32 %v5580_v28, %v5652_v40  ;;  %v5826_v19 = vmax.f32 %v5794_v5, %v14016_v26  ;;  %v5284_v62 = vsel %vm14022_vm6, %v5282_v30, %v5283_v47  ;;  %vm14036_vm5 = vmmov %vm14023_vm0 }
 0x92f   : > { %v5093_v50 = vpop.permute.xlu0 %5092  ;;  %v5795_v33 = vmax.f32 %v5754_v61, %v5650_v4  ;;  %v5796_v48 = vmax.f32 %v5755_v25, %v5652_v40  ;;  %v5374_v10 = vsel %vm14023_vm0, %v5283_v47, -inf  ;;  %v5508_v37 = vrot.slane %v11895_v55, 1  ;;  %vm14039_vm6 = vmmov %vm14018_vm4 }
 0x930   : > { %5184 = vst.msk [vmem:[%s7176_s26 + $0x28] sm:$0xff] %vm5178_vm9, %v5093_v50  ;;  %v5505_v50 = vsel %vm14017_vm8, %v5503_v38, %v5504_v35  ;;  %v5865_v31 = vmax.f32 %v5826_v19, %v5507_v44  ;;  %v5509_v34 = vrot.slane %v5284_v62, 1  ;;  %v5653_v29 = vrot.slane %v11895_v55, 2  ;;  %vm14031_vm8 = vmmov %vm14018_vm4 }
 0x931   : > { %v11886_v7 = vpop.f32.mrf.mxu3  ;;  %v5579_v2 = vmax.f32 %v5402_v12, %v5505_v50  ;;  %v5864_v9 = vmax.f32 %v5825_v24, %v5505_v50  ;;  %v5511_v12 = vrot.slane %v5374_v10, 1  ;;  %v5654_v5 = vrot.slane %v5284_v62, 2  ;;  %v6695_v24 = vld [vmem:[%s6891_s27 + $0xd0] sm:$0xff]  ;;  %vm14040_vm0 = vmmov %vm14018_vm4 }
 0x932   : > { %v5897_v8 = vmax.f32 %v5865_v31, %v5652_v40  ;;  %v5656_v30 = vrot.slane %v5374_v10, 2  ;;  %v5510_v22 = vsel %vm14024_vm11, %v5508_v37, %v5509_v34  ;;  %v5827_v35 = vmax.f32 %v5795_v33, %v11895_v55  ;;  %v6694_v40 = vld [vmem:[%s6891_s27 + $0xd8] sm:$0xff]  ;;  %vm14041_vm11 = vmmov %vm14032_vm10 }
 0x933   : > { %v5724_v46 = vmax.f32 %v5579_v2, %v5650_v4  ;;  %v5896_v21 = vmax.f32 %v5864_v9, %v5650_v4  ;;  %v5512_v38 = vsel %vm14025_vm12, %v5509_v34, %v5511_v12  ;;  %v5828_v42 = vmax.f32 %v5796_v48, %v5284_v62  ;;  %vm14042_vm12 = vmmov %vm14032_vm10 }
 0x934   : > { %v5655_v54 = vsel %vm14026_vm13, %v5653_v29, %v5654_v5  ;;  %v5657_v58 = vsel %vm14027_vm14, %v5654_v5, %v5656_v30  ;;  %v5866_v18 = vmax.f32 %v5827_v35, %v5510_v22  ;;  %v5286_v25 = vrot.slane %v6694_v40, 7  ;;  %vm14048_vm13 = vmmov %vm14028_vm2 }
 0x935   : > { %v5918_v26 = vpack.c.bf16 %v5897_v8, %v5896_v21  ;;  %v5867_v47 = vmax.f32 %v5828_v42, %v5512_v38  ;;  %v5756_v33 = vmax.f32 %v5724_v46, %v11895_v55  ;;  %v5285_v48 = vrot.slane %v6695_v24, 7  ;;  %vm14050_vm14 = vmmov %vm14028_vm2 }
 0x936   : > { %v5898_v50 = vmax.f32 %v5866_v18, %v5655_v54  ;;  %v5375_v10 = vsel %vm14028_vm2, %v5286_v25, -inf  ;;  %v5404_v21 = vmax.f32 %v6695_v24, %v11895_v55  ;;  %vm14052_vm2 = vmmov %vm14032_vm10 }
 0x937   : > { %v5099_v0 = vpop.permute.xlu0 %5098  ;;  %v5899_v44 = vmax.f32 %v5867_v47, %v5657_v58  ;;  %v5797_v9 = vmax.f32 %v5756_v33, %v5655_v54  ;;  %v5287_v37 = vsel %vm14029_vm3, %v5285_v48, %v5286_v25  ;;  %v5358_v34 = vsel %vm14030_vm7, -inf, %v5285_v48  ;;  %vm14053_vm3 = vmmov %vm14052_vm2 }
 0x938   : > { %5187 = vst.msk [vmem:[%s7176_s26 + $0x40] sm:$0xff] %vm5178_vm9, %v5099_v0  ;;  %6436 = vmatmul.msk.bf16.gmra.mxu3 %vm385_vm1, %v5917_v59  ;;  %v5757_v59 = vmax.f32 %v5725_v1, %v5284_v62  ;;  %v5516_v12 = vrot.slane %v5375_v10, 1  ;;  %v5661_v46 = vrot.slane %v5375_v10, 2  ;;  %v5513_v29 = vrot.slane %v5358_v34, 1  ;;  %vm14054_vm7 = vmmov %vm14040_vm0 }
 0x939   : > { %v11903_v20 = vpop.f32.mrf.mxu3  ;;  %v5919_v63 = vpack.c.bf16 %v5899_v44, %v5898_v50  ;;  %v5829_v1 = vmax.f32 %v5797_v9, %v5358_v34  ;;  %v5514_v5 = vrot.slane %v5287_v37, 1  ;;  %v5658_v30 = vrot.slane %v5358_v34, 2 }
 0x93a   : > { %v5798_v31 = vmax.f32 %v5757_v59, %v5657_v58  ;;  %v5581_v42 = vmax.f32 %v5404_v21, %v5510_v22 }
 0x93b   : > { %v5515_v47 = vsel %vm14031_vm8, %v5513_v29, %v5514_v5  ;;  %v5517_v50 = vsel %vm14018_vm4, %v5514_v5, %v5516_v12  ;;  %v11944_v12 = vpop.f32.mrf.mxu2  ;;  %vm14055_vm8 = vmmov %vm14040_vm0 }
 0x93c   : > { %v5830_v8 = vmax.f32 %v5798_v31, %v5287_v37  ;;  %v5868_v44 = vmax.f32 %v5829_v1, %v5515_v47  ;;  %v5726_v33 = vmax.f32 %v5581_v42, %v5655_v54 }
 0x93f   : > { %v5105_v3 = vpop.permute.xlu0 %5104 }
 0x940   : > { %5190 = vst.msk [vmem:[%s7176_s26 + $0x58] sm:$0xff] %vm5178_vm9, %v5105_v3  ;;  %v5405_v3 = vmax.f32 %v6694_v40, %v5284_v62  ;;  %v6697_v40 = vld [vmem:[%s6891_s27 + $0xe8] sm:$0xff] }
 0x941   : > { %v11914_v0 = vpop.f32.mrf.mxu3  ;;  %v5407_v25 = vmax.f32 %v6697_v40, %v5287_v37 }
 0x942   : > { %v5582_v18 = vmax.f32 %v5405_v3, %v5512_v38  ;;  %v5758_v38 = vmax.f32 %v5726_v33, %v5358_v34  ;;  %v14034_v3 = vld [vmem:[#allocation77_spill] sm:$0xff] }
 0x943   : > { %v5584_v31 = vmax.f32 %v5407_v25, %v5517_v50 }
 0x944   : > { %v5727_v59 = vmax.f32 %v5582_v18, %v5657_v58 }
 0x946   : > { %v5759_v10 = vmax.f32 %v5727_v59, %v5287_v37  ;;  %v14043_v59 = vld [vmem:[#allocation85_spill] sm:$0xff] }
 0x947   : > { %v5111_v61 = vpop.permute.xlu0 %5110 }
 0x948   : > { %5193 = vst.msk [vmem:[%s7176_s26 + $0x70] sm:$0xff] %vm5178_vm9, %v5111_v61  ;;  %6437 = vmatmul.msk.bf16.gmra.mxu3 %vm385_vm1, %v5918_v26  ;;  %v5659_v26 = vrot.slane %v5287_v37, 2  ;;  %v5869_v61 = vmax.f32 %v5830_v8, %v5517_v50  ;;  %v14037_v37 = vld [vmem:[#allocation87_spill] sm:$0xff] }
 0x949   : > { %v11918_v2 = vpop.f32.mrf.mxu3  ;;  %v5663_v18 = vrot.slane %v14037_v37, 2 }
 0x94a   : > { %v5660_v55 = vsel %vm14032_vm10, %v5658_v30, %v5659_v26  ;;  %v5662_v62 = vsel %vm14033_vm15, %v5659_v26, %v5661_v46  ;;  %v14035_v46 = vrot.slane %v14034_v3, 7  ;;  %v5518_v30 = vrot.slane %v14037_v37, 1  ;;  %v14038_v26 = vld [vmem:[#allocation78_spill] sm:$0xff] }
 0x94b   : > { %v5900_v24 = vmax.f32 %v5868_v44, %v5660_v55  ;;  %v5901_v48 = vmax.f32 %v5869_v61, %v5662_v62  ;;  %v5729_v58 = vmax.f32 %v5584_v31, %v5662_v62  ;;  %v5799_v8 = vmax.f32 %v5758_v38, %v5660_v55  ;;  %v11973_v31 = vpop.f32.mrf.mxu2 }
 0x94c   : > { %v5376_v1 = vsel %vm14036_vm5, %v14035_v46, -inf  ;;  %v5800_v29 = vmax.f32 %v5759_v10, %v5662_v62  ;;  %v5519_v42 = vrot.slane %v14038_v26, 1 }
 0x94d   : > { %v5920_v22 = vpack.c.bf16 %v5901_v48, %v5900_v24  ;;  %v5521_v5 = vrot.slane %v5376_v1, 1  ;;  %v5761_v61 = vmax.f32 %v5729_v58, %v14038_v26  ;;  %v14044_v24 = vmax.f32 %v14043_v59, %v14037_v37 }
 0x94f   : > { %v5117_v28 = vpop.permute.xlu0 %5116  ;;  %v5522_v40 = vsel %vm14040_vm0, %v5519_v42, %v5521_v5 }
 0x950   : > { %5196 = vst.msk [vmem:[%s7176_s26 + $0x88] sm:$0xff] %vm5178_vm9, %v5117_v28 }
 0x951   : > { %v11923_v4 = vpop.f32.mrf.mxu3 }
 0x958   : > { %6438 = vmatmul.msk.bf16.gmra.mxu3 %vm385_vm1, %v5919_v63  ;;  %v6696_v63 = vld [vmem:[%s6891_s27 + $0xe0] sm:$0xff]  ;;  %s6263_s27 = scalar_lea.sflag [#allocation3], %s14056_s22 }
 0x959   : > { %v11928_v19 = vpop.f32.mrf.mxu3  ;;  %v5406_v28 = vmax.f32 %v6696_v63, %v5358_v34  ;;  %v5666_v34 = vrot.slane %v5376_v1, 2  ;;  %v5831_v63 = vmax.f32 %v5799_v8, %v14037_v37 }
 0x95b   : > { %v5583_v9 = vmax.f32 %v5406_v28, %v5515_v47  ;;  %v5664_v47 = vrot.slane %v14038_v26, 2  ;;  %v5520_v28 = vsel %vm14039_vm6, %v5518_v30, %v5519_v42  ;;  %v14049_v30 = vrot.slane %v14043_v59, 7 }
 0x95c   : > { %v5585_v48 = vmax.f32 %v14044_v24, %v5520_v28  ;;  %v5870_v46 = vmax.f32 %v5831_v63, %v5520_v28 }
 0x95d   : > { %v5728_v54 = vmax.f32 %v5583_v9, %v5660_v55  ;;  %v5832_v55 = vmax.f32 %v5800_v29, %v14038_v26  ;;  %v5665_v25 = vsel %vm14041_vm11, %v5663_v18, %v5664_v47  ;;  %v5667_v33 = vsel %vm14042_vm12, %v5664_v47, %v5666_v34 }
 0x95e   : > { %v5802_v3 = vmax.f32 %v5761_v61, %v5667_v33  ;;  %v5902_v8 = vmax.f32 %v5870_v46, %v5665_v25 }
 0x95f   : > { %v5760_v44 = vmax.f32 %v5728_v54, %v14037_v37  ;;  %v5871_v1 = vmax.f32 %v5832_v55, %v5522_v40  ;;  %v5730_v54 = vmax.f32 %v5585_v48, %v5665_v25 }
 0x961   : > { %v11935_v35 = vpop.f32.mrf.mxu3  ;;  %v5801_v9 = vmax.f32 %v5760_v44, %v5665_v25  ;;  %v5903_v29 = vmax.f32 %v5871_v1, %v5667_v33 }
 0x963   : > { %v5921_v37 = vpack.c.bf16 %v5903_v29, %v5902_v8 }
 0x968   : > { %6439 = vmatmul.msk.bf16.gmra.mxu3 %vm385_vm1, %v5920_v22  ;;  %v14045_v22 = vld [vmem:[#allocation86_spill] sm:$0xff] }
 0x969   : > { %v11946_v21 = vpop.f32.mrf.mxu3  ;;  %v14046_v38 = vmax.f32 %v14045_v22, %v14038_v26  ;;  %v14047_v5 = vrot.slane %v14045_v22, 7  ;;  %v5360_v26 = vsel %vm14050_vm14, -inf, %v14049_v30 }
 0x96a   : > { %v5762_v47 = vmax.f32 %v5730_v54, %v5360_v26  ;;  %v5766_v61 = vrot.slane %v5360_v26, 2  ;;  %v5837_v24 = vrot.slane %v5360_v26, 1 }
 0x96b   : > { %v5586_v10 = vmax.f32 %v14046_v38, %v5522_v40  ;;  %v5377_v34 = vsel %vm14048_vm13, %v14047_v5, -inf  ;;  %v5833_v40 = vmax.f32 %v5801_v9, %v5360_v26 }
 0x96c   : > { %v5840_v42 = vrot.slane %v5377_v34, 1  ;;  %v5769_v28 = vrot.slane %v5377_v34, 2 }
 0x96d   : > { %v5731_v58 = vmax.f32 %v5586_v10, %v5667_v33 }
 0x971   : > { %v11961_v62 = vpop.f32.mrf.mxu3 }
 0x977   : > { %v5123_v50 = vpop.permute.xlu0 %5122 }
 0x978   : > { %5199 = vst.msk [vmem:[%s7176_s26 + $0xa0] sm:$0xff] %vm5178_vm9, %v5123_v50  ;;  %6440 = vmatmul.msk.bf16.gmra.mxu3 %vm385_vm1, %v5921_v37  ;;  %v14051_v50 = vld [vmem:[#allocation90_spill] sm:$0xff] }
 0x979   : > { %v11982_v18 = vpop.f32.mrf.mxu3  ;;  %v5763_v44 = vmax.f32 %v5731_v58, %v14051_v50  ;;  %v5767_v63 = vrot.slane %v14051_v50, 2  ;;  %v5834_v25 = vmax.f32 %v5802_v3, %v14051_v50  ;;  %v5838_v48 = vrot.slane %v14051_v50, 1 }
 0x97b   : > { %v5768_v59 = vsel %vm14052_vm2, %v5766_v61, %v5767_v63  ;;  %v5770_v22 = vsel %vm14053_vm3, %v5767_v63, %v5769_v28  ;;  %v5839_v1 = vsel %vm14054_vm7, %v5837_v24, %v5838_v48  ;;  %v5841_v54 = vsel %vm14055_vm8, %v5838_v48, %v5840_v42 }
 0x97c   : > { %v5803_v38 = vmax.f32 %v5762_v47, %v5768_v59  ;;  %v5804_v46 = vmax.f32 %v5763_v44, %v5770_v22  ;;  %v5872_v9 = vmax.f32 %v5833_v40, %v5839_v1  ;;  %v5873_v58 = vmax.f32 %v5834_v25, %v5841_v54 }
 0x97e   : > { %v5904_v3 = vmax.f32 %v5872_v9, %v5768_v59  ;;  %v5905_v8 = vmax.f32 %v5873_v58, %v5770_v22  ;;  %v5835_v30 = vmax.f32 %v5803_v38, %v11479_v41  ;;  %v5836_v26 = vmax.f32 %v5804_v46, %v11464_v39  ;;  %v12015_v39 = vld [vmem:[%s12351_s8] ss:$0 sm:$0xff] }
 0x97f   : > { %v4946_v59 = vadd.f32 %v11622_v14, %v11416_v51  ;;  %v5997_v46 = vadd.f32 %v12015_v39, %v11914_v0  ;;  %v12036_v51 = vld [vmem:[%s12349_s6] ss:$0 sm:$0xff]  ;;  %v6005_v58 = vadd.f32 %v12015_v39, %v11928_v19  ;;  %v6012_v19 = vadd.f32 %v12015_v39, %v11961_v62 }
 0x980   : > { %v5922_v34 = vpack.c.bf16 %v5905_v8, %v5904_v3  ;;  %v5874_v47 = vmax.f32 %v5835_v30, %v11524_v6  ;;  %v5875_v50 = vmax.f32 %v5836_v26, %v11529_v57 }
 0x981   : > { %v11994_v29 = vpop.f32.mrf.mxu3  ;;  %v5021_v38 = vmax.f32 %v4946_v59, 0.0  ;;  %v6072_v54 = vmax.f32 %v5997_v46, 0.0  ;;  %v6075_v8 = vmax.f32 %v6005_v58, 0.0  ;;  %v6078_v26 = vmax.f32 %v6012_v19, 0.0 }
 0x982   : > { %v5003_v55 = vpop.f32.mrf.mxu2  ;;  %v5906_v61 = vmax.f32 %v5874_v47, %v11532_v27  ;;  %v5907_v63 = vmax.f32 %v5875_v50, %v11540_v13  ;;  %v5990_v13 = vadd.f32 %v12015_v39, %v11856_v56  ;;  %v4954_v56 = vadd.f32 %v12036_v51, %v11422_v43 }
 0x983   : > { %v5004_v33 = vadd.f32 %v11622_v14, %v5003_v55  ;;  %v4961_v43 = vadd.f32 %v12036_v51, %v11471_v52  ;;  %v4969_v52 = vadd.f32 %v12036_v51, %v11610_v49 }
 0x984   : > { %v5923_v55 = vpack.c.bf16 %v5907_v63, %v5906_v61  ;;  %v6069_v24 = vmax.f32 %v5990_v13, 0.0  ;;  %v5024_v9 = vmax.f32 %v4954_v56, 0.0  ;;  %v4971_v63 = vadd.f32 %v12036_v51, %v11633_v15 }
 0x985   : > { %v5044_v10 = vmax.f32 %v5004_v33, 0.0  ;;  %v5030_v50 = vmax.f32 %v4969_v52, 0.0  ;;  %v4984_v15 = vadd.f32 %v12036_v51, %v11737_v23  ;;  %v4991_v23 = vadd.f32 %v12036_v51, %v11783_v32 }
 0x986   : > { %v5031_v49 = vmax.f32 %v4971_v63, 0.0  ;;  %v5001_v56 = vadd.f32 %v12036_v51, %v11973_v31  ;;  %v6002_v63 = vadd.f32 %v12015_v39, %v11923_v4  ;;  %v6015_v4 = vadd.f32 %v12015_v39, %v11982_v18 }
 0x987   : > { %5134 = vrot.lane.b32.xlu0 %v5044_v10, %s13643_s0  ;;  %v6017_v18 = vadd.f32 %v12015_v39, %v11994_v29 }
 0x988   : > { %6441 = vmatmul.msk.bf16.gmra.mxu3 %vm385_vm1, %v5922_v34 }
 0x989   : > { %v6019_v42 = vpop.f32.mrf.mxu3 }
 0x98a   : > { %v11996_v5 = vpop.f32.mrf.mxu2  ;;  %v6020_v61 = vadd.f32 %v12015_v39, %v6019_v42  ;;  %v4979_v42 = vadd.f32 %v12036_v51, %v11705_v11  ;;  %v4986_v11 = vadd.f32 %v12036_v51, %v11760_v53  ;;  %v4999_v53 = vadd.f32 %v12036_v51, %v11944_v12 }
 0x990   : > { %v5129_v37 = vpop.permute.xlu0 %5128 }
 0x991   : > { %5202 = vst.msk [vmem:[%s7176_s26 + $0xb8] sm:$0xff] %vm5178_vm9, %v5129_v37  ;;  %v12009_v28 = vpop.f32.mrf.mxu3  ;;  %v5027_v37 = vmax.f32 %v4961_v43, 0.0 }
 0x993   : > { %v12005_v44 = vpop.f32.mrf.mxu2 }
 0x994   : > { %v5009_v58 = vadd.f32 %v12036_v51, %v12005_v44 }
 0x996   : > { %v5046_v43 = vmax.f32 %v5009_v58, 0.0 }
 0x998   : > { %6442 = vmatmul.msk.bf16.gmra.mxu3 %vm385_vm1, %v5923_v55  ;;  %v6081_v55 = vmax.f32 %v6020_v61, 0.0  ;;  %vm6229_vm1 = vcmask 261312  }
 0x999   : > { %v12022_v33 = vpop.f32.mrf.mxu3 }
 0x99b   : > { %v5010_v40 = vpop.f32.mrf.mxu2 }
 0x99c   : > { %v5011_v41 = vadd.f32 %v11622_v14, %v5010_v40 }
 0x99e   : > { %v5047_v6 = vmax.f32 %v5011_v41, 0.0  ;;  %v4938_v25 = vpop.f32.mrf.mxu0 }
 0x99f   : > { %v4939_v57 = vadd.f32 %v11622_v14, %v4938_v25 }
 0x9a0   : > { %5140 = vrot.lane.b32.xlu0 %v5047_v6, %s13643_s0 }
 0x9a1   : > { %v5018_v27 = vmax.f32 %v4939_v57, 0.0  ;;  %v6026_v1 = vpop.f32.mrf.mxu3  ;;  %v5034_v57 = vmax.f32 %v4979_v42, 0.0 }
 0x9a2   : > { %v6027_v41 = vadd.f32 %v12015_v39, %v6026_v1  ;;  %v5042_v1 = vmax.f32 %v4999_v53, 0.0 }
 0x9a3   : > { %5082 = vrot.lane.b32.xlu1 %v5018_v27, %s13643_s0  ;;  %v5036_v27 = vmax.f32 %v4984_v15, 0.0 }
 0x9a6   : > { %v4940_v48 = vpop.f32.mrf.mxu0 }
 0x9a7   : > { %v4941_v22 = vadd.f32 %v11622_v14, %v4940_v48  ;;  %v4949_v14 = vadd.f32 %v12036_v51, %v11418_v16  ;;  %v4956_v16 = vadd.f32 %v12036_v51, %v11431_v17  ;;  %v4964_v17 = vadd.f32 %v12036_v51, %v11519_v36 }
 0x9a8   : > { %6133 = vrot.lane.b32.xlu0 %v6069_v24, %s13645_s16  ;;  %v4976_v36 = vadd.f32 %v12036_v51, %v11676_v45  ;;  %v6084_v45 = vmax.f32 %v6027_v41, 0.0  ;;  %v5037_v24 = vmax.f32 %v4986_v11, 0.0  ;;  %v5039_v48 = vmax.f32 %v4991_v23, 0.0 }
 0x9a9   : > { %v5019_v10 = vmax.f32 %v4941_v22, 0.0  ;;  %v5022_v0 = vmax.f32 %v4949_v14, 0.0  ;;  %v5025_v34 = vmax.f32 %v4956_v16, 0.0  ;;  %v5028_v47 = vmax.f32 %v4964_v17, 0.0 }
 0x9aa   : > { %v5033_v40 = vmax.f32 %v4976_v36, 0.0  ;;  %v6007_v36 = vadd.f32 %v12015_v39, %v11935_v35  ;;  %v6010_v41 = vadd.f32 %v12015_v39, %v11946_v21  ;;  %v6080_v11 = vmax.f32 %v6017_v18, 0.0 }
 0x9ab   : > { %5084 = vrot.lane.b32.xlu2 %v5019_v10, %s13643_s0  ;;  %5088 = vrot.lane.b32.xlu1 %v5021_v38, %s13643_s0  ;;  %v12045_v3 = vpop.f32.mrf.mxu3  ;;  %v4994_v10 = vadd.f32 %v12036_v51, %v11802_v60  ;;  %v5006_v60 = vadd.f32 %v12036_v51, %v11996_v5 }
 0x9ac   : > { %v6077_v15 = vmax.f32 %v6010_v41, 0.0 }
 0x9ad   : > { %v5040_v32 = vmax.f32 %v4994_v10, 0.0  ;;  %v5045_v12 = vmax.f32 %v5006_v60, 0.0 }
 0x9b0   : > { %6139 = vrot.lane.b32.xlu0 %v6072_v54, %s13645_s16  ;;  %v5013_v54 = vpop.f32.mrf.mxu2 }
 0x9b1   : > { %v5014_v16 = vadd.f32 %v12036_v51, %v5013_v54 }
 0x9b3   : > { %5090 = vrot.lane.b32.xlu2 %v5022_v0, %s13643_s0  ;;  %5094 = vrot.lane.b32.xlu1 %v5024_v9, %s13643_s0  ;;  %v12056_v30 = vpop.f32.mrf.mxu3  ;;  %v5043_v0 = vmax.f32 %v5001_v56, 0.0  ;;  %v5048_v31 = vmax.f32 %v5014_v16, 0.0 }
 0x9b8   : > { %6145 = vrot.lane.b32.xlu0 %v6075_v8, %s13645_s16  ;;  %v5015_v8 = vpop.f32.mrf.mxu2 }
 0x9b9   : > { %v5016_v19 = vadd.f32 %v12036_v51, %v5015_v8  ;;  %v6000_v51 = vadd.f32 %v12015_v39, %v11918_v2  ;;  %v6076_v2 = vmax.f32 %v6007_v36, 0.0 }
 0x9bb   : > { %5096 = vrot.lane.b32.xlu2 %v5025_v34, %s13643_s0  ;;  %5100 = vrot.lane.b32.xlu1 %v5027_v37, %s13643_s0  ;;  %v6034_v62 = vpop.f32.mrf.mxu3  ;;  %v5992_v37 = vadd.f32 %v12015_v39, %v11886_v7  ;;  %v5049_v52 = vmax.f32 %v5016_v19, 0.0  ;;  %v5995_v7 = vadd.f32 %v12015_v39, %v11903_v20  ;;  %v6073_v61 = vmax.f32 %v6000_v51, 0.0 }
 0x9bc   : > { %v6035_v25 = vadd.f32 %v12015_v39, %v6034_v62  ;;  %v6074_v20 = vmax.f32 %v6002_v63, 0.0 }
 0x9bd   : > { %v6070_v44 = vmax.f32 %v5992_v37, 0.0 }
 0x9be   : > { %v6087_v59 = vmax.f32 %v6035_v25, 0.0 }
 0x9c0   : > { %6151 = vrot.lane.b32.xlu0 %v6078_v26, %s13645_s16 }
 0x9c3   : > { %5102 = vrot.lane.b32.xlu2 %v5028_v47, %s13643_s0  ;;  %5106 = vrot.lane.b32.xlu1 %v5030_v50, %s13643_s0  ;;  %v12074_v6 = vpop.f32.mrf.mxu3  ;;  %v6071_v50 = vmax.f32 %v5995_v7, 0.0 }
 0x9c8   : > { %6157 = vrot.lane.b32.xlu0 %v6081_v55, %s13645_s16 }
 0x9cb   : > { %5108 = vrot.lane.b32.xlu2 %v5031_v49, %s13643_s0  ;;  %5112 = vrot.lane.b32.xlu1 %v5033_v40, %s13643_s0  ;;  %v12084_v13 = vpop.f32.mrf.mxu3 }
 0x9d0   : > { %6163 = vrot.lane.b32.xlu0 %v6084_v45, %s13645_s16  ;;  %v6079_v45 = vmax.f32 %v6015_v4, 0.0 }
 0x9d3   : > { %5114 = vrot.lane.b32.xlu2 %v5034_v57, %s13643_s0  ;;  %5118 = vrot.lane.b32.xlu1 %v5036_v27, %s13643_s0  ;;  %v6041_v22 = vpop.f32.mrf.mxu3  ;;  %v6022_v57 = vadd.f32 %v12015_v39, %v12009_v28  ;;  %v6025_v28 = vadd.f32 %v12015_v39, %v12022_v33 }
 0x9d4   : > { %v6042_v38 = vadd.f32 %v12015_v39, %v6041_v22 }
 0x9d5   : > { %v6082_v23 = vmax.f32 %v6022_v57, 0.0  ;;  %v6083_v10 = vmax.f32 %v6025_v28, 0.0 }
 0x9d6   : > { %v6090_v46 = vmax.f32 %v6042_v38, 0.0 }
 0x9d8   : > { %6169 = vrot.lane.b32.xlu0 %v6087_v59, %s13645_s16 }
 0x9db   : > { %5120 = vrot.lane.b32.xlu2 %v5037_v24, %s13643_s0  ;;  %5124 = vrot.lane.b32.xlu1 %v5039_v48, %s13643_s0  ;;  %v12101_v14 = vpop.f32.mrf.mxu3  ;;  %v6030_v48 = vadd.f32 %v12015_v39, %v12045_v3 }
 0x9dd   : > { %v6085_v53 = vmax.f32 %v6030_v48, 0.0 }
 0x9e0   : > { %6175 = vrot.lane.b32.xlu0 %v6090_v46, %s13645_s16 }
 0x9e3   : > { %5126 = vrot.lane.b32.xlu2 %v5040_v32, %s13643_s0  ;;  %5130 = vrot.lane.b32.xlu1 %v5042_v1, %s13643_s0  ;;  %v12109_v9 = vpop.f32.mrf.mxu3  ;;  %v6032_v32 = vadd.f32 %v12015_v39, %v12056_v30  ;;  %v6037_v1 = vadd.f32 %v12015_v39, %v12074_v6  ;;  %v6040_v30 = vadd.f32 %v12015_v39, %v12084_v13 }
 0x9e4   : > { %v6045_v6 = vadd.f32 %v12015_v39, %v12101_v14  ;;  %v6047_v13 = vadd.f32 %v12015_v39, %v12109_v9 }
 0x9e6   : > { %v6091_v8 = vmax.f32 %v6045_v6, 0.0  ;;  %v6092_v19 = vmax.f32 %v6047_v13, 0.0 }
 0x9eb   : > { %5132 = vrot.lane.b32.xlu2 %v5043_v0, %s13643_s0  ;;  %5136 = vrot.lane.b32.xlu1 %v5045_v12, %s13643_s0  ;;  %v6049_v34 = vpop.f32.mrf.mxu3  ;;  %v6086_v0 = vmax.f32 %v6032_v32, 0.0  ;;  %v6088_v12 = vmax.f32 %v6037_v1, 0.0 }
 0x9ec   : > { %v6050_v5 = vadd.f32 %v12015_v39, %v6049_v34 }
 0x9ee   : > { %v6093_v17 = vmax.f32 %v6050_v5, 0.0 }
 0x9f0   : > { %6181 = vrot.lane.b32.xlu0 %v6093_v17, %s13645_s16 }
 0x9f3   : > { %5142 = vrot.lane.b32.xlu1 %v5048_v31, %s13643_s0  ;;  %5138 = vrot.lane.b32.xlu2 %v5046_v43, %s13643_s0  ;;  %v12125_v47 = vpop.f32.mrf.mxu3  ;;  %v6089_v31 = vmax.f32 %v6040_v30, 0.0 }
 0x9f4   : > { %v6052_v14 = vadd.f32 %v12015_v39, %v12125_v47 }
 0x9f6   : > { %v6094_v17 = vmax.f32 %v6052_v14, 0.0 }
 0x9f9   : > { %v5135_v26 = vpop.permute.xlu0 %5134 }
 0x9fa   : > { %5205 = vst.msk [vmem:[%s7176_s26 + $0xd0] sm:$0xff] %vm5178_vm9, %v5135_v26 }
 0x9fb   : > { %6135 = vrot.lane.b32.xlu1 %v6070_v44, %s13645_s16  ;;  %5144 = vrot.lane.b32.xlu2 %v5049_v52, %s13643_s0  ;;  %v12135_v62 = vpop.f32.mrf.mxu3  ;;  %s6457_s0 = sshll.u32 %s6855_s13, 8 }
 0x9fc   : > { %v6055_v9 = vadd.f32 %v12015_v39, %v12135_v62  ;;  %s6274_s25 = scalar_lea.hbm %s12352_s9, %s6457_s0  ;;  %s6719_s0 = scalar_lea.hbm %s12352_s9, 512 }
 0x9fd   : > { %s6277_s28 = sshll.u32 %s6274_s25, 4  ;;  %s6278_s28 = int_to_ptr.hbm [resolvable:$true] %s6277_s28 }
 0x9fe   : > { %v6095_v7 = vmax.f32 %v6055_v9, 0.0  ;;  %s6713_s17 = sshra.s32 %s6278_s28, 4  ;;  %s6714_s17 = int_to_ptr.hbm [resolvable:$true] %s6713_s17 }
 0x9ff   : > { %s6715_s24 = scalar_lea.hbm %s6714_s17, 256  ;;  %p6720_p0 = scmp.lt.s32.totalorder %s6714_s17, %s12352_s9 }
 0xa00   : > { %p6716_p11 = scmp.ne.s32.totalorder %s6714_s17, %s6715_s24  ;;  %p6721_p1 = scmp.lt.s32.totalorder %s6719_s0, %s6715_s24 }
 0xa02   : > { %p6717_p12 = pnand %p6716_p11, %p6872_p5  ;;  %p6722_p2 = por %p6721_p1, %p6720_p0 }
 0xa03   : > { %6141 = vrot.lane.b32.xlu1 %v6073_v61, %s13645_s16  ;;  %6137 = vrot.lane.b32.xlu2 %v6071_v50, %s13645_s16  ;;  %v6056_v49 = vpop.f32.mrf.mxu3 }
 0xa04   : > { %v6057_v40 = vadd.f32 %v12015_v39, %v6056_v49  ;;  %p6718_p13 = pneg %p6717_p12 }
 0xa05   : > { %v5085_v55 = vpop.permute.xlu2 %5084 }
 0xa06   : > { %5180 = vst.msk [vmem:[%s7176_s26 + $0x8] sm:$0xff] %vm5178_vm9, %v5085_v55  ;;  %v6096_v42 = vmax.f32 %v6057_v40, 0.0  ;;  %p6723_p3 = pnand %p6722_p2, %p6718_p13 }
 0xa08   : > { %6187 = vrot.lane.b32.xlu0 %v6096_v42, %s13645_s16 }
 0xa0b   : > { %6147 = vrot.lane.b32.xlu1 %v6076_v2, %s13645_s16  ;;  %6143 = vrot.lane.b32.xlu2 %v6074_v20, %s13645_s16  ;;  %v12157_v21 = vpop.f32.mrf.mxu3 }
 0xa0c   : > { %v6060_v52 = vadd.f32 %v12015_v39, %v12157_v21 }
 0xa0d   : > { %v5091_v35 = vpop.permute.xlu2 %5090 }
 0xa0e   : > { %5183 = vst.msk [vmem:[%s7176_s26 + $0x20] sm:$0xff] %vm5178_vm9, %v5091_v35  ;;  %v6097_v51 = vmax.f32 %v6060_v52, 0.0 }
 0xa12   : > { %v5141_v25 = vpop.permute.xlu0 %5140 }
 0xa13   : > { %5208 = vst.msk [vmem:[%s7176_s26 + $0xe8] sm:$0xff] %vm5178_vm9, %v5141_v25  ;;  %6153 = vrot.lane.b32.xlu1 %v6079_v45, %s13645_s16  ;;  %6149 = vrot.lane.b32.xlu2 %v6077_v15, %s13645_s16  ;;  %v12171_v29 = vpop.f32.mrf.mxu3 }
 0xa14   : > { %v6062_v62 = vadd.f32 %v12015_v39, %v12171_v29 }
 0xa15   : > { %v5097_v27 = vpop.permute.xlu2 %5096  ;;  %v5083_v59 = vpop.permute.xlu1 %5082 }
 0xa16   : > { %5186 = vst.msk [vmem:[%s7176_s26 + $0x38] sm:$0xff] %vm5178_vm9, %v5097_v27  ;;  %v6098_v20 = vmax.f32 %v6062_v62, 0.0 }
 0xa17   : > { %5179 = vst.msk [vmem:[%s7176_s26] sm:$0xff] %vm5178_vm9, %v5083_v59 }
 0xa1a   : > { %v6134_v24 = vpop.permute.xlu0 %6133 }
 0xa1b   : > { %6230 = vst.msk [vmem:[%s7176_s26] sm:$0xff] %vm6229_vm1, %v6134_v24  ;;  %6159 = vrot.lane.b32.xlu1 %v6082_v23, %s13645_s16  ;;  %6155 = vrot.lane.b32.xlu2 %v6080_v11, %s13645_s16  ;;  %v6064_v33 = vpop.f32.mrf.mxu3 }
 0xa1c   : > { %v6065_v3 = vadd.f32 %v12015_v39, %v6064_v33 }
 0xa1d   : > { %v5103_v22 = vpop.permute.xlu2 %5102  ;;  %v5089_v38 = vpop.permute.xlu1 %5088 }
 0xa1e   : > { %5189 = vst.msk [vmem:[%s7176_s26 + $0x50] sm:$0xff] %vm5178_vm9, %v5103_v22  ;;  %v6099_v54 = vmax.f32 %v6065_v3, 0.0 }
 0xa1f   : > { %5182 = vst.msk [vmem:[%s7176_s26 + $0x18] sm:$0xff] %vm5178_vm9, %v5089_v38 }
 0xa20   : > { %6193 = vrot.lane.b32.xlu0 %v6099_v54, %s13645_s16 }
 0xa22   : > { %v6140_v46 = vpop.permute.xlu0 %6139 }
 0xa23   : > { %6233 = vst.msk [vmem:[%s7176_s26 + $0x18] sm:$0xff] %vm6229_vm1, %v6140_v46  ;;  %6165 = vrot.lane.b32.xlu1 %v6085_v53, %s13645_s16  ;;  %6161 = vrot.lane.b32.xlu2 %v6083_v10, %s13645_s16  ;;  %v6066_v50 = vpop.f32.mrf.mxu3 }
 0xa24   : > { %v6067_v63 = vadd.f32 %v12015_v39, %v6066_v50 }
 0xa25   : > { %v5109_v56 = vpop.permute.xlu2 %5108  ;;  %v5095_v60 = vpop.permute.xlu1 %5094 }
 0xa26   : > { %5192 = vst.msk [vmem:[%s7176_s26 + $0x68] sm:$0xff] %vm5178_vm9, %v5109_v56  ;;  %v6100_v2 = vmax.f32 %v6067_v63, 0.0 }
 0xa27   : > { %5185 = vst.msk [vmem:[%s7176_s26 + $0x30] sm:$0xff] %vm5178_vm9, %v5095_v60 }
 0xa2a   : > { %v6146_v58 = vpop.permute.xlu0 %6145 }
 0xa2b   : > { %6236 = vst.msk [vmem:[%s7176_s26 + $0x30] sm:$0xff] %vm6229_vm1, %v6146_v58  ;;  %6171 = vrot.lane.b32.xlu1 %v6088_v12, %s13645_s16  ;;  %6167 = vrot.lane.b32.xlu2 %v6086_v0, %s13645_s16 }
 0xa2d   : > { %v5115_v16 = vpop.permute.xlu2 %5114  ;;  %v5101_v43 = vpop.permute.xlu1 %5100 }
 0xa2e   : > { %5195 = vst.msk [vmem:[%s7176_s26 + $0x80] sm:$0xff] %vm5178_vm9, %v5115_v16 }
 0xa2f   : > { %5188 = vst.msk [vmem:[%s7176_s26 + $0x48] sm:$0xff] %vm5178_vm9, %v5101_v43 }
 0xa32   : > { %v6152_v34 = vpop.permute.xlu0 %6151 }
 0xa33   : > { %6239 = vst.msk [vmem:[%s7176_s26 + $0x48] sm:$0xff] %vm6229_vm1, %v6152_v34  ;;  %6177 = vrot.lane.b32.xlu1 %v6091_v8, %s13645_s16  ;;  %6173 = vrot.lane.b32.xlu2 %v6089_v31, %s13645_s16 }
 0xa35   : > { %v5121_v5 = vpop.permute.xlu2 %5120  ;;  %v5107_v37 = vpop.permute.xlu1 %5106 }
 0xa36   : > { %5198 = vst.msk [vmem:[%s7176_s26 + $0x98] sm:$0xff] %vm5178_vm9, %v5121_v5 }
 0xa37   : > { %5191 = vst.msk [vmem:[%s7176_s26 + $0x60] sm:$0xff] %vm5178_vm9, %v5107_v37 }
 0xa3a   : > { %v6158_v44 = vpop.permute.xlu0 %6157 }
 0xa3b   : > { %6242 = vst.msk [vmem:[%s7176_s26 + $0x60] sm:$0xff] %vm6229_vm1, %v6158_v44  ;;  %6183 = vrot.lane.b32.xlu1 %v6094_v17, %s13645_s16  ;;  %6179 = vrot.lane.b32.xlu2 %v6092_v19, %s13645_s16 }
 0xa3d   : > { %v5127_v26 = vpop.permute.xlu2 %5126  ;;  %v5113_v47 = vpop.permute.xlu1 %5112 }
 0xa3e   : > { %5201 = vst.msk [vmem:[%s7176_s26 + $0xb0] sm:$0xff] %vm5178_vm9, %v5127_v26 }
 0xa3f   : > { %5194 = vst.msk [vmem:[%s7176_s26 + $0x78] sm:$0xff] %vm5178_vm9, %v5113_v47 }
 0xa42   : > { %v6164_v61 = vpop.permute.xlu0 %6163 }
 0xa43   : > { %6245 = vst.msk [vmem:[%s7176_s26 + $0x78] sm:$0xff] %vm6229_vm1, %v6164_v61  ;;  %6189 = vrot.lane.b32.xlu1 %v6097_v51, %s13645_s16  ;;  %6185 = vrot.lane.b32.xlu2 %v6095_v7, %s13645_s16 }
 0xa45   : > { %v5133_v36 = vpop.permute.xlu2 %5132  ;;  %v5119_v55 = vpop.permute.xlu1 %5118 }
 0xa46   : > { %5204 = vst.msk [vmem:[%s7176_s26 + $0xc8] sm:$0xff] %vm5178_vm9, %v5133_v36 }
 0xa47   : > { %5197 = vst.msk [vmem:[%s7176_s26 + $0x90] sm:$0xff] %vm5178_vm9, %v5119_v55 }
 0xa4a   : > { %v6170_v49 = vpop.permute.xlu0 %6169 }
 0xa4b   : > { %6195 = vrot.lane.b32.xlu1 %v6100_v2, %s13645_s16  ;;  %6191 = vrot.lane.b32.xlu2 %v6098_v20, %s13645_s16  ;;  %6248 = vst.msk [vmem:[%s7176_s26 + $0x90] sm:$0xff] %vm6229_vm1, %v6170_v49 }
 0xa4d   : > { %v5139_v39 = vpop.permute.xlu2 %5138  ;;  %v5125_v40 = vpop.permute.xlu1 %5124 }
 0xa4e   : > { %5207 = vst.msk [vmem:[%s7176_s26 + $0xe0] sm:$0xff] %vm5178_vm9, %v5139_v39 }
 0xa4f   : > { %5200 = vst.msk [vmem:[%s7176_s26 + $0xa8] sm:$0xff] %vm5178_vm9, %v5125_v40 }
 0xa52   : > { %v6176_v41 = vpop.permute.xlu0 %6175 }
 0xa53   : > { %6251 = vst.msk [vmem:[%s7176_s26 + $0xa8] sm:$0xff] %vm6229_vm1, %v6176_v41 }
 0xa55   : > { %v5145_v4 = vpop.permute.xlu2 %5144  ;;  %v5131_v35 = vpop.permute.xlu1 %5130 }
 0xa56   : > { %5210 = vst.msk [vmem:[%s7176_s26 + $0xf8] sm:$0xff] %vm5178_vm9, %v5145_v4 }
 0xa57   : > { %5203 = vst.msk [vmem:[%s7176_s26 + $0xc0] sm:$0xff] %vm5178_vm9, %v5131_v35 }
 0xa5d   : > { %v6138_v42 = vpop.permute.xlu2 %6137  ;;  %v5137_v15 = vpop.permute.xlu1 %5136 }
 0xa5e   : > { %6232 = vst.msk [vmem:[%s7176_s26 + $0x10] sm:$0xff] %vm6229_vm1, %v6138_v42 }
 0xa5f   : > { %5206 = vst.msk [vmem:[%s7176_s26 + $0xd8] sm:$0xff] %vm5178_vm9, %v5137_v15 }
 0xa62   : > { %v6182_v21 = vpop.permute.xlu0 %6181 }
 0xa63   : > { %6254 = vst.msk [vmem:[%s7176_s26 + $0xc0] sm:$0xff] %vm6229_vm1, %v6182_v21 }
 0xa65   : > { %v6144_v45 = vpop.permute.xlu2 %6143  ;;  %v5143_v25 = vpop.permute.xlu1 %5142 }
 0xa66   : > { %6235 = vst.msk [vmem:[%s7176_s26 + $0x28] sm:$0xff] %vm6229_vm1, %v6144_v45 }
 0xa67   : > { %5209 = vst.msk [vmem:[%s7176_s26 + $0xf0] sm:$0xff] %vm5178_vm9, %v5143_v25 }
 0xa6d   : > { %v6150_v18 = vpop.permute.xlu2 %6149  ;;  %v6136_v57 = vpop.permute.xlu1 %6135 }
 0xa6e   : > { %6238 = vst.msk [vmem:[%s7176_s26 + $0x40] sm:$0xff] %vm6229_vm1, %v6150_v18 }
 0xa6f   : > { %6231 = vst.msk [vmem:[%s7176_s26 + $0x8] sm:$0xff] %vm6229_vm1, %v6136_v57 }
 0xa75   : > { %v6156_v27 = vpop.permute.xlu2 %6155  ;;  %v6142_v59 = vpop.permute.xlu1 %6141 }
 0xa76   : > { %6241 = vst.msk [vmem:[%s7176_s26 + $0x58] sm:$0xff] %vm6229_vm1, %v6156_v27 }
 0xa77   : > { %6234 = vst.msk [vmem:[%s7176_s26 + $0x20] sm:$0xff] %vm6229_vm1, %v6142_v59 }
 0xa7a   : > { %v6188_v24 = vpop.permute.xlu0 %6187 }
 0xa7b   : > { %6257 = vst.msk [vmem:[%s7176_s26 + $0xd8] sm:$0xff] %vm6229_vm1, %v6188_v24 }
 0xa7d   : > { %v6162_v11 = vpop.permute.xlu2 %6161  ;;  %v6148_v23 = vpop.permute.xlu1 %6147 }
 0xa7e   : > { %6244 = vst.msk [vmem:[%s7176_s26 + $0x70] sm:$0xff] %vm6229_vm1, %v6162_v11 }
 0xa7f   : > { %6237 = vst.msk [vmem:[%s7176_s26 + $0x38] sm:$0xff] %vm6229_vm1, %v6148_v23 }
 0xa85   : > { %v6168_v29 = vpop.permute.xlu2 %6167  ;;  %v6154_v28 = vpop.permute.xlu1 %6153 }
 0xa86   : > { %6247 = vst.msk [vmem:[%s7176_s26 + $0x88] sm:$0xff] %vm6229_vm1, %v6168_v29 }
 0xa87   : > { %6240 = vst.msk [vmem:[%s7176_s26 + $0x50] sm:$0xff] %vm6229_vm1, %v6154_v28 }
 0xa8d   : > { %v6174_v48 = vpop.permute.xlu2 %6173  ;;  %v6160_v22 = vpop.permute.xlu1 %6159 }
 0xa8e   : > { %6250 = vst.msk [vmem:[%s7176_s26 + $0xa0] sm:$0xff] %vm6229_vm1, %v6174_v48 }
 0xa8f   : > { %6243 = vst.msk [vmem:[%s7176_s26 + $0x68] sm:$0xff] %vm6229_vm1, %v6160_v22 }
 0xa92   : > { %v6194_v53 = vpop.permute.xlu0 %6193 }
 0xa93   : > { %6260 = vst.msk [vmem:[%s7176_s26 + $0xf0] sm:$0xff] %vm6229_vm1, %v6194_v53 }
 0xa95   : > { %v6180_v38 = vpop.permute.xlu2 %6179  ;;  %v6166_v10 = vpop.permute.xlu1 %6165 }
 0xa96   : > { %6253 = vst.msk [vmem:[%s7176_s26 + $0xb8] sm:$0xff] %vm6229_vm1, %v6180_v38 }
 0xa97   : > { %6246 = vst.msk [vmem:[%s7176_s26 + $0x80] sm:$0xff] %vm6229_vm1, %v6166_v10 }
 0xa9d   : > { %v6186_v46 = vpop.permute.xlu2 %6185  ;;  %v6172_v33 = vpop.permute.xlu1 %6171 }
 0xa9e   : > { %6256 = vst.msk [vmem:[%s7176_s26 + $0xd0] sm:$0xff] %vm6229_vm1, %v6186_v46 }
 0xa9f   : > { %6249 = vst.msk [vmem:[%s7176_s26 + $0x98] sm:$0xff] %vm6229_vm1, %v6172_v33 }
 0xaa5   : > { %v6192_v3 = vpop.permute.xlu2 %6191  ;;  %v6178_v32 = vpop.permute.xlu1 %6177 }
 0xaa6   : > { %6259 = vst.msk [vmem:[%s7176_s26 + $0xe8] sm:$0xff] %vm6229_vm1, %v6192_v3 }
 0xaa7   : > { %6252 = vst.msk [vmem:[%s7176_s26 + $0xb0] sm:$0xff] %vm6229_vm1, %v6178_v32 }
 0xaad   : > { %v6184_v1 = vpop.permute.xlu1 %6183 }
 0xaae   : > { %6255 = vst.msk [vmem:[%s7176_s26 + $0xc8] sm:$0xff] %vm6229_vm1, %v6184_v1 }
 0xab5   : > { %v6190_v56 = vpop.permute.xlu1 %6189 }
 0xab6   : > { %6258 = vst.msk [vmem:[%s7176_s26 + $0xe0] sm:$0xff] %vm6229_vm1, %v6190_v56 }
 0xabd   : > { %v6196_v60 = vpop.permute.xlu1 %6195 }
 0xabe   : > { %6261 = vst.msk [vmem:[%s7176_s26 + $0xf8] sm:$0xff] %vm6229_vm1, %v6196_v60 }
 0xabf   : > { %6726 = shalt.err (!%p6723_p3)
}
 0xac0   : > { %s6783_s26 = smov 128  }
 0xac1   : > { %6465 = dma.vmem_to_hbm [thread:$0]  (%p6872_p5), %s6276_s21, 4096, %s6278_s28, %s6263_s27, %s6783_s26, %s6783_s26, %s13016_s14  }
 0xac2 PF: > { %p6471_p4 = scmp.ge.s32.totalorder %s6761_s12, 2  ;;  %s6292_s25 = sand.u32 1, %s6749_s30  }
 0xac3   : > { %s6293_s22 = scalar_lea.sflag [#allocation3], %s6292_s25 }
 0xac4   : > { %p6468_p7 = pnand %p6471_p4, %p6876_p6 }
 0xac6   : > { %p6469_p8 = pneg %p6468_p7 }
 0xac8   : > { %6744 = dma.done.wait (%p6469_p8), %s6293_s22, 4096  }
 0xac9   : > { %6746 = vsyncadd (%p6469_p8), %s6293_s22, 4294963200  ;;  %p19_p9 = scmp.ge.s32.totalorder %s6859_s15, 4   ;;  %s14057_s30 = smov %s6753_s10 }
 0xaca   : > { %s14058_s10 = smov %s6757_s11  ;;  %s14059_s11 = smov %s6870_s18 }
 0xacb   : > { %s14060_s12 = smov %s6859_s15  ;;  %21 = sbr.rel (!%p19_p9) target bundleno = 5 (0x5), region = 91 }
 0xad0   :  { %6299 = vsyncpa [#allocation3], 1 }
 0xad1   :  { %6301 = vsyncpa [#allocation3 + $0x1], 1 }

</bundles_post_ra>
